<compile_context>
chip_gen: v6e
topology: v6e:2x2x1
jax: 0.10.0
libtpu: 0.0.40
codegen_flags: <defaults>
</compile_context>

<pallas_src>
import functools
import math

import jax
import jax.numpy as jnp
from jax.experimental import pallas as pl
from jax.experimental.pallas import tpu as pltpu

VMEM_LIMIT = 32 * 1024 * 1024  # safe on v5e (128 MiB), v6e (128 MiB), v7x (64 MiB)


# ------------------------------- helpers ----------------------------------- #

def _round_up(x, m):
    return ((x + m - 1) // m) * m


def _pick_tm(M, cap=512):
    """Row tile for the 1x1-conv matmul: large (fills MXU M dim) but small
    enough that the grid has >=2 steps when possible (v7x megacore)."""
    if M <= 8:
        return 8
    return min(cap, _round_up((M + 1) // 2, 8))


def _phase_split(x, Ho, Wo):
    """x: (N, H, W, C) -> (N, 4, Ho+1, Wo+1, C) with
    ph[n, 2*p+q, i, j, c] = x[n, 2*i+p, 2*j+q, c].
    Padded rows/cols are never read by the stride-2 kernels."""
    N, H, W, C = x.shape
    Hp, Wp = Ho + 1, Wo + 1
    x = jnp.pad(x, ((0, 0), (0, 2 * Hp - H), (0, 2 * Wp - W), (0, 0)))
    x = x.reshape(N, Hp, 2, Wp, 2, C)
    x = jnp.transpose(x, (0, 2, 4, 1, 3, 5))          # (N, 2, 2, Hp, Wp, C)
    return x.reshape(N, 4, Hp, Wp, C)


# ----------------------------- Pallas kernels ------------------------------ #

def _matmul_bias_relu_kernel(x_ref, w_ref, b_ref, o_ref):
    """One (tm, K) x (K, Cout) tile of the 1x1 conv: relu(x @ w + bias)."""
    acc = jnp.dot(x_ref[...], w_ref[...], preferred_element_type=jnp.float32)
    o_ref[...] = jnp.maximum(acc + b_ref[...], 0.0).astype(o_ref.dtype)


def _conv3x3_s1_kernel(x_ref, w_ref, b_ref, o_ref, *, Wo):
    """Stride-1 'same' 3x3 conv, one output row per grid step.
    x_ref: (1, H+2, W+2, C) padded feature map (resident per batch element)
    w_ref: (9, C, Cout) BN-scaled weights; b_ref: (1, Cout) BN bias."""
    ho = pl.program_id(1)
    cout = o_ref.shape[-1]
    acc = jnp.zeros((Wo, cout), jnp.float32)
    for di in range(3):
        for dj in range(3):
            xt = x_ref[0, ho + di, dj:dj + Wo, :]          # (Wo, C), contiguous
            acc = acc + jnp.dot(xt, w_ref[di * 3 + dj],
                                preferred_element_type=jnp.float32)
    o_ref[0, 0] = jnp.maximum(acc + b_ref[...], 0.0).astype(o_ref.dtype)


def _conv3x3_s2_kernel(ph_ref, w_ref, b_ref, o_ref, *, Wo):
    """Stride-2 valid 3x3 conv via phase decomposition, one output row per step.
    ph_ref: (1, 4, Hp, Wp, C) with ph[2p+q, i, j] = x[2i+p, 2j+q]."""
    ho = pl.program_id(1)
    cout = o_ref.shape[-1]
    acc = jnp.zeros((Wo, cout), jnp.float32)
    for di in range(3):
        p, a = di % 2, di // 2
        for dj in range(3):
            q, b = dj % 2, dj // 2
            xt = ph_ref[0, 2 * p + q, ho + a, b:b + Wo, :]  # (Wo, C), contiguous
            acc = acc + jnp.dot(xt, w_ref[di * 3 + dj],
                                preferred_element_type=jnp.float32)
    o_ref[0, 0] = jnp.maximum(acc + b_ref[...], 0.0).astype(o_ref.dtype)


def _maxpool3x3_s2_kernel(ph_ref, o_ref, *, Ho, Wo):
    """3x3 stride-2 valid maxpool via phase decomposition (one batch element)."""
    res = None
    for di in range(3):
        p, a = di % 2, di // 2
        for dj in range(3):
            q, b = dj % 2, dj // 2
            slab = ph_ref[0, 2 * p + q, a:a + Ho, b:b + Wo, :]
            res = slab if res is None else jnp.maximum(res, slab)
    o_ref[0] = res


# ------------------------------ wrappers ----------------------------------- #

def conv1x1_bn_relu(x, w_hwio, scale, bias, out_dtype=jnp.bfloat16):
    """1x1 Conv2d(no bias) + folded BN + ReLU as a row-tiled matmul. NHWC."""
    N, H, W, C = x.shape
    cout = w_hwio.shape[-1]
    M = N * H * W
    x2 = x.reshape(M, C).astype(jnp.bfloat16)
    wmat = (w_hwio.reshape(C, cout) * scale[None, :]).astype(jnp.bfloat16)
    b = bias.reshape(1, cout).astype(jnp.float32)

    tm = _pick_tm(M)
    M_pad = _round_up(M, tm)
    x2 = jnp.pad(x2, ((0, M_pad - M), (0, 0)))

    out = pl.pallas_call(
        _matmul_bias_relu_kernel,
        out_shape=jax.ShapeDtypeStruct((M_pad, cout), out_dtype),
        grid=(M_pad // tm,),
        in_specs=[
            pl.BlockSpec((tm, C), lambda i: (i, 0)),
            pl.BlockSpec((C, cout), lambda i: (0, 0)),
            pl.BlockSpec((1, cout), lambda i: (0, 0)),
        ],
        out_specs=pl.BlockSpec((tm, cout), lambda i: (i, 0)),
        compiler_params=pltpu.CompilerParams(
            dimension_semantics=("parallel",),
            vmem_limit_bytes=VMEM_LIMIT),
    )(x2, wmat, b)
    # padded rows hold relu(bias) garbage — keep this slice.
    return out[:M].reshape(N, H, W, cout)


def _prep_3x3_weights(w_hwio, scale, bias):
    cout = w_hwio.shape[-1]
    wmat = (w_hwio * scale.reshape(1, 1, 1, cout)).reshape(9, -1, cout)
    return wmat.astype(jnp.bfloat16), bias.reshape(1, cout).astype(jnp.float32)


def conv3x3_s1_same_bn_relu(x, w_hwio, scale, bias, out_dtype=jnp.bfloat16):
    """3x3 conv, stride 1, padding 'same' (=1), folded BN + ReLU. NHWC."""
    N, H, W, C = x.shape
    cout = w_hwio.shape[-1]
    xp = jnp.pad(x.astype(jnp.bfloat16), ((0, 0), (1, 1), (1, 1), (0, 0)))
    wmat, b = _prep_3x3_weights(w_hwio, scale, bias)
    Ho, Wo = H, W

    out = pl.pallas_call(
        functools.partial(_conv3x3_s1_kernel, Wo=Wo),
        out_shape=jax.ShapeDtypeStruct((N, Ho, Wo, cout), out_dtype),
        grid=(N, Ho),
        in_specs=[
            pl.BlockSpec((1, H + 2, W + 2, C), lambda n, ho: (n, 0, 0, 0)),
            pl.BlockSpec((9, C, cout), lambda n, ho: (0, 0, 0)),
            pl.BlockSpec((1, cout), lambda n, ho: (0, 0)),
        ],
        out_specs=pl.BlockSpec((1, 1, Wo, cout), lambda n, ho: (n, ho, 0, 0)),
        compiler_params=pltpu.CompilerParams(
            dimension_semantics=("parallel", "arbitrary"),
            vmem_limit_bytes=VMEM_LIMIT),
    )(xp, wmat, b)
    return out


def conv3x3_s2_bn_relu(x, w_hwio, scale, bias, out_dtype=jnp.float32):
    """3x3 conv, stride 2, padding 0 (valid), folded BN + ReLU. NHWC."""
    N, H, W, C = x.shape
    cout = w_hwio.shape[-1]
    Ho, Wo = (H - 3) // 2 + 1, (W - 3) // 2 + 1
    Hp, Wp = Ho + 1, Wo + 1
    ph = _phase_split(x.astype(jnp.bfloat16), Ho, Wo)   # (N, 4, Hp, Wp, C)
    wmat, b = _prep_3x3_weights(w_hwio, scale, bias)

    out = pl.pallas_call(
        functools.partial(_conv3x3_s2_kernel, Wo=Wo),
        out_shape=jax.ShapeDtypeStruct((N, Ho, Wo, cout), out_dtype),
        grid=(N, Ho),
        in_specs=[
            pl.BlockSpec((1, 4, Hp, Wp, C), lambda n, ho: (n, 0, 0, 0, 0)),
            pl.BlockSpec((9, C, cout), lambda n, ho: (0, 0, 0)),
            pl.BlockSpec((1, cout), lambda n, ho: (0, 0)),
        ],
        out_specs=pl.BlockSpec((1, 1, Wo, cout), lambda n, ho: (n, ho, 0, 0)),
        compiler_params=pltpu.CompilerParams(
            dimension_semantics=("parallel", "arbitrary"),
            vmem_limit_bytes=VMEM_LIMIT),
    )(ph, wmat, b)
    return out


def maxpool_3x3_s2(x):
    """MaxPool2d(kernel_size=3, stride=2, padding=0), NHWC in/out (f32)."""
    N, H, W, C = x.shape
    Ho, Wo = (H - 3) // 2 + 1, (W - 3) // 2 + 1
    Hp, Wp = Ho + 1, Wo + 1
    ph = _phase_split(x, Ho, Wo)                        # (N, 4, Hp, Wp, C)

    out = pl.pallas_call(
        functools.partial(_maxpool3x3_s2_kernel, Ho=Ho, Wo=Wo),
        out_shape=jax.ShapeDtypeStruct((N, Ho, Wo, C), x.dtype),
        grid=(N,),
        in_specs=[pl.BlockSpec((1, 4, Hp, Wp, C), lambda n: (n, 0, 0, 0, 0))],
        out_specs=pl.BlockSpec((1, Ho, Wo, C), lambda n: (n, 0, 0, 0)),
        compiler_params=pltpu.CompilerParams(
            dimension_semantics=("parallel",),
            vmem_limit_bytes=VMEM_LIMIT),
    )(ph)
    return out


# ------------------------------ ReductionB --------------------------------- #

def _make_conv_params(key, k, cin, cout):
    kw, kg, kb, km, kv = jax.random.split(key, 5)
    w = jax.random.normal(kw, (k, k, cin, cout), jnp.float32) / math.sqrt(k * k * cin)
    gamma = jax.random.uniform(kg, (cout,), jnp.float32, 0.5, 1.5)
    beta = 0.1 * jax.random.normal(kb, (cout,), jnp.float32)
    mean = 0.1 * jax.random.normal(km, (cout,), jnp.float32)
    var = jax.random.uniform(kv, (cout,), jnp.float32, 0.5, 1.5)
    eps = 1e-5
    scale = gamma / jnp.sqrt(var + eps)
    bias = beta - mean * scale
    return w, scale, bias


def make_reduction_b_params(key, in_channels):
    keys = jax.random.split(key, 7)
    return {
        "b2_0": _make_conv_params(keys[0], 1, in_channels, 256),
        "b2_1": _make_conv_params(keys[1], 3, 256, 384),
        "b3_0": _make_conv_params(keys[2], 1, in_channels, 256),
        "b3_1": _make_conv_params(keys[3], 3, 256, 288),
        "b4_0": _make_conv_params(keys[4], 1, in_channels, 256),
        "b4_1": _make_conv_params(keys[5], 3, 256, 288),
        "b4_2": _make_conv_params(keys[6], 3, 288, 320),
    }


def reduction_b_forward(x_nchw, params):
    x = jnp.transpose(x_nchw, (0, 2, 3, 1))  # NCHW -> NHWC

    # branch 1: 3x3 max-pool, stride 2
    b1 = maxpool_3x3_s2(x)

    # branch 2: 1x1 (C->256) 'same' -> 3x3 s2 (256->384)
    b2 = conv1x1_bn_relu(x, *params["b2_0"])
    b2 = conv3x3_s2_bn_relu(b2, *params["b2_1"], out_dtype=jnp.float32)

    # branch 3: 1x1 (C->256) 'same' -> 3x3 s2 (256->288)
    b3 = conv1x1_bn_relu(x, *params["b3_0"])
    b3 = conv3x3_s2_bn_relu(b3, *params["b3_1"], out_dtype=jnp.float32)

    # branch 4: 1x1 (C->256) -> 3x3 s1 'same' (256->288) -> 3x3 s2 (288->320)
    b4 = conv1x1_bn_relu(x, *params["b4_0"])
    b4 = conv3x3_s1_same_bn_relu(b4, *params["b4_1"])
    b4 = conv3x3_s2_bn_relu(b4, *params["b4_2"], out_dtype=jnp.float32)

    out = jnp.concatenate([b1, b2, b3, b4], axis=-1)
    return jnp.transpose(out, (0, 3, 1, 2))  # NHWC -> NCHW (match torch)


# ------------------------- pure-JAX reference ------------------------------ #

def _ref_conv_bn_relu(x, w_hwio, scale, bias, stride, pad):
    y = jax.lax.conv_general_dilated(
        x, w_hwio, (stride, stride), [(pad, pad), (pad, pad)],
        dimension_numbers=("NHWC", "HWIO", "NHWC"))
    return jnp.maximum(y * scale + bias, 0.0)


def reference_forward(x_nchw, params):
    x = jnp.transpose(x_nchw, (0, 2, 3, 1))
    b1 = jax.lax.reduce_window(x, -jnp.inf, jax.lax.max,
                               (1, 3, 3, 1), (1, 2, 2, 1), "VALID")
    b2 = _ref_conv_bn_relu(x, *params["b2_0"], 1, 0)
    b2 = _ref_conv_bn_relu(b2, *params["b2_1"], 2, 0)
    b3 = _ref_conv_bn_relu(x, *params["b3_0"], 1, 0)
    b3 = _ref_conv_bn_relu(b3, *params["b3_1"], 2, 0)
    b4 = _ref_conv_bn_relu(x, *params["b4_0"], 1, 0)
    b4 = _ref_conv_bn_relu(b4, *params["b4_1"], 1, 1)
    b4 = _ref_conv_bn_relu(b4, *params["b4_2"], 2, 0)
    out = jnp.concatenate([b1, b2, b3, b4], axis=-1)
    return jnp.transpose(out, (0, 3, 1, 2))


# ---------------------------------- main ------------------------------------ #

if __name__ == "__main__":
    key = jax.random.PRNGKey(0)
    kx, kp = jax.random.split(key)

    N, C, H, W = 2, 4, 9, 9  # 9x9 -> 4x4 spatial reduction (small analogue of 17->8)
    x = jax.random.normal(kx, (N, C, H, W), jnp.float32)
    params = make_reduction_b_params(kp, C)

    fwd = jax.jit(reduction_b_forward)
    out = jax.block_until_ready(fwd(x, params))

    expected_channels = C + 384 + 288 + 320
    assert out.shape == (N, expected_channels, 4, 4), out.shape

    ref = jax.block_until_ready(reference_forward(x, params))
    max_err = float(jnp.max(jnp.abs(out - ref)))
    denom = float(jnp.max(jnp.abs(ref))) + 1e-6
    # Tolerance reflects bf16 matmul operands (f32 reference); ~0.5% per conv layer.
    assert max_err / denom < 2e-2, f"mismatch: max_err={max_err}"

    print("KERNEL_OK")
</pallas_src>

<mosaic_0001>
module attributes {stable_mosaic.version = 11 : i64} {
  func.func @_matmul_bias_relu_kernel(%arg0: i32, %arg1: memref<88x4xbf16, #tpu.memory_space<vmem>>, %arg2: memref<4x256xbf16, #tpu.memory_space<vmem>>, %arg3: memref<1x256xf32, #tpu.memory_space<vmem>>, %arg4: memref<88x256xbf16, #tpu.memory_space<vmem>>) attributes {dimension_semantics = [#tpu.dimension_semantics<parallel>], iteration_bounds = array<i64: 2>, scalar_prefetch = 0 : i64, scratch_operands = 0 : i64, tpu.core_type = #tpu.core_type<tc>, window_params = [{transform_indices = @transform_0, window_bounds = array<i64: 88, 4>}, {pipeline_mode = #tpu.pipeline_mode<synchronous>, transform_indices = @transform_1, window_bounds = array<i64: 4, 256>}, {pipeline_mode = #tpu.pipeline_mode<synchronous>, transform_indices = @transform_2, window_bounds = array<i64: 1, 256>}, {transform_indices = @transform_3, window_bounds = array<i64: 88, 256>}]} {
    %c0 = arith.constant 0 : index
    %c0_0 = arith.constant 0 : index
    %0 = vector.load %arg1[%c0, %c0_0] : memref<88x4xbf16, #tpu.memory_space<vmem>>, vector<88x4xbf16>
    %c0_1 = arith.constant 0 : index
    %c0_2 = arith.constant 0 : index
    %1 = vector.load %arg2[%c0_1, %c0_2] : memref<4x256xbf16, #tpu.memory_space<vmem>>, vector<4x256xbf16>
    %cst = arith.constant dense<0.000000e+00> : vector<88x256xf32>
    %2 = tpu.matmul %0, %1, %cst {dimension_numbers = #tpu.dot_dimension_numbers<[1], [0], [0], [1], [0, 0, 1, 1], [], []>} : vector<88x4xbf16>, vector<4x256xbf16>, vector<88x256xf32> -> vector<88x256xf32>
    %c0_3 = arith.constant 0 : index
    %c0_4 = arith.constant 0 : index
    %3 = vector.load %arg3[%c0_3, %c0_4] : memref<1x256xf32, #tpu.memory_space<vmem>>, vector<1x256xf32>
    %4 = vector.broadcast %3 : vector<1x256xf32> to vector<88x256xf32>
    %5 = arith.addf %2, %4 : vector<88x256xf32>
    %cst_5 = arith.constant 0.000000e+00 : f32
    %6 = vector.broadcast %cst_5 : f32 to vector<88x256xf32>
    %7 = arith.maximumf %5, %6 : vector<88x256xf32>
    %8 = arith.truncf %7 : vector<88x256xf32> to vector<88x256xbf16>
    %c0_6 = arith.constant 0 : index
    %c0_7 = arith.constant 0 : index
    %9 = vector.load %arg4[%c0_6, %c0_7] : memref<88x256xbf16, #tpu.memory_space<vmem>>, vector<88x256xbf16>
    tpu.vector_store %arg4[%c0_6, %c0_7], %8 {strides = array<i32>} : memref<88x256xbf16, #tpu.memory_space<vmem>>, vector<88x256xbf16>,
    return
  }
  func.func @transform_0(%arg0: i32) -> (i32, i32) {
    %c0_i32 = arith.constant 0 : i32
    %c0_i32_0 = arith.constant 0 : i32
    return %arg0, %c0_i32 : i32, i32
  }
  func.func @transform_1(%arg0: i32) -> (i32, i32) {
    %c0_i32 = arith.constant 0 : i32
    %c0_i32_0 = arith.constant 0 : i32
    %c0_i32_1 = arith.constant 0 : i32
    return %c0_i32, %c0_i32_0 : i32, i32
  }
  func.func @transform_2(%arg0: i32) -> (i32, i32) {
    %c0_i32 = arith.constant 0 : i32
    %c0_i32_0 = arith.constant 0 : i32
    %c0_i32_1 = arith.constant 0 : i32
    return %c0_i32, %c0_i32_0 : i32, i32
  }
  func.func @transform_3(%arg0: i32) -> (i32, i32) {
    %c0_i32 = arith.constant 0 : i32
    %c0_i32_0 = arith.constant 0 : i32
    return %arg0, %c0_i32 : i32, i32
  }
}

module attributes {stable_mosaic.version = 11 : i64} {
  func.func @_conv3x3_s1_kernel(%arg0: i32, %arg1: i32, %arg2: memref<1x11x11x256xbf16, #tpu.memory_space<vmem>>, %arg3: memref<9x256x288xbf16, #tpu.memory_space<vmem>>, %arg4: memref<1x288xf32, #tpu.memory_space<vmem>>, %arg5: memref<1x1x9x288xbf16, #tpu.memory_space<vmem>>) attributes {dimension_semantics = [#tpu.dimension_semantics<parallel>, #tpu.dimension_semantics<arbitrary>], iteration_bounds = array<i64: 2, 9>, scalar_prefetch = 0 : i64, scratch_operands = 0 : i64, tpu.core_type = #tpu.core_type<tc>, window_params = [{transform_indices = @transform_0, window_bounds = array<i64: 1, 11, 11, 256>}, {pipeline_mode = #tpu.pipeline_mode<synchronous>, transform_indices = @transform_1, window_bounds = array<i64: 9, 256, 288>}, {pipeline_mode = #tpu.pipeline_mode<synchronous>, transform_indices = @transform_2, window_bounds = array<i64: 1, 288>}, {transform_indices = @transform_3, window_bounds = array<i64: 1, 1, 9, 288>}]} {
    %cst = arith.constant 0.000000e+00 : f32
    %0 = vector.broadcast %cst : f32 to vector<9x288xf32>
    %c0_i32 = arith.constant 0 : i32
    %1 = arith.addi %arg1, %c0_i32 : i32
    %c0 = arith.constant 0 : index
    %2 = arith.index_cast %1 : i32 to index
    %c0_0 = arith.constant 0 : index
    %c0_1 = arith.constant 0 : index
    %3 = vector.load %arg2[%c0, %2, %c0_0, %c0_1] : memref<1x11x11x256xbf16, #tpu.memory_space<vmem>>, vector<1x1x9x256xbf16>
    %4 = vector.shape_cast %3 : vector<1x1x9x256xbf16> to vector<9x256xbf16>
    %c0_2 = arith.constant 0 : index
    %c0_3 = arith.constant 0 : index
    %c0_4 = arith.constant 0 : index
    %5 = vector.load %arg3[%c0_2, %c0_3, %c0_4] : memref<9x256x288xbf16, #tpu.memory_space<vmem>>, vector<1x256x288xbf16>
    %6 = vector.shape_cast %5 : vector<1x256x288xbf16> to vector<256x288xbf16>
    %cst_5 = arith.constant dense<0.000000e+00> : vector<9x288xf32>
    %7 = tpu.matmul %4, %6, %cst_5 {dimension_numbers = #tpu.dot_dimension_numbers<[1], [0], [0], [1], [0, 0, 1, 1], [], []>} : vector<9x256xbf16>, vector<256x288xbf16>, vector<9x288xf32> -> vector<9x288xf32>
    %8 = arith.addf %0, %7 : vector<9x288xf32>
    %c0_i32_6 = arith.constant 0 : i32
    %9 = arith.addi %arg1, %c0_i32_6 : i32
    %c0_7 = arith.constant 0 : index
    %10 = arith.index_cast %9 : i32 to index
    %c1 = arith.constant 1 : index
    %c0_8 = arith.constant 0 : index
    %11 = vector.load %arg2[%c0_7, %10, %c1, %c0_8] : memref<1x11x11x256xbf16, #tpu.memory_space<vmem>>, vector<1x1x9x256xbf16>
    %12 = vector.shape_cast %11 : vector<1x1x9x256xbf16> to vector<9x256xbf16>
    %c1_9 = arith.constant 1 : index
    %c0_10 = arith.constant 0 : index
    %c0_11 = arith.constant 0 : index
    %13 = vector.load %arg3[%c1_9, %c0_10, %c0_11] : memref<9x256x288xbf16, #tpu.memory_space<vmem>>, vector<1x256x288xbf16>
    %14 = vector.shape_cast %13 : vector<1x256x288xbf16> to vector<256x288xbf16>
    %cst_12 = arith.constant dense<0.000000e+00> : vector<9x288xf32>
    %15 = tpu.matmul %12, %14, %cst_12 {dimension_numbers = #tpu.dot_dimension_numbers<[1], [0], [0], [1], [0, 0, 1, 1], [], []>} : vector<9x256xbf16>, vector<256x288xbf16>, vector<9x288xf32> -> vector<9x288xf32>
    %16 = arith.addf %8, %15 : vector<9x288xf32>
    %c0_i32_13 = arith.constant 0 : i32
    %17 = arith.addi %arg1, %c0_i32_13 : i32
    %c0_14 = arith.constant 0 : index
    %18 = arith.index_cast %17 : i32 to index
    %c2 = arith.constant 2 : index
    %c0_15 = arith.constant 0 : index
    %19 = vector.load %arg2[%c0_14, %18, %c2, %c0_15] : memref<1x11x11x256xbf16, #tpu.memory_space<vmem>>, vector<1x1x9x256xbf16>
    %20 = vector.shape_cast %19 : vector<1x1x9x256xbf16> to vector<9x256xbf16>
    %c2_16 = arith.constant 2 : index
    %c0_17 = arith.constant 0 : index
    %c0_18 = arith.constant 0 : index
    %21 = vector.load %arg3[%c2_16, %c0_17, %c0_18] : memref<9x256x288xbf16, #tpu.memory_space<vmem>>, vector<1x256x288xbf16>
    %22 = vector.shape_cast %21 : vector<1x256x288xbf16> to vector<256x288xbf16>
    %cst_19 = arith.constant dense<0.000000e+00> : vector<9x288xf32>
    %23 = tpu.matmul %20, %22, %cst_19 {dimension_numbers = #tpu.dot_dimension_numbers<[1], [0], [0], [1], [0, 0, 1, 1], [], []>} : vector<9x256xbf16>, vector<256x288xbf16>, vector<9x288xf32> -> vector<9x288xf32>
    %24 = arith.addf %16, %23 : vector<9x288xf32>
    %c1_i32 = arith.constant 1 : i32
    %25 = arith.addi %arg1, %c1_i32 : i32
    %c0_20 = arith.constant 0 : index
    %26 = arith.index_cast %25 : i32 to index
    %c0_21 = arith.constant 0 : index
    %c0_22 = arith.constant 0 : index
    %27 = vector.load %arg2[%c0_20, %26, %c0_21, %c0_22] : memref<1x11x11x256xbf16, #tpu.memory_space<vmem>>, vector<1x1x9x256xbf16>
    %28 = vector.shape_cast %27 : vector<1x1x9x256xbf16> to vector<9x256xbf16>
    %c3 = arith.constant 3 : index
    %c0_23 = arith.constant 0 : index
    %c0_24 = arith.constant 0 : index
    %29 = vector.load %arg3[%c3, %c0_23, %c0_24] : memref<9x256x288xbf16, #tpu.memory_space<vmem>>, vector<1x256x288xbf16>
    %30 = vector.shape_cast %29 : vector<1x256x288xbf16> to vector<256x288xbf16>
    %cst_25 = arith.constant dense<0.000000e+00> : vector<9x288xf32>
    %31 = tpu.matmul %28, %30, %cst_25 {dimension_numbers = #tpu.dot_dimension_numbers<[1], [0], [0], [1], [0, 0, 1, 1], [], []>} : vector<9x256xbf16>, vector<256x288xbf16>, vector<9x288xf32> -> vector<9x288xf32>
    %32 = arith.addf %24, %31 : vector<9x288xf32>
    %c1_i32_26 = arith.constant 1 : i32
    %33 = arith.addi %arg1, %c1_i32_26 : i32
    %c0_27 = arith.constant 0 : index
    %34 = arith.index_cast %33 : i32 to index
    %c1_28 = arith.constant 1 : index
    %c0_29 = arith.constant 0 : index
    %35 = vector.load %arg2[%c0_27, %34, %c1_28, %c0_29] : memref<1x11x11x256xbf16, #tpu.memory_space<vmem>>, vector<1x1x9x256xbf16>
    %36 = vector.shape_cast %35 : vector<1x1x9x256xbf16> to vector<9x256xbf16>
    %c4 = arith.constant 4 : index
    %c0_30 = arith.constant 0 : index
    %c0_31 = arith.constant 0 : index
    %37 = vector.load %arg3[%c4, %c0_30, %c0_31] : memref<9x256x288xbf16, #tpu.memory_space<vmem>>, vector<1x256x288xbf16>
    %38 = vector.shape_cast %37 : vector<1x256x288xbf16> to vector<256x288xbf16>
    %cst_32 = arith.constant dense<0.000000e+00> : vector<9x288xf32>
    %39 = tpu.matmul %36, %38, %cst_32 {dimension_numbers = #tpu.dot_dimension_numbers<[1], [0], [0], [1], [0, 0, 1, 1], [], []>} : vector<9x256xbf16>, vector<256x288xbf16>, vector<9x288xf32> -> vector<9x288xf32>
    %40 = arith.addf %32, %39 : vector<9x288xf32>
    %c1_i32_33 = arith.constant 1 : i32
    %41 = arith.addi %arg1, %c1_i32_33 : i32
    %c0_34 = arith.constant 0 : index
    %42 = arith.index_cast %41 : i32 to index
    %c2_35 = arith.constant 2 : index
    %c0_36 = arith.constant 0 : index
    %43 = vector.load %arg2[%c0_34, %42, %c2_35, %c0_36] : memref<1x11x11x256xbf16, #tpu.memory_space<vmem>>, vector<1x1x9x256xbf16>
    %44 = vector.shape_cast %43 : vector<1x1x9x256xbf16> to vector<9x256xbf16>
    %c5 = arith.constant 5 : index
    %c0_37 = arith.constant 0 : index
    %c0_38 = arith.constant 0 : index
    %45 = vector.load %arg3[%c5, %c0_37, %c0_38] : memref<9x256x288xbf16, #tpu.memory_space<vmem>>, vector<1x256x288xbf16>
    %46 = vector.shape_cast %45 : vector<1x256x288xbf16> to vector<256x288xbf16>
    %cst_39 = arith.constant dense<0.000000e+00> : vector<9x288xf32>
    %47 = tpu.matmul %44, %46, %cst_39 {dimension_numbers = #tpu.dot_dimension_numbers<[1], [0], [0], [1], [0, 0, 1, 1], [], []>} : vector<9x256xbf16>, vector<256x288xbf16>, vector<9x288xf32> -> vector<9x288xf32>
    %48 = arith.addf %40, %47 : vector<9x288xf32>
    %c2_i32 = arith.constant 2 : i32
    %49 = arith.addi %arg1, %c2_i32 : i32
    %c0_40 = arith.constant 0 : index
    %50 = arith.index_cast %49 : i32 to index
    %c0_41 = arith.constant 0 : index
    %c0_42 = arith.constant 0 : index
    %51 = vector.load %arg2[%c0_40, %50, %c0_41, %c0_42] : memref<1x11x11x256xbf16, #tpu.memory_space<vmem>>, vector<1x1x9x256xbf16>
    %52 = vector.shape_cast %51 : vector<1x1x9x256xbf16> to vector<9x256xbf16>
    %c6 = arith.constant 6 : index
    %c0_43 = arith.constant 0 : index
    %c0_44 = arith.constant 0 : index
    %53 = vector.load %arg3[%c6, %c0_43, %c0_44] : memref<9x256x288xbf16, #tpu.memory_space<vmem>>, vector<1x256x288xbf16>
    %54 = vector.shape_cast %53 : vector<1x256x288xbf16> to vector<256x288xbf16>
    %cst_45 = arith.constant dense<0.000000e+00> : vector<9x288xf32>
    %55 = tpu.matmul %52, %54, %cst_45 {dimension_numbers = #tpu.dot_dimension_numbers<[1], [0], [0], [1], [0, 0, 1, 1], [], []>} : vector<9x256xbf16>, vector<256x288xbf16>, vector<9x288xf32> -> vector<9x288xf32>
    %56 = arith.addf %48, %55 : vector<9x288xf32>
    %c2_i32_46 = arith.constant 2 : i32
    %57 = arith.addi %arg1, %c2_i32_46 : i32
    %c0_47 = arith.constant 0 : index
    %58 = arith.index_cast %57 : i32 to index
    %c1_48 = arith.constant 1 : index
    %c0_49 = arith.constant 0 : index
    %59 = vector.load %arg2[%c0_47, %58, %c1_48, %c0_49] : memref<1x11x11x256xbf16, #tpu.memory_space<vmem>>, vector<1x1x9x256xbf16>
    %60 = vector.shape_cast %59 : vector<1x1x9x256xbf16> to vector<9x256xbf16>
    %c7 = arith.constant 7 : index
    %c0_50 = arith.constant 0 : index
    %c0_51 = arith.constant 0 : index
    %61 = vector.load %arg3[%c7, %c0_50, %c0_51] : memref<9x256x288xbf16, #tpu.memory_space<vmem>>, vector<1x256x288xbf16>
    %62 = vector.shape_cast %61 : vector<1x256x288xbf16> to vector<256x288xbf16>
    %cst_52 = arith.constant dense<0.000000e+00> : vector<9x288xf32>
    %63 = tpu.matmul %60, %62, %cst_52 {dimension_numbers = #tpu.dot_dimension_numbers<[1], [0], [0], [1], [0, 0, 1, 1], [], []>} : vector<9x256xbf16>, vector<256x288xbf16>, vector<9x288xf32> -> vector<9x288xf32>
    %64 = arith.addf %56, %63 : vector<9x288xf32>
    %c2_i32_53 = arith.constant 2 : i32
    %65 = arith.addi %arg1, %c2_i32_53 : i32
    %c0_54 = arith.constant 0 : index
    %66 = arith.index_cast %65 : i32 to index
    %c2_55 = arith.constant 2 : index
    %c0_56 = arith.constant 0 : index
    %67 = vector.load %arg2[%c0_54, %66, %c2_55, %c0_56] : memref<1x11x11x256xbf16, #tpu.memory_space<vmem>>, vector<1x1x9x256xbf16>
    %68 = vector.shape_cast %67 : vector<1x1x9x256xbf16> to vector<9x256xbf16>
    %c8 = arith.constant 8 : index
    %c0_57 = arith.constant 0 : index
    %c0_58 = arith.constant 0 : index
    %69 = vector.load %arg3[%c8, %c0_57, %c0_58] : memref<9x256x288xbf16, #tpu.memory_space<vmem>>, vector<1x256x288xbf16>
    %70 = vector.shape_cast %69 : vector<1x256x288xbf16> to vector<256x288xbf16>
    %cst_59 = arith.constant dense<0.000000e+00> : vector<9x288xf32>
    %71 = tpu.matmul %68, %70, %cst_59 {dimension_numbers = #tpu.dot_dimension_numbers<[1], [0], [0], [1], [0, 0, 1, 1], [], []>} : vector<9x256xbf16>, vector<256x288xbf16>, vector<9x288xf32> -> vector<9x288xf32>
    %72 = arith.addf %64, %71 : vector<9x288xf32>
    %c0_60 = arith.constant 0 : index
    %c0_61 = arith.constant 0 : index
    %73 = vector.load %arg4[%c0_60, %c0_61] : memref<1x288xf32, #tpu.memory_space<vmem>>, vector<1x288xf32>
    %74 = vector.broadcast %73 : vector<1x288xf32> to vector<9x288xf32>
    %75 = arith.addf %72, %74 : vector<9x288xf32>
    %cst_62 = arith.constant 0.000000e+00 : f32
    %76 = vector.broadcast %cst_62 : f32 to vector<9x288xf32>
    %77 = arith.maximumf %75, %76 : vector<9x288xf32>
    %78 = arith.truncf %77 : vector<9x288xf32> to vector<9x288xbf16>
    %c0_63 = arith.constant 0 : index
    %c0_64 = arith.constant 0 : index
    %c0_65 = arith.constant 0 : index
    %c0_66 = arith.constant 0 : index
    %79 = vector.load %arg5[%c0_63, %c0_64, %c0_65, %c0_66] : memref<1x1x9x288xbf16, #tpu.memory_space<vmem>>, vector<1x1x9x288xbf16>
    %80 = vector.shape_cast %79 : vector<1x1x9x288xbf16> to vector<9x288xbf16>
    %81 = vector.shape_cast %78 : vector<9x288xbf16> to vector<1x1x9x288xbf16>
    tpu.vector_store %arg5[%c0_63, %c0_64, %c0_65, %c0_66], %81 {strides = array<i32>} : memref<1x1x9x288xbf16, #tpu.memory_space<vmem>>, vector<1x1x9x288xbf16>,
    return
  }
  func.func @transform_0(%arg0: i32, %arg1: i32) -> (i32, i32, i32, i32) {
    %c0_i32 = arith.constant 0 : i32
    %c0_i32_0 = arith.constant 0 : i32
    %c0_i32_1 = arith.constant 0 : i32
    %c0_i32_2 = arith.constant 0 : i32
    return %arg0, %c0_i32, %c0_i32_0, %c0_i32_1 : i32, i32, i32, i32
  }
  func.func @transform_1(%arg0: i32, %arg1: i32) -> (i32, i32, i32) {
    %c0_i32 = arith.constant 0 : i32
    %c0_i32_0 = arith.constant 0 : i32
    %c0_i32_1 = arith.constant 0 : i32
    %c0_i32_2 = arith.constant 0 : i32
    return %c0_i32, %c0_i32_0, %c0_i32_1 : i32, i32, i32
  }
  func.func @transform_2(%arg0: i32, %arg1: i32) -> (i32, i32) {
    %c0_i32 = arith.constant 0 : i32
    %c0_i32_0 = arith.constant 0 : i32
    %c0_i32_1 = arith.constant 0 : i32
    return %c0_i32, %c0_i32_0 : i32, i32
  }
  func.func @transform_3(%arg0: i32, %arg1: i32) -> (i32, i32, i32, i32) {
    %c0_i32 = arith.constant 0 : i32
    %c0_i32_0 = arith.constant 0 : i32
    %c0_i32_1 = arith.constant 0 : i32
    return %arg0, %arg1, %c0_i32, %c0_i32_0 : i32, i32, i32, i32
  }
}

module attributes {stable_mosaic.version = 11 : i64} {
  func.func @_conv3x3_s2_kernel(%arg0: i32, %arg1: i32, %arg2: memref<1x4x5x5x288xbf16, #tpu.memory_space<vmem>>, %arg3: memref<9x288x320xbf16, #tpu.memory_space<vmem>>, %arg4: memref<1x320xf32, #tpu.memory_space<vmem>>, %arg5: memref<1x1x4x320xf32, #tpu.memory_space<vmem>>) attributes {dimension_semantics = [#tpu.dimension_semantics<parallel>, #tpu.dimension_semantics<arbitrary>], iteration_bounds = array<i64: 2, 4>, scalar_prefetch = 0 : i64, scratch_operands = 0 : i64, tpu.core_type = #tpu.core_type<tc>, window_params = [{transform_indices = @transform_0, window_bounds = array<i64: 1, 4, 5, 5, 288>}, {pipeline_mode = #tpu.pipeline_mode<synchronous>, transform_indices = @transform_1, window_bounds = array<i64: 9, 288, 320>}, {pipeline_mode = #tpu.pipeline_mode<synchronous>, transform_indices = @transform_2, window_bounds = array<i64: 1, 320>}, {transform_indices = @transform_3, window_bounds = array<i64: 1, 1, 4, 320>}]} {
    %cst = arith.constant 0.000000e+00 : f32
    %0 = vector.broadcast %cst : f32 to vector<4x320xf32>
    %c0_i32 = arith.constant 0 : i32
    %1 = arith.addi %arg1, %c0_i32 : i32
    %c0 = arith.constant 0 : index
    %c0_0 = arith.constant 0 : index
    %2 = arith.index_cast %1 : i32 to index
    %c0_1 = arith.constant 0 : index
    %c0_2 = arith.constant 0 : index
    %3 = vector.load %arg2[%c0, %c0_0, %2, %c0_1, %c0_2] : memref<1x4x5x5x288xbf16, #tpu.memory_space<vmem>>, vector<1x1x1x4x288xbf16>
    %4 = vector.shape_cast %3 : vector<1x1x1x4x288xbf16> to vector<4x288xbf16>
    %c0_3 = arith.constant 0 : index
    %c0_4 = arith.constant 0 : index
    %c0_5 = arith.constant 0 : index
    %5 = vector.load %arg3[%c0_3, %c0_4, %c0_5] : memref<9x288x320xbf16, #tpu.memory_space<vmem>>, vector<1x288x320xbf16>
    %6 = vector.shape_cast %5 : vector<1x288x320xbf16> to vector<288x320xbf16>
    %cst_6 = arith.constant dense<0.000000e+00> : vector<4x320xf32>
    %7 = tpu.matmul %4, %6, %cst_6 {dimension_numbers = #tpu.dot_dimension_numbers<[1], [0], [0], [1], [0, 0, 1, 1], [], []>} : vector<4x288xbf16>, vector<288x320xbf16>, vector<4x320xf32> -> vector<4x320xf32>
    %8 = arith.addf %0, %7 : vector<4x320xf32>
    %c0_i32_7 = arith.constant 0 : i32
    %9 = arith.addi %arg1, %c0_i32_7 : i32
    %c0_8 = arith.constant 0 : index
    %c1 = arith.constant 1 : index
    %10 = arith.index_cast %9 : i32 to index
    %c0_9 = arith.constant 0 : index
    %c0_10 = arith.constant 0 : index
    %11 = vector.load %arg2[%c0_8, %c1, %10, %c0_9, %c0_10] : memref<1x4x5x5x288xbf16, #tpu.memory_space<vmem>>, vector<1x1x1x4x288xbf16>
    %12 = vector.shape_cast %11 : vector<1x1x1x4x288xbf16> to vector<4x288xbf16>
    %c1_11 = arith.constant 1 : index
    %c0_12 = arith.constant 0 : index
    %c0_13 = arith.constant 0 : index
    %13 = vector.load %arg3[%c1_11, %c0_12, %c0_13] : memref<9x288x320xbf16, #tpu.memory_space<vmem>>, vector<1x288x320xbf16>
    %14 = vector.shape_cast %13 : vector<1x288x320xbf16> to vector<288x320xbf16>
    %cst_14 = arith.constant dense<0.000000e+00> : vector<4x320xf32>
    %15 = tpu.matmul %12, %14, %cst_14 {dimension_numbers = #tpu.dot_dimension_numbers<[1], [0], [0], [1], [0, 0, 1, 1], [], []>} : vector<4x288xbf16>, vector<288x320xbf16>, vector<4x320xf32> -> vector<4x320xf32>
    %16 = arith.addf %8, %15 : vector<4x320xf32>
    %c0_i32_15 = arith.constant 0 : i32
    %17 = arith.addi %arg1, %c0_i32_15 : i32
    %c0_16 = arith.constant 0 : index
    %c0_17 = arith.constant 0 : index
    %18 = arith.index_cast %17 : i32 to index
    %c1_18 = arith.constant 1 : index
    %c0_19 = arith.constant 0 : index
    %19 = vector.load %arg2[%c0_16, %c0_17, %18, %c1_18, %c0_19] : memref<1x4x5x5x288xbf16, #tpu.memory_space<vmem>>, vector<1x1x1x4x288xbf16>
    %20 = vector.shape_cast %19 : vector<1x1x1x4x288xbf16> to vector<4x288xbf16>
    %c2 = arith.constant 2 : index
    %c0_20 = arith.constant 0 : index
    %c0_21 = arith.constant 0 : index
    %21 = vector.load %arg3[%c2, %c0_20, %c0_21] : memref<9x288x320xbf16, #tpu.memory_space<vmem>>, vector<1x288x320xbf16>
    %22 = vector.shape_cast %21 : vector<1x288x320xbf16> to vector<288x320xbf16>
    %cst_22 = arith.constant dense<0.000000e+00> : vector<4x320xf32>
    %23 = tpu.matmul %20, %22, %cst_22 {dimension_numbers = #tpu.dot_dimension_numbers<[1], [0], [0], [1], [0, 0, 1, 1], [], []>} : vector<4x288xbf16>, vector<288x320xbf16>, vector<4x320xf32> -> vector<4x320xf32>
    %24 = arith.addf %16, %23 : vector<4x320xf32>
    %c0_i32_23 = arith.constant 0 : i32
    %25 = arith.addi %arg1, %c0_i32_23 : i32
    %c0_24 = arith.constant 0 : index
    %c2_25 = arith.constant 2 : index
    %26 = arith.index_cast %25 : i32 to index
    %c0_26 = arith.constant 0 : index
    %c0_27 = arith.constant 0 : index
    %27 = vector.load %arg2[%c0_24, %c2_25, %26, %c0_26, %c0_27] : memref<1x4x5x5x288xbf16, #tpu.memory_space<vmem>>, vector<1x1x1x4x288xbf16>
    %28 = vector.shape_cast %27 : vector<1x1x1x4x288xbf16> to vector<4x288xbf16>
    %c3 = arith.constant 3 : index
    %c0_28 = arith.constant 0 : index
    %c0_29 = arith.constant 0 : index
    %29 = vector.load %arg3[%c3, %c0_28, %c0_29] : memref<9x288x320xbf16, #tpu.memory_space<vmem>>, vector<1x288x320xbf16>
    %30 = vector.shape_cast %29 : vector<1x288x320xbf16> to vector<288x320xbf16>
    %cst_30 = arith.constant dense<0.000000e+00> : vector<4x320xf32>
    %31 = tpu.matmul %28, %30, %cst_30 {dimension_numbers = #tpu.dot_dimension_numbers<[1], [0], [0], [1], [0, 0, 1, 1], [], []>} : vector<4x288xbf16>, vector<288x320xbf16>, vector<4x320xf32> -> vector<4x320xf32>
    %32 = arith.addf %24, %31 : vector<4x320xf32>
    %c0_i32_31 = arith.constant 0 : i32
    %33 = arith.addi %arg1, %c0_i32_31 : i32
    %c0_32 = arith.constant 0 : index
    %c3_33 = arith.constant 3 : index
    %34 = arith.index_cast %33 : i32 to index
    %c0_34 = arith.constant 0 : index
    %c0_35 = arith.constant 0 : index
    %35 = vector.load %arg2[%c0_32, %c3_33, %34, %c0_34, %c0_35] : memref<1x4x5x5x288xbf16, #tpu.memory_space<vmem>>, vector<1x1x1x4x288xbf16>
    %36 = vector.shape_cast %35 : vector<1x1x1x4x288xbf16> to vector<4x288xbf16>
    %c4 = arith.constant 4 : index
    %c0_36 = arith.constant 0 : index
    %c0_37 = arith.constant 0 : index
    %37 = vector.load %arg3[%c4, %c0_36, %c0_37] : memref<9x288x320xbf16, #tpu.memory_space<vmem>>, vector<1x288x320xbf16>
    %38 = vector.shape_cast %37 : vector<1x288x320xbf16> to vector<288x320xbf16>
    %cst_38 = arith.constant dense<0.000000e+00> : vector<4x320xf32>
    %39 = tpu.matmul %36, %38, %cst_38 {dimension_numbers = #tpu.dot_dimension_numbers<[1], [0], [0], [1], [0, 0, 1, 1], [], []>} : vector<4x288xbf16>, vector<288x320xbf16>, vector<4x320xf32> -> vector<4x320xf32>
    %40 = arith.addf %32, %39 : vector<4x320xf32>
    %c0_i32_39 = arith.constant 0 : i32
    %41 = arith.addi %arg1, %c0_i32_39 : i32
    %c0_40 = arith.constant 0 : index
    %c2_41 = arith.constant 2 : index
    %42 = arith.index_cast %41 : i32 to index
    %c1_42 = arith.constant 1 : index
    %c0_43 = arith.constant 0 : index
    %43 = vector.load %arg2[%c0_40, %c2_41, %42, %c1_42, %c0_43] : memref<1x4x5x5x288xbf16, #tpu.memory_space<vmem>>, vector<1x1x1x4x288xbf16>
    %44 = vector.shape_cast %43 : vector<1x1x1x4x288xbf16> to vector<4x288xbf16>
    %c5 = arith.constant 5 : index
    %c0_44 = arith.constant 0 : index
    %c0_45 = arith.constant 0 : index
    %45 = vector.load %arg3[%c5, %c0_44, %c0_45] : memref<9x288x320xbf16, #tpu.memory_space<vmem>>, vector<1x288x320xbf16>
    %46 = vector.shape_cast %45 : vector<1x288x320xbf16> to vector<288x320xbf16>
    %cst_46 = arith.constant dense<0.000000e+00> : vector<4x320xf32>
    %47 = tpu.matmul %44, %46, %cst_46 {dimension_numbers = #tpu.dot_dimension_numbers<[1], [0], [0], [1], [0, 0, 1, 1], [], []>} : vector<4x288xbf16>, vector<288x320xbf16>, vector<4x320xf32> -> vector<4x320xf32>
    %48 = arith.addf %40, %47 : vector<4x320xf32>
    %c1_i32 = arith.constant 1 : i32
    %49 = arith.addi %arg1, %c1_i32 : i32
    %c0_47 = arith.constant 0 : index
    %c0_48 = arith.constant 0 : index
    %50 = arith.index_cast %49 : i32 to index
    %c0_49 = arith.constant 0 : index
    %c0_50 = arith.constant 0 : index
    %51 = vector.load %arg2[%c0_47, %c0_48, %50, %c0_49, %c0_50] : memref<1x4x5x5x288xbf16, #tpu.memory_space<vmem>>, vector<1x1x1x4x288xbf16>
    %52 = vector.shape_cast %51 : vector<1x1x1x4x288xbf16> to vector<4x288xbf16>
    %c6 = arith.constant 6 : index
    %c0_51 = arith.constant 0 : index
    %c0_52 = arith.constant 0 : index
    %53 = vector.load %arg3[%c6, %c0_51, %c0_52] : memref<9x288x320xbf16, #tpu.memory_space<vmem>>, vector<1x288x320xbf16>
    %54 = vector.shape_cast %53 : vector<1x288x320xbf16> to vector<288x320xbf16>
    %cst_53 = arith.constant dense<0.000000e+00> : vector<4x320xf32>
    %55 = tpu.matmul %52, %54, %cst_53 {dimension_numbers = #tpu.dot_dimension_numbers<[1], [0], [0], [1], [0, 0, 1, 1], [], []>} : vector<4x288xbf16>, vector<288x320xbf16>, vector<4x320xf32> -> vector<4x320xf32>
    %56 = arith.addf %48, %55 : vector<4x320xf32>
    %c1_i32_54 = arith.constant 1 : i32
    %57 = arith.addi %arg1, %c1_i32_54 : i32
    %c0_55 = arith.constant 0 : index
    %c1_56 = arith.constant 1 : index
    %58 = arith.index_cast %57 : i32 to index
    %c0_57 = arith.constant 0 : index
    %c0_58 = arith.constant 0 : index
    %59 = vector.load %arg2[%c0_55, %c1_56, %58, %c0_57, %c0_58] : memref<1x4x5x5x288xbf16, #tpu.memory_space<vmem>>, vector<1x1x1x4x288xbf16>
    %60 = vector.shape_cast %59 : vector<1x1x1x4x288xbf16> to vector<4x288xbf16>
    %c7 = arith.constant 7 : index
    %c0_59 = arith.constant 0 : index
    %c0_60 = arith.constant 0 : index
    %61 = vector.load %arg3[%c7, %c0_59, %c0_60] : memref<9x288x320xbf16, #tpu.memory_space<vmem>>, vector<1x288x320xbf16>
    %62 = vector.shape_cast %61 : vector<1x288x320xbf16> to vector<288x320xbf16>
    %cst_61 = arith.constant dense<0.000000e+00> : vector<4x320xf32>
    %63 = tpu.matmul %60, %62, %cst_61 {dimension_numbers = #tpu.dot_dimension_numbers<[1], [0], [0], [1], [0, 0, 1, 1], [], []>} : vector<4x288xbf16>, vector<288x320xbf16>, vector<4x320xf32> -> vector<4x320xf32>
    %64 = arith.addf %56, %63 : vector<4x320xf32>
    %c1_i32_62 = arith.constant 1 : i32
    %65 = arith.addi %arg1, %c1_i32_62 : i32
    %c0_63 = arith.constant 0 : index
    %c0_64 = arith.constant 0 : index
    %66 = arith.index_cast %65 : i32 to index
    %c1_65 = arith.constant 1 : index
    %c0_66 = arith.constant 0 : index
    %67 = vector.load %arg2[%c0_63, %c0_64, %66, %c1_65, %c0_66] : memref<1x4x5x5x288xbf16, #tpu.memory_space<vmem>>, vector<1x1x1x4x288xbf16>
    %68 = vector.shape_cast %67 : vector<1x1x1x4x288xbf16> to vector<4x288xbf16>
    %c8 = arith.constant 8 : index
    %c0_67 = arith.constant 0 : index
    %c0_68 = arith.constant 0 : index
    %69 = vector.load %arg3[%c8, %c0_67, %c0_68] : memref<9x288x320xbf16, #tpu.memory_space<vmem>>, vector<1x288x320xbf16>
    %70 = vector.shape_cast %69 : vector<1x288x320xbf16> to vector<288x320xbf16>
    %cst_69 = arith.constant dense<0.000000e+00> : vector<4x320xf32>
    %71 = tpu.matmul %68, %70, %cst_69 {dimension_numbers = #tpu.dot_dimension_numbers<[1], [0], [0], [1], [0, 0, 1, 1], [], []>} : vector<4x288xbf16>, vector<288x320xbf16>, vector<4x320xf32> -> vector<4x320xf32>
    %72 = arith.addf %64, %71 : vector<4x320xf32>
    %c0_70 = arith.constant 0 : index
    %c0_71 = arith.constant 0 : index
    %73 = vector.load %arg4[%c0_70, %c0_71] : memref<1x320xf32, #tpu.memory_space<vmem>>, vector<1x320xf32>
    %74 = vector.broadcast %73 : vector<1x320xf32> to vector<4x320xf32>
    %75 = arith.addf %72, %74 : vector<4x320xf32>
    %cst_72 = arith.constant 0.000000e+00 : f32
    %76 = vector.broadcast %cst_72 : f32 to vector<4x320xf32>
    %77 = arith.maximumf %75, %76 : vector<4x320xf32>
    %c0_73 = arith.constant 0 : index
    %c0_74 = arith.constant 0 : index
    %c0_75 = arith.constant 0 : index
    %c0_76 = arith.constant 0 : index
    %78 = vector.load %arg5[%c0_73, %c0_74, %c0_75, %c0_76] : memref<1x1x4x320xf32, #tpu.memory_space<vmem>>, vector<1x1x4x320xf32>
    %79 = vector.shape_cast %78 : vector<1x1x4x320xf32> to vector<4x320xf32>
    %80 = vector.shape_cast %77 : vector<4x320xf32> to vector<1x1x4x320xf32>
    tpu.vector_store %arg5[%c0_73, %c0_74, %c0_75, %c0_76], %80 {strides = array<i32>} : memref<1x1x4x320xf32, #tpu.memory_space<vmem>>, vector<1x1x4x320xf32>,
    return
  }
  func.func @transform_0(%arg0: i32, %arg1: i32) -> (i32, i32, i32, i32, i32) {
    %c0_i32 = arith.constant 0 : i32
    %c0_i32_0 = arith.constant 0 : i32
    %c0_i32_1 = arith.constant 0 : i32
    %c0_i32_2 = arith.constant 0 : i32
    %c0_i32_3 = arith.constant 0 : i32
    return %arg0, %c0_i32, %c0_i32_0, %c0_i32_1, %c0_i32_2 : i32, i32, i32, i32, i32
  }
  func.func @transform_1(%arg0: i32, %arg1: i32) -> (i32, i32, i32) {
    %c0_i32 = arith.constant 0 : i32
    %c0_i32_0 = arith.constant 0 : i32
    %c0_i32_1 = arith.constant 0 : i32
    %c0_i32_2 = arith.constant 0 : i32
    return %c0_i32, %c0_i32_0, %c0_i32_1 : i32, i32, i32
  }
  func.func @transform_2(%arg0: i32, %arg1: i32) -> (i32, i32) {
    %c0_i32 = arith.constant 0 : i32
    %c0_i32_0 = arith.constant 0 : i32
    %c0_i32_1 = arith.constant 0 : i32
    return %c0_i32, %c0_i32_0 : i32, i32
  }
  func.func @transform_3(%arg0: i32, %arg1: i32) -> (i32, i32, i32, i32) {
    %c0_i32 = arith.constant 0 : i32
    %c0_i32_0 = arith.constant 0 : i32
    %c0_i32_1 = arith.constant 0 : i32
    return %arg0, %arg1, %c0_i32, %c0_i32_0 : i32, i32, i32, i32
  }
}

module attributes {stable_mosaic.version = 11 : i64} {
  func.func @_matmul_bias_relu_kernel(%arg0: i32, %arg1: memref<88x4xbf16, #tpu.memory_space<vmem>>, %arg2: memref<4x256xbf16, #tpu.memory_space<vmem>>, %arg3: memref<1x256xf32, #tpu.memory_space<vmem>>, %arg4: memref<88x256xbf16, #tpu.memory_space<vmem>>) attributes {dimension_semantics = [#tpu.dimension_semantics<parallel>], iteration_bounds = array<i64: 2>, scalar_prefetch = 0 : i64, scratch_operands = 0 : i64, tpu.core_type = #tpu.core_type<tc>, window_params = [{transform_indices = @transform_0, window_bounds = array<i64: 88, 4>}, {pipeline_mode = #tpu.pipeline_mode<synchronous>, transform_indices = @transform_1, window_bounds = array<i64: 4, 256>}, {pipeline_mode = #tpu.pipeline_mode<synchronous>, transform_indices = @transform_2, window_bounds = array<i64: 1, 256>}, {transform_indices = @transform_3, window_bounds = array<i64: 88, 256>}]} {
    %c0 = arith.constant 0 : index
    %c0_0 = arith.constant 0 : index
    %0 = vector.load %arg1[%c0, %c0_0] : memref<88x4xbf16, #tpu.memory_space<vmem>>, vector<88x4xbf16>
    %c0_1 = arith.constant 0 : index
    %c0_2 = arith.constant 0 : index
    %1 = vector.load %arg2[%c0_1, %c0_2] : memref<4x256xbf16, #tpu.memory_space<vmem>>, vector<4x256xbf16>
    %cst = arith.constant dense<0.000000e+00> : vector<88x256xf32>
    %2 = tpu.matmul %0, %1, %cst {dimension_numbers = #tpu.dot_dimension_numbers<[1], [0], [0], [1], [0, 0, 1, 1], [], []>} : vector<88x4xbf16>, vector<4x256xbf16>, vector<88x256xf32> -> vector<88x256xf32>
    %c0_3 = arith.constant 0 : index
    %c0_4 = arith.constant 0 : index
    %3 = vector.load %arg3[%c0_3, %c0_4] : memref<1x256xf32, #tpu.memory_space<vmem>>, vector<1x256xf32>
    %4 = vector.broadcast %3 : vector<1x256xf32> to vector<88x256xf32>
    %5 = arith.addf %2, %4 : vector<88x256xf32>
    %cst_5 = arith.constant 0.000000e+00 : f32
    %6 = vector.broadcast %cst_5 : f32 to vector<88x256xf32>
    %7 = arith.maximumf %5, %6 : vector<88x256xf32>
    %8 = arith.truncf %7 : vector<88x256xf32> to vector<88x256xbf16>
    %c0_6 = arith.constant 0 : index
    %c0_7 = arith.constant 0 : index
    %9 = vector.load %arg4[%c0_6, %c0_7] : memref<88x256xbf16, #tpu.memory_space<vmem>>, vector<88x256xbf16>
    tpu.vector_store %arg4[%c0_6, %c0_7], %8 {strides = array<i32>} : memref<88x256xbf16, #tpu.memory_space<vmem>>, vector<88x256xbf16>,
    return
  }
  func.func @transform_0(%arg0: i32) -> (i32, i32) {
    %c0_i32 = arith.constant 0 : i32
    %c0_i32_0 = arith.constant 0 : i32
    return %arg0, %c0_i32 : i32, i32
  }
  func.func @transform_1(%arg0: i32) -> (i32, i32) {
    %c0_i32 = arith.constant 0 : i32
    %c0_i32_0 = arith.constant 0 : i32
    %c0_i32_1 = arith.constant 0 : i32
    return %c0_i32, %c0_i32_0 : i32, i32
  }
  func.func @transform_2(%arg0: i32) -> (i32, i32) {
    %c0_i32 = arith.constant 0 : i32
    %c0_i32_0 = arith.constant 0 : i32
    %c0_i32_1 = arith.constant 0 : i32
    return %c0_i32, %c0_i32_0 : i32, i32
  }
  func.func @transform_3(%arg0: i32) -> (i32, i32) {
    %c0_i32 = arith.constant 0 : i32
    %c0_i32_0 = arith.constant 0 : i32
    return %arg0, %c0_i32 : i32, i32
  }
}

module attributes {stable_mosaic.version = 11 : i64} {
  func.func @_conv3x3_s2_kernel(%arg0: i32, %arg1: i32, %arg2: memref<1x4x5x5x256xbf16, #tpu.memory_space<vmem>>, %arg3: memref<9x256x288xbf16, #tpu.memory_space<vmem>>, %arg4: memref<1x288xf32, #tpu.memory_space<vmem>>, %arg5: memref<1x1x4x288xf32, #tpu.memory_space<vmem>>) attributes {dimension_semantics = [#tpu.dimension_semantics<parallel>, #tpu.dimension_semantics<arbitrary>], iteration_bounds = array<i64: 2, 4>, scalar_prefetch = 0 : i64, scratch_operands = 0 : i64, tpu.core_type = #tpu.core_type<tc>, window_params = [{transform_indices = @transform_0, window_bounds = array<i64: 1, 4, 5, 5, 256>}, {pipeline_mode = #tpu.pipeline_mode<synchronous>, transform_indices = @transform_1, window_bounds = array<i64: 9, 256, 288>}, {pipeline_mode = #tpu.pipeline_mode<synchronous>, transform_indices = @transform_2, window_bounds = array<i64: 1, 288>}, {transform_indices = @transform_3, window_bounds = array<i64: 1, 1, 4, 288>}]} {
    %cst = arith.constant 0.000000e+00 : f32
    %0 = vector.broadcast %cst : f32 to vector<4x288xf32>
    %c0_i32 = arith.constant 0 : i32
    %1 = arith.addi %arg1, %c0_i32 : i32
    %c0 = arith.constant 0 : index
    %c0_0 = arith.constant 0 : index
    %2 = arith.index_cast %1 : i32 to index
    %c0_1 = arith.constant 0 : index
    %c0_2 = arith.constant 0 : index
    %3 = vector.load %arg2[%c0, %c0_0, %2, %c0_1, %c0_2] : memref<1x4x5x5x256xbf16, #tpu.memory_space<vmem>>, vector<1x1x1x4x256xbf16>
    %4 = vector.shape_cast %3 : vector<1x1x1x4x256xbf16> to vector<4x256xbf16>
    %c0_3 = arith.constant 0 : index
    %c0_4 = arith.constant 0 : index
    %c0_5 = arith.constant 0 : index
    %5 = vector.load %arg3[%c0_3, %c0_4, %c0_5] : memref<9x256x288xbf16, #tpu.memory_space<vmem>>, vector<1x256x288xbf16>
    %6 = vector.shape_cast %5 : vector<1x256x288xbf16> to vector<256x288xbf16>
    %cst_6 = arith.constant dense<0.000000e+00> : vector<4x288xf32>
    %7 = tpu.matmul %4, %6, %cst_6 {dimension_numbers = #tpu.dot_dimension_numbers<[1], [0], [0], [1], [0, 0, 1, 1], [], []>} : vector<4x256xbf16>, vector<256x288xbf16>, vector<4x288xf32> -> vector<4x288xf32>
    %8 = arith.addf %0, %7 : vector<4x288xf32>
    %c0_i32_7 = arith.constant 0 : i32
    %9 = arith.addi %arg1, %c0_i32_7 : i32
    %c0_8 = arith.constant 0 : index
    %c1 = arith.constant 1 : index
    %10 = arith.index_cast %9 : i32 to index
    %c0_9 = arith.constant 0 : index
    %c0_10 = arith.constant 0 : index
    %11 = vector.load %arg2[%c0_8, %c1, %10, %c0_9, %c0_10] : memref<1x4x5x5x256xbf16, #tpu.memory_space<vmem>>, vector<1x1x1x4x256xbf16>
    %12 = vector.shape_cast %11 : vector<1x1x1x4x256xbf16> to vector<4x256xbf16>
    %c1_11 = arith.constant 1 : index
    %c0_12 = arith.constant 0 : index
    %c0_13 = arith.constant 0 : index
    %13 = vector.load %arg3[%c1_11, %c0_12, %c0_13] : memref<9x256x288xbf16, #tpu.memory_space<vmem>>, vector<1x256x288xbf16>
    %14 = vector.shape_cast %13 : vector<1x256x288xbf16> to vector<256x288xbf16>
    %cst_14 = arith.constant dense<0.000000e+00> : vector<4x288xf32>
    %15 = tpu.matmul %12, %14, %cst_14 {dimension_numbers = #tpu.dot_dimension_numbers<[1], [0], [0], [1], [0, 0, 1, 1], [], []>} : vector<4x256xbf16>, vector<256x288xbf16>, vector<4x288xf32> -> vector<4x288xf32>
    %16 = arith.addf %8, %15 : vector<4x288xf32>
    %c0_i32_15 = arith.constant 0 : i32
    %17 = arith.addi %arg1, %c0_i32_15 : i32
    %c0_16 = arith.constant 0 : index
    %c0_17 = arith.constant 0 : index
    %18 = arith.index_cast %17 : i32 to index
    %c1_18 = arith.constant 1 : index
    %c0_19 = arith.constant 0 : index
    %19 = vector.load %arg2[%c0_16, %c0_17, %18, %c1_18, %c0_19] : memref<1x4x5x5x256xbf16, #tpu.memory_space<vmem>>, vector<1x1x1x4x256xbf16>
    %20 = vector.shape_cast %19 : vector<1x1x1x4x256xbf16> to vector<4x256xbf16>
    %c2 = arith.constant 2 : index
    %c0_20 = arith.constant 0 : index
    %c0_21 = arith.constant 0 : index
    %21 = vector.load %arg3[%c2, %c0_20, %c0_21] : memref<9x256x288xbf16, #tpu.memory_space<vmem>>, vector<1x256x288xbf16>
    %22 = vector.shape_cast %21 : vector<1x256x288xbf16> to vector<256x288xbf16>
    %cst_22 = arith.constant dense<0.000000e+00> : vector<4x288xf32>
    %23 = tpu.matmul %20, %22, %cst_22 {dimension_numbers = #tpu.dot_dimension_numbers<[1], [0], [0], [1], [0, 0, 1, 1], [], []>} : vector<4x256xbf16>, vector<256x288xbf16>, vector<4x288xf32> -> vector<4x288xf32>
    %24 = arith.addf %16, %23 : vector<4x288xf32>
    %c0_i32_23 = arith.constant 0 : i32
    %25 = arith.addi %arg1, %c0_i32_23 : i32
    %c0_24 = arith.constant 0 : index
    %c2_25 = arith.constant 2 : index
    %26 = arith.index_cast %25 : i32 to index
    %c0_26 = arith.constant 0 : index
    %c0_27 = arith.constant 0 : index
    %27 = vector.load %arg2[%c0_24, %c2_25, %26, %c0_26, %c0_27] : memref<1x4x5x5x256xbf16, #tpu.memory_space<vmem>>, vector<1x1x1x4x256xbf16>
    %28 = vector.shape_cast %27 : vector<1x1x1x4x256xbf16> to vector<4x256xbf16>
    %c3 = arith.constant 3 : index
    %c0_28 = arith.constant 0 : index
    %c0_29 = arith.constant 0 : index
    %29 = vector.load %arg3[%c3, %c0_28, %c0_29] : memref<9x256x288xbf16, #tpu.memory_space<vmem>>, vector<1x256x288xbf16>
    %30 = vector.shape_cast %29 : vector<1x256x288xbf16> to vector<256x288xbf16>
    %cst_30 = arith.constant dense<0.000000e+00> : vector<4x288xf32>
    %31 = tpu.matmul %28, %30, %cst_30 {dimension_numbers = #tpu.dot_dimension_numbers<[1], [0], [0], [1], [0, 0, 1, 1], [], []>} : vector<4x256xbf16>, vector<256x288xbf16>, vector<4x288xf32> -> vector<4x288xf32>
    %32 = arith.addf %24, %31 : vector<4x288xf32>
    %c0_i32_31 = arith.constant 0 : i32
    %33 = arith.addi %arg1, %c0_i32_31 : i32
    %c0_32 = arith.constant 0 : index
    %c3_33 = arith.constant 3 : index
    %34 = arith.index_cast %33 : i32 to index
    %c0_34 = arith.constant 0 : index
    %c0_35 = arith.constant 0 : index
    %35 = vector.load %arg2[%c0_32, %c3_33, %34, %c0_34, %c0_35] : memref<1x4x5x5x256xbf16, #tpu.memory_space<vmem>>, vector<1x1x1x4x256xbf16>
    %36 = vector.shape_cast %35 : vector<1x1x1x4x256xbf16> to vector<4x256xbf16>
    %c4 = arith.constant 4 : index
    %c0_36 = arith.constant 0 : index
    %c0_37 = arith.constant 0 : index
    %37 = vector.load %arg3[%c4, %c0_36, %c0_37] : memref<9x256x288xbf16, #tpu.memory_space<vmem>>, vector<1x256x288xbf16>
    %38 = vector.shape_cast %37 : vector<1x256x288xbf16> to vector<256x288xbf16>
    %cst_38 = arith.constant dense<0.000000e+00> : vector<4x288xf32>
    %39 = tpu.matmul %36, %38, %cst_38 {dimension_numbers = #tpu.dot_dimension_numbers<[1], [0], [0], [1], [0, 0, 1, 1], [], []>} : vector<4x256xbf16>, vector<256x288xbf16>, vector<4x288xf32> -> vector<4x288xf32>
    %40 = arith.addf %32, %39 : vector<4x288xf32>
    %c0_i32_39 = arith.constant 0 : i32
    %41 = arith.addi %arg1, %c0_i32_39 : i32
    %c0_40 = arith.constant 0 : index
    %c2_41 = arith.constant 2 : index
    %42 = arith.index_cast %41 : i32 to index
    %c1_42 = arith.constant 1 : index
    %c0_43 = arith.constant 0 : index
    %43 = vector.load %arg2[%c0_40, %c2_41, %42, %c1_42, %c0_43] : memref<1x4x5x5x256xbf16, #tpu.memory_space<vmem>>, vector<1x1x1x4x256xbf16>
    %44 = vector.shape_cast %43 : vector<1x1x1x4x256xbf16> to vector<4x256xbf16>
    %c5 = arith.constant 5 : index
    %c0_44 = arith.constant 0 : index
    %c0_45 = arith.constant 0 : index
    %45 = vector.load %arg3[%c5, %c0_44, %c0_45] : memref<9x256x288xbf16, #tpu.memory_space<vmem>>, vector<1x256x288xbf16>
    %46 = vector.shape_cast %45 : vector<1x256x288xbf16> to vector<256x288xbf16>
    %cst_46 = arith.constant dense<0.000000e+00> : vector<4x288xf32>
    %47 = tpu.matmul %44, %46, %cst_46 {dimension_numbers = #tpu.dot_dimension_numbers<[1], [0], [0], [1], [0, 0, 1, 1], [], []>} : vector<4x256xbf16>, vector<256x288xbf16>, vector<4x288xf32> -> vector<4x288xf32>
    %48 = arith.addf %40, %47 : vector<4x288xf32>
    %c1_i32 = arith.constant 1 : i32
    %49 = arith.addi %arg1, %c1_i32 : i32
    %c0_47 = arith.constant 0 : index
    %c0_48 = arith.constant 0 : index
    %50 = arith.index_cast %49 : i32 to index
    %c0_49 = arith.constant 0 : index
    %c0_50 = arith.constant 0 : index
    %51 = vector.load %arg2[%c0_47, %c0_48, %50, %c0_49, %c0_50] : memref<1x4x5x5x256xbf16, #tpu.memory_space<vmem>>, vector<1x1x1x4x256xbf16>
    %52 = vector.shape_cast %51 : vector<1x1x1x4x256xbf16> to vector<4x256xbf16>
    %c6 = arith.constant 6 : index
    %c0_51 = arith.constant 0 : index
    %c0_52 = arith.constant 0 : index
    %53 = vector.load %arg3[%c6, %c0_51, %c0_52] : memref<9x256x288xbf16, #tpu.memory_space<vmem>>, vector<1x256x288xbf16>
    %54 = vector.shape_cast %53 : vector<1x256x288xbf16> to vector<256x288xbf16>
    %cst_53 = arith.constant dense<0.000000e+00> : vector<4x288xf32>
    %55 = tpu.matmul %52, %54, %cst_53 {dimension_numbers = #tpu.dot_dimension_numbers<[1], [0], [0], [1], [0, 0, 1, 1], [], []>} : vector<4x256xbf16>, vector<256x288xbf16>, vector<4x288xf32> -> vector<4x288xf32>
    %56 = arith.addf %48, %55 : vector<4x288xf32>
    %c1_i32_54 = arith.constant 1 : i32
    %57 = arith.addi %arg1, %c1_i32_54 : i32
    %c0_55 = arith.constant 0 : index
    %c1_56 = arith.constant 1 : index
    %58 = arith.index_cast %57 : i32 to index
    %c0_57 = arith.constant 0 : index
    %c0_58 = arith.constant 0 : index
    %59 = vector.load %arg2[%c0_55, %c1_56, %58, %c0_57, %c0_58] : memref<1x4x5x5x256xbf16, #tpu.memory_space<vmem>>, vector<1x1x1x4x256xbf16>
    %60 = vector.shape_cast %59 : vector<1x1x1x4x256xbf16> to vector<4x256xbf16>
    %c7 = arith.constant 7 : index
    %c0_59 = arith.constant 0 : index
    %c0_60 = arith.constant 0 : index
    %61 = vector.load %arg3[%c7, %c0_59, %c0_60] : memref<9x256x288xbf16, #tpu.memory_space<vmem>>, vector<1x256x288xbf16>
    %62 = vector.shape_cast %61 : vector<1x256x288xbf16> to vector<256x288xbf16>
    %cst_61 = arith.constant dense<0.000000e+00> : vector<4x288xf32>
    %63 = tpu.matmul %60, %62, %cst_61 {dimension_numbers = #tpu.dot_dimension_numbers<[1], [0], [0], [1], [0, 0, 1, 1], [], []>} : vector<4x256xbf16>, vector<256x288xbf16>, vector<4x288xf32> -> vector<4x288xf32>
    %64 = arith.addf %56, %63 : vector<4x288xf32>
    %c1_i32_62 = arith.constant 1 : i32
    %65 = arith.addi %arg1, %c1_i32_62 : i32
    %c0_63 = arith.constant 0 : index
    %c0_64 = arith.constant 0 : index
    %66 = arith.index_cast %65 : i32 to index
    %c1_65 = arith.constant 1 : index
    %c0_66 = arith.constant 0 : index
    %67 = vector.load %arg2[%c0_63, %c0_64, %66, %c1_65, %c0_66] : memref<1x4x5x5x256xbf16, #tpu.memory_space<vmem>>, vector<1x1x1x4x256xbf16>
    %68 = vector.shape_cast %67 : vector<1x1x1x4x256xbf16> to vector<4x256xbf16>
    %c8 = arith.constant 8 : index
    %c0_67 = arith.constant 0 : index
    %c0_68 = arith.constant 0 : index
    %69 = vector.load %arg3[%c8, %c0_67, %c0_68] : memref<9x256x288xbf16, #tpu.memory_space<vmem>>, vector<1x256x288xbf16>
    %70 = vector.shape_cast %69 : vector<1x256x288xbf16> to vector<256x288xbf16>
    %cst_69 = arith.constant dense<0.000000e+00> : vector<4x288xf32>
    %71 = tpu.matmul %68, %70, %cst_69 {dimension_numbers = #tpu.dot_dimension_numbers<[1], [0], [0], [1], [0, 0, 1, 1], [], []>} : vector<4x256xbf16>, vector<256x288xbf16>, vector<4x288xf32> -> vector<4x288xf32>
    %72 = arith.addf %64, %71 : vector<4x288xf32>
    %c0_70 = arith.constant 0 : index
    %c0_71 = arith.constant 0 : index
    %73 = vector.load %arg4[%c0_70, %c0_71] : memref<1x288xf32, #tpu.memory_space<vmem>>, vector<1x288xf32>
    %74 = vector.broadcast %73 : vector<1x288xf32> to vector<4x288xf32>
    %75 = arith.addf %72, %74 : vector<4x288xf32>
    %cst_72 = arith.constant 0.000000e+00 : f32
    %76 = vector.broadcast %cst_72 : f32 to vector<4x288xf32>
    %77 = arith.maximumf %75, %76 : vector<4x288xf32>
    %c0_73 = arith.constant 0 : index
    %c0_74 = arith.constant 0 : index
    %c0_75 = arith.constant 0 : index
    %c0_76 = arith.constant 0 : index
    %78 = vector.load %arg5[%c0_73, %c0_74, %c0_75, %c0_76] : memref<1x1x4x288xf32, #tpu.memory_space<vmem>>, vector<1x1x4x288xf32>
    %79 = vector.shape_cast %78 : vector<1x1x4x288xf32> to vector<4x288xf32>
    %80 = vector.shape_cast %77 : vector<4x288xf32> to vector<1x1x4x288xf32>
    tpu.vector_store %arg5[%c0_73, %c0_74, %c0_75, %c0_76], %80 {strides = array<i32>} : memref<1x1x4x288xf32, #tpu.memory_space<vmem>>, vector<1x1x4x288xf32>,
    return
  }
  func.func @transform_0(%arg0: i32, %arg1: i32) -> (i32, i32, i32, i32, i32) {
    %c0_i32 = arith.constant 0 : i32
    %c0_i32_0 = arith.constant 0 : i32
    %c0_i32_1 = arith.constant 0 : i32
    %c0_i32_2 = arith.constant 0 : i32
    %c0_i32_3 = arith.constant 0 : i32
    return %arg0, %c0_i32, %c0_i32_0, %c0_i32_1, %c0_i32_2 : i32, i32, i32, i32, i32
  }
  func.func @transform_1(%arg0: i32, %arg1: i32) -> (i32, i32, i32) {
    %c0_i32 = arith.constant 0 : i32
    %c0_i32_0 = arith.constant 0 : i32
    %c0_i32_1 = arith.constant 0 : i32
    %c0_i32_2 = arith.constant 0 : i32
    return %c0_i32, %c0_i32_0, %c0_i32_1 : i32, i32, i32
  }
  func.func @transform_2(%arg0: i32, %arg1: i32) -> (i32, i32) {
    %c0_i32 = arith.constant 0 : i32
    %c0_i32_0 = arith.constant 0 : i32
    %c0_i32_1 = arith.constant 0 : i32
    return %c0_i32, %c0_i32_0 : i32, i32
  }
  func.func @transform_3(%arg0: i32, %arg1: i32) -> (i32, i32, i32, i32) {
    %c0_i32 = arith.constant 0 : i32
    %c0_i32_0 = arith.constant 0 : i32
    %c0_i32_1 = arith.constant 0 : i32
    return %arg0, %arg1, %c0_i32, %c0_i32_0 : i32, i32, i32, i32
  }
}

module attributes {stable_mosaic.version = 11 : i64} {
  func.func @_conv3x3_s2_kernel(%arg0: i32, %arg1: i32, %arg2: memref<1x4x5x5x256xbf16, #tpu.memory_space<vmem>>, %arg3: memref<9x256x384xbf16, #tpu.memory_space<vmem>>, %arg4: memref<1x384xf32, #tpu.memory_space<vmem>>, %arg5: memref<1x1x4x384xf32, #tpu.memory_space<vmem>>) attributes {dimension_semantics = [#tpu.dimension_semantics<parallel>, #tpu.dimension_semantics<arbitrary>], iteration_bounds = array<i64: 2, 4>, scalar_prefetch = 0 : i64, scratch_operands = 0 : i64, tpu.core_type = #tpu.core_type<tc>, window_params = [{transform_indices = @transform_0, window_bounds = array<i64: 1, 4, 5, 5, 256>}, {pipeline_mode = #tpu.pipeline_mode<synchronous>, transform_indices = @transform_1, window_bounds = array<i64: 9, 256, 384>}, {pipeline_mode = #tpu.pipeline_mode<synchronous>, transform_indices = @transform_2, window_bounds = array<i64: 1, 384>}, {transform_indices = @transform_3, window_bounds = array<i64: 1, 1, 4, 384>}]} {
    %cst = arith.constant 0.000000e+00 : f32
    %0 = vector.broadcast %cst : f32 to vector<4x384xf32>
    %c0_i32 = arith.constant 0 : i32
    %1 = arith.addi %arg1, %c0_i32 : i32
    %c0 = arith.constant 0 : index
    %c0_0 = arith.constant 0 : index
    %2 = arith.index_cast %1 : i32 to index
    %c0_1 = arith.constant 0 : index
    %c0_2 = arith.constant 0 : index
    %3 = vector.load %arg2[%c0, %c0_0, %2, %c0_1, %c0_2] : memref<1x4x5x5x256xbf16, #tpu.memory_space<vmem>>, vector<1x1x1x4x256xbf16>
    %4 = vector.shape_cast %3 : vector<1x1x1x4x256xbf16> to vector<4x256xbf16>
    %c0_3 = arith.constant 0 : index
    %c0_4 = arith.constant 0 : index
    %c0_5 = arith.constant 0 : index
    %5 = vector.load %arg3[%c0_3, %c0_4, %c0_5] : memref<9x256x384xbf16, #tpu.memory_space<vmem>>, vector<1x256x384xbf16>
    %6 = vector.shape_cast %5 : vector<1x256x384xbf16> to vector<256x384xbf16>
    %cst_6 = arith.constant dense<0.000000e+00> : vector<4x384xf32>
    %7 = tpu.matmul %4, %6, %cst_6 {dimension_numbers = #tpu.dot_dimension_numbers<[1], [0], [0], [1], [0, 0, 1, 1], [], []>} : vector<4x256xbf16>, vector<256x384xbf16>, vector<4x384xf32> -> vector<4x384xf32>
    %8 = arith.addf %0, %7 : vector<4x384xf32>
    %c0_i32_7 = arith.constant 0 : i32
    %9 = arith.addi %arg1, %c0_i32_7 : i32
    %c0_8 = arith.constant 0 : index
    %c1 = arith.constant 1 : index
    %10 = arith.index_cast %9 : i32 to index
    %c0_9 = arith.constant 0 : index
    %c0_10 = arith.constant 0 : index
    %11 = vector.load %arg2[%c0_8, %c1, %10, %c0_9, %c0_10] : memref<1x4x5x5x256xbf16, #tpu.memory_space<vmem>>, vector<1x1x1x4x256xbf16>
    %12 = vector.shape_cast %11 : vector<1x1x1x4x256xbf16> to vector<4x256xbf16>
    %c1_11 = arith.constant 1 : index
    %c0_12 = arith.constant 0 : index
    %c0_13 = arith.constant 0 : index
    %13 = vector.load %arg3[%c1_11, %c0_12, %c0_13] : memref<9x256x384xbf16, #tpu.memory_space<vmem>>, vector<1x256x384xbf16>
    %14 = vector.shape_cast %13 : vector<1x256x384xbf16> to vector<256x384xbf16>
    %cst_14 = arith.constant dense<0.000000e+00> : vector<4x384xf32>
    %15 = tpu.matmul %12, %14, %cst_14 {dimension_numbers = #tpu.dot_dimension_numbers<[1], [0], [0], [1], [0, 0, 1, 1], [], []>} : vector<4x256xbf16>, vector<256x384xbf16>, vector<4x384xf32> -> vector<4x384xf32>
    %16 = arith.addf %8, %15 : vector<4x384xf32>
    %c0_i32_15 = arith.constant 0 : i32
    %17 = arith.addi %arg1, %c0_i32_15 : i32
    %c0_16 = arith.constant 0 : index
    %c0_17 = arith.constant 0 : index
    %18 = arith.index_cast %17 : i32 to index
    %c1_18 = arith.constant 1 : index
    %c0_19 = arith.constant 0 : index
    %19 = vector.load %arg2[%c0_16, %c0_17, %18, %c1_18, %c0_19] : memref<1x4x5x5x256xbf16, #tpu.memory_space<vmem>>, vector<1x1x1x4x256xbf16>
    %20 = vector.shape_cast %19 : vector<1x1x1x4x256xbf16> to vector<4x256xbf16>
    %c2 = arith.constant 2 : index
    %c0_20 = arith.constant 0 : index
    %c0_21 = arith.constant 0 : index
    %21 = vector.load %arg3[%c2, %c0_20, %c0_21] : memref<9x256x384xbf16, #tpu.memory_space<vmem>>, vector<1x256x384xbf16>
    %22 = vector.shape_cast %21 : vector<1x256x384xbf16> to vector<256x384xbf16>
    %cst_22 = arith.constant dense<0.000000e+00> : vector<4x384xf32>
    %23 = tpu.matmul %20, %22, %cst_22 {dimension_numbers = #tpu.dot_dimension_numbers<[1], [0], [0], [1], [0, 0, 1, 1], [], []>} : vector<4x256xbf16>, vector<256x384xbf16>, vector<4x384xf32> -> vector<4x384xf32>
    %24 = arith.addf %16, %23 : vector<4x384xf32>
    %c0_i32_23 = arith.constant 0 : i32
    %25 = arith.addi %arg1, %c0_i32_23 : i32
    %c0_24 = arith.constant 0 : index
    %c2_25 = arith.constant 2 : index
    %26 = arith.index_cast %25 : i32 to index
    %c0_26 = arith.constant 0 : index
    %c0_27 = arith.constant 0 : index
    %27 = vector.load %arg2[%c0_24, %c2_25, %26, %c0_26, %c0_27] : memref<1x4x5x5x256xbf16, #tpu.memory_space<vmem>>, vector<1x1x1x4x256xbf16>
    %28 = vector.shape_cast %27 : vector<1x1x1x4x256xbf16> to vector<4x256xbf16>
    %c3 = arith.constant 3 : index
    %c0_28 = arith.constant 0 : index
    %c0_29 = arith.constant 0 : index
    %29 = vector.load %arg3[%c3, %c0_28, %c0_29] : memref<9x256x384xbf16, #tpu.memory_space<vmem>>, vector<1x256x384xbf16>
    %30 = vector.shape_cast %29 : vector<1x256x384xbf16> to vector<256x384xbf16>
    %cst_30 = arith.constant dense<0.000000e+00> : vector<4x384xf32>
    %31 = tpu.matmul %28, %30, %cst_30 {dimension_numbers = #tpu.dot_dimension_numbers<[1], [0], [0], [1], [0, 0, 1, 1], [], []>} : vector<4x256xbf16>, vector<256x384xbf16>, vector<4x384xf32> -> vector<4x384xf32>
    %32 = arith.addf %24, %31 : vector<4x384xf32>
    %c0_i32_31 = arith.constant 0 : i32
    %33 = arith.addi %arg1, %c0_i32_31 : i32
    %c0_32 = arith.constant 0 : index
    %c3_33 = arith.constant 3 : index
    %34 = arith.index_cast %33 : i32 to index
    %c0_34 = arith.constant 0 : index
    %c0_35 = arith.constant 0 : index
    %35 = vector.load %arg2[%c0_32, %c3_33, %34, %c0_34, %c0_35] : memref<1x4x5x5x256xbf16, #tpu.memory_space<vmem>>, vector<1x1x1x4x256xbf16>
    %36 = vector.shape_cast %35 : vector<1x1x1x4x256xbf16> to vector<4x256xbf16>
    %c4 = arith.constant 4 : index
    %c0_36 = arith.constant 0 : index
    %c0_37 = arith.constant 0 : index
    %37 = vector.load %arg3[%c4, %c0_36, %c0_37] : memref<9x256x384xbf16, #tpu.memory_space<vmem>>, vector<1x256x384xbf16>
    %38 = vector.shape_cast %37 : vector<1x256x384xbf16> to vector<256x384xbf16>
    %cst_38 = arith.constant dense<0.000000e+00> : vector<4x384xf32>
    %39 = tpu.matmul %36, %38, %cst_38 {dimension_numbers = #tpu.dot_dimension_numbers<[1], [0], [0], [1], [0, 0, 1, 1], [], []>} : vector<4x256xbf16>, vector<256x384xbf16>, vector<4x384xf32> -> vector<4x384xf32>
    %40 = arith.addf %32, %39 : vector<4x384xf32>
    %c0_i32_39 = arith.constant 0 : i32
    %41 = arith.addi %arg1, %c0_i32_39 : i32
    %c0_40 = arith.constant 0 : index
    %c2_41 = arith.constant 2 : index
    %42 = arith.index_cast %41 : i32 to index
    %c1_42 = arith.constant 1 : index
    %c0_43 = arith.constant 0 : index
    %43 = vector.load %arg2[%c0_40, %c2_41, %42, %c1_42, %c0_43] : memref<1x4x5x5x256xbf16, #tpu.memory_space<vmem>>, vector<1x1x1x4x256xbf16>
    %44 = vector.shape_cast %43 : vector<1x1x1x4x256xbf16> to vector<4x256xbf16>
    %c5 = arith.constant 5 : index
    %c0_44 = arith.constant 0 : index
    %c0_45 = arith.constant 0 : index
    %45 = vector.load %arg3[%c5, %c0_44, %c0_45] : memref<9x256x384xbf16, #tpu.memory_space<vmem>>, vector<1x256x384xbf16>
    %46 = vector.shape_cast %45 : vector<1x256x384xbf16> to vector<256x384xbf16>
    %cst_46 = arith.constant dense<0.000000e+00> : vector<4x384xf32>
    %47 = tpu.matmul %44, %46, %cst_46 {dimension_numbers = #tpu.dot_dimension_numbers<[1], [0], [0], [1], [0, 0, 1, 1], [], []>} : vector<4x256xbf16>, vector<256x384xbf16>, vector<4x384xf32> -> vector<4x384xf32>
    %48 = arith.addf %40, %47 : vector<4x384xf32>
    %c1_i32 = arith.constant 1 : i32
    %49 = arith.addi %arg1, %c1_i32 : i32
    %c0_47 = arith.constant 0 : index
    %c0_48 = arith.constant 0 : index
    %50 = arith.index_cast %49 : i32 to index
    %c0_49 = arith.constant 0 : index
    %c0_50 = arith.constant 0 : index
    %51 = vector.load %arg2[%c0_47, %c0_48, %50, %c0_49, %c0_50] : memref<1x4x5x5x256xbf16, #tpu.memory_space<vmem>>, vector<1x1x1x4x256xbf16>
    %52 = vector.shape_cast %51 : vector<1x1x1x4x256xbf16> to vector<4x256xbf16>
    %c6 = arith.constant 6 : index
    %c0_51 = arith.constant 0 : index
    %c0_52 = arith.constant 0 : index
    %53 = vector.load %arg3[%c6, %c0_51, %c0_52] : memref<9x256x384xbf16, #tpu.memory_space<vmem>>, vector<1x256x384xbf16>
    %54 = vector.shape_cast %53 : vector<1x256x384xbf16> to vector<256x384xbf16>
    %cst_53 = arith.constant dense<0.000000e+00> : vector<4x384xf32>
    %55 = tpu.matmul %52, %54, %cst_53 {dimension_numbers = #tpu.dot_dimension_numbers<[1], [0], [0], [1], [0, 0, 1, 1], [], []>} : vector<4x256xbf16>, vector<256x384xbf16>, vector<4x384xf32> -> vector<4x384xf32>
    %56 = arith.addf %48, %55 : vector<4x384xf32>
    %c1_i32_54 = arith.constant 1 : i32
    %57 = arith.addi %arg1, %c1_i32_54 : i32
    %c0_55 = arith.constant 0 : index
    %c1_56 = arith.constant 1 : index
    %58 = arith.index_cast %57 : i32 to index
    %c0_57 = arith.constant 0 : index
    %c0_58 = arith.constant 0 : index
    %59 = vector.load %arg2[%c0_55, %c1_56, %58, %c0_57, %c0_58] : memref<1x4x5x5x256xbf16, #tpu.memory_space<vmem>>, vector<1x1x1x4x256xbf16>
    %60 = vector.shape_cast %59 : vector<1x1x1x4x256xbf16> to vector<4x256xbf16>
    %c7 = arith.constant 7 : index
    %c0_59 = arith.constant 0 : index
    %c0_60 = arith.constant 0 : index
    %61 = vector.load %arg3[%c7, %c0_59, %c0_60] : memref<9x256x384xbf16, #tpu.memory_space<vmem>>, vector<1x256x384xbf16>
    %62 = vector.shape_cast %61 : vector<1x256x384xbf16> to vector<256x384xbf16>
    %cst_61 = arith.constant dense<0.000000e+00> : vector<4x384xf32>
    %63 = tpu.matmul %60, %62, %cst_61 {dimension_numbers = #tpu.dot_dimension_numbers<[1], [0], [0], [1], [0, 0, 1, 1], [], []>} : vector<4x256xbf16>, vector<256x384xbf16>, vector<4x384xf32> -> vector<4x384xf32>
    %64 = arith.addf %56, %63 : vector<4x384xf32>
    %c1_i32_62 = arith.constant 1 : i32
    %65 = arith.addi %arg1, %c1_i32_62 : i32
    %c0_63 = arith.constant 0 : index
    %c0_64 = arith.constant 0 : index
    %66 = arith.index_cast %65 : i32 to index
    %c1_65 = arith.constant 1 : index
    %c0_66 = arith.constant 0 : index
    %67 = vector.load %arg2[%c0_63, %c0_64, %66, %c1_65, %c0_66] : memref<1x4x5x5x256xbf16, #tpu.memory_space<vmem>>, vector<1x1x1x4x256xbf16>
    %68 = vector.shape_cast %67 : vector<1x1x1x4x256xbf16> to vector<4x256xbf16>
    %c8 = arith.constant 8 : index
    %c0_67 = arith.constant 0 : index
    %c0_68 = arith.constant 0 : index
    %69 = vector.load %arg3[%c8, %c0_67, %c0_68] : memref<9x256x384xbf16, #tpu.memory_space<vmem>>, vector<1x256x384xbf16>
    %70 = vector.shape_cast %69 : vector<1x256x384xbf16> to vector<256x384xbf16>
    %cst_69 = arith.constant dense<0.000000e+00> : vector<4x384xf32>
    %71 = tpu.matmul %68, %70, %cst_69 {dimension_numbers = #tpu.dot_dimension_numbers<[1], [0], [0], [1], [0, 0, 1, 1], [], []>} : vector<4x256xbf16>, vector<256x384xbf16>, vector<4x384xf32> -> vector<4x384xf32>
    %72 = arith.addf %64, %71 : vector<4x384xf32>
    %c0_70 = arith.constant 0 : index
    %c0_71 = arith.constant 0 : index
    %73 = vector.load %arg4[%c0_70, %c0_71] : memref<1x384xf32, #tpu.memory_space<vmem>>, vector<1x384xf32>
    %74 = vector.broadcast %73 : vector<1x384xf32> to vector<4x384xf32>
    %75 = arith.addf %72, %74 : vector<4x384xf32>
    %cst_72 = arith.constant 0.000000e+00 : f32
    %76 = vector.broadcast %cst_72 : f32 to vector<4x384xf32>
    %77 = arith.maximumf %75, %76 : vector<4x384xf32>
    %c0_73 = arith.constant 0 : index
    %c0_74 = arith.constant 0 : index
    %c0_75 = arith.constant 0 : index
    %c0_76 = arith.constant 0 : index
    %78 = vector.load %arg5[%c0_73, %c0_74, %c0_75, %c0_76] : memref<1x1x4x384xf32, #tpu.memory_space<vmem>>, vector<1x1x4x384xf32>
    %79 = vector.shape_cast %78 : vector<1x1x4x384xf32> to vector<4x384xf32>
    %80 = vector.shape_cast %77 : vector<4x384xf32> to vector<1x1x4x384xf32>
    tpu.vector_store %arg5[%c0_73, %c0_74, %c0_75, %c0_76], %80 {strides = array<i32>} : memref<1x1x4x384xf32, #tpu.memory_space<vmem>>, vector<1x1x4x384xf32>,
    return
  }
  func.func @transform_0(%arg0: i32, %arg1: i32) -> (i32, i32, i32, i32, i32) {
    %c0_i32 = arith.constant 0 : i32
    %c0_i32_0 = arith.constant 0 : i32
    %c0_i32_1 = arith.constant 0 : i32
    %c0_i32_2 = arith.constant 0 : i32
    %c0_i32_3 = arith.constant 0 : i32
    return %arg0, %c0_i32, %c0_i32_0, %c0_i32_1, %c0_i32_2 : i32, i32, i32, i32, i32
  }
  func.func @transform_1(%arg0: i32, %arg1: i32) -> (i32, i32, i32) {
    %c0_i32 = arith.constant 0 : i32
    %c0_i32_0 = arith.constant 0 : i32
    %c0_i32_1 = arith.constant 0 : i32
    %c0_i32_2 = arith.constant 0 : i32
    return %c0_i32, %c0_i32_0, %c0_i32_1 : i32, i32, i32
  }
  func.func @transform_2(%arg0: i32, %arg1: i32) -> (i32, i32) {
    %c0_i32 = arith.constant 0 : i32
    %c0_i32_0 = arith.constant 0 : i32
    %c0_i32_1 = arith.constant 0 : i32
    return %c0_i32, %c0_i32_0 : i32, i32
  }
  func.func @transform_3(%arg0: i32, %arg1: i32) -> (i32, i32, i32, i32) {
    %c0_i32 = arith.constant 0 : i32
    %c0_i32_0 = arith.constant 0 : i32
    %c0_i32_1 = arith.constant 0 : i32
    return %arg0, %arg1, %c0_i32, %c0_i32_0 : i32, i32, i32, i32
  }
}

module attributes {stable_mosaic.version = 11 : i64} {
  func.func @_maxpool3x3_s2_kernel(%arg0: i32, %arg1: memref<1x4x5x5x4xf32, #tpu.memory_space<vmem>>, %arg2: memref<1x4x4x4xf32, #tpu.memory_space<vmem>>) attributes {dimension_semantics = [#tpu.dimension_semantics<parallel>], iteration_bounds = array<i64: 2>, scalar_prefetch = 0 : i64, scratch_operands = 0 : i64, tpu.core_type = #tpu.core_type<tc>, window_params = [{transform_indices = @transform_0, window_bounds = array<i64: 1, 4, 5, 5, 4>}, {transform_indices = @transform_1, window_bounds = array<i64: 1, 4, 4, 4>}]} {
    %c0 = arith.constant 0 : index
    %c0_0 = arith.constant 0 : index
    %c0_1 = arith.constant 0 : index
    %c0_2 = arith.constant 0 : index
    %c0_3 = arith.constant 0 : index
    %0 = vector.load %arg1[%c0, %c0_0, %c0_1, %c0_2, %c0_3] : memref<1x4x5x5x4xf32, #tpu.memory_space<vmem>>, vector<1x1x4x4x4xf32>
    %1 = vector.shape_cast %0 : vector<1x1x4x4x4xf32> to vector<4x4x4xf32>
    %c0_4 = arith.constant 0 : index
    %c1 = arith.constant 1 : index
    %c0_5 = arith.constant 0 : index
    %c0_6 = arith.constant 0 : index
    %c0_7 = arith.constant 0 : index
    %2 = vector.load %arg1[%c0_4, %c1, %c0_5, %c0_6, %c0_7] : memref<1x4x5x5x4xf32, #tpu.memory_space<vmem>>, vector<1x1x4x4x4xf32>
    %3 = vector.shape_cast %2 : vector<1x1x4x4x4xf32> to vector<4x4x4xf32>
    %4 = arith.maximumf %1, %3 : vector<4x4x4xf32>
    %c0_8 = arith.constant 0 : index
    %c0_9 = arith.constant 0 : index
    %c0_10 = arith.constant 0 : index
    %c1_11 = arith.constant 1 : index
    %c0_12 = arith.constant 0 : index
    %5 = vector.load %arg1[%c0_8, %c0_9, %c0_10, %c1_11, %c0_12] : memref<1x4x5x5x4xf32, #tpu.memory_space<vmem>>, vector<1x1x4x4x4xf32>
    %6 = vector.shape_cast %5 : vector<1x1x4x4x4xf32> to vector<4x4x4xf32>
    %7 = arith.maximumf %4, %6 : vector<4x4x4xf32>
    %c0_13 = arith.constant 0 : index
    %c2 = arith.constant 2 : index
    %c0_14 = arith.constant 0 : index
    %c0_15 = arith.constant 0 : index
    %c0_16 = arith.constant 0 : index
    %8 = vector.load %arg1[%c0_13, %c2, %c0_14, %c0_15, %c0_16] : memref<1x4x5x5x4xf32, #tpu.memory_space<vmem>>, vector<1x1x4x4x4xf32>
    %9 = vector.shape_cast %8 : vector<1x1x4x4x4xf32> to vector<4x4x4xf32>
    %10 = arith.maximumf %7, %9 : vector<4x4x4xf32>
    %c0_17 = arith.constant 0 : index
    %c3 = arith.constant 3 : index
    %c0_18 = arith.constant 0 : index
    %c0_19 = arith.constant 0 : index
    %c0_20 = arith.constant 0 : index
    %11 = vector.load %arg1[%c0_17, %c3, %c0_18, %c0_19, %c0_20] : memref<1x4x5x5x4xf32, #tpu.memory_space<vmem>>, vector<1x1x4x4x4xf32>
    %12 = vector.shape_cast %11 : vector<1x1x4x4x4xf32> to vector<4x4x4xf32>
    %13 = arith.maximumf %10, %12 : vector<4x4x4xf32>
    %c0_21 = arith.constant 0 : index
    %c2_22 = arith.constant 2 : index
    %c0_23 = arith.constant 0 : index
    %c1_24 = arith.constant 1 : index
    %c0_25 = arith.constant 0 : index
    %14 = vector.load %arg1[%c0_21, %c2_22, %c0_23, %c1_24, %c0_25] : memref<1x4x5x5x4xf32, #tpu.memory_space<vmem>>, vector<1x1x4x4x4xf32>
    %15 = vector.shape_cast %14 : vector<1x1x4x4x4xf32> to vector<4x4x4xf32>
    %16 = arith.maximumf %13, %15 : vector<4x4x4xf32>
    %c0_26 = arith.constant 0 : index
    %c0_27 = arith.constant 0 : index
    %c1_28 = arith.constant 1 : index
    %c0_29 = arith.constant 0 : index
    %c0_30 = arith.constant 0 : index
    %17 = vector.load %arg1[%c0_26, %c0_27, %c1_28, %c0_29, %c0_30] : memref<1x4x5x5x4xf32, #tpu.memory_space<vmem>>, vector<1x1x4x4x4xf32>
    %18 = vector.shape_cast %17 : vector<1x1x4x4x4xf32> to vector<4x4x4xf32>
    %19 = arith.maximumf %16, %18 : vector<4x4x4xf32>
    %c0_31 = arith.constant 0 : index
    %c1_32 = arith.constant 1 : index
    %c1_33 = arith.constant 1 : index
    %c0_34 = arith.constant 0 : index
    %c0_35 = arith.constant 0 : index
    %20 = vector.load %arg1[%c0_31, %c1_32, %c1_33, %c0_34, %c0_35] : memref<1x4x5x5x4xf32, #tpu.memory_space<vmem>>, vector<1x1x4x4x4xf32>
    %21 = vector.shape_cast %20 : vector<1x1x4x4x4xf32> to vector<4x4x4xf32>
    %22 = arith.maximumf %19, %21 : vector<4x4x4xf32>
    %c0_36 = arith.constant 0 : index
    %c0_37 = arith.constant 0 : index
    %c1_38 = arith.constant 1 : index
    %c1_39 = arith.constant 1 : index
    %c0_40 = arith.constant 0 : index
    %23 = vector.load %arg1[%c0_36, %c0_37, %c1_38, %c1_39, %c0_40] : memref<1x4x5x5x4xf32, #tpu.memory_space<vmem>>, vector<1x1x4x4x4xf32>
    %24 = vector.shape_cast %23 : vector<1x1x4x4x4xf32> to vector<4x4x4xf32>
    %25 = arith.maximumf %22, %24 : vector<4x4x4xf32>
    %c0_41 = arith.constant 0 : index
    %c0_42 = arith.constant 0 : index
    %c0_43 = arith.constant 0 : index
    %c0_44 = arith.constant 0 : index
    %26 = vector.load %arg2[%c0_41, %c0_42, %c0_43, %c0_44] : memref<1x4x4x4xf32, #tpu.memory_space<vmem>>, vector<1x4x4x4xf32>
    %27 = vector.shape_cast %26 : vector<1x4x4x4xf32> to vector<4x4x4xf32>
    %28 = vector.shape_cast %25 : vector<4x4x4xf32> to vector<1x4x4x4xf32>
    tpu.vector_store %arg2[%c0_41, %c0_42, %c0_43, %c0_44], %28 {strides = array<i32>} : memref<1x4x4x4xf32, #tpu.memory_space<vmem>>, vector<1x4x4x4xf32>,
    return
  }
  func.func @transform_0(%arg0: i32) -> (i32, i32, i32, i32, i32) {
    %c0_i32 = arith.constant 0 : i32
    %c0_i32_0 = arith.constant 0 : i32
    %c0_i32_1 = arith.constant 0 : i32
    %c0_i32_2 = arith.constant 0 : i32
    %c0_i32_3 = arith.constant 0 : i32
    return %arg0, %c0_i32, %c0_i32_0, %c0_i32_1, %c0_i32_2 : i32, i32, i32, i32, i32
  }
  func.func @transform_1(%arg0: i32) -> (i32, i32, i32, i32) {
    %c0_i32 = arith.constant 0 : i32
    %c0_i32_0 = arith.constant 0 : i32
    %c0_i32_1 = arith.constant 0 : i32
    %c0_i32_2 = arith.constant 0 : i32
    return %arg0, %c0_i32, %c0_i32_0, %c0_i32_1 : i32, i32, i32, i32
  }
}

</mosaic_0001>

<bundles_post_ra>
// kernel: reduction_b_forward.13
= control target key start
LH: loop header
LB: loop body
LE: loop exit
PB: predicated region body
PF: predicated region fallthrough
CT: control target
= control target key end

     0   :  { %8 = vsyncpa [#allocation3], 0  ;;  %s676_s12 = smov 0   ;;  %s760_s0 = inlined_call_operand.vmem [shape: bf16[176,4], index: 0, kind: input, shape index: {}]   ;;  %s761_s1 = inlined_call_operand.vmem [shape: bf16[4,256], index: 1, kind: input, shape index: {}]   ;;  %s762_s2 = inlined_call_operand.hbm [shape: f32[1,256], index: 2, kind: input, shape index: {}]   ;;  %s763_s3 = inlined_call_operand.vmem [shape: bf16[176,256], index: 3, kind: output, shape index: {}]  }
   0x1 LB: > { %s539_s13 = sadd.s32 4294967295, %s652_s12   ;;  %p541_p0 = scmp.ge.s32.totalorder %s652_s12, 1  ;;  %s652_s12 = sphi %s676_s12, %s14_s12  }
   0x2   : > { %p113_p1 = scmp.lt.s32.totalorder %s652_s12, 3  ;;  %p688_p3 = scmp.eq.s32.totalorder %s539_s13, 0 }
   0x3   : > { %s654_s16 = smov [#allocation2]  }
   0x4   : > { %p684_p2 = pnand %p541_p0, %p113_p1  ;;  %s129_s17 = sshll.u32 %s654_s16, 4  ;;  %s130_s17 = int_to_ptr.vmem [resolvable:$true] %s129_s17 }
   0x5   : > { %s627_s18 = scalar_lea.vmem %s130_s17, 32  ;;  %p635_p10 = scmp.lt.s32.totalorder %s130_s17, %s130_s17 }
   0x6   : > { %p594_p4 = pneg %p684_p2  ;;  %p628_p7 = scmp.ne.s32.totalorder %s130_s17, %s627_s18 }
   0x7   : > { %p636_p11 = scmp.lt.s32.totalorder %s627_s18, %s627_s18 }
   0x8   : > { %p595_p5 = pnand %p688_p3, %p594_p4 }
   0x9   : > { %p637_p12 = por %p636_p11, %p635_p10 }
   0xa   : > { %p618_p6 = pneg %p595_p5 }
   0xc   : > { %p630_p8 = pnand %p628_p7, %p618_p6 }
   0xe   : > { %p631_p9 = pneg %p630_p8 }
  0x10   : > { %p638_p13 = pnand %p637_p12, %p631_p9 }
  0x12   : > { %641 = shalt.err (!%p638_p13)
}
  0x13   : > { %597 = dma.hbm_to_vmem [thread:$0]  (!%p595_p5), %s762_s2, 32, %s130_s17, [#allocation3]  }
  0x14   : > { %151 = sbr.rel (%p684_p2) target bundleno = 256 (0x100), region = 32 }
  0x19   : > { %647 = dma.done.wait (%p688_p3), [#allocation3], 32  }
  0x1a   : > { %649 = vsyncadd (%p688_p3), [#allocation3], 4294967264  ;;  %s176_s21 = smul.u32 11, %s539_s13  ;;  %v655_v0 = vmov 0   ;;  %vm270_vm0 = vcmask 1041408   ;;  %vm251_vm1 = vcmask 31744   ;;  %v204_v10 = vlaneseq }
  0x1b   : > { %309 = vmatprep.mubr.bf16.mxu0 %v655_v0  ;;  %339 = vmatprep.mubr.bf16.mxu1 %v655_v0  ;;  %v555_v1 = vld.sshfl [vmem:[%s761_s1] sm:$0x33 pattern:$0x76325410] }
  0x1c   : > { %p177_p0 = scmp.lt.s32.totalorder %s176_s21, 21  ;;  %v250_v2 = vcombine.high %v555_v1, %v555_v1  ;;  %v272_v3 = vsel %vm270_vm0, %v555_v1, 0  ;;  %v205_v11 = vshrl.u32 %v204_v10, 7  ;;  %v202_v13 = vld [vmem:[#allocation2] sm:$0x3] }
  0x1e   : > { %s767_s21 = smov (!%p177_p0, %s176_s21), 21  ;;  %556 = vmatprep.subr.msk.bf16.mxu0 %vm270_vm0, %v250_v2  ;;  %588 = vmatprep.subr.msk.bf16.mxu1 %vm270_vm0, %v250_v2  ;;  %v206_v12 = vsub.s32 0, %v205_v11  ;;  %v210_v14 = vsub.s32 1, %v205_v11 }
  0x1f   : > { %s546_s22 = sshll.u32 %s767_s21, 2  ;;  %292 = vmatpush1.bf16.msra.mxu0 %v272_v3  ;;  %589 = vmatpush1.bf16.msra.mxu1 %v272_v3  ;;  %s576_s28 = sshll.u32 %s767_s21, 3 }
  0x20   : > { %s180_s27 = scalar_lea.vmem %s760_s0, %s546_s22  ;;  %v714_v15 = vrot.slane %v202_v13, %v206_v12  ;;  %v716_v16 = vrot.slane %v202_v13, %v210_v14  ;;  %s726_s4 = scalar_lea.vmem %s763_s3, %s576_s28 }
  0x21   : > { %v610_v4 = vld [vmem:[%s180_s27] sm:$0xff]   ;;  %v611_v5 = vld [vmem:[%s180_s27 + $0x18] sm:$0xff]   ;;  %v612_v6 = vld [vmem:[%s180_s27 + $0x8] sm:$0xff]  }
  0x22   : > { %557 = vmatmul.mubr.msk.bf16.vlgmr.msra.gmra.mxu0 %vm251_vm1, %v610_v4  ;;  %560 = vmatmul.mubr.msk.bf16.vlgmr.msra.gmra.mxu1 %vm251_vm1, %v611_v5  ;;  %v613_v7 = vld [vmem:[%s180_s27 + $0x20] sm:$0xff]   ;;  %v614_v8 = vld [vmem:[%s180_s27 + $0x10] sm:$0xff]   ;;  %v615_v9 = vld [vmem:[%s180_s27 + $0x28] ss:$0 sps:$4 sm:$0xff]  }
  0x23   : > { %319 = vmatprep.mubr.bf16.mxu0 %v655_v0  ;;  %349 = vmatprep.mubr.bf16.mxu1 %v655_v0 }
  0x2a   : > { %558 = vmatmul.mubr.msk.bf16.gmra.mxu0 %vm251_vm1, %v612_v6  ;;  %561 = vmatmul.mubr.msk.bf16.gmra.mxu1 %vm251_vm1, %v613_v7 }
  0x2b   : > { %329 = vmatprep.mubr.bf16.mxu0 %v655_v0  ;;  %359 = vmatprep.mubr.bf16.mxu1 %v655_v0 }
  0x32   : > { %559 = vmatmul.mubr.msk.bf16.gmra.mxu0 %vm251_vm1, %v614_v8  ;;  %562 = vmatmul.mubr.msk.bf16.gmra.mxu1 %vm251_vm1, %v615_v9 }
  0xe2   : > { %v311_v17 = vpop.f32.mrf.mxu0  ;;  %v341_v18 = vpop.f32.mrf.mxu1 }
  0xe3   : > { %v312_v19 = vadd.f32 %v311_v17, %v714_v15  ;;  %v342_v20 = vadd.f32 %v341_v18, %v714_v15 }
  0xe4   : > { %v313_v21 = vpop.f32.mrf.mxu0  ;;  %v343_v22 = vpop.f32.mrf.mxu1 }
  0xe5   : > { %v380_v23 = vmax.f32 %v342_v20, 0.0  ;;  %v314_v24 = vadd.f32 %v313_v21, %v716_v16  ;;  %v344_v25 = vadd.f32 %v343_v22, %v716_v16  ;;  %v368_v28 = vmax.f32 %v312_v19, 0.0 }
  0xe6   : > { %v315_v26 = vpop.f32.mrf.mxu0  ;;  %v345_v27 = vpop.f32.mrf.mxu1 }
  0xe7   : > { %v369_v29 = vmax.f32 %v314_v24, 0.0  ;;  %v381_v30 = vmax.f32 %v344_v25, 0.0  ;;  %v316_v31 = vadd.f32 %v315_v26, %v714_v15  ;;  %v346_v32 = vadd.f32 %v345_v27, %v714_v15 }
  0xe8   : > { %v317_v33 = vpop.f32.mrf.mxu0  ;;  %v347_v34 = vpop.f32.mrf.mxu1 }
  0xe9   : > { %v577_v35 = vpack.c.bf16 %v369_v29, %v368_v28  ;;  %v583_v36 = vpack.c.bf16 %v381_v30, %v380_v23  ;;  %v318_v37 = vadd.f32 %v317_v33, %v716_v16  ;;  %v348_v38 = vadd.f32 %v347_v34, %v716_v16 }
  0xea   : > { %v321_v39 = vpop.f32.mrf.mxu0  ;;  %v351_v40 = vpop.f32.mrf.mxu1  ;;  %v370_v43 = vmax.f32 %v316_v31, 0.0  ;;  %v382_v44 = vmax.f32 %v346_v32, 0.0 }
  0xeb   : > { %458 = vst [vmem:[%s726_s4] sm:$0xff] %v577_v35  ;;  %464 = vst [vmem:[%s726_s4 + $0x30] sm:$0xff] %v583_v36  ;;  %v322_v41 = vadd.f32 %v321_v39, %v714_v15  ;;  %v352_v42 = vadd.f32 %v351_v40, %v714_v15  ;;  %v371_v45 = vmax.f32 %v318_v37, 0.0  ;;  %v383_v46 = vmax.f32 %v348_v38, 0.0 }
  0xec   : > { %v323_v47 = vpop.f32.mrf.mxu0  ;;  %v353_v48 = vpop.f32.mrf.mxu1 }
  0xed   : > { %v384_v49 = vmax.f32 %v352_v42, 0.0  ;;  %v324_v50 = vadd.f32 %v323_v47, %v716_v16  ;;  %v354_v51 = vadd.f32 %v353_v48, %v716_v16  ;;  %v578_v52 = vpack.c.bf16 %v371_v45, %v370_v43 }
  0xee   : > { %v584_v53 = vpack.c.bf16 %v383_v46, %v382_v44  ;;  %v325_v54 = vpop.f32.mrf.mxu0  ;;  %v355_v55 = vpop.f32.mrf.mxu1  ;;  %v372_v56 = vmax.f32 %v322_v41, 0.0 }
  0xef   : > { %v373_v57 = vmax.f32 %v324_v50, 0.0  ;;  %v385_v58 = vmax.f32 %v354_v51, 0.0  ;;  %459 = vst [vmem:[%s726_s4 + $0x8] sm:$0xff] %v578_v52  ;;  %v326_v59 = vadd.f32 %v325_v54, %v714_v15  ;;  %v356_v60 = vadd.f32 %v355_v55, %v714_v15 }
  0xf0   : > { %465 = vst [vmem:[%s726_s4 + $0x38] sm:$0xff] %v584_v53  ;;  %v327_v61 = vpop.f32.mrf.mxu0  ;;  %v357_v62 = vpop.f32.mrf.mxu1 }
  0xf1   : > { %v579_v63 = vpack.c.bf16 %v373_v57, %v372_v56  ;;  %v585_v0 = vpack.c.bf16 %v385_v58, %v384_v49  ;;  %v328_v1 = vadd.f32 %v327_v61, %v716_v16  ;;  %v358_v2 = vadd.f32 %v357_v62, %v716_v16 }
  0xf2   : > { %v331_v3 = vpop.f32.mrf.mxu0  ;;  %v361_v4 = vpop.f32.mrf.mxu1  ;;  %v374_v7 = vmax.f32 %v326_v59, 0.0  ;;  %v386_v8 = vmax.f32 %v356_v60, 0.0 }
  0xf3   : > { %460 = vst [vmem:[%s726_s4 + $0x10] sm:$0xff] %v579_v63  ;;  %466 = vst [vmem:[%s726_s4 + $0x40] sm:$0xff] %v585_v0  ;;  %v332_v5 = vadd.f32 %v331_v3, %v714_v15  ;;  %v362_v6 = vadd.f32 %v361_v4, %v714_v15  ;;  %v375_v9 = vmax.f32 %v328_v1, 0.0  ;;  %v387_v10 = vmax.f32 %v358_v2, 0.0 }
  0xf4   : > { %v333_v11 = vpop.f32.mrf.mxu0  ;;  %v363_v12 = vpop.f32.mrf.mxu1 }
  0xf5   : > { %v388_v13 = vmax.f32 %v362_v6, 0.0  ;;  %v334_v14 = vadd.f32 %v333_v11, %v716_v16  ;;  %v364_v17 = vadd.f32 %v363_v12, %v716_v16  ;;  %v580_v18 = vpack.c.bf16 %v375_v9, %v374_v7 }
  0xf6   : > { %v586_v19 = vpack.c.bf16 %v387_v10, %v386_v8  ;;  %v335_v20 = vpop.f32.mrf.mxu0  ;;  %v365_v21 = vpop.f32.mrf.mxu1  ;;  %v376_v22 = vmax.f32 %v332_v5, 0.0 }
  0xf7   : > { %v377_v23 = vmax.f32 %v334_v14, 0.0  ;;  %v389_v24 = vmax.f32 %v364_v17, 0.0  ;;  %v336_v25 = vadd.f32 %v335_v20, %v714_v15  ;;  %461 = vst [vmem:[%s726_s4 + $0x18] sm:$0xff] %v580_v18 }
  0xf8   : > { %467 = vst [vmem:[%s726_s4 + $0x48] sm:$0xff] %v586_v19  ;;  %v337_v26 = vpop.f32.mrf.mxu0  ;;  %v366_v27 = vpop.f32.mrf.mxu1 }
  0xf9   : > { %v581_v28 = vpack.c.bf16 %v377_v23, %v376_v22  ;;  %v587_v29 = vpack.c.bf16 %v389_v24, %v388_v13  ;;  %v338_v30 = vadd.f32 %v337_v26, %v716_v16  ;;  %v378_v31 = vmax.f32 %v336_v25, 0.0 }
  0xfb   : > { %462 = vst [vmem:[%s726_s4 + $0x20] sm:$0xff] %v581_v28  ;;  %468 = vst [vmem:[%s726_s4 + $0x50] sm:$0xff] %v587_v29  ;;  %v379_v32 = vmax.f32 %v338_v30, 0.0 }
  0xfd   : > { %v582_v33 = vpack.c.bf16 %v379_v32, %v378_v31 }
  0xff   : > { %463 = vst [vmem:[%s726_s4 + $0x28] sm:$0xff] %v582_v33 }
 0x100 PF: > { %s14_s12 = sadd.s32 1, %s652_s12  }
 0x101   : > { %p11_p1 = scmp.ge.s32.totalorder %s14_s12, 4  }
 0x103   :  { %13 = sbr.rel (!%p11_p1) target bundleno = 1 (0x1), region = 67 }
 0x108   :  { %493 = vsyncpa [#allocation3], 1 }
 0x109   :  { %495 = vsyncpa [#allocation3 + $0x1], 1 }

// kernel: reduction_b_forward.11
= control target key start
LH: loop header
LB: loop body
LE: loop exit
PB: predicated region body
PF: predicated region fallthrough
CT: control target
= control target key end

     0   :  { %s607_s12 = smov 0   ;;  %s679_s0 = inlined_call_operand.vmem [shape: bf16[176,4], index: 0, kind: input, shape index: {}]   ;;  %s680_s1 = inlined_call_operand.vmem [shape: bf16[4,256], index: 1, kind: input, shape index: {}]   ;;  %s681_s2 = inlined_call_operand.vmem [shape: f32[1,256], index: 2, kind: input, shape index: {}]   ;;  %s682_s3 = inlined_call_operand.vmem [shape: bf16[176,256], index: 3, kind: output, shape index: {}]  }
   0x1 LB: > { %s514_s13 = sadd.s32 4294967295, %s584_s12   ;;  %p518_p0 = scmp.ge.s32.totalorder %s584_s12, 1  ;;  %s584_s12 = sphi %s607_s12, %s13_s12  }
   0x2   : > { %p138_p1 = scmp.lt.s32.totalorder %s584_s12, 3 }
   0x4   : > { %p139_p2 = pnand %p518_p0, %p138_p1 }
   0x5   : > { %s163_s16 = smul.u32 (!%p139_p2), 11, %s514_s13 }
   0x6   : > { %142 = sbr.rel (%p139_p2) target bundleno = 240 (0xf0), region = 32 }
   0x7   : > { %p164_p3 = scmp.lt.s32.totalorder (!%p139_p2), %s163_s16, 21 }
   0xb   : > { %v528_v0 = vld.sshfl [vmem:[%s680_s1] sm:$0x33 pattern:$0x76325410]  ;;  %vm257_vm0 = vcmask 1041408   ;;  %v586_v3 = vmov 0   ;;  %v191_v10 = vlaneseq }
   0xc   : > { %v237_v1 = vcombine.high %v528_v0, %v528_v0  ;;  %v259_v2 = vsel %vm257_vm0, %v528_v0, 0  ;;  %296 = vmatprep.mubr.bf16.mxu0 %v586_v3  ;;  %326 = vmatprep.mubr.bf16.mxu1 %v586_v3  ;;  %s684_s16 = smov (!%p164_p3, %s163_s16), 21  ;;  %vm238_vm1 = vcmask 31744   ;;  %v189_v13 = vld [vmem:[%s681_s2] sm:$0x3] }
   0xd   : > { %s519_s17 = sshll.u32 %s684_s16, 2  ;;  %v192_v11 = vshrl.u32 %v191_v10, 7  ;;  %s549_s23 = sshll.u32 %s684_s16, 3 }
   0xe   : > { %529 = vmatprep.subr.msk.bf16.mxu0 %vm257_vm0, %v237_v1  ;;  %561 = vmatprep.subr.msk.bf16.mxu1 %vm257_vm0, %v237_v1  ;;  %s167_s20 = scalar_lea.vmem %s679_s0, %s519_s17  ;;  %s646_s26 = scalar_lea.vmem %s682_s3, %s549_s23 }
   0xf   : > { %279 = vmatpush1.bf16.msra.mxu0 %v259_v2  ;;  %562 = vmatpush1.bf16.msra.mxu1 %v259_v2  ;;  %v572_v4 = vld [vmem:[%s167_s20] sm:$0xff]   ;;  %v573_v5 = vld [vmem:[%s167_s20 + $0x18] sm:$0xff]   ;;  %v574_v6 = vld [vmem:[%s167_s20 + $0x8] sm:$0xff]   ;;  %v193_v12 = vsub.s32 0, %v192_v11  ;;  %v197_v14 = vsub.s32 1, %v192_v11 }
  0x10   : > { %v575_v7 = vld [vmem:[%s167_s20 + $0x20] sm:$0xff]   ;;  %v576_v8 = vld [vmem:[%s167_s20 + $0x10] sm:$0xff]   ;;  %v577_v9 = vld [vmem:[%s167_s20 + $0x28] ss:$0 sps:$4 sm:$0xff]  }
  0x11   : > { %v633_v15 = vrot.slane %v189_v13, %v193_v12  ;;  %v635_v16 = vrot.slane %v189_v13, %v197_v14 }
  0x12   : > { %530 = vmatmul.mubr.msk.bf16.vlgmr.msra.gmra.mxu0 %vm238_vm1, %v572_v4  ;;  %533 = vmatmul.mubr.msk.bf16.vlgmr.msra.gmra.mxu1 %vm238_vm1, %v573_v5 }
  0x13   : > { %306 = vmatprep.mubr.bf16.mxu0 %v586_v3  ;;  %336 = vmatprep.mubr.bf16.mxu1 %v586_v3 }
  0x1a   : > { %531 = vmatmul.mubr.msk.bf16.gmra.mxu0 %vm238_vm1, %v574_v6  ;;  %534 = vmatmul.mubr.msk.bf16.gmra.mxu1 %vm238_vm1, %v575_v7 }
  0x1b   : > { %316 = vmatprep.mubr.bf16.mxu0 %v586_v3  ;;  %346 = vmatprep.mubr.bf16.mxu1 %v586_v3 }
  0x22   : > { %532 = vmatmul.mubr.msk.bf16.gmra.mxu0 %vm238_vm1, %v576_v8  ;;  %535 = vmatmul.mubr.msk.bf16.gmra.mxu1 %vm238_vm1, %v577_v9 }
  0xd2   : > { %v298_v17 = vpop.f32.mrf.mxu0  ;;  %v328_v19 = vpop.f32.mrf.mxu1 }
  0xd3   : > { %v299_v18 = vadd.f32 %v298_v17, %v633_v15  ;;  %v329_v20 = vadd.f32 %v328_v19, %v633_v15 }
  0xd4   : > { %v300_v21 = vpop.f32.mrf.mxu0  ;;  %v330_v23 = vpop.f32.mrf.mxu1 }
  0xd5   : > { %v301_v22 = vadd.f32 %v300_v21, %v635_v16  ;;  %v367_v24 = vmax.f32 %v329_v20, 0.0  ;;  %v331_v25 = vadd.f32 %v330_v23, %v635_v16  ;;  %v355_v27 = vmax.f32 %v299_v18, 0.0 }
  0xd6   : > { %v302_v26 = vpop.f32.mrf.mxu0  ;;  %v332_v30 = vpop.f32.mrf.mxu1 }
  0xd7   : > { %v356_v28 = vmax.f32 %v301_v22, 0.0  ;;  %v303_v29 = vadd.f32 %v302_v26, %v633_v15  ;;  %v368_v31 = vmax.f32 %v331_v25, 0.0  ;;  %v333_v32 = vadd.f32 %v332_v30, %v633_v15 }
  0xd8   : > { %v304_v33 = vpop.f32.mrf.mxu0  ;;  %v334_v36 = vpop.f32.mrf.mxu1 }
  0xd9   : > { %v550_v34 = vpack.c.bf16 %v356_v28, %v355_v27  ;;  %v305_v35 = vadd.f32 %v304_v33, %v635_v16  ;;  %v556_v37 = vpack.c.bf16 %v368_v31, %v367_v24  ;;  %v335_v38 = vadd.f32 %v334_v36, %v635_v16 }
  0xda   : > { %v308_v39 = vpop.f32.mrf.mxu0  ;;  %v357_v40 = vmax.f32 %v303_v29, 0.0  ;;  %v338_v43 = vpop.f32.mrf.mxu1  ;;  %v369_v44 = vmax.f32 %v333_v32, 0.0 }
  0xdb   : > { %445 = vst [vmem:[%s646_s26] sm:$0xff] %v550_v34  ;;  %v358_v41 = vmax.f32 %v305_v35, 0.0  ;;  %v309_v42 = vadd.f32 %v308_v39, %v633_v15  ;;  %451 = vst [vmem:[%s646_s26 + $0x30] sm:$0xff] %v556_v37  ;;  %v370_v45 = vmax.f32 %v335_v38, 0.0  ;;  %v339_v46 = vadd.f32 %v338_v43, %v633_v15 }
  0xdc   : > { %v310_v47 = vpop.f32.mrf.mxu0  ;;  %v340_v50 = vpop.f32.mrf.mxu1 }
  0xdd   : > { %v551_v48 = vpack.c.bf16 %v358_v41, %v357_v40  ;;  %v311_v49 = vadd.f32 %v310_v47, %v635_v16  ;;  %v557_v51 = vpack.c.bf16 %v370_v45, %v369_v44  ;;  %v371_v52 = vmax.f32 %v339_v46, 0.0 }
  0xde   : > { %v341_v53 = vadd.f32 %v340_v50, %v635_v16  ;;  %v312_v54 = vpop.f32.mrf.mxu0  ;;  %v359_v55 = vmax.f32 %v309_v42, 0.0  ;;  %v342_v58 = vpop.f32.mrf.mxu1 }
  0xdf   : > { %446 = vst [vmem:[%s646_s26 + $0x8] sm:$0xff] %v551_v48  ;;  %v360_v56 = vmax.f32 %v311_v49, 0.0  ;;  %v313_v57 = vadd.f32 %v312_v54, %v633_v15  ;;  %452 = vst [vmem:[%s646_s26 + $0x38] sm:$0xff] %v557_v51  ;;  %v343_v60 = vadd.f32 %v342_v58, %v633_v15 }
  0xe0   : > { %v372_v59 = vmax.f32 %v341_v53, 0.0  ;;  %v314_v61 = vpop.f32.mrf.mxu0  ;;  %v344_v0 = vpop.f32.mrf.mxu1 }
  0xe1   : > { %v552_v62 = vpack.c.bf16 %v360_v56, %v359_v55  ;;  %v315_v63 = vadd.f32 %v314_v61, %v635_v16  ;;  %v345_v2 = vadd.f32 %v344_v0, %v635_v16  ;;  %v361_v4 = vmax.f32 %v313_v57, 0.0 }
  0xe2   : > { %v558_v1 = vpack.c.bf16 %v372_v59, %v371_v52  ;;  %v318_v3 = vpop.f32.mrf.mxu0  ;;  %v348_v7 = vpop.f32.mrf.mxu1  ;;  %v373_v8 = vmax.f32 %v343_v60, 0.0 }
  0xe3   : > { %447 = vst [vmem:[%s646_s26 + $0x10] sm:$0xff] %v552_v62  ;;  %v362_v5 = vmax.f32 %v315_v63, 0.0  ;;  %v319_v6 = vadd.f32 %v318_v3, %v633_v15  ;;  %v374_v9 = vmax.f32 %v345_v2, 0.0  ;;  %v349_v10 = vadd.f32 %v348_v7, %v633_v15 }
  0xe4   : > { %453 = vst [vmem:[%s646_s26 + $0x40] sm:$0xff] %v558_v1  ;;  %v320_v11 = vpop.f32.mrf.mxu0  ;;  %v350_v14 = vpop.f32.mrf.mxu1 }
  0xe5   : > { %v553_v12 = vpack.c.bf16 %v362_v5, %v361_v4  ;;  %v321_v13 = vadd.f32 %v320_v11, %v635_v16  ;;  %v559_v17 = vpack.c.bf16 %v374_v9, %v373_v8  ;;  %v375_v18 = vmax.f32 %v349_v10, 0.0 }
  0xe6   : > { %v351_v19 = vadd.f32 %v350_v14, %v635_v16  ;;  %v322_v20 = vpop.f32.mrf.mxu0  ;;  %v363_v21 = vmax.f32 %v319_v6, 0.0  ;;  %v352_v24 = vpop.f32.mrf.mxu1 }
  0xe7   : > { %448 = vst [vmem:[%s646_s26 + $0x18] sm:$0xff] %v553_v12  ;;  %v364_v22 = vmax.f32 %v321_v13, 0.0  ;;  %v323_v23 = vadd.f32 %v322_v20, %v633_v15  ;;  %454 = vst [vmem:[%s646_s26 + $0x48] sm:$0xff] %v559_v17 }
  0xe8   : > { %v376_v25 = vmax.f32 %v351_v19, 0.0  ;;  %v324_v26 = vpop.f32.mrf.mxu0  ;;  %v353_v29 = vpop.f32.mrf.mxu1 }
  0xe9   : > { %v554_v27 = vpack.c.bf16 %v364_v22, %v363_v21  ;;  %v325_v28 = vadd.f32 %v324_v26, %v635_v16  ;;  %v365_v31 = vmax.f32 %v323_v23, 0.0 }
  0xea   : > { %v560_v30 = vpack.c.bf16 %v376_v25, %v375_v18 }
  0xeb   : > { %449 = vst [vmem:[%s646_s26 + $0x20] sm:$0xff] %v554_v27  ;;  %v366_v32 = vmax.f32 %v325_v28, 0.0 }
  0xec   : > { %455 = vst [vmem:[%s646_s26 + $0x50] sm:$0xff] %v560_v30 }
  0xed   : > { %v555_v33 = vpack.c.bf16 %v366_v32, %v365_v31 }
  0xef   : > { %450 = vst [vmem:[%s646_s26 + $0x28] sm:$0xff] %v555_v33 }
  0xf0 PF: > { %s13_s12 = sadd.s32 1, %s584_s12  }
  0xf1   : > { %p10_p4 = scmp.ge.s32.totalorder %s13_s12, 4  }
  0xf3   :  { %12 = sbr.rel (!%p10_p4) target bundleno = 1 (0x1), region = 62 }

// kernel: reduction_b_forward.14
= control target key start
LH: loop header
LB: loop body
LE: loop exit
PB: predicated region body
PF: predicated region fallthrough
CT: control target
= control target key end

     0   :  { %s6059_s12 = smov 0   ;;  %s6061_s13 = smov 0   ;;  %s7612_s0 = inlined_call_operand.vmem [shape: bf16[2,11,11,256], index: 0, kind: input, shape index: {}]   ;;  %s7613_s1 = inlined_call_operand.vmem [shape: bf16[9,256,288], index: 1, kind: input, shape index: {}]   ;;  %s7614_s2 = inlined_call_operand.vmem [shape: f32[1,288], index: 2, kind: input, shape index: {}]   ;;  %s7615_s3 = inlined_call_operand.vmem [shape: bf16[2,9,9,288], index: 3, kind: output, shape index: {}]  }
   0x1   :  { %s6063_s14 = smov 0   ;;  %s6065_s15 = smov 0  }
   0x2   :  { %s6067_s16 = smov 0  }
   0x3 LB: > { %s22_s17 = sadd.s32 1, %s6029_s14  ;;  %s25_s18 = sadd.s32 1, %s6033_s15  ;;  %s6037_s16 = sphi %s6067_s16, %s13_s16   ;;  %s6033_s15 = sphi %s6065_s15, %s7625_s15   ;;  %s6029_s14 = sphi %s6063_s14, %s7624_s14   ;;  %s6025_s13 = sphi %s6061_s13, %s7623_s13   ;;  %s6021_s12 = sphi %s6059_s12, %s7622_s12  }
   0x4   : > { %p23_p0 = scmp.ge.s32.totalorder %s22_s17, 9  ;;  %p4182_p1 = scmp.ge.s32.totalorder %s6037_s16, 1 }
   0x5   : > { %p151_p2 = scmp.lt.s32.totalorder %s6037_s16, 19 }
   0x6   : > { %s7627_s17 = smov (%p23_p0, %s22_s17), 0  ;;  %s7629_s18 = smov (!%p23_p0, %s25_s18), %s6033_s15 }
   0x7   : > { %p152_p3 = pnand %p4182_p1, %p151_p2  ;;  %p27_p4 = scmp.ge.s32.totalorder %s7629_s18, 2 }
   0x9   : > { %s7631_s18 = smov (%p27_p4, %s7629_s18), 0  ;;  %155 = sbr.rel (%p152_p3) target bundleno = 672 (0x2a0), region = 32 }
   0xe   : > { %v5405_v0 = vld [vmem:[%s7613_s1 + $0x22c] ss:$12 sps:$4 sm:$0xff]   ;;  %v5407_v1 = vld [vmem:[%s7613_s1 + $0x2f0] ss:$12 sps:$4 sm:$0xff]   ;;  %v5408_v2 = vld [vmem:[%s7613_s1 + $0x228] ss:$12 sps:$4 sm:$0xff]  }
   0xf   : > { %608 = vmatprep.subr.bf16.mxu0 %v5405_v0  ;;  %5164 = vmatprep.subr.bf16.mxu1 %v5407_v1  ;;  %v5409_v3 = vld [vmem:[%s7613_s1 + $0x230] ss:$12 sps:$4 sm:$0xff]   ;;  %v5410_v4 = vld [vmem:[%s7613_s1 + $0x214] ss:$12 sps:$4 sm:$0xff]   ;;  %v5412_v5 = vld [vmem:[%s7613_s1 + $0x2d8] ss:$12 sps:$4 sm:$0xff]  }
  0x10   : > { %609 = vmatpush1.bf16.msra.mxu0 %v5408_v2  ;;  %5165 = vmatpush3.bf16.msra.mxu1 %v5409_v3  ;;  %v5413_v6 = vld [vmem:[%s7613_s1 + $0x210] ss:$12 sps:$4 sm:$0xff]   ;;  %v5414_v7 = vld [vmem:[%s7613_s1 + $0x218] ss:$12 sps:$4 sm:$0xff]   ;;  %p179_p5 = scmp.lt.s32.totalorder %s6025_s13, 1  ;;  %s5159_s28 = sshll.u32 %s6021_s12, 4 }
  0x11   : > { %610 = vmatprep.subr.bf16.mxu0 %v5410_v4  ;;  %5166 = vmatprep.subr.bf16.mxu1 %v5412_v5  ;;  %v5415_v8 = vld [vmem:[%s7613_s1 + $0x1fc] ss:$12 sps:$4 sm:$0xff]   ;;  %v5417_v9 = vld [vmem:[%s7613_s1 + $0x2c0] ss:$12 sps:$4 sm:$0xff]   ;;  %v5418_v10 = vld [vmem:[%s7613_s1 + $0x1f8] ss:$12 sps:$4 sm:$0xff]  }
  0x12   : > { %v5419_v11 = vld [vmem:[%s7613_s1 + $0x200] ss:$12 sps:$4 sm:$0xff]   ;;  %v5420_v12 = vld [vmem:[%s7613_s1 + $0x1e4] ss:$12 sps:$4 sm:$0xff]   ;;  %v5422_v13 = vld [vmem:[%s7613_s1 + $0x2a8] ss:$12 sps:$4 sm:$0xff]  }
  0x13   : > { %v5423_v14 = vld [vmem:[%s7613_s1 + $0x1e0] ss:$12 sps:$4 sm:$0xff]   ;;  %v5424_v15 = vld [vmem:[%s7613_s1 + $0x1e8] ss:$12 sps:$4 sm:$0xff]   ;;  %s7633_s13 = smov (!%p179_p5, %s6025_s13), 1  ;;  %p186_p6 = scmp.lt.s32.totalorder %s6021_s12, 8 }
  0x14   : > { %611 = vmatpush1.bf16.msra.mxu0 %v5413_v6  ;;  %5167 = vmatpush3.bf16.msra.mxu1 %v5414_v7  ;;  %v5425_v16 = vld [vmem:[%s7613_s1 + $0x1cc] ss:$12 sps:$4 sm:$0xff]   ;;  %v5427_v17 = vld [vmem:[%s7613_s1 + $0x290] ss:$12 sps:$4 sm:$0xff]   ;;  %v5428_v18 = vld [vmem:[%s7613_s1 + $0x1c8] ss:$12 sps:$4 sm:$0xff]  }
  0x15   : > { %612 = vmatprep.subr.bf16.mxu0 %v5415_v8  ;;  %5168 = vmatprep.subr.bf16.mxu1 %v5417_v9  ;;  %v5429_v19 = vld [vmem:[%s7613_s1 + $0x1d0] ss:$12 sps:$4 sm:$0xff]   ;;  %v5430_v20 = vld [vmem:[%s7613_s1 + $0x1b4] ss:$12 sps:$4 sm:$0xff]   ;;  %v5432_v21 = vld [vmem:[%s7613_s1 + $0x278] ss:$12 sps:$4 sm:$0xff]  }
  0x16   : > { %s5362_s23 = smul.u32 176, %s7633_s13  ;;  %v5433_v22 = vld [vmem:[%s7613_s1 + $0x1b0] ss:$12 sps:$4 sm:$0xff]   ;;  %v5434_v23 = vld [vmem:[%s7613_s1 + $0x1b8] ss:$12 sps:$4 sm:$0xff]   ;;  %s7635_s12 = smov (!%p186_p6, %s6021_s12), 8 }
  0x17   : > { %v5435_v24 = vld [vmem:[%s7613_s1 + $0x19c] ss:$12 sps:$4 sm:$0xff]   ;;  %v5437_v25 = vld [vmem:[%s7613_s1 + $0x260] ss:$12 sps:$4 sm:$0xff]   ;;  %v5438_v26 = vld [vmem:[%s7613_s1 + $0x198] ss:$12 sps:$4 sm:$0xff]  }
  0x18   : > { %613 = vmatpush1.bf16.msra.mxu0 %v5418_v10  ;;  %5169 = vmatpush3.bf16.msra.mxu1 %v5419_v11  ;;  %s183_s8 = scalar_lea.vmem %s7612_s0, %s5362_s23  ;;  %v5439_v27 = vld [vmem:[%s7613_s1 + $0x1a0] ss:$12 sps:$4 sm:$0xff]   ;;  %v5440_v28 = vld [vmem:[%s7613_s1 + $0x184] ss:$12 sps:$4 sm:$0xff]   ;;  %v5442_v29 = vld [vmem:[%s7613_s1 + $0x248] ss:$12 sps:$4 sm:$0xff]  }
  0x19   : > { %614 = vmatprep.subr.bf16.mxu0 %v5420_v12  ;;  %5170 = vmatprep.subr.bf16.mxu1 %v5422_v13  ;;  %s6194_s23 = scalar_lea.vmem %s183_s8, %s5159_s28  ;;  %v5443_v30 = vld [vmem:[%s7613_s1 + $0x180] ss:$12 sps:$4 sm:$0xff]   ;;  %v5444_v31 = vld [vmem:[%s7613_s1 + $0x188] ss:$12 sps:$4 sm:$0xff]   ;;  %v5459_v48 = vld [vmem:[%s7613_s1 + $0x2d0] ss:$12 sps:$4 sm:$0xff]  }
  0x1a   : > { %v6203_v32 = vld [vmem:[%s6194_s23] ss:$8 sps:$4 sm:$0x1f]   ;;  %v5445_v33 = vld [vmem:[%s7613_s1 + $0x2ec] ss:$12 sps:$4 sm:$0xff]   ;;  %s5364_s30 = smul.u32 54, %s7633_s13 }
  0x1b   : > { %v6209_v34 = vld [vmem:[%s6194_s23 + $0x4] ss:$8 sps:$4 sm:$0x1f]   ;;  %v337_v36 = vshrl.u32 %v6203_v32, 16  ;;  %v339_v37 = vshll.u32 %v6203_v32, 16  ;;  %s5363_s5 = smul.u32 6, %s7635_s12 }
  0x1c   : > { %615 = vmatpush1.bf16.msra.mxu0 %v5423_v14  ;;  %5171 = vmatpush3.bf16.msra.mxu1 %v5424_v15  ;;  %v5452_v35 = vld [vmem:[%s7613_s1 + $0xac] ss:$12 sps:$4 sm:$0xff]   ;;  %v344_v38 = vshrl.u32 %v6209_v34, 16  ;;  %v346_v39 = vshll.u32 %v6209_v34, 16  ;;  %v5453_v40 = vld [vmem:[%s7613_s1 + $0x2e8] ss:$12 sps:$4 sm:$0xff]  }
  0x1d   : > { %616 = vmatprep.subr.bf16.mxu0 %v5425_v16  ;;  %5172 = vmatprep.subr.bf16.mxu1 %v5427_v17  ;;  %v341_v41 = vrot.slane %v339_v37, 1  ;;  %v5454_v43 = vld [vmem:[%s7613_s1 + $0x2d4] ss:$12 sps:$4 sm:$0xff]   ;;  %v5460_v49 = vld [vmem:[%s7613_s1 + $0x2bc] ss:$12 sps:$4 sm:$0xff]   ;;  %s190_s6 = sadd.s32 %s5364_s30, %s5363_s5  ;;  %vm4067_vm0 = vcmask 257024  }
  0x1e   : > { %v348_v42 = vrot.slane %v346_v39, 1  ;;  %v5450_v46 = vld [vmem:[%s7613_s1 + $0xa8] ss:$12 sps:$4 sm:$0xff]   ;;  %v5456_v50 = vld [vmem:[%s7613_s1 + $0x90] ss:$12 sps:$4 sm:$0xff]   ;;  %s4184_s13 = sshll.u32 %s190_s6, 2 }
  0x1f   : > { %v6224_v44 = vor.u32 %v341_v41, %v337_v36  ;;  %v5458_v47 = vld [vmem:[%s7613_s1 + $0x94] ss:$12 sps:$4 sm:$0xff]   ;;  %v5464_v51 = vld [vmem:[%s7613_s1 + $0x7c] ss:$12 sps:$4 sm:$0xff]   ;;  %v5465_v52 = vld [vmem:[%s7613_s1 + $0x2b8] ss:$12 sps:$4 sm:$0xff]   ;;  %s7555_s8 = scalar_lea.vmem %s7615_s3, %s4184_s13 }
  0x20   : > { %617 = vmatpush1.bf16.msra.mxu0 %v5428_v18  ;;  %5173 = vmatpush3.bf16.msra.mxu1 %v5429_v19  ;;  %v349_v45 = vor.u32 %v348_v42, %v344_v38  ;;  %v5466_v53 = vld [vmem:[%s7613_s1 + $0x2a4] ss:$12 sps:$4 sm:$0xff]   ;;  %v5471_v56 = vld [vmem:[%s7613_s1 + $0x2a0] ss:$12 sps:$4 sm:$0xff]   ;;  %v5477_v60 = vld [vmem:[%s7613_s1 + $0x288] ss:$12 sps:$4 sm:$0xff]  }
  0x21   : > { %618 = vmatprep.subr.bf16.mxu0 %v5430_v20  ;;  %5174 = vmatprep.subr.bf16.mxu1 %v5432_v21  ;;  %v5462_v54 = vld [vmem:[%s7613_s1 + $0x78] ss:$12 sps:$4 sm:$0xff]   ;;  %v5468_v58 = vld [vmem:[%s7613_s1 + $0x60] ss:$12 sps:$4 sm:$0xff]   ;;  %v5474_v62 = vld [vmem:[%s7613_s1 + $0x48] ss:$12 sps:$4 sm:$0xff]  }
  0x22   : > { %683 = vmatprep.mubr.bf16.mxu1 %v349_v45  ;;  %640 = vmatprep.mubr.bf16.mxu0 %v349_v45  ;;  %v5470_v55 = vld [vmem:[%s7613_s1 + $0x64] ss:$12 sps:$4 sm:$0xff]   ;;  %v5472_v57 = vld [vmem:[%s7613_s1 + $0x28c] ss:$12 sps:$4 sm:$0xff]   ;;  %v5478_v61 = vld [vmem:[%s7613_s1 + $0x274] ss:$12 sps:$4 sm:$0xff]  }
  0x23   : > { %v5476_v59 = vld [vmem:[%s7613_s1 + $0x4c] ss:$12 sps:$4 sm:$0xff]   ;;  %v5482_v63 = vld [vmem:[%s7613_s1 + $0x34] ss:$12 sps:$4 sm:$0xff]   ;;  %v5483_v0 = vld [vmem:[%s7613_s1 + $0x270] ss:$12 sps:$4 sm:$0xff]  }
  0x24   : > { %619 = vmatpush1.bf16.msra.mxu0 %v5433_v22  ;;  %5175 = vmatpush3.bf16.msra.mxu1 %v5434_v23  ;;  %v5484_v1 = vld [vmem:[%s7613_s1 + $0x25c] ss:$12 sps:$4 sm:$0xff]   ;;  %v5489_v4 = vld [vmem:[%s7613_s1 + $0x258] ss:$12 sps:$4 sm:$0xff]   ;;  %v5495_v8 = vld [vmem:[%s7613_s1 + $0x240] ss:$12 sps:$4 sm:$0xff]  }
  0x25   : > { %620 = vmatprep.subr.bf16.mxu0 %v5435_v24  ;;  %5176 = vmatprep.subr.bf16.mxu1 %v5437_v25  ;;  %v5480_v2 = vld [vmem:[%s7613_s1 + $0x30] ss:$12 sps:$4 sm:$0xff]   ;;  %v5486_v6 = vld [vmem:[%s7613_s1 + $0x18] ss:$12 sps:$4 sm:$0xff]   ;;  %v5492_v10 = vld [vmem:[%s7613_s1] ss:$12 sps:$4 sm:$0xff]  }
  0x26   : > { %v5488_v3 = vld [vmem:[%s7613_s1 + $0x1c] ss:$12 sps:$4 sm:$0xff]   ;;  %v5490_v5 = vld [vmem:[%s7613_s1 + $0x244] ss:$12 sps:$4 sm:$0xff]   ;;  %v5498_v11 = vld [vmem:[%s7613_s1 + $0x16c] ss:$12 sps:$4 sm:$0xff]  }
  0x27   : > { %v5494_v7 = vld [vmem:[%s7613_s1 + $0x4] ss:$12 sps:$4 sm:$0xff]   ;;  %v5496_v14 = vld [vmem:[%s7613_s1 + $0x168] ss:$12 sps:$4 sm:$0xff]   ;;  %v5509_v17 = vld [vmem:[%s7613_s1 + $0x140] ss:$12 sps:$4 sm:$0xff]  }
  0x28   : > { %621 = vmatpush1.bf16.msra.mxu0 %v5438_v26  ;;  %5177 = vmatpush3.bf16.msra.mxu1 %v5439_v27  ;;  %v5499_v9 = vld [vmem:[%s7613_s1 + $0x170] ss:$12 sps:$4 sm:$0xff]   ;;  %v5504_v13 = vld [vmem:[%s7613_s1 + $0x158] ss:$12 sps:$4 sm:$0xff]   ;;  %v5503_v15 = vld [vmem:[%s7613_s1 + $0x154] ss:$12 sps:$4 sm:$0xff]  }
  0x29   : > { %622 = vmatprep.subr.bf16.mxu0 %v5440_v28  ;;  %5178 = vmatprep.subr.bf16.mxu1 %v5442_v29  ;;  %v5500_v12 = vld [vmem:[%s7613_s1 + $0xb0] ss:$12 sps:$4 sm:$0xff]   ;;  %v5505_v16 = vld [vmem:[%s7613_s1 + $0x98] ss:$12 sps:$4 sm:$0xff]   ;;  %v5510_v20 = vld [vmem:[%s7613_s1 + $0x80] ss:$12 sps:$4 sm:$0xff]  }
  0x2a   : > { %v5501_v18 = vld [vmem:[%s7613_s1 + $0x150] ss:$12 sps:$4 sm:$0xff]   ;;  %v5514_v21 = vld [vmem:[%s7613_s1 + $0x128] ss:$12 sps:$4 sm:$0xff]   ;;  %v5506_v22 = vld [vmem:[%s7613_s1 + $0x138] ss:$12 sps:$4 sm:$0xff]  }
  0x2b   : > { %v5508_v19 = vld [vmem:[%s7613_s1 + $0x13c] ss:$12 sps:$4 sm:$0xff]   ;;  %v5513_v23 = vld [vmem:[%s7613_s1 + $0x124] ss:$12 sps:$4 sm:$0xff]   ;;  %v5511_v26 = vld [vmem:[%s7613_s1 + $0x120] ss:$12 sps:$4 sm:$0xff]  }
  0x2c   : > { %623 = vmatpush1.bf16.msra.mxu0 %v5443_v30  ;;  %5179 = vmatpush3.bf16.msra.mxu1 %v5444_v31  ;;  %v5515_v24 = vld [vmem:[%s7613_s1 + $0x68] ss:$12 sps:$4 sm:$0xff]   ;;  %v5519_v25 = vld [vmem:[%s7613_s1 + $0x110] ss:$12 sps:$4 sm:$0xff]   ;;  %v5518_v27 = vld [vmem:[%s7613_s1 + $0x10c] ss:$12 sps:$4 sm:$0xff]  }
  0x2d   : > { %624 = vmatprep.subr.bf16.mxu0 %v5445_v33  ;;  %950 = vmatprep.subr.bf16.mxu1 %v5452_v35  ;;  %v5520_v28 = vld [vmem:[%s7613_s1 + $0x50] ss:$12 sps:$4 sm:$0xff]   ;;  %v5524_v29 = vld [vmem:[%s7613_s1 + $0xf8] ss:$12 sps:$4 sm:$0xff]   ;;  %v5516_v30 = vld [vmem:[%s7613_s1 + $0x108] ss:$12 sps:$4 sm:$0xff]  }
  0x2e   : > { %v5523_v31 = vld [vmem:[%s7613_s1 + $0xf4] ss:$12 sps:$4 sm:$0xff]   ;;  %v5525_v33 = vld [vmem:[%s7613_s1 + $0x38] ss:$12 sps:$4 sm:$0xff]   ;;  %v5521_v35 = vld [vmem:[%s7613_s1 + $0xf0] ss:$12 sps:$4 sm:$0xff]  }
  0x2f   : > { %684 = vmatmul.mubr.bf16.vlgmr.msra.gmra.mxu1 %v6224_v44  ;;  %v5528_v36 = vld [vmem:[%s7613_s1 + $0xdc] ss:$12 sps:$4 sm:$0xff]   ;;  %v5530_v37 = vld [vmem:[%s7613_s1 + $0x20] ss:$12 sps:$4 sm:$0xff]   ;;  %v5526_v39 = vld [vmem:[%s7613_s1 + $0xd8] ss:$12 sps:$4 sm:$0xff]  }
  0x30   : > { %625 = vmatpush2.bf16.msra.mxu0 %v5453_v40  ;;  %951 = vmatpush1.bf16.msra.mxu1 %v5450_v46  ;;  %v5534_v38 = vld [vmem:[%s7613_s1 + $0xc8] ss:$12 sps:$4 sm:$0xff]   ;;  %v5533_v40 = vld [vmem:[%s7613_s1 + $0xc4] ss:$12 sps:$4 sm:$0xff]   ;;  %v5538_v42 = vld [vmem:[%s7613_s1 + $0x3ac] ss:$12 sps:$4 sm:$0xff]  }
  0x31   : > { %626 = vmatprep.subr.bf16.mxu0 %v5454_v43  ;;  %982 = vmatprep.mubr.bf16.mxu1 %v6209_v34  ;;  %v5535_v41 = vld [vmem:[%s7613_s1 + $0x8] ss:$12 sps:$4 sm:$0xff]   ;;  %v5531_v43 = vld [vmem:[%s7613_s1 + $0xc0] ss:$12 sps:$4 sm:$0xff]   ;;  %v5539_v45 = vld [vmem:[%s7613_s1 + $0x470] ss:$12 sps:$4 sm:$0xff]  }
  0x32   : > { %952 = vmatprep.subr.bf16.mxu1 %v5458_v47  ;;  %v5543_v46 = vld [vmem:[%s7613_s1 + $0x394] ss:$12 sps:$4 sm:$0xff]   ;;  %v5540_v47 = vld [vmem:[%s7613_s1 + $0x3b0] ss:$12 sps:$4 sm:$0xff]   ;;  %vm4070_vm1 = vsmask.f32 256 }
  0x33   : > { %vm4079_vm2 = vcmask 253952   ;;  %vm4069_vm4 = vcmask 1040384   ;;  %vm4072_vm5 = vcmask 1044484   ;;  %vm4073_vm6 = vsmask.f32 4352 }
  0x34   : > { %627 = vmatpush2.bf16.msra.mxu0 %v5459_v48  ;;  %953 = vmatpush1.bf16.msra.mxu1 %v5456_v50  ;;  %v5541_v48 = vld [vmem:[%s7613_s1 + $0x390] ss:$12 sps:$4 sm:$0xff]   ;;  %v5545_v50 = vld [vmem:[%s7613_s1 + $0x398] ss:$12 sps:$4 sm:$0xff]   ;;  %vm4080_vm3 = vmand %vm4079_vm2, %vm4070_vm1 }
  0x35   : > { %628 = vmatprep.subr.bf16.mxu0 %v5460_v49  ;;  %954 = vmatprep.subr.bf16.mxu1 %v5464_v51  ;;  %v5544_v49 = vld [vmem:[%s7613_s1 + $0x458] ss:$12 sps:$4 sm:$0xff]   ;;  %v5548_v51 = vld [vmem:[%s7613_s1 + $0x37c] ss:$12 sps:$4 sm:$0xff]   ;;  %vm4071_vm7 = vmand %vm4069_vm4, %vm4070_vm1 }
  0x36   : > { %vm4074_vm8 = vmand %vm4072_vm5, %vm4073_vm6 }
  0x37   : > { %vm4075_vm9 = vmor %vm4074_vm8, %vm4071_vm7 }
  0x38   : > { %629 = vmatpush2.bf16.msra.mxu0 %v5465_v52  ;;  %955 = vmatpush1.bf16.msra.mxu1 %v5462_v54  ;;  %v5546_v52 = vld [vmem:[%s7613_s1 + $0x378] ss:$12 sps:$4 sm:$0xff]  }
  0x39   : > { %630 = vmatprep.subr.bf16.mxu0 %v5466_v53  ;;  %956 = vmatprep.subr.bf16.mxu1 %v5470_v55  ;;  %v5549_v53 = vld [vmem:[%s7613_s1 + $0x440] ss:$12 sps:$4 sm:$0xff]   ;;  %v5553_v55 = vld [vmem:[%s7613_s1 + $0x364] ss:$12 sps:$4 sm:$0xff]  }
  0x3a   : > { %v5578_v54 = vld [vmem:[%s6194_s23 + $0x4] ss:$8 sps:$4 sm:$0x3e]  }
  0x3c   : > { %631 = vmatpush2.bf16.msra.mxu0 %v5471_v56  ;;  %957 = vmatpush1.bf16.msra.mxu1 %v5468_v58  ;;  %v1110_v56 = vrot.slane %v5578_v54, 1  ;;  %v5554_v58 = vld [vmem:[%s7613_s1 + $0x428] ss:$12 sps:$4 sm:$0xff]   ;;  %v5636_v54 = vld [vmem:[%s7613_s1 + $0x518] ss:$12 sps:$4 sm:$0xff]  }
  0x3d   : > { %632 = vmatprep.subr.bf16.mxu0 %v5472_v57  ;;  %958 = vmatprep.subr.bf16.mxu1 %v5476_v59  ;;  %v5551_v57 = vld [vmem:[%s7613_s1 + $0x360] ss:$12 sps:$4 sm:$0xff]  }
  0x3e   : > { %v5558_v59 = vld [vmem:[%s7613_s1 + $0x34c] ss:$12 sps:$4 sm:$0xff]  }
  0x40   : > { %633 = vmatpush2.bf16.msra.mxu0 %v5477_v60  ;;  %959 = vmatpush1.bf16.msra.mxu1 %v5474_v62  ;;  %v5555_v60 = vld [vmem:[%s7613_s1 + $0x368] ss:$12 sps:$4 sm:$0xff]   ;;  %v5559_v62 = vld [vmem:[%s7613_s1 + $0x410] ss:$12 sps:$4 sm:$0xff]  }
  0x41   : > { %634 = vmatprep.subr.bf16.mxu0 %v5478_v61  ;;  %960 = vmatprep.subr.bf16.mxu1 %v5482_v63  ;;  %v5556_v61 = vld [vmem:[%s7613_s1 + $0x348] ss:$12 sps:$4 sm:$0xff]  }
  0x42   : > { %v5563_v63 = vld [vmem:[%s7613_s1 + $0x334] ss:$12 sps:$4 sm:$0xff]  }
  0x44   : > { %635 = vmatpush2.bf16.msra.mxu0 %v5483_v0  ;;  %961 = vmatpush1.bf16.msra.mxu1 %v5480_v2  ;;  %v5560_v0 = vld [vmem:[%s7613_s1 + $0x350] ss:$12 sps:$4 sm:$0xff]   ;;  %v5564_v2 = vld [vmem:[%s7613_s1 + $0x3f8] ss:$12 sps:$4 sm:$0xff]  }
  0x45   : > { %636 = vmatprep.subr.bf16.mxu0 %v5484_v1  ;;  %962 = vmatprep.subr.bf16.mxu1 %v5488_v3  ;;  %v5561_v1 = vld [vmem:[%s7613_s1 + $0x330] ss:$12 sps:$4 sm:$0xff]  }
  0x46   : > { %v5568_v3 = vld [vmem:[%s7613_s1 + $0x31c] ss:$12 sps:$4 sm:$0xff]  }
  0x48   : > { %637 = vmatpush2.bf16.msra.mxu0 %v5489_v4  ;;  %963 = vmatpush1.bf16.msra.mxu1 %v5486_v6  ;;  %v5565_v4 = vld [vmem:[%s7613_s1 + $0x338] ss:$12 sps:$4 sm:$0xff]   ;;  %v5569_v6 = vld [vmem:[%s7613_s1 + $0x3e0] ss:$12 sps:$4 sm:$0xff]  }
  0x49   : > { %638 = vmatprep.subr.bf16.mxu0 %v5490_v5  ;;  %964 = vmatprep.subr.bf16.mxu1 %v5494_v7  ;;  %v5566_v5 = vld [vmem:[%s7613_s1 + $0x318] ss:$12 sps:$4 sm:$0xff]  }
  0x4a   : > { %v5573_v7 = vld [vmem:[%s7613_s1 + $0x304] ss:$12 sps:$4 sm:$0xff]  }
  0x4c   : > { %639 = vmatpush2.bf16.msra.mxu0 %v5495_v8  ;;  %965 = vmatpush1.bf16.msra.mxu1 %v5492_v10  ;;  %v5570_v8 = vld [vmem:[%s7613_s1 + $0x320] ss:$12 sps:$4 sm:$0xff]   ;;  %v5574_v10 = vld [vmem:[%s7613_s1 + $0x3c8] ss:$12 sps:$4 sm:$0xff]  }
  0x4d   : > { %5186 = vmatprep.subr.bf16.mxu0 %v5499_v9  ;;  %966 = vmatprep.subr.bf16.mxu1 %v5498_v11  ;;  %v5571_v9 = vld [vmem:[%s7613_s1 + $0x300] ss:$12 sps:$4 sm:$0xff]   ;;  %v5575_v11 = vld [vmem:[%s7613_s1 + $0x308] ss:$12 sps:$4 sm:$0xff]  }
  0x4f   : > { %641 = vmatmul.mubr.bf16.vlgmr.msra.gmra.mxu0 %v6224_v44  ;;  %v5536_v44 = vld [vmem:[%s7613_s1 + $0x3a8] ss:$12 sps:$4 sm:$0xff]  }
  0x50   : > { %5187 = vmatpush3.bf16.msra.mxu0 %v5500_v12  ;;  %1025 = vmatprep.mubr.bf16.mxu0 %v6209_v34  ;;  %v5529_v34 = vld [vmem:[%s7613_s1 + $0xe0] ss:$12 sps:$4 sm:$0xff]  }
  0x51   : > { %5188 = vmatprep.subr.bf16.mxu0 %v5504_v13  ;;  %967 = vmatpush2.bf16.msra.mxu1 %v5496_v14  ;;  %v5581_v12 = vld [vmem:[%s7613_s1 + $0x46c] ss:$12 sps:$4 sm:$0xff]   ;;  %v6513_v13 = vld [vmem:[%s6194_s23] ss:$8 sps:$4 sm:$0x3e]  }
  0x52   : > { %968 = vmatprep.subr.bf16.mxu1 %v5503_v15  ;;  %v5579_v14 = vld [vmem:[%s7613_s1 + $0x468] ss:$12 sps:$4 sm:$0xff]   ;;  %v5584_v15 = vld [vmem:[%s7613_s1 + $0x52c] ss:$12 sps:$4 sm:$0xff]  }
  0x54   : > { %5189 = vmatpush3.bf16.msra.mxu0 %v5505_v16  ;;  %v5587_v16 = vld [vmem:[%s7613_s1 + $0x454] ss:$12 sps:$4 sm:$0xff]  }
  0x55   : > { %5190 = vmatprep.subr.bf16.mxu0 %v5509_v17  ;;  %969 = vmatpush2.bf16.msra.mxu1 %v5501_v18  ;;  %v1109_v17 = vrot.slane %v6513_v13, 1  ;;  %v5582_v18 = vld [vmem:[%s7613_s1 + $0x528] ss:$12 sps:$4 sm:$0xff]   ;;  %v5664_v13 = vld [vmem:[%s7613_s1 + $0x544] ss:$12 sps:$4 sm:$0xff]  }
  0x56   : > { %970 = vmatprep.subr.bf16.mxu1 %v5508_v19  ;;  %v5585_v19 = vld [vmem:[%s7613_s1 + $0x450] ss:$12 sps:$4 sm:$0xff]  }
  0x58   : > { %5191 = vmatpush3.bf16.msra.mxu0 %v5510_v20  ;;  %v5590_v20 = vld [vmem:[%s7613_s1 + $0x514] ss:$12 sps:$4 sm:$0xff]  }
  0x59   : > { %5192 = vmatprep.subr.bf16.mxu0 %v5514_v21  ;;  %971 = vmatpush2.bf16.msra.mxu1 %v5506_v22  ;;  %v5593_v21 = vld [vmem:[%s7613_s1 + $0x43c] ss:$12 sps:$4 sm:$0xff]  }
  0x5a   : > { %972 = vmatprep.subr.bf16.mxu1 %v5513_v23  ;;  %v5588_v22 = vld [vmem:[%s7613_s1 + $0x510] ss:$12 sps:$4 sm:$0xff]   ;;  %v5591_v23 = vld [vmem:[%s7613_s1 + $0x438] ss:$12 sps:$4 sm:$0xff]  }
  0x5c   : > { %5193 = vmatpush3.bf16.msra.mxu0 %v5515_v24  ;;  %v5596_v24 = vld [vmem:[%s7613_s1 + $0x4fc] ss:$12 sps:$4 sm:$0xff]  }
  0x5d   : > { %5194 = vmatprep.subr.bf16.mxu0 %v5519_v25  ;;  %973 = vmatpush2.bf16.msra.mxu1 %v5511_v26  ;;  %v5599_v25 = vld [vmem:[%s7613_s1 + $0x424] ss:$12 sps:$4 sm:$0xff]  }
  0x5e   : > { %974 = vmatprep.subr.bf16.mxu1 %v5518_v27  ;;  %v5594_v26 = vld [vmem:[%s7613_s1 + $0x4f8] ss:$12 sps:$4 sm:$0xff]   ;;  %v5597_v27 = vld [vmem:[%s7613_s1 + $0x420] ss:$12 sps:$4 sm:$0xff]  }
  0x60   : > { %5195 = vmatpush3.bf16.msra.mxu0 %v5520_v28  ;;  %v5602_v28 = vld [vmem:[%s7613_s1 + $0x4e4] ss:$12 sps:$4 sm:$0xff]  }
  0x61   : > { %5196 = vmatprep.subr.bf16.mxu0 %v5524_v29  ;;  %975 = vmatpush2.bf16.msra.mxu1 %v5516_v30  ;;  %v5605_v29 = vld [vmem:[%s7613_s1 + $0x40c] ss:$12 sps:$4 sm:$0xff]  }
  0x62   : > { %976 = vmatprep.subr.bf16.mxu1 %v5523_v31  ;;  %v5600_v30 = vld [vmem:[%s7613_s1 + $0x4e0] ss:$12 sps:$4 sm:$0xff]   ;;  %v5603_v31 = vld [vmem:[%s7613_s1 + $0x408] ss:$12 sps:$4 sm:$0xff]  }
  0x64   : > { %5197 = vmatpush3.bf16.msra.mxu0 %v5525_v33  ;;  %v5608_v33 = vld [vmem:[%s7613_s1 + $0x4cc] ss:$12 sps:$4 sm:$0xff]  }
  0x65   : > { %5198 = vmatprep.subr.bf16.mxu0 %v5529_v34  ;;  %977 = vmatpush2.bf16.msra.mxu1 %v5521_v35  ;;  %v5611_v34 = vld [vmem:[%s7613_s1 + $0x3f4] ss:$12 sps:$4 sm:$0xff]  }
  0x66   : > { %978 = vmatprep.subr.bf16.mxu1 %v5528_v36  ;;  %v5606_v35 = vld [vmem:[%s7613_s1 + $0x4c8] ss:$12 sps:$4 sm:$0xff]   ;;  %v5609_v36 = vld [vmem:[%s7613_s1 + $0x3f0] ss:$12 sps:$4 sm:$0xff]  }
  0x68   : > { %5199 = vmatpush3.bf16.msra.mxu0 %v5530_v37  ;;  %v5614_v37 = vld [vmem:[%s7613_s1 + $0x4b4] ss:$12 sps:$4 sm:$0xff]  }
  0x69   : > { %5200 = vmatprep.subr.bf16.mxu0 %v5534_v38  ;;  %979 = vmatpush2.bf16.msra.mxu1 %v5526_v39  ;;  %v5617_v38 = vld [vmem:[%s7613_s1 + $0x3dc] ss:$12 sps:$4 sm:$0xff]  }
  0x6a   : > { %980 = vmatprep.subr.bf16.mxu1 %v5533_v40  ;;  %v5612_v39 = vld [vmem:[%s7613_s1 + $0x4b0] ss:$12 sps:$4 sm:$0xff]   ;;  %v5615_v40 = vld [vmem:[%s7613_s1 + $0x3d8] ss:$12 sps:$4 sm:$0xff]  }
  0x6c   : > { %5201 = vmatpush3.bf16.msra.mxu0 %v5535_v41  ;;  %v5620_v41 = vld [vmem:[%s7613_s1 + $0x49c] ss:$12 sps:$4 sm:$0xff]  }
  0x6d   : > { %1369 = vmatprep.subr.bf16.mxu0 %v5538_v42  ;;  %981 = vmatpush2.bf16.msra.mxu1 %v5531_v43  ;;  %v5623_v42 = vld [vmem:[%s7613_s1 + $0x3c4] ss:$12 sps:$4 sm:$0xff]   ;;  %v6600_v43 = vld [vmem:[%s6194_s23 + $0x14] ss:$8 sps:$4 sm:$0x1f]  }
  0x6e   : > { %5208 = vmatprep.subr.bf16.mxu1 %v5539_v45  ;;  %v5621_v45 = vld [vmem:[%s7613_s1 + $0x3c0] ss:$12 sps:$4 sm:$0xff]  }
  0x6f   : > { %1026 = vmatmul.mubr.bf16.vlgmr.msra.gmra.mxu0 %v6203_v32 }
  0x70   : > { %1370 = vmatpush1.bf16.msra.mxu0 %v5536_v44  ;;  %983 = vmatmul.mubr.bf16.vlgmr.msra.gmra.mxu1 %v6203_v32  ;;  %v5550_v32 = vld [vmem:[%s7613_s1 + $0x380] ss:$12 sps:$4 sm:$0xff]   ;;  %v5618_v44 = vld [vmem:[%s7613_s1 + $0x498] ss:$12 sps:$4 sm:$0xff]  }
  0x71   : > { %1371 = vmatprep.subr.bf16.mxu0 %v5543_v46  ;;  %5209 = vmatpush3.bf16.msra.mxu1 %v5540_v47  ;;  %v5626_v46 = vld [vmem:[%s7613_s1 + $0x484] ss:$12 sps:$4 sm:$0xff]  }
  0x72   : > { %5210 = vmatprep.subr.bf16.mxu1 %v5544_v49  ;;  %1444 = vmatprep.mubr.bf16.mxu1 %v1110_v56  ;;  %v5630_v47 = vld [vmem:[%s7613_s1 + $0x5f0] ss:$12 sps:$4 sm:$0xff]   ;;  %v5629_v49 = vld [vmem:[%s7613_s1 + $0x5ec] ss:$12 sps:$4 sm:$0xff]  }
  0x73   : > { %1401 = vmatprep.mubr.bf16.mxu0 %v1110_v56  ;;  %v5632_v56 = vld [vmem:[%s7613_s1 + $0x5d0] ss:$12 sps:$4 sm:$0xff]  }
  0x74   : > { %1372 = vmatpush1.bf16.msra.mxu0 %v5541_v48  ;;  %v5624_v48 = vld [vmem:[%s7613_s1 + $0x480] ss:$12 sps:$4 sm:$0xff]  }
  0x75   : > { %1373 = vmatprep.subr.bf16.mxu0 %v5548_v51  ;;  %5211 = vmatpush3.bf16.msra.mxu1 %v5545_v50  ;;  %v5631_v50 = vld [vmem:[%s7613_s1 + $0x530] ss:$12 sps:$4 sm:$0xff]   ;;  %v5635_v51 = vld [vmem:[%s7613_s1 + $0x5d8] ss:$12 sps:$4 sm:$0xff]  }
  0x76   : > { %5212 = vmatprep.subr.bf16.mxu1 %v5549_v53  ;;  %v5634_v53 = vld [vmem:[%s7613_s1 + $0x5d4] ss:$12 sps:$4 sm:$0xff]  }
  0x78   : > { %1374 = vmatpush1.bf16.msra.mxu0 %v5546_v52  ;;  %v5627_v52 = vld [vmem:[%s7613_s1 + $0x5e8] ss:$12 sps:$4 sm:$0xff]  }
  0x79   : > { %1375 = vmatprep.subr.bf16.mxu0 %v5553_v55  ;;  %5213 = vmatpush3.bf16.msra.mxu1 %v5550_v32  ;;  %v5640_v55 = vld [vmem:[%s7613_s1 + $0x5c0] ss:$12 sps:$4 sm:$0xff]   ;;  %v5639_v32 = vld [vmem:[%s7613_s1 + $0x5bc] ss:$12 sps:$4 sm:$0xff]  }
  0x7a   : > { %5214 = vmatprep.subr.bf16.mxu1 %v5554_v58  ;;  %v5645_v58 = vld [vmem:[%s7613_s1 + $0x5a8] ss:$12 sps:$4 sm:$0xff]  }
  0x7c   : > { %1376 = vmatpush1.bf16.msra.mxu0 %v5551_v57  ;;  %v5641_v57 = vld [vmem:[%s7613_s1 + $0x500] ss:$12 sps:$4 sm:$0xff]  }
  0x7d   : > { %1377 = vmatprep.subr.bf16.mxu0 %v5558_v59  ;;  %5215 = vmatpush3.bf16.msra.mxu1 %v5555_v60  ;;  %v5637_v59 = vld [vmem:[%s7613_s1 + $0x5b8] ss:$12 sps:$4 sm:$0xff]  }
  0x7e   : > { %5216 = vmatprep.subr.bf16.mxu1 %v5559_v62  ;;  %v5644_v60 = vld [vmem:[%s7613_s1 + $0x5a4] ss:$12 sps:$4 sm:$0xff]  }
  0x7f   : > { %v5650_v62 = vld [vmem:[%s7613_s1 + $0x590] ss:$12 sps:$4 sm:$0xff]  }
  0x80   : > { %1378 = vmatpush1.bf16.msra.mxu0 %v5556_v61  ;;  %v5646_v61 = vld [vmem:[%s7613_s1 + $0x4e8] ss:$12 sps:$4 sm:$0xff]  }
  0x81   : > { %1379 = vmatprep.subr.bf16.mxu0 %v5563_v63  ;;  %5217 = vmatpush3.bf16.msra.mxu1 %v5560_v0  ;;  %v5642_v63 = vld [vmem:[%s7613_s1 + $0x5a0] ss:$12 sps:$4 sm:$0xff]  }
  0x82   : > { %5218 = vmatprep.subr.bf16.mxu1 %v5564_v2  ;;  %v5649_v0 = vld [vmem:[%s7613_s1 + $0x58c] ss:$12 sps:$4 sm:$0xff]  }
  0x83   : > { %v5655_v2 = vld [vmem:[%s7613_s1 + $0x578] ss:$12 sps:$4 sm:$0xff]  }
  0x84   : > { %1380 = vmatpush1.bf16.msra.mxu0 %v5561_v1  ;;  %v5651_v1 = vld [vmem:[%s7613_s1 + $0x4d0] ss:$12 sps:$4 sm:$0xff]  }
  0x85   : > { %1381 = vmatprep.subr.bf16.mxu0 %v5568_v3  ;;  %5219 = vmatpush3.bf16.msra.mxu1 %v5565_v4  ;;  %v5647_v3 = vld [vmem:[%s7613_s1 + $0x588] ss:$12 sps:$4 sm:$0xff]  }
  0x86   : > { %5220 = vmatprep.subr.bf16.mxu1 %v5569_v6  ;;  %v5654_v4 = vld [vmem:[%s7613_s1 + $0x574] ss:$12 sps:$4 sm:$0xff]  }
  0x87   : > { %v5660_v6 = vld [vmem:[%s7613_s1 + $0x560] ss:$12 sps:$4 sm:$0xff]  }
  0x88   : > { %1382 = vmatpush1.bf16.msra.mxu0 %v5566_v5  ;;  %v5656_v5 = vld [vmem:[%s7613_s1 + $0x4b8] ss:$12 sps:$4 sm:$0xff]  }
  0x89   : > { %1383 = vmatprep.subr.bf16.mxu0 %v5573_v7  ;;  %5221 = vmatpush3.bf16.msra.mxu1 %v5570_v8  ;;  %v5652_v7 = vld [vmem:[%s7613_s1 + $0x570] ss:$12 sps:$4 sm:$0xff]  }
  0x8a   : > { %5222 = vmatprep.subr.bf16.mxu1 %v5574_v10  ;;  %v5659_v8 = vld [vmem:[%s7613_s1 + $0x55c] ss:$12 sps:$4 sm:$0xff]  }
  0x8b   : > { %v5665_v10 = vld [vmem:[%s7613_s1 + $0x548] ss:$12 sps:$4 sm:$0xff]  }
  0x8c   : > { %1384 = vmatpush1.bf16.msra.mxu0 %v5571_v9  ;;  %v5661_v9 = vld [vmem:[%s7613_s1 + $0x4a0] ss:$12 sps:$4 sm:$0xff]  }
  0x8d   : > { %1385 = vmatprep.subr.bf16.mxu0 %v5581_v12  ;;  %5223 = vmatpush3.bf16.msra.mxu1 %v5575_v11  ;;  %v5657_v11 = vld [vmem:[%s7613_s1 + $0x558] ss:$12 sps:$4 sm:$0xff]   ;;  %v1961_v12 = vshll.u32 %v6600_v43, 16 }
  0x8e   : > { %1796 = vmatprep.subr.bf16.mxu1 %v5584_v15  ;;  %v5672_v15 = vld [vmem:[%s7613_s1 + $0x6ac] ss:$12 sps:$4 sm:$0xff]  }
  0x90   : > { %1386 = vmatpush2.bf16.msra.mxu0 %v5579_v14  ;;  %1445 = vmatmul.mubr.bf16.vlgmr.msra.gmra.mxu1 %v1109_v17  ;;  %v5666_v14 = vld [vmem:[%s7613_s1 + $0x488] ss:$12 sps:$4 sm:$0xff]  }
  0x91   : > { %1387 = vmatprep.subr.bf16.mxu0 %v5587_v16  ;;  %1797 = vmatpush1.bf16.msra.mxu1 %v5582_v18  ;;  %v6716_v16 = vld [vmem:[%s6194_s23 + $0x10] ss:$8 sps:$4 sm:$0x1f]   ;;  %v1959_v18 = vshrl.u32 %v6600_v43, 16 }
  0x92   : > { %1798 = vmatprep.subr.bf16.mxu1 %v5590_v20  ;;  %1828 = vmatprep.mubr.bf16.mxu1 %v6600_v43  ;;  %v5670_v20 = vld [vmem:[%s7613_s1 + $0x6a8] ss:$12 sps:$4 sm:$0xff]  }
  0x94   : > { %1388 = vmatpush2.bf16.msra.mxu0 %v5585_v19  ;;  %v1963_v19 = vrot.slane %v1961_v12, 1  ;;  %v5739_v12 = vld [vmem:[%s7613_s1 + $0x7cc] ss:$12 sps:$4 sm:$0xff]  }
  0x95   : > { %1389 = vmatprep.subr.bf16.mxu0 %v5593_v21  ;;  %1799 = vmatpush1.bf16.msra.mxu1 %v5588_v22  ;;  %v5673_v21 = vld [vmem:[%s7613_s1 + $0x770] ss:$12 sps:$4 sm:$0xff]   ;;  %v5677_v22 = vld [vmem:[%s7613_s1 + $0x694] ss:$12 sps:$4 sm:$0xff]  }
  0x96   : > { %1800 = vmatprep.subr.bf16.mxu1 %v5596_v24  ;;  %v1964_v24 = vor.u32 %v1963_v19, %v1959_v18  ;;  %v5743_v18 = vld [vmem:[%s7613_s1 + $0x7b0] ss:$12 sps:$4 sm:$0xff]   ;;  %v5746_v19 = vld [vmem:[%s7613_s1 + $0x6d8] ss:$12 sps:$4 sm:$0xff]  }
  0x98   : > { %1390 = vmatpush2.bf16.msra.mxu0 %v5591_v23  ;;  %v5674_v23 = vld [vmem:[%s7613_s1 + $0x6b0] ss:$12 sps:$4 sm:$0xff]  }
  0x99   : > { %1391 = vmatprep.subr.bf16.mxu0 %v5599_v25  ;;  %1801 = vmatpush1.bf16.msra.mxu1 %v5594_v26  ;;  %v5675_v25 = vld [vmem:[%s7613_s1 + $0x690] ss:$12 sps:$4 sm:$0xff]   ;;  %v5678_v26 = vld [vmem:[%s7613_s1 + $0x758] ss:$12 sps:$4 sm:$0xff]  }
  0x9a   : > { %1802 = vmatprep.subr.bf16.mxu1 %v5602_v28  ;;  %v5679_v28 = vld [vmem:[%s7613_s1 + $0x698] ss:$12 sps:$4 sm:$0xff]  }
  0x9c   : > { %1392 = vmatpush2.bf16.msra.mxu0 %v5597_v27  ;;  %v5682_v27 = vld [vmem:[%s7613_s1 + $0x67c] ss:$12 sps:$4 sm:$0xff]  }
  0x9d   : > { %1393 = vmatprep.subr.bf16.mxu0 %v5605_v29  ;;  %1803 = vmatpush1.bf16.msra.mxu1 %v5600_v30  ;;  %v5680_v29 = vld [vmem:[%s7613_s1 + $0x678] ss:$12 sps:$4 sm:$0xff]   ;;  %v5683_v30 = vld [vmem:[%s7613_s1 + $0x740] ss:$12 sps:$4 sm:$0xff]  }
  0x9e   : > { %1804 = vmatprep.subr.bf16.mxu1 %v5608_v33  ;;  %v5684_v33 = vld [vmem:[%s7613_s1 + $0x680] ss:$12 sps:$4 sm:$0xff]  }
  0xa0   : > { %1394 = vmatpush2.bf16.msra.mxu0 %v5603_v31  ;;  %v5687_v31 = vld [vmem:[%s7613_s1 + $0x664] ss:$12 sps:$4 sm:$0xff]  }
  0xa1   : > { %1395 = vmatprep.subr.bf16.mxu0 %v5611_v34  ;;  %1805 = vmatpush1.bf16.msra.mxu1 %v5606_v35  ;;  %v5685_v34 = vld [vmem:[%s7613_s1 + $0x660] ss:$12 sps:$4 sm:$0xff]   ;;  %v5688_v35 = vld [vmem:[%s7613_s1 + $0x728] ss:$12 sps:$4 sm:$0xff]  }
  0xa2   : > { %1806 = vmatprep.subr.bf16.mxu1 %v5614_v37  ;;  %v5689_v37 = vld [vmem:[%s7613_s1 + $0x668] ss:$12 sps:$4 sm:$0xff]  }
  0xa4   : > { %1396 = vmatpush2.bf16.msra.mxu0 %v5609_v36  ;;  %v5692_v36 = vld [vmem:[%s7613_s1 + $0x64c] ss:$12 sps:$4 sm:$0xff]  }
  0xa5   : > { %1397 = vmatprep.subr.bf16.mxu0 %v5617_v38  ;;  %1807 = vmatpush1.bf16.msra.mxu1 %v5612_v39  ;;  %v5690_v38 = vld [vmem:[%s7613_s1 + $0x648] ss:$12 sps:$4 sm:$0xff]   ;;  %v5693_v39 = vld [vmem:[%s7613_s1 + $0x710] ss:$12 sps:$4 sm:$0xff]  }
  0xa6   : > { %1808 = vmatprep.subr.bf16.mxu1 %v5620_v41  ;;  %v5694_v41 = vld [vmem:[%s7613_s1 + $0x650] ss:$12 sps:$4 sm:$0xff]  }
  0xa8   : > { %1398 = vmatpush2.bf16.msra.mxu0 %v5615_v40  ;;  %v5697_v40 = vld [vmem:[%s7613_s1 + $0x634] ss:$12 sps:$4 sm:$0xff]  }
  0xa9   : > { %1399 = vmatprep.subr.bf16.mxu0 %v5623_v42  ;;  %1809 = vmatpush1.bf16.msra.mxu1 %v5618_v44  ;;  %v5695_v42 = vld [vmem:[%s7613_s1 + $0x630] ss:$12 sps:$4 sm:$0xff]  }
  0xaa   : > { %1810 = vmatprep.subr.bf16.mxu1 %v5626_v46  ;;  %v5702_v44 = vld [vmem:[%s7613_s1 + $0x61c] ss:$12 sps:$4 sm:$0xff]   ;;  %v5700_v46 = vld [vmem:[%s7613_s1 + $0x618] ss:$12 sps:$4 sm:$0xff]  }
  0xac   : > { %1400 = vmatpush2.bf16.msra.mxu0 %v5621_v45  ;;  %v5699_v45 = vld [vmem:[%s7613_s1 + $0x638] ss:$12 sps:$4 sm:$0xff]  }
  0xad   : > { %5230 = vmatprep.subr.bf16.mxu0 %v5630_v47  ;;  %1811 = vmatpush1.bf16.msra.mxu1 %v5624_v48  ;;  %v5703_v47 = vld [vmem:[%s7613_s1 + $0x6e0] ss:$12 sps:$4 sm:$0xff]   ;;  %v5707_v48 = vld [vmem:[%s7613_s1 + $0x604] ss:$12 sps:$4 sm:$0xff]  }
  0xae   : > { %1812 = vmatprep.subr.bf16.mxu1 %v5629_v49  ;;  %v1954_v49 = vshll.u32 %v6716_v16, 16 }
  0xaf   : > { %1402 = vmatmul.mubr.bf16.vlgmr.msra.gmra.mxu0 %v1109_v17  ;;  %v5662_v17 = vld [vmem:[%s7613_s1 + $0x540] ss:$12 sps:$4 sm:$0xff]  }
  0xb0   : > { %5231 = vmatpush3.bf16.msra.mxu0 %v5631_v50  ;;  %1871 = vmatprep.mubr.bf16.mxu0 %v6600_v43  ;;  %v5698_v43 = vld [vmem:[%s7613_s1 + $0x6f8] ss:$12 sps:$4 sm:$0xff]   ;;  %v5704_v50 = vld [vmem:[%s7613_s1 + $0x620] ss:$12 sps:$4 sm:$0xff]  }
  0xb1   : > { %5232 = vmatprep.subr.bf16.mxu0 %v5635_v51  ;;  %1813 = vmatpush2.bf16.msra.mxu1 %v5627_v52  ;;  %v5705_v51 = vld [vmem:[%s7613_s1 + $0x600] ss:$12 sps:$4 sm:$0xff]   ;;  %v5708_v52 = vld [vmem:[%s7613_s1 + $0x6c8] ss:$12 sps:$4 sm:$0xff]  }
  0xb2   : > { %1814 = vmatprep.subr.bf16.mxu1 %v5634_v53  ;;  %v5712_v53 = vld [vmem:[%s7613_s1 + $0x76c] ss:$12 sps:$4 sm:$0xff]  }
  0xb4   : > { %5233 = vmatpush3.bf16.msra.mxu0 %v5636_v54  ;;  %v5709_v54 = vld [vmem:[%s7613_s1 + $0x608] ss:$12 sps:$4 sm:$0xff]  }
  0xb5   : > { %5234 = vmatprep.subr.bf16.mxu0 %v5640_v55  ;;  %1815 = vmatpush2.bf16.msra.mxu1 %v5632_v56  ;;  %v1952_v55 = vshrl.u32 %v6716_v16, 16  ;;  %v1956_v56 = vrot.slane %v1954_v49, 1  ;;  %v5787_v49 = vld [vmem:[%s7613_s1 + $0x7b8] ss:$12 sps:$4 sm:$0xff]  }
  0xb6   : > { %1816 = vmatprep.subr.bf16.mxu1 %v5639_v32  ;;  %v5710_v32 = vld [vmem:[%s7613_s1 + $0x768] ss:$12 sps:$4 sm:$0xff]  }
  0xb8   : > { %5235 = vmatpush3.bf16.msra.mxu0 %v5641_v57  ;;  %v5715_v57 = vld [vmem:[%s7613_s1 + $0x82c] ss:$12 sps:$4 sm:$0xff]  }
  0xb9   : > { %5236 = vmatprep.subr.bf16.mxu0 %v5645_v58  ;;  %1817 = vmatpush2.bf16.msra.mxu1 %v5637_v59  ;;  %v5718_v58 = vld [vmem:[%s7613_s1 + $0x754] ss:$12 sps:$4 sm:$0xff]   ;;  %v6831_v59 = vor.u32 %v1956_v56, %v1952_v55  ;;  %v5788_v56 = vld [vmem:[%s7613_s1 + $0x858] ss:$12 sps:$4 sm:$0xff]  }
  0xba   : > { %1818 = vmatprep.subr.bf16.mxu1 %v5644_v60  ;;  %v5713_v60 = vld [vmem:[%s7613_s1 + $0x828] ss:$12 sps:$4 sm:$0xff]  }
  0xbb   : > { %v5796_v55 = vld [vmem:[%s7613_s1 + $0x848] ss:$12 sps:$4 sm:$0xff]  }
  0xbc   : > { %5237 = vmatpush3.bf16.msra.mxu0 %v5646_v61  ;;  %v5716_v61 = vld [vmem:[%s7613_s1 + $0x750] ss:$12 sps:$4 sm:$0xff]  }
  0xbd   : > { %5238 = vmatprep.subr.bf16.mxu0 %v5650_v62  ;;  %1819 = vmatpush2.bf16.msra.mxu1 %v5642_v63  ;;  %v5721_v62 = vld [vmem:[%s7613_s1 + $0x814] ss:$12 sps:$4 sm:$0xff]   ;;  %v5724_v63 = vld [vmem:[%s7613_s1 + $0x73c] ss:$12 sps:$4 sm:$0xff]  }
  0xbe   : > { %1820 = vmatprep.subr.bf16.mxu1 %v5649_v0  ;;  %v5719_v0 = vld [vmem:[%s7613_s1 + $0x810] ss:$12 sps:$4 sm:$0xff]  }
  0xc0   : > { %5239 = vmatpush3.bf16.msra.mxu0 %v5651_v1  ;;  %v6850_v1 = vld [vmem:[%s6194_s23 + $0x14] ss:$8 sps:$4 sm:$0x3e]  }
  0xc1   : > { %5240 = vmatprep.subr.bf16.mxu0 %v5655_v2  ;;  %1821 = vmatpush2.bf16.msra.mxu1 %v5647_v3  ;;  %v5722_v2 = vld [vmem:[%s7613_s1 + $0x738] ss:$12 sps:$4 sm:$0xff]   ;;  %v5727_v3 = vld [vmem:[%s7613_s1 + $0x7fc] ss:$12 sps:$4 sm:$0xff]  }
  0xc2   : > { %1822 = vmatprep.subr.bf16.mxu1 %v5654_v4  ;;  %v2389_v4 = vrot.slane %v6850_v1, 1 }
  0xc4   : > { %5241 = vmatpush3.bf16.msra.mxu0 %v5656_v5  ;;  %v5730_v5 = vld [vmem:[%s7613_s1 + $0x724] ss:$12 sps:$4 sm:$0xff]  }
  0xc5   : > { %5242 = vmatprep.subr.bf16.mxu0 %v5660_v6  ;;  %1823 = vmatpush2.bf16.msra.mxu1 %v5652_v7  ;;  %v5725_v6 = vld [vmem:[%s7613_s1 + $0x7f8] ss:$12 sps:$4 sm:$0xff]   ;;  %v5728_v7 = vld [vmem:[%s7613_s1 + $0x720] ss:$12 sps:$4 sm:$0xff]  }
  0xc6   : > { %1824 = vmatprep.subr.bf16.mxu1 %v5659_v8  ;;  %v5733_v8 = vld [vmem:[%s7613_s1 + $0x7e4] ss:$12 sps:$4 sm:$0xff]  }
  0xc8   : > { %5243 = vmatpush3.bf16.msra.mxu0 %v5661_v9  ;;  %v5736_v9 = vld [vmem:[%s7613_s1 + $0x70c] ss:$12 sps:$4 sm:$0xff]  }
  0xc9   : > { %5244 = vmatprep.subr.bf16.mxu0 %v5665_v10  ;;  %1825 = vmatpush2.bf16.msra.mxu1 %v5657_v11  ;;  %v5731_v10 = vld [vmem:[%s7613_s1 + $0x7e0] ss:$12 sps:$4 sm:$0xff]   ;;  %v5734_v11 = vld [vmem:[%s7613_s1 + $0x708] ss:$12 sps:$4 sm:$0xff]  }
  0xca   : > { %1826 = vmatprep.subr.bf16.mxu1 %v5664_v13  ;;  %v5742_v13 = vld [vmem:[%s7613_s1 + $0x6f4] ss:$12 sps:$4 sm:$0xff]  }
  0xcc   : > { %5245 = vmatpush3.bf16.msra.mxu0 %v5666_v14  ;;  %v5737_v14 = vld [vmem:[%s7613_s1 + $0x7c8] ss:$12 sps:$4 sm:$0xff]  }
  0xcd   : > { %2223 = vmatprep.subr.bf16.mxu0 %v5672_v15  ;;  %1827 = vmatpush2.bf16.msra.mxu1 %v5662_v17  ;;  %v5740_v15 = vld [vmem:[%s7613_s1 + $0x6f0] ss:$12 sps:$4 sm:$0xff]  }
  0xce   : > { %5252 = vmatprep.subr.bf16.mxu1 %v5673_v21  ;;  %v5748_v17 = vld [vmem:[%s7613_s1 + $0x6dc] ss:$12 sps:$4 sm:$0xff]   ;;  %v5754_v21 = vld [vmem:[%s7613_s1 + $0x6c4] ss:$12 sps:$4 sm:$0xff]  }
  0xcf   : > { %1872 = vmatmul.mubr.bf16.vlgmr.msra.gmra.mxu0 %v6716_v16 }
  0xd0   : > { %2224 = vmatpush1.bf16.msra.mxu0 %v5670_v20  ;;  %2255 = vmatprep.mubr.bf16.mxu0 %v1964_v24  ;;  %v5751_v20 = vld [vmem:[%s7613_s1 + $0x79c] ss:$12 sps:$4 sm:$0xff]  }
  0xd1   : > { %2225 = vmatprep.subr.bf16.mxu0 %v5677_v22  ;;  %1829 = vmatmul.mubr.bf16.vlgmr.msra.gmra.mxu1 %v6716_v16  ;;  %v5745_v16 = vld [vmem:[%s7613_s1 + $0x7b4] ss:$12 sps:$4 sm:$0xff]   ;;  %v5749_v22 = vld [vmem:[%s7613_s1 + $0x798] ss:$12 sps:$4 sm:$0xff]  }
  0xd2   : > { %5253 = vmatpush3.bf16.msra.mxu1 %v5674_v23  ;;  %2298 = vmatprep.mubr.bf16.mxu1 %v1964_v24  ;;  %v5752_v23 = vld [vmem:[%s7613_s1 + $0x6c0] ss:$12 sps:$4 sm:$0xff]   ;;  %v5757_v24 = vld [vmem:[%s7613_s1 + $0x784] ss:$12 sps:$4 sm:$0xff]  }
  0xd3   : > { %5254 = vmatprep.subr.bf16.mxu1 %v5678_v26  ;;  %v5755_v26 = vld [vmem:[%s7613_s1 + $0x780] ss:$12 sps:$4 sm:$0xff]  }
  0xd4   : > { %2226 = vmatpush1.bf16.msra.mxu0 %v5675_v25  ;;  %v5761_v25 = vld [vmem:[%s7613_s1 + $0x8f0] ss:$12 sps:$4 sm:$0xff]  }
  0xd5   : > { %2227 = vmatprep.subr.bf16.mxu0 %v5682_v27  ;;  %v5760_v27 = vld [vmem:[%s7613_s1 + $0x8ec] ss:$12 sps:$4 sm:$0xff]  }
  0xd6   : > { %5255 = vmatpush3.bf16.msra.mxu1 %v5679_v28  ;;  %v5762_v28 = vld [vmem:[%s7613_s1 + $0x830] ss:$12 sps:$4 sm:$0xff]  }
  0xd7   : > { %5256 = vmatprep.subr.bf16.mxu1 %v5683_v30  ;;  %v5758_v30 = vld [vmem:[%s7613_s1 + $0x8e8] ss:$12 sps:$4 sm:$0xff]  }
  0xd8   : > { %2228 = vmatpush1.bf16.msra.mxu0 %v5680_v29  ;;  %v5766_v29 = vld [vmem:[%s7613_s1 + $0x8d8] ss:$12 sps:$4 sm:$0xff]  }
  0xd9   : > { %2229 = vmatprep.subr.bf16.mxu0 %v5687_v31  ;;  %v5765_v31 = vld [vmem:[%s7613_s1 + $0x8d4] ss:$12 sps:$4 sm:$0xff]  }
  0xda   : > { %5257 = vmatpush3.bf16.msra.mxu1 %v5684_v33  ;;  %v5767_v33 = vld [vmem:[%s7613_s1 + $0x818] ss:$12 sps:$4 sm:$0xff]  }
  0xdb   : > { %5258 = vmatprep.subr.bf16.mxu1 %v5688_v35  ;;  %v5763_v35 = vld [vmem:[%s7613_s1 + $0x8d0] ss:$12 sps:$4 sm:$0xff]  }
  0xdc   : > { %2230 = vmatpush1.bf16.msra.mxu0 %v5685_v34  ;;  %v5771_v34 = vld [vmem:[%s7613_s1 + $0x8c0] ss:$12 sps:$4 sm:$0xff]  }
  0xdd   : > { %2231 = vmatprep.subr.bf16.mxu0 %v5692_v36  ;;  %v5770_v36 = vld [vmem:[%s7613_s1 + $0x8bc] ss:$12 sps:$4 sm:$0xff]  }
  0xde   : > { %5259 = vmatpush3.bf16.msra.mxu1 %v5689_v37  ;;  %v5772_v37 = vld [vmem:[%s7613_s1 + $0x800] ss:$12 sps:$4 sm:$0xff]  }
  0xdf   : > { %5260 = vmatprep.subr.bf16.mxu1 %v5693_v39  ;;  %v5768_v39 = vld [vmem:[%s7613_s1 + $0x8b8] ss:$12 sps:$4 sm:$0xff]  }
  0xe0   : > { %2232 = vmatpush1.bf16.msra.mxu0 %v5690_v38  ;;  %v5776_v38 = vld [vmem:[%s7613_s1 + $0x8a8] ss:$12 sps:$4 sm:$0xff]  }
  0xe1   : > { %2233 = vmatprep.subr.bf16.mxu0 %v5697_v40  ;;  %v5775_v40 = vld [vmem:[%s7613_s1 + $0x8a4] ss:$12 sps:$4 sm:$0xff]  }
  0xe2   : > { %5261 = vmatpush3.bf16.msra.mxu1 %v5694_v41  ;;  %v5777_v41 = vld [vmem:[%s7613_s1 + $0x7e8] ss:$12 sps:$4 sm:$0xff]  }
  0xe3   : > { %5262 = vmatprep.subr.bf16.mxu1 %v5698_v43  ;;  %v5773_v43 = vld [vmem:[%s7613_s1 + $0x8a0] ss:$12 sps:$4 sm:$0xff]  }
  0xe4   : > { %2234 = vmatpush1.bf16.msra.mxu0 %v5695_v42  ;;  %v5781_v42 = vld [vmem:[%s7613_s1 + $0x890] ss:$12 sps:$4 sm:$0xff]  }
  0xe5   : > { %2235 = vmatprep.subr.bf16.mxu0 %v5702_v44  ;;  %v5780_v44 = vld [vmem:[%s7613_s1 + $0x88c] ss:$12 sps:$4 sm:$0xff]  }
  0xe6   : > { %5263 = vmatpush3.bf16.msra.mxu1 %v5699_v45  ;;  %v5782_v45 = vld [vmem:[%s7613_s1 + $0x7d0] ss:$12 sps:$4 sm:$0xff]  }
  0xe7   : > { %5264 = vmatprep.subr.bf16.mxu1 %v5703_v47  ;;  %v5778_v47 = vld [vmem:[%s7613_s1 + $0x888] ss:$12 sps:$4 sm:$0xff]  }
  0xe8   : > { %2236 = vmatpush1.bf16.msra.mxu0 %v5700_v46  ;;  %v5786_v46 = vld [vmem:[%s7613_s1 + $0x878] ss:$12 sps:$4 sm:$0xff]  }
  0xe9   : > { %2237 = vmatprep.subr.bf16.mxu0 %v5707_v48  ;;  %v5785_v48 = vld [vmem:[%s7613_s1 + $0x874] ss:$12 sps:$4 sm:$0xff]  }
  0xea   : > { %5265 = vmatpush3.bf16.msra.mxu1 %v5704_v50  ;;  %v5791_v50 = vld [vmem:[%s7613_s1 + $0x860] ss:$12 sps:$4 sm:$0xff]  }
  0xeb   : > { %5266 = vmatprep.subr.bf16.mxu1 %v5708_v52 }
  0xec   : > { %2238 = vmatpush1.bf16.msra.mxu0 %v5705_v51  ;;  %v5783_v51 = vld [vmem:[%s7613_s1 + $0x870] ss:$12 sps:$4 sm:$0xff]  }
  0xed   : > { %2239 = vmatprep.subr.bf16.mxu0 %v5712_v53  ;;  %v5790_v53 = vld [vmem:[%s7613_s1 + $0x85c] ss:$12 sps:$4 sm:$0xff]  }
  0xee   : > { %5267 = vmatpush3.bf16.msra.mxu1 %v5709_v54  ;;  %v5792_v54 = vld [vmem:[%s7613_s1 + $0x7a0] ss:$12 sps:$4 sm:$0xff]  }
  0xef   : > { %2648 = vmatprep.subr.bf16.mxu1 %v5715_v57  ;;  %v6998_v52 = vpop.f32.mrf.mxu1  ;;  %v5798_v57 = vld [vmem:[%s6194_s23 + $0x10] ss:$8 sps:$4 sm:$0x3e]  }
  0xf0   : > { %2240 = vmatpush2.bf16.msra.mxu0 %v5710_v32  ;;  %v5795_v32 = vld [vmem:[%s7613_s1 + $0x844] ss:$12 sps:$4 sm:$0xff]  }
  0xf1   : > { %2241 = vmatprep.subr.bf16.mxu0 %v5718_v58  ;;  %2299 = vmatmul.mubr.bf16.vlgmr.msra.gmra.mxu1 %v6831_v59  ;;  %v7016_v58 = vpop.f32.mrf.mxu1 }
  0xf2   : > { %2649 = vmatpush1.bf16.msra.mxu1 %v5713_v60  ;;  %2680 = vmatprep.mubr.bf16.mxu1 %v2389_v4  ;;  %v5793_v60 = vld [vmem:[%s7613_s1 + $0x840] ss:$12 sps:$4 sm:$0xff]  }
  0xf3   : > { %2650 = vmatprep.subr.bf16.mxu1 %v5721_v62  ;;  %v5801_v62 = vld [vmem:[%s7613_s1 + $0x9a8] ss:$12 sps:$4 sm:$0xff]  }
  0xf4   : > { %2242 = vmatpush2.bf16.msra.mxu0 %v5716_v61  ;;  %v5803_v61 = vld [vmem:[%s7613_s1 + $0x9ac] ss:$12 sps:$4 sm:$0xff]  }
  0xf5   : > { %2243 = vmatprep.subr.bf16.mxu0 %v5724_v63  ;;  %v2388_v63 = vrot.slane %v5798_v57, 1  ;;  %v5855_v57 = vld [vmem:[%s7613_s1 + $0xb14] ss:$12 sps:$4 sm:$0xff]  }
  0xf6   : > { %2651 = vmatpush1.bf16.msra.mxu1 %v5719_v0  ;;  %v7030_v0 = vpop.f32.mrf.mxu1 }
  0xf7   : > { %2652 = vmatprep.subr.bf16.mxu1 %v5727_v3  ;;  %v5805_v3 = vld [vmem:[%s7613_s1 + $0x9b0] ss:$12 sps:$4 sm:$0xff]  }
  0xf8   : > { %2244 = vmatpush2.bf16.msra.mxu0 %v5722_v2  ;;  %v5804_v2 = vld [vmem:[%s7613_s1 + $0xa70] ss:$12 sps:$4 sm:$0xff]  }
  0xf9   : > { %2245 = vmatprep.subr.bf16.mxu0 %v5730_v5  ;;  %v7042_v5 = vld [vmem:[%s6194_s23 + $0x24] ss:$8 sps:$4 sm:$0x1f]  }
  0xfa   : > { %2653 = vmatpush1.bf16.msra.mxu1 %v5725_v6  ;;  %v5806_v6 = vld [vmem:[%s7613_s1 + $0x990] ss:$12 sps:$4 sm:$0xff]  }
  0xfb   : > { %2654 = vmatprep.subr.bf16.mxu1 %v5733_v8 }
  0xfc   : > { %2246 = vmatpush2.bf16.msra.mxu0 %v5728_v7  ;;  %v7047_v7 = vpop.f32.mrf.mxu1 }
  0xfd   : > { %2247 = vmatprep.subr.bf16.mxu0 %v5736_v9  ;;  %v5809_v9 = vld [vmem:[%s7613_s1 + $0xa58] ss:$12 sps:$4 sm:$0xff]  }
  0xfe   : > { %2655 = vmatpush1.bf16.msra.mxu1 %v5731_v10  ;;  %v5813_v10 = vld [vmem:[%s7613_s1 + $0x97c] ss:$12 sps:$4 sm:$0xff]  }
  0xff   : > { %2656 = vmatprep.subr.bf16.mxu1 %v5739_v12  ;;  %v5810_v12 = vld [vmem:[%s7613_s1 + $0x998] ss:$12 sps:$4 sm:$0xff]  }
 0x100   : > { %2248 = vmatpush2.bf16.msra.mxu0 %v5734_v11 }
 0x101   : > { %2249 = vmatprep.subr.bf16.mxu0 %v5742_v13 }
 0x102   : > { %2657 = vmatpush1.bf16.msra.mxu1 %v5737_v14  ;;  %v5811_v14 = vld [vmem:[%s7613_s1 + $0x978] ss:$12 sps:$4 sm:$0xff]  }
 0x103   : > { %2658 = vmatprep.subr.bf16.mxu1 %v5745_v16 }
 0x104   : > { %2250 = vmatpush2.bf16.msra.mxu0 %v5740_v15 }
 0x105   : > { %2251 = vmatprep.subr.bf16.mxu0 %v5748_v17  ;;  %v5814_v17 = vld [vmem:[%s7613_s1 + $0xa40] ss:$12 sps:$4 sm:$0xff]  }
 0x106   : > { %2659 = vmatpush1.bf16.msra.mxu1 %v5743_v18 }
 0x107   : > { %2660 = vmatprep.subr.bf16.mxu1 %v5751_v20 }
 0x108   : > { %2252 = vmatpush2.bf16.msra.mxu0 %v5746_v19  ;;  %v5818_v19 = vld [vmem:[%s7613_s1 + $0x964] ss:$12 sps:$4 sm:$0xff]  }
 0x109   : > { %2253 = vmatprep.subr.bf16.mxu0 %v5754_v21 }
 0x10a   : > { %2661 = vmatpush1.bf16.msra.mxu1 %v5749_v22  ;;  %v5815_v22 = vld [vmem:[%s7613_s1 + $0x980] ss:$12 sps:$4 sm:$0xff]  }
 0x10b   : > { %2662 = vmatprep.subr.bf16.mxu1 %v5757_v24 }
 0x10c   : > { %2254 = vmatpush2.bf16.msra.mxu0 %v5752_v23 }
 0x10d   : > { %5274 = vmatprep.subr.bf16.mxu0 %v5761_v25  ;;  %v5816_v25 = vld [vmem:[%s7613_s1 + $0x960] ss:$12 sps:$4 sm:$0xff]  }
 0x10e   : > { %2663 = vmatpush1.bf16.msra.mxu1 %v5755_v26  ;;  %v5819_v26 = vld [vmem:[%s7613_s1 + $0xa28] ss:$12 sps:$4 sm:$0xff]  }
 0x10f   : > { %2256 = vmatmul.mubr.bf16.vlgmr.msra.gmra.mxu0 %v6831_v59  ;;  %2664 = vmatprep.subr.bf16.mxu1 %v5760_v27  ;;  %v5797_v59 = vld [vmem:[%s7613_s1 + $0x788] ss:$12 sps:$4 sm:$0xff]   ;;  %v642_v1 = vpop.f32.mrf.mxu0 }
 0x110   : > { %5275 = vmatpush3.bf16.msra.mxu0 %v5762_v28  ;;  %2723 = vmatprep.mubr.bf16.mxu0 %v2389_v4  ;;  %v5808_v4 = vld [vmem:[%s7613_s1 + $0x994] ss:$12 sps:$4 sm:$0xff]   ;;  %v5823_v28 = vld [vmem:[%s7613_s1 + $0x94c] ss:$12 sps:$4 sm:$0xff]  }
 0x111   : > { %5276 = vmatprep.subr.bf16.mxu0 %v5766_v29  ;;  %v644_v8 = vpop.f32.mrf.mxu0  ;;  %v5820_v29 = vld [vmem:[%s7613_s1 + $0x968] ss:$12 sps:$4 sm:$0xff]  }
 0x112   : > { %2665 = vmatpush2.bf16.msra.mxu1 %v5758_v30  ;;  %v5821_v30 = vld [vmem:[%s7613_s1 + $0x948] ss:$12 sps:$4 sm:$0xff]  }
 0x113   : > { %2666 = vmatprep.subr.bf16.mxu1 %v5765_v31  ;;  %v646_v15 = vpop.f32.mrf.mxu0  ;;  %v5824_v31 = vld [vmem:[%s7613_s1 + $0xa10] ss:$12 sps:$4 sm:$0xff]  }
 0x114   : > { %5277 = vmatpush3.bf16.msra.mxu0 %v5767_v33  ;;  %v5828_v33 = vld [vmem:[%s7613_s1 + $0x934] ss:$12 sps:$4 sm:$0xff]  }
 0x115   : > { %5278 = vmatprep.subr.bf16.mxu0 %v5771_v34  ;;  %v648_v23 = vpop.f32.mrf.mxu0  ;;  %v5825_v34 = vld [vmem:[%s7613_s1 + $0x950] ss:$12 sps:$4 sm:$0xff]  }
 0x116   : > { %2667 = vmatpush2.bf16.msra.mxu1 %v5763_v35  ;;  %v5826_v35 = vld [vmem:[%s7613_s1 + $0x930] ss:$12 sps:$4 sm:$0xff]  }
 0x117   : > { %2668 = vmatprep.subr.bf16.mxu1 %v5770_v36  ;;  %v5829_v36 = vld [vmem:[%s7613_s1 + $0x9f8] ss:$12 sps:$4 sm:$0xff]  }
 0x118   : > { %5279 = vmatpush3.bf16.msra.mxu0 %v5772_v37  ;;  %v5833_v37 = vld [vmem:[%s7613_s1 + $0x91c] ss:$12 sps:$4 sm:$0xff]  }
 0x119   : > { %5280 = vmatprep.subr.bf16.mxu0 %v5776_v38  ;;  %v5830_v38 = vld [vmem:[%s7613_s1 + $0x938] ss:$12 sps:$4 sm:$0xff]  }
 0x11a   : > { %2669 = vmatpush2.bf16.msra.mxu1 %v5768_v39  ;;  %v5831_v39 = vld [vmem:[%s7613_s1 + $0x918] ss:$12 sps:$4 sm:$0xff]  }
 0x11b   : > { %2670 = vmatprep.subr.bf16.mxu1 %v5775_v40  ;;  %v5834_v40 = vld [vmem:[%s7613_s1 + $0x9e0] ss:$12 sps:$4 sm:$0xff]  }
 0x11c   : > { %5281 = vmatpush3.bf16.msra.mxu0 %v5777_v41  ;;  %v5835_v41 = vld [vmem:[%s7613_s1 + $0x920] ss:$12 sps:$4 sm:$0xff]  }
 0x11d   : > { %5282 = vmatprep.subr.bf16.mxu0 %v5781_v42  ;;  %v5838_v42 = vld [vmem:[%s7613_s1 + $0x904] ss:$12 sps:$4 sm:$0xff]  }
 0x11e   : > { %2671 = vmatpush2.bf16.msra.mxu1 %v5773_v43  ;;  %v5836_v43 = vld [vmem:[%s7613_s1 + $0x900] ss:$12 sps:$4 sm:$0xff]  }
 0x11f   : > { %2672 = vmatprep.subr.bf16.mxu1 %v5780_v44  ;;  %v3240_v44 = vshll.u32 %v7042_v5, 16 }
 0x120   : > { %5283 = vmatpush3.bf16.msra.mxu0 %v5782_v45  ;;  %v5839_v45 = vld [vmem:[%s7613_s1 + $0x9c8] ss:$12 sps:$4 sm:$0xff]  }
 0x121   : > { %5284 = vmatprep.subr.bf16.mxu0 %v5786_v46  ;;  %v5845_v46 = vld [vmem:[%s7613_s1 + $0xa6c] ss:$12 sps:$4 sm:$0xff]  }
 0x122   : > { %2673 = vmatpush2.bf16.msra.mxu1 %v5778_v47  ;;  %v5840_v47 = vld [vmem:[%s7613_s1 + $0x908] ss:$12 sps:$4 sm:$0xff]  }
 0x123   : > { %2674 = vmatprep.subr.bf16.mxu1 %v5785_v48  ;;  %v3238_v48 = vshrl.u32 %v7042_v5, 16 }
 0x124   : > { %5285 = vmatpush3.bf16.msra.mxu0 %v5787_v49  ;;  %v3242_v49 = vrot.slane %v3240_v44, 1  ;;  %v5914_v44 = vld [vmem:[%s7613_s1 + $0xb8c] ss:$12 sps:$4 sm:$0xff]  }
 0x125   : > { %5286 = vmatprep.subr.bf16.mxu0 %v5791_v50  ;;  %v5843_v50 = vld [vmem:[%s7613_s1 + $0xa68] ss:$12 sps:$4 sm:$0xff]  }
 0x126   : > { %2675 = vmatpush2.bf16.msra.mxu1 %v5783_v51  ;;  %v5849_v51 = vld [vmem:[%s7613_s1 + $0xb2c] ss:$12 sps:$4 sm:$0xff]  }
 0x127   : > { %2676 = vmatprep.subr.bf16.mxu1 %v5790_v53  ;;  %v5852_v53 = vld [vmem:[%s7613_s1 + $0xa54] ss:$12 sps:$4 sm:$0xff]  }
 0x128   : > { %5287 = vmatpush3.bf16.msra.mxu0 %v5792_v54  ;;  %v7152_v54 = vld [vmem:[%s6194_s23 + $0x20] ss:$8 sps:$4 sm:$0x1f]  }
 0x129   : > { %5288 = vmatprep.subr.bf16.mxu0 %v5796_v55  ;;  %v5847_v55 = vld [vmem:[%s7613_s1 + $0xb28] ss:$12 sps:$4 sm:$0xff]  }
 0x12a   : > { %2677 = vmatpush2.bf16.msra.mxu1 %v5788_v56  ;;  %v5850_v56 = vld [vmem:[%s7613_s1 + $0xa50] ss:$12 sps:$4 sm:$0xff]  }
 0x12b   : > { %2678 = vmatprep.subr.bf16.mxu1 %v5795_v32  ;;  %v7160_v32 = vor.u32 %v3242_v49, %v3238_v48  ;;  %v5919_v48 = vld [vmem:[%s7613_s1 + $0xb74] ss:$12 sps:$4 sm:$0xff]   ;;  %v5921_v49 = vld [vmem:[%s7613_s1 + $0xab8] ss:$12 sps:$4 sm:$0xff]  }
 0x12c   : > { %5289 = vmatpush3.bf16.msra.mxu0 %v5797_v59  ;;  %v5858_v59 = vld [vmem:[%s7613_s1 + $0xa3c] ss:$12 sps:$4 sm:$0xff]  }
 0x12d   : > { %3075 = vmatprep.subr.bf16.mxu0 %v5803_v61  ;;  %v5856_v61 = vld [vmem:[%s7613_s1 + $0xa38] ss:$12 sps:$4 sm:$0xff]  }
 0x12e   : > { %2679 = vmatpush2.bf16.msra.mxu1 %v5793_v60  ;;  %v5853_v60 = vld [vmem:[%s7613_s1 + $0xb10] ss:$12 sps:$4 sm:$0xff]  }
 0x12f   : > { %2724 = vmatmul.mubr.bf16.vlgmr.msra.gmra.mxu0 %v2388_v63  ;;  %5296 = vmatprep.subr.bf16.mxu1 %v5804_v2  ;;  %v5862_v2 = vld [vmem:[%s7613_s1 + $0xa20] ss:$12 sps:$4 sm:$0xff]  }
 0x130   : > { %3076 = vmatpush1.bf16.msra.mxu0 %v5801_v62  ;;  %3107 = vmatprep.mubr.bf16.mxu0 %v7042_v5  ;;  %v984_v11 = vpop.f32.mrf.mxu1  ;;  %v5861_v62 = vld [vmem:[%s7613_s1 + $0xafc] ss:$12 sps:$4 sm:$0xff]  }
 0x131   : > { %3077 = vmatprep.subr.bf16.mxu0 %v5808_v4  ;;  %2681 = vmatmul.mubr.bf16.vlgmr.msra.gmra.mxu1 %v2388_v63  ;;  %v7059_v13 = vadd.f32 %v984_v11, %v642_v1  ;;  %v5864_v63 = vld [vmem:[%s7613_s1 + $0xa24] ss:$12 sps:$4 sm:$0xff]   ;;  %v5870_v4 = vld [vmem:[%s7613_s1 + $0xa0c] ss:$12 sps:$4 sm:$0xff]  }
 0x132   : > { %5297 = vmatpush3.bf16.msra.mxu1 %v5805_v3  ;;  %3150 = vmatprep.mubr.bf16.mxu1 %v7042_v5  ;;  %v986_v16 = vpop.f32.mrf.mxu1  ;;  %v5859_v1 = vld [vmem:[%s7613_s1 + $0xaf8] ss:$12 sps:$4 sm:$0xff]   ;;  %v5865_v5 = vld [vmem:[%s7613_s1 + $0xae0] ss:$12 sps:$4 sm:$0xff]   ;;  %v5874_v11 = vld [vmem:[%s7613_s1 + $0x9f0] ss:$12 sps:$4 sm:$0xff]  }
 0x133   : > { %5298 = vmatprep.subr.bf16.mxu1 %v5809_v9  ;;  %v7068_v18 = vadd.f32 %v986_v16, %v644_v8  ;;  %v5867_v3 = vld [vmem:[%s7613_s1 + $0xae4] ss:$12 sps:$4 sm:$0xff]   ;;  %v5873_v8 = vld [vmem:[%s7613_s1 + $0xacc] ss:$12 sps:$4 sm:$0xff]   ;;  %v5876_v9 = vld [vmem:[%s7613_s1 + $0x9f4] ss:$12 sps:$4 sm:$0xff]  }
 0x134   : > { %3078 = vmatpush1.bf16.msra.mxu0 %v5806_v6  ;;  %v988_v20 = vpop.f32.mrf.mxu1  ;;  %v5868_v6 = vld [vmem:[%s7613_s1 + $0xa08] ss:$12 sps:$4 sm:$0xff]   ;;  %v5880_v16 = vld [vmem:[%s7613_s1 + $0x9d8] ss:$12 sps:$4 sm:$0xff]  }
 0x135   : > { %3079 = vmatprep.subr.bf16.mxu0 %v5813_v10  ;;  %v7073_v21 = vadd.f32 %v988_v20, %v646_v15  ;;  %v5871_v10 = vld [vmem:[%s7613_s1 + $0xac8] ss:$12 sps:$4 sm:$0xff]   ;;  %v5877_v15 = vld [vmem:[%s7613_s1 + $0xab0] ss:$12 sps:$4 sm:$0xff]   ;;  %v5883_v20 = vld [vmem:[%s7613_s1 + $0xa98] ss:$12 sps:$4 sm:$0xff]  }
 0x136   : > { %5299 = vmatpush3.bf16.msra.mxu1 %v5810_v12  ;;  %v990_v24 = vpop.f32.mrf.mxu1  ;;  %v5879_v12 = vld [vmem:[%s7613_s1 + $0xab4] ss:$12 sps:$4 sm:$0xff]  }
 0x137   : > { %5300 = vmatprep.subr.bf16.mxu1 %v5814_v17  ;;  %v7084_v27 = vadd.f32 %v990_v24, %v648_v23  ;;  %v5885_v17 = vld [vmem:[%s7613_s1 + $0xa9c] ss:$12 sps:$4 sm:$0xff]   ;;  %v5891_v23 = vld [vmem:[%s7613_s1 + $0xa84] ss:$12 sps:$4 sm:$0xff]  }
 0x138   : > { %3080 = vmatpush1.bf16.msra.mxu0 %v5811_v14  ;;  %v5882_v14 = vld [vmem:[%s7613_s1 + $0x9dc] ss:$12 sps:$4 sm:$0xff]  }
 0x139   : > { %3081 = vmatprep.subr.bf16.mxu0 %v5818_v19  ;;  %v5888_v19 = vld [vmem:[%s7613_s1 + $0x9c4] ss:$12 sps:$4 sm:$0xff]  }
 0x13a   : > { %5301 = vmatpush3.bf16.msra.mxu1 %v5815_v22  ;;  %v5886_v22 = vld [vmem:[%s7613_s1 + $0x9c0] ss:$12 sps:$4 sm:$0xff]   ;;  %v5895_v24 = vld [vmem:[%s7613_s1 + $0xbf0] ss:$12 sps:$4 sm:$0xff]  }
 0x13b   : > { %5302 = vmatprep.subr.bf16.mxu1 %v5819_v26  ;;  %v5894_v26 = vld [vmem:[%s7613_s1 + $0xbec] ss:$12 sps:$4 sm:$0xff]  }
 0x13c   : > { %3082 = vmatpush1.bf16.msra.mxu0 %v5816_v25  ;;  %v5889_v25 = vld [vmem:[%s7613_s1 + $0xa80] ss:$12 sps:$4 sm:$0xff]  }
 0x13d   : > { %3083 = vmatprep.subr.bf16.mxu0 %v5823_v28  ;;  %v5896_v28 = vld [vmem:[%s7613_s1 + $0xb30] ss:$12 sps:$4 sm:$0xff]  }
 0x13e   : > { %5303 = vmatpush3.bf16.msra.mxu1 %v5820_v29  ;;  %v5900_v29 = vld [vmem:[%s7613_s1 + $0xbd8] ss:$12 sps:$4 sm:$0xff]  }
 0x13f   : > { %5304 = vmatprep.subr.bf16.mxu1 %v5824_v31  ;;  %v5899_v31 = vld [vmem:[%s7613_s1 + $0xbd4] ss:$12 sps:$4 sm:$0xff]  }
 0x140   : > { %3084 = vmatpush1.bf16.msra.mxu0 %v5821_v30  ;;  %v5892_v30 = vld [vmem:[%s7613_s1 + $0xbe8] ss:$12 sps:$4 sm:$0xff]  }
 0x141   : > { %3085 = vmatprep.subr.bf16.mxu0 %v5828_v33  ;;  %v5901_v33 = vld [vmem:[%s7613_s1 + $0xb18] ss:$12 sps:$4 sm:$0xff]  }
 0x142   : > { %5305 = vmatpush3.bf16.msra.mxu1 %v5825_v34  ;;  %v5905_v34 = vld [vmem:[%s7613_s1 + $0xbc0] ss:$12 sps:$4 sm:$0xff]  }
 0x143   : > { %5306 = vmatprep.subr.bf16.mxu1 %v5829_v36  ;;  %v5904_v36 = vld [vmem:[%s7613_s1 + $0xbbc] ss:$12 sps:$4 sm:$0xff]  }
 0x144   : > { %3086 = vmatpush1.bf16.msra.mxu0 %v5826_v35  ;;  %v5897_v35 = vld [vmem:[%s7613_s1 + $0xbd0] ss:$12 sps:$4 sm:$0xff]  }
 0x145   : > { %3087 = vmatprep.subr.bf16.mxu0 %v5833_v37  ;;  %v5906_v37 = vld [vmem:[%s7613_s1 + $0xb00] ss:$12 sps:$4 sm:$0xff]  }
 0x146   : > { %5307 = vmatpush3.bf16.msra.mxu1 %v5830_v38  ;;  %v5910_v38 = vld [vmem:[%s7613_s1 + $0xba8] ss:$12 sps:$4 sm:$0xff]  }
 0x147   : > { %5308 = vmatprep.subr.bf16.mxu1 %v5834_v40  ;;  %v5909_v40 = vld [vmem:[%s7613_s1 + $0xba4] ss:$12 sps:$4 sm:$0xff]  }
 0x148   : > { %3088 = vmatpush1.bf16.msra.mxu0 %v5831_v39  ;;  %v5902_v39 = vld [vmem:[%s7613_s1 + $0xbb8] ss:$12 sps:$4 sm:$0xff]  }
 0x149   : > { %3089 = vmatprep.subr.bf16.mxu0 %v5838_v42  ;;  %v5915_v42 = vld [vmem:[%s7613_s1 + $0xb90] ss:$12 sps:$4 sm:$0xff]  }
 0x14a   : > { %5309 = vmatpush3.bf16.msra.mxu1 %v5835_v41  ;;  %v5911_v41 = vld [vmem:[%s7613_s1 + $0xae8] ss:$12 sps:$4 sm:$0xff]  }
 0x14b   : > { %5310 = vmatprep.subr.bf16.mxu1 %v5839_v45  ;;  %v5916_v45 = vld [vmem:[%s7613_s1 + $0xad0] ss:$12 sps:$4 sm:$0xff]  }
 0x14c   : > { %3090 = vmatpush1.bf16.msra.mxu0 %v5836_v43  ;;  %v5907_v43 = vld [vmem:[%s7613_s1 + $0xba0] ss:$12 sps:$4 sm:$0xff]  }
 0x14d   : > { %3091 = vmatprep.subr.bf16.mxu0 %v5845_v46  ;;  %v5920_v46 = vld [vmem:[%s7613_s1 + $0xb78] ss:$12 sps:$4 sm:$0xff]  }
 0x14e   : > { %5311 = vmatpush3.bf16.msra.mxu1 %v5840_v47  ;;  %v5912_v47 = vld [vmem:[%s7613_s1 + $0xb88] ss:$12 sps:$4 sm:$0xff]  }
 0x14f   : > { %3502 = vmatprep.subr.bf16.mxu1 %v5849_v51  ;;  %v5917_v51 = vld [vmem:[%s7613_s1 + $0xb70] ss:$12 sps:$4 sm:$0xff]  }
 0x150   : > { %3092 = vmatpush2.bf16.msra.mxu0 %v5843_v50  ;;  %v5925_v50 = vld [vmem:[%s7613_s1 + $0xb60] ss:$12 sps:$4 sm:$0xff]  }
 0x151   : > { %3093 = vmatprep.subr.bf16.mxu0 %v5852_v53  ;;  %3151 = vmatmul.mubr.bf16.vlgmr.msra.gmra.mxu1 %v7152_v54  ;;  %v3233_v53 = vshll.u32 %v7152_v54, 16 }
 0x152   : > { %3503 = vmatpush1.bf16.msra.mxu1 %v5847_v55  ;;  %3534 = vmatprep.mubr.bf16.mxu1 %v7160_v32  ;;  %v5924_v55 = vld [vmem:[%s7613_s1 + $0xb5c] ss:$12 sps:$4 sm:$0xff]  }
 0x153   : > { %3504 = vmatprep.subr.bf16.mxu1 %v5855_v57  ;;  %v5922_v57 = vld [vmem:[%s7613_s1 + $0xb58] ss:$12 sps:$4 sm:$0xff]  }
 0x154   : > { %3094 = vmatpush2.bf16.msra.mxu0 %v5850_v56  ;;  %v5926_v56 = vld [vmem:[%s7613_s1 + $0xaa0] ss:$12 sps:$4 sm:$0xff]  }
 0x155   : > { %3095 = vmatprep.subr.bf16.mxu0 %v5858_v59  ;;  %v3231_v59 = vshrl.u32 %v7152_v54, 16 }
 0x156   : > { %3505 = vmatpush1.bf16.msra.mxu1 %v5853_v60  ;;  %v3235_v60 = vrot.slane %v3233_v53, 1  ;;  %v5987_v53 = vld [vmem:[%s7613_s1 + $0xd08] ss:$12 sps:$4 sm:$0xff]  }
 0x157   : > { %3506 = vmatprep.subr.bf16.mxu1 %v5861_v62  ;;  %v5931_v62 = vld [vmem:[%s7613_s1 + $0xa88] ss:$12 sps:$4 sm:$0xff]  }
 0x158   : > { %3096 = vmatpush2.bf16.msra.mxu0 %v5856_v61  ;;  %v5929_v61 = vld [vmem:[%s7613_s1 + $0xb44] ss:$12 sps:$4 sm:$0xff]  }
 0x159   : > { %3097 = vmatprep.subr.bf16.mxu0 %v5864_v63  ;;  %v5934_v63 = vld [vmem:[%s7613_s1 + $0xcac] ss:$12 sps:$4 sm:$0xff]  }
 0x15a   : > { %3507 = vmatpush1.bf16.msra.mxu1 %v5859_v1  ;;  %v3236_v1 = vor.u32 %v3235_v60, %v3231_v59  ;;  %v5998_v59 = vld [vmem:[%s7613_s1 + $0xcc4] ss:$12 sps:$4 sm:$0xff]   ;;  %v5996_v60 = vld [vmem:[%s7613_s1 + $0xcc0] ss:$12 sps:$4 sm:$0xff]  }
 0x15b   : > { %3508 = vmatprep.subr.bf16.mxu1 %v5867_v3  ;;  %v5932_v3 = vld [vmem:[%s7613_s1 + $0xca8] ss:$12 sps:$4 sm:$0xff]  }
 0x15c   : > { %3098 = vmatpush2.bf16.msra.mxu0 %v5862_v2  ;;  %v5974_v2 = vld [vmem:[%s6194_s23 + $0x24] ss:$8 sps:$4 sm:$0x3e]  }
 0x15d   : > { %3099 = vmatprep.subr.bf16.mxu0 %v5870_v4  ;;  %v5935_v4 = vld [vmem:[%s7613_s1 + $0xd70] ss:$12 sps:$4 sm:$0xff]  }
 0x15e   : > { %3509 = vmatpush1.bf16.msra.mxu1 %v5865_v5  ;;  %v5939_v5 = vld [vmem:[%s7613_s1 + $0xc94] ss:$12 sps:$4 sm:$0xff]  }
 0x15f   : > { %3510 = vmatprep.subr.bf16.mxu1 %v5873_v8  ;;  %v3668_v8 = vrot.slane %v5974_v2, 1 }
 0x160   : > { %3100 = vmatpush2.bf16.msra.mxu0 %v5868_v6  ;;  %v5936_v6 = vld [vmem:[%s7613_s1 + $0xcb0] ss:$12 sps:$4 sm:$0xff]  }
 0x161   : > { %3101 = vmatprep.subr.bf16.mxu0 %v5876_v9  ;;  %v5937_v9 = vld [vmem:[%s7613_s1 + $0xc90] ss:$12 sps:$4 sm:$0xff]  }
 0x162   : > { %3511 = vmatpush1.bf16.msra.mxu1 %v5871_v10  ;;  %v5940_v10 = vld [vmem:[%s7613_s1 + $0xd58] ss:$12 sps:$4 sm:$0xff]  }
 0x163   : > { %3512 = vmatprep.subr.bf16.mxu1 %v5879_v12  ;;  %v5941_v12 = vld [vmem:[%s7613_s1 + $0xc98] ss:$12 sps:$4 sm:$0xff]  }
 0x164   : > { %3102 = vmatpush2.bf16.msra.mxu0 %v5874_v11  ;;  %v5944_v11 = vld [vmem:[%s7613_s1 + $0xc7c] ss:$12 sps:$4 sm:$0xff]  }
 0x165   : > { %3103 = vmatprep.subr.bf16.mxu0 %v5882_v14  ;;  %v5942_v14 = vld [vmem:[%s7613_s1 + $0xc78] ss:$12 sps:$4 sm:$0xff]  }
 0x166   : > { %3513 = vmatpush1.bf16.msra.mxu1 %v5877_v15  ;;  %v5945_v15 = vld [vmem:[%s7613_s1 + $0xd40] ss:$12 sps:$4 sm:$0xff]  }
 0x167   : > { %3514 = vmatprep.subr.bf16.mxu1 %v5885_v17  ;;  %v5946_v17 = vld [vmem:[%s7613_s1 + $0xc80] ss:$12 sps:$4 sm:$0xff]  }
 0x168   : > { %3104 = vmatpush2.bf16.msra.mxu0 %v5880_v16  ;;  %v5949_v16 = vld [vmem:[%s7613_s1 + $0xc64] ss:$12 sps:$4 sm:$0xff]  }
 0x169   : > { %3105 = vmatprep.subr.bf16.mxu0 %v5888_v19  ;;  %v5947_v19 = vld [vmem:[%s7613_s1 + $0xc60] ss:$12 sps:$4 sm:$0xff]  }
 0x16a   : > { %3515 = vmatpush1.bf16.msra.mxu1 %v5883_v20  ;;  %v5950_v20 = vld [vmem:[%s7613_s1 + $0xd28] ss:$12 sps:$4 sm:$0xff]  }
 0x16b   : > { %3516 = vmatprep.subr.bf16.mxu1 %v5891_v23  ;;  %v5951_v23 = vld [vmem:[%s7613_s1 + $0xc68] ss:$12 sps:$4 sm:$0xff]  }
 0x16c   : > { %3106 = vmatpush2.bf16.msra.mxu0 %v5886_v22  ;;  %v5954_v22 = vld [vmem:[%s7613_s1 + $0xc4c] ss:$12 sps:$4 sm:$0xff]  }
 0x16d   : > { %5318 = vmatprep.subr.bf16.mxu0 %v5895_v24  ;;  %v5952_v24 = vld [vmem:[%s7613_s1 + $0xc48] ss:$12 sps:$4 sm:$0xff]  }
 0x16e   : > { %3517 = vmatpush1.bf16.msra.mxu1 %v5889_v25  ;;  %v5955_v25 = vld [vmem:[%s7613_s1 + $0xd10] ss:$12 sps:$4 sm:$0xff]  }
 0x16f   : > { %3108 = vmatmul.mubr.bf16.vlgmr.msra.gmra.mxu0 %v7152_v54  ;;  %3518 = vmatprep.subr.bf16.mxu1 %v5894_v26  ;;  %v5927_v54 = vld [vmem:[%s7613_s1 + $0xb40] ss:$12 sps:$4 sm:$0xff]  }
 0x170   : > { %5319 = vmatpush3.bf16.msra.mxu0 %v5896_v28  ;;  %3577 = vmatprep.mubr.bf16.mxu0 %v7160_v32  ;;  %v5930_v32 = vld [vmem:[%s7613_s1 + $0xb48] ss:$12 sps:$4 sm:$0xff]   ;;  %v5956_v28 = vld [vmem:[%s7613_s1 + $0xc50] ss:$12 sps:$4 sm:$0xff]  }
 0x171   : > { %5320 = vmatprep.subr.bf16.mxu0 %v5900_v29  ;;  %v5959_v26 = vld [vmem:[%s7613_s1 + $0xc34] ss:$12 sps:$4 sm:$0xff]   ;;  %v5957_v29 = vld [vmem:[%s7613_s1 + $0xc30] ss:$12 sps:$4 sm:$0xff]  }
 0x172   : > { %3519 = vmatpush2.bf16.msra.mxu1 %v5892_v30  ;;  %v5960_v30 = vld [vmem:[%s7613_s1 + $0xcf8] ss:$12 sps:$4 sm:$0xff]  }
 0x173   : > { %3520 = vmatprep.subr.bf16.mxu1 %v5899_v31  ;;  %v5964_v31 = vld [vmem:[%s7613_s1 + $0xc1c] ss:$12 sps:$4 sm:$0xff]  }
 0x174   : > { %5321 = vmatpush3.bf16.msra.mxu0 %v5901_v33  ;;  %v5961_v33 = vld [vmem:[%s7613_s1 + $0xc38] ss:$12 sps:$4 sm:$0xff]  }
 0x175   : > { %5322 = vmatprep.subr.bf16.mxu0 %v5905_v34  ;;  %v5962_v34 = vld [vmem:[%s7613_s1 + $0xc18] ss:$12 sps:$4 sm:$0xff]  }
 0x176   : > { %3521 = vmatpush2.bf16.msra.mxu1 %v5897_v35  ;;  %v5965_v35 = vld [vmem:[%s7613_s1 + $0xce0] ss:$12 sps:$4 sm:$0xff]  }
 0x177   : > { %3522 = vmatprep.subr.bf16.mxu1 %v5904_v36  ;;  %v5969_v36 = vld [vmem:[%s7613_s1 + $0xc04] ss:$12 sps:$4 sm:$0xff]  }
 0x178   : > { %5323 = vmatpush3.bf16.msra.mxu0 %v5906_v37  ;;  %v5966_v37 = vld [vmem:[%s7613_s1 + $0xc20] ss:$12 sps:$4 sm:$0xff]  }
 0x179   : > { %5324 = vmatprep.subr.bf16.mxu0 %v5910_v38  ;;  %v5967_v38 = vld [vmem:[%s7613_s1 + $0xc00] ss:$12 sps:$4 sm:$0xff]  }
 0x17a   : > { %3523 = vmatpush2.bf16.msra.mxu1 %v5902_v39  ;;  %v5970_v39 = vld [vmem:[%s7613_s1 + $0xcc8] ss:$12 sps:$4 sm:$0xff]  }
 0x17b   : > { %3524 = vmatprep.subr.bf16.mxu1 %v5909_v40  ;;  %v5977_v40 = vld [vmem:[%s7613_s1 + $0xd6c] ss:$12 sps:$4 sm:$0xff]  }
 0x17c   : > { %5325 = vmatpush3.bf16.msra.mxu0 %v5911_v41  ;;  %v5972_v41 = vld [vmem:[%s6194_s23 + $0x20] ss:$8 sps:$4 sm:$0x3e]  }
 0x17d   : > { %5326 = vmatprep.subr.bf16.mxu0 %v5915_v42  ;;  %v5971_v42 = vld [vmem:[%s7613_s1 + $0xc08] ss:$12 sps:$4 sm:$0xff]  }
 0x17e   : > { %3525 = vmatpush2.bf16.msra.mxu1 %v5907_v43  ;;  %v5975_v43 = vld [vmem:[%s7613_s1 + $0xd68] ss:$12 sps:$4 sm:$0xff]  }
 0x17f   : > { %3526 = vmatprep.subr.bf16.mxu1 %v5914_v44  ;;  %v5980_v44 = vld [vmem:[%s7613_s1 + $0xd54] ss:$12 sps:$4 sm:$0xff]  }
 0x180   : > { %5327 = vmatpush3.bf16.msra.mxu0 %v5916_v45  ;;  %v3667_v45 = vrot.slane %v5972_v41, 1 }
 0x181   : > { %5328 = vmatprep.subr.bf16.mxu0 %v5920_v46  ;;  %v5978_v46 = vld [vmem:[%s7613_s1 + $0xd50] ss:$12 sps:$4 sm:$0xff]  }
 0x182   : > { %3527 = vmatpush2.bf16.msra.mxu1 %v5912_v47  ;;  %v5983_v47 = vld [vmem:[%s7613_s1 + $0xd3c] ss:$12 sps:$4 sm:$0xff]  }
 0x183   : > { %3528 = vmatprep.subr.bf16.mxu1 %v5919_v48  ;;  %v5981_v48 = vld [vmem:[%s7613_s1 + $0xd38] ss:$12 sps:$4 sm:$0xff]  }
 0x184   : > { %5329 = vmatpush3.bf16.msra.mxu0 %v5921_v49  ;;  %v5986_v49 = vld [vmem:[%s7613_s1 + $0xd24] ss:$12 sps:$4 sm:$0xff]  }
 0x185   : > { %5330 = vmatprep.subr.bf16.mxu0 %v5925_v50  ;;  %v5984_v50 = vld [vmem:[%s7613_s1 + $0xd20] ss:$12 sps:$4 sm:$0xff]  }
 0x186   : > { %3529 = vmatpush2.bf16.msra.mxu1 %v5917_v51  ;;  %v5989_v51 = vld [vmem:[%s7613_s1 + $0xd0c] ss:$12 sps:$4 sm:$0xff]  }
 0x187   : > { %3530 = vmatprep.subr.bf16.mxu1 %v5924_v55  ;;  %v5992_v55 = vld [vmem:[%s7613_s1 + $0xcf4] ss:$12 sps:$4 sm:$0xff]  }
 0x188   : > { %5331 = vmatpush3.bf16.msra.mxu0 %v5926_v56  ;;  %v5990_v56 = vld [vmem:[%s7613_s1 + $0xcf0] ss:$12 sps:$4 sm:$0xff]  }
 0x189   : > { %5332 = vmatprep.subr.bf16.mxu0 %v5930_v32  ;;  %v5995_v32 = vld [vmem:[%s7613_s1 + $0xcdc] ss:$12 sps:$4 sm:$0xff]  }
 0x18a   : > { %3531 = vmatpush2.bf16.msra.mxu1 %v5922_v57  ;;  %v5993_v57 = vld [vmem:[%s7613_s1 + $0xcd8] ss:$12 sps:$4 sm:$0xff]  }
 0x18b   : > { %3532 = vmatprep.subr.bf16.mxu1 %v5929_v61  ;;  %v5202_v61 = vpop.f32.mrf.mxu0 }
 0x18c   : > { %5333 = vmatpush3.bf16.msra.mxu0 %v5931_v62 }
 0x18d   : > { %3927 = vmatprep.subr.bf16.mxu0 %v5934_v63  ;;  %v5203_v62 = vpop.f32.mrf.mxu0 }
 0x18e   : > { %3533 = vmatpush2.bf16.msra.mxu1 %v5927_v54 }
 0x18f   : > { %3578 = vmatmul.mubr.bf16.vlgmr.msra.gmra.mxu0 %v3236_v1  ;;  %5340 = vmatprep.subr.bf16.mxu1 %v5935_v4  ;;  %v5205_v63 = vpop.f32.mrf.mxu0 }
 0x190   : > { %3928 = vmatpush1.bf16.msra.mxu0 %v5932_v3  ;;  %3959 = vmatprep.mubr.bf16.mxu0 %v3668_v8 }
 0x191   : > { %3929 = vmatprep.subr.bf16.mxu0 %v5939_v5  ;;  %3535 = vmatmul.mubr.bf16.vlgmr.msra.gmra.mxu1 %v3236_v1  ;;  %v5206_v54 = vpop.f32.mrf.mxu0  ;;  %v5224_v1 = vpop.f32.mrf.mxu1 }
 0x192   : > { %5341 = vmatpush3.bf16.msra.mxu1 %v5936_v6  ;;  %4002 = vmatprep.mubr.bf16.mxu1 %v3668_v8 }
 0x193   : > { %5342 = vmatprep.subr.bf16.mxu1 %v5940_v10  ;;  %v7488_v2 = vpop.f32.mrf.mxu0  ;;  %v5225_v3 = vpop.f32.mrf.mxu1 }
 0x194   : > { %3930 = vmatpush1.bf16.msra.mxu0 %v5937_v9 }
 0x195   : > { %3931 = vmatprep.subr.bf16.mxu0 %v5944_v11  ;;  %v7490_v4 = vpop.f32.mrf.mxu0  ;;  %v5227_v5 = vpop.f32.mrf.mxu1 }
 0x196   : > { %5343 = vmatpush3.bf16.msra.mxu1 %v5941_v12 }
 0x197   : > { %5344 = vmatprep.subr.bf16.mxu1 %v5945_v15  ;;  %v7492_v6 = vpop.f32.mrf.mxu0  ;;  %v5228_v8 = vpop.f32.mrf.mxu1 }
 0x198   : > { %3932 = vmatpush1.bf16.msra.mxu0 %v5942_v14 }
 0x199   : > { %3933 = vmatprep.subr.bf16.mxu0 %v5949_v16  ;;  %v7494_v9 = vpop.f32.mrf.mxu0  ;;  %v7496_v10 = vpop.f32.mrf.mxu1 }
 0x19a   : > { %5345 = vmatpush3.bf16.msra.mxu1 %v5946_v17 }
 0x19b   : > { %5346 = vmatprep.subr.bf16.mxu1 %v5950_v20  ;;  %v5246_v11 = vpop.f32.mrf.mxu0  ;;  %v7498_v12 = vpop.f32.mrf.mxu1 }
 0x19c   : > { %3934 = vmatpush1.bf16.msra.mxu0 %v5947_v19 }
 0x19d   : > { %3935 = vmatprep.subr.bf16.mxu0 %v5954_v22  ;;  %v5247_v14 = vpop.f32.mrf.mxu0  ;;  %v7500_v15 = vpop.f32.mrf.mxu1 }
 0x19e   : > { %5347 = vmatpush3.bf16.msra.mxu1 %v5951_v23 }
 0x19f   : > { %5348 = vmatprep.subr.bf16.mxu1 %v5955_v25  ;;  %v5249_v16 = vpop.f32.mrf.mxu0  ;;  %v7502_v17 = vpop.f32.mrf.mxu1 }
 0x1a0   : > { %3936 = vmatpush1.bf16.msra.mxu0 %v5952_v24 }
 0x1a1   : > { %3937 = vmatprep.subr.bf16.mxu0 %v5959_v26  ;;  %v5250_v19 = vpop.f32.mrf.mxu0 }
 0x1a2   : > { %5349 = vmatpush3.bf16.msra.mxu1 %v5956_v28 }
 0x1a3   : > { %5350 = vmatprep.subr.bf16.mxu1 %v5960_v30 }
 0x1a4   : > { %3938 = vmatpush1.bf16.msra.mxu0 %v5957_v29 }
 0x1a5   : > { %3939 = vmatprep.subr.bf16.mxu0 %v5964_v31 }
 0x1a6   : > { %5351 = vmatpush3.bf16.msra.mxu1 %v5961_v33 }
 0x1a7   : > { %5352 = vmatprep.subr.bf16.mxu1 %v5965_v35 }
 0x1a8   : > { %3940 = vmatpush1.bf16.msra.mxu0 %v5962_v34 }
 0x1a9   : > { %3941 = vmatprep.subr.bf16.mxu0 %v5969_v36 }
 0x1aa   : > { %5353 = vmatpush3.bf16.msra.mxu1 %v5966_v37 }
 0x1ab   : > { %5354 = vmatprep.subr.bf16.mxu1 %v5970_v39 }
 0x1ac   : > { %3942 = vmatpush1.bf16.msra.mxu0 %v5967_v38 }
 0x1ad   : > { %3943 = vmatprep.subr.bf16.mxu0 %v5977_v40 }
 0x1ae   : > { %5355 = vmatpush3.bf16.msra.mxu1 %v5971_v42 }
 0x1b0   : > { %3944 = vmatpush2.bf16.msra.mxu0 %v5975_v43 }
 0x1b1   : > { %3945 = vmatprep.subr.bf16.mxu0 %v5980_v44  ;;  %4003 = vmatmul.mubr.bf16.vlgmr.msra.gmra.mxu1 %v3667_v45  ;;  %v5268_v20 = vpop.f32.mrf.mxu1 }
 0x1b3   : > { %v5269_v23 = vpop.f32.mrf.mxu1 }
 0x1b4   : > { %3946 = vmatpush2.bf16.msra.mxu0 %v5978_v46 }
 0x1b5   : > { %3947 = vmatprep.subr.bf16.mxu0 %v5983_v47  ;;  %v5271_v25 = vpop.f32.mrf.mxu1 }
 0x1b7   : > { %v5272_v28 = vpop.f32.mrf.mxu1 }
 0x1b8   : > { %3948 = vmatpush2.bf16.msra.mxu0 %v5981_v48  ;;  %v5204_v48 = vadd.f32 %v5203_v62, %v5202_v61  ;;  %v5270_v61 = vadd.f32 %v5269_v23, %v5268_v20 }
 0x1b9   : > { %3949 = vmatprep.subr.bf16.mxu0 %v5986_v49 }
 0x1bc   : > { %3950 = vmatpush2.bf16.msra.mxu0 %v5984_v50  ;;  %v5182_v50 = vadd.f32 %v7016_v58, %v6998_v52 }
 0x1bd   : > { %3951 = vmatprep.subr.bf16.mxu0 %v5989_v51  ;;  %v5226_v51 = vadd.f32 %v5225_v3, %v5224_v1  ;;  %v5251_v1 = vadd.f32 %v5250_v19, %v5249_v16  ;;  %v7549_v16 = vld [vmem:[%s7614_s2] sm:$0x7] }
 0x1c0   : > { %3952 = vmatpush2.bf16.msra.mxu0 %v5987_v53 }
 0x1c1   : > { %3953 = vmatprep.subr.bf16.mxu0 %v5992_v55  ;;  %v4019_v55 = vlaneseq }
 0x1c4   : > { %3954 = vmatpush2.bf16.msra.mxu0 %v5990_v56  ;;  %v1028_v56 = vadd.f32 %v5204_v48, %v5182_v50 }
 0x1c5   : > { %3955 = vmatprep.subr.bf16.mxu0 %v5995_v32  ;;  %v5207_v32 = vadd.f32 %v5206_v54, %v5205_v63 }
 0x1c8   : > { %3956 = vmatpush2.bf16.msra.mxu0 %v5993_v57  ;;  %v5248_v57 = vadd.f32 %v5247_v14, %v5246_v11  ;;  %v5273_v11 = vadd.f32 %v5272_v28, %v5271_v25 }
 0x1c9   : > { %3957 = vmatprep.subr.bf16.mxu0 %v5998_v59 }
 0x1cc   : > { %3958 = vmatpush2.bf16.msra.mxu0 %v5996_v60  ;;  %v5185_v60 = vadd.f32 %v7047_v7, %v7030_v0 }
 0x1ce   : > { %v1031_v52 = vadd.f32 %v5207_v32, %v5185_v60 }
 0x1cf   : > { %3960 = vmatmul.mubr.bf16.vlgmr.msra.gmra.mxu0 %v3667_v45  ;;  %v7504_v22 = vpop.f32.mrf.mxu0 }
 0x1d1   : > { %v7506_v24 = vpop.f32.mrf.mxu0 }
 0x1d3   : > { %v7508_v26 = vpop.f32.mrf.mxu0 }
 0x1d5   : > { %v7510_v29 = vpop.f32.mrf.mxu0 }
 0x1ef   : > { %v5290_v31 = vpop.f32.mrf.mxu0 }
 0x1f1   : > { %v7512_v30 = vpop.f32.mrf.mxu1  ;;  %v5291_v34 = vpop.f32.mrf.mxu0 }
 0x1f2   : > { %v5292_v3 = vadd.f32 %v5291_v34, %v5290_v31 }
 0x1f3   : > { %v7514_v33 = vpop.f32.mrf.mxu1  ;;  %v5293_v36 = vpop.f32.mrf.mxu0 }
 0x1f5   : > { %v7516_v35 = vpop.f32.mrf.mxu1  ;;  %v5294_v38 = vpop.f32.mrf.mxu0 }
 0x1f7   : > { %v7518_v37 = vpop.f32.mrf.mxu1 }
 0x1f8   : > { %7616 = vst [vmem:[#allocation2_spill] sm:$0xff] %v7518_v37  ;;  %v7539_v37 = vshrl.u32 %v4019_v55, 7 }
 0x1fa   : > { %v4029_v0 = vsub.s32 2, %v7539_v37 }
 0x211   : > { %v5312_v39 = vpop.f32.mrf.mxu1 }
 0x213   : > { %v5313_v41 = vpop.f32.mrf.mxu1 }
 0x214   : > { %v5314_v14 = vadd.f32 %v5313_v41, %v5312_v39  ;;  %v4030_v39 = vrot.slane %v7549_v16, %v4029_v0  ;;  %v1457_v0 = vadd.f32 %v7494_v9, %v7084_v27 }
 0x215   : > { %v5315_v43 = vpop.f32.mrf.mxu1 }
 0x217   : > { %v5316_v45 = vpop.f32.mrf.mxu1 }
 0x218   : > { %v5317_v28 = vadd.f32 %v5316_v45, %v5315_v43 }
 0x22f   : > { %v7520_v40 = vpop.f32.mrf.mxu0 }
 0x231   : > { %v7522_v42 = vpop.f32.mrf.mxu0 }
 0x233   : > { %v7524_v44 = vpop.f32.mrf.mxu0 }
 0x234   : > { %7617 = vst [vmem:[#allocation3_spill] sm:$0xff] %v7524_v44  ;;  %v5229_v44 = vadd.f32 %v5228_v8, %v5227_v5  ;;  %v5295_v8 = vadd.f32 %v5294_v38, %v5293_v36 }
 0x235   : > { %v7526_v46 = vpop.f32.mrf.mxu0 }
 0x236   : > { %7618 = vst [vmem:[#allocation4_spill] sm:$0xff] %v7526_v46  ;;  %v1455_v46 = vadd.f32 %v5226_v51, %v1028_v56  ;;  %v1458_v63 = vadd.f32 %v5229_v44, %v1031_v52  ;;  %v4081_v52 = vld [vmem:[%s7555_s8 + $0x14] sm:$0x1] }
 0x238   : > { %v1882_v58 = vadd.f32 %v5248_v57, %v1455_v46  ;;  %v1885_v7 = vadd.f32 %v5251_v1, %v1458_v63 }
 0x23a   : > { %v2309_v54 = vadd.f32 %v5270_v61, %v1882_v58  ;;  %v2312_v31 = vadd.f32 %v5273_v11, %v1885_v7 }
 0x23c   : > { %v2734_v5 = vadd.f32 %v5292_v3, %v2309_v54  ;;  %v2737_v41 = vadd.f32 %v5295_v8, %v2312_v31  ;;  %v1453_v3 = vadd.f32 %v7488_v2, %v7059_v13  ;;  %v1456_v54 = vadd.f32 %v7492_v6, %v7073_v21 }
 0x23e   : > { %v3161_v25 = vadd.f32 %v5314_v14, %v2734_v5  ;;  %v1880_v63 = vadd.f32 %v7496_v10, %v1453_v3  ;;  %v1883_v7 = vadd.f32 %v7500_v15, %v1456_v54 }
 0x240   : > { %v2307_v14 = vadd.f32 %v7504_v22, %v1880_v63  ;;  %v2310_v10 = vadd.f32 %v7508_v26, %v1883_v7  ;;  %v7620_v26 = vld [vmem:[#allocation3_spill] sm:$0xff] }
 0x242   : > { %v2732_v2 = vadd.f32 %v7512_v30, %v2307_v14  ;;  %v2735_v9 = vadd.f32 %v7516_v35, %v2310_v10  ;;  %v7619_v30 = vld [vmem:[#allocation2_spill] sm:$0xff] }
 0x244   : > { %v3159_v6 = vadd.f32 %v7520_v40, %v2732_v2  ;;  %v3162_v8 = vadd.f32 %v7620_v26, %v2735_v9 }
 0x24f   : > { %v5334_v49 = vpop.f32.mrf.mxu0 }
 0x251   : > { %v7528_v47 = vpop.f32.mrf.mxu1  ;;  %v5335_v59 = vpop.f32.mrf.mxu0 }
 0x252   : > { %v5336_v20 = vadd.f32 %v5335_v59, %v5334_v49  ;;  %v3164_v49 = vadd.f32 %v5317_v28, %v2737_v41  ;;  %v3586_v22 = vadd.f32 %v7528_v47, %v3159_v6 }
 0x253   : > { %v7532_v53 = vpop.f32.mrf.mxu1  ;;  %v5337_v48 = vpop.f32.mrf.mxu0 }
 0x254   : > { %v3588_v44 = vadd.f32 %v5336_v20, %v3161_v25 }
 0x255   : > { %v7537_v62 = vpop.f32.mrf.mxu1  ;;  %v5338_v19 = vpop.f32.mrf.mxu0 }
 0x256   : > { %v5339_v46 = vadd.f32 %v5338_v19, %v5337_v48  ;;  %v1454_v48 = vadd.f32 %v7490_v4, %v7068_v18  ;;  %v4021_v18 = vsub.s32 0, %v7539_v37  ;;  %v1884_v4 = vadd.f32 %v7502_v17, %v1457_v0 }
 0x257   : > { %v7542_v50 = vpop.f32.mrf.mxu1  ;;  %v3589_v35 = vadd.f32 %v7537_v62, %v3162_v8 }
 0x258   : > { %v3591_v56 = vadd.f32 %v5339_v46, %v3164_v49  ;;  %v1881_v11 = vadd.f32 %v7498_v12, %v1454_v48  ;;  %v4025_v12 = vsub.s32 1, %v7539_v37  ;;  %v2311_v27 = vadd.f32 %v7510_v29, %v1884_v4  ;;  %v7621_v29 = vld [vmem:[#allocation4_spill] sm:$0xff] }
 0x25a   : > { %v2308_v13 = vadd.f32 %v7506_v24, %v1881_v11  ;;  %v4022_v24 = vrot.slane %v7549_v16, %v4021_v18  ;;  %v2736_v17 = vadd.f32 %v7619_v30, %v2311_v27  ;;  %v4026_v37 = vrot.slane %v7549_v16, %v4025_v12 }
 0x25c   : > { %v2733_v21 = vadd.f32 %v7514_v33, %v2308_v13  ;;  %v3163_v19 = vadd.f32 %v7621_v29, %v2736_v17 }
 0x25e   : > { %v3160_v15 = vadd.f32 %v7522_v42, %v2733_v21  ;;  %v3590_v31 = vadd.f32 %v7542_v50, %v3163_v19 }
 0x260   : > { %v3587_v33 = vadd.f32 %v7532_v53, %v3160_v15 }
 0x271   : > { %v5356_v23 = vpop.f32.mrf.mxu1 }
 0x273   : > { %v5357_v34 = vpop.f32.mrf.mxu1 }
 0x274   : > { %v5358_v36 = vadd.f32 %v5357_v34, %v5356_v23 }
 0x275   : > { %v5359_v38 = vpop.f32.mrf.mxu1 }
 0x276   : > { %v4013_v51 = vadd.f32 %v5358_v36, %v3588_v44  ;;  %v4076_v36 = vld [vmem:[%s7555_s8 + $0xc] sm:$0x11] }
 0x277   : > { %v5360_v55 = vpop.f32.mrf.mxu1 }
 0x278   : > { %v4036_v32 = vadd.f32 %v4030_v39, %v4013_v51  ;;  %v5361_v57 = vadd.f32 %v5360_v55, %v5359_v38 }
 0x27a   : > { %v4042_v59 = vmax.f32 %v4036_v32, 0.0  ;;  %v4016_v60 = vadd.f32 %v5361_v57, %v3591_v56 }
 0x27c   : > { %v5161_v43 = vpack.c.bf16 %v4042_v59, %v4042_v59  ;;  %v4039_v45 = vadd.f32 %v4030_v39, %v4016_v60 }
 0x27e   : > { %4068 = vst.msk [vmem:[%s7555_s8 + $0x8] sm:$0xf] %vm4067_vm0, %v5161_v43  ;;  %v4045_v61 = vmax.f32 %v4039_v45, 0.0 }
 0x280   : > { %v5163_v58 = vpack.c.bf16 %v4045_v61, %v4045_v61 }
 0x282   : > { %v4082_v1 = vsel %vm4080_vm3, %v5163_v58, %v4081_v52 }
 0x283   : > { %4083 = vst [vmem:[%s7555_s8 + $0x14] sm:$0x1] %v4082_v1 }
 0x28f   : > { %v3961_v5 = vpop.f32.mrf.mxu0 }
 0x290   : > { %v4011_v40 = vadd.f32 %v3961_v5, %v3586_v22 }
 0x291   : > { %v3963_v20 = vpop.f32.mrf.mxu0 }
 0x292   : > { %v4034_v42 = vadd.f32 %v4022_v24, %v4011_v40  ;;  %v4012_v23 = vadd.f32 %v3963_v20, %v3587_v33 }
 0x293   : > { %v3965_v47 = vpop.f32.mrf.mxu0 }
 0x294   : > { %v4035_v25 = vadd.f32 %v4026_v37, %v4012_v23  ;;  %v4014_v28 = vadd.f32 %v3965_v47, %v3589_v35  ;;  %v4040_v53 = vmax.f32 %v4034_v42, 0.0 }
 0x295   : > { %v3967_v34 = vpop.f32.mrf.mxu0 }
 0x296   : > { %v4041_v16 = vmax.f32 %v4035_v25, 0.0  ;;  %v4037_v39 = vadd.f32 %v4022_v24, %v4014_v28  ;;  %v4015_v41 = vadd.f32 %v3967_v34, %v3590_v31 }
 0x298   : > { %v5160_v62 = vpack.c.bf16 %v4041_v16, %v4040_v53  ;;  %v4038_v44 = vadd.f32 %v4026_v37, %v4015_v41  ;;  %v4043_v46 = vmax.f32 %v4037_v39, 0.0 }
 0x29a   : > { %4066 = vst [vmem:[%s7555_s8] sm:$0xff] %v5160_v62  ;;  %v4044_v50 = vmax.f32 %v4038_v44, 0.0 }
 0x29c   : > { %v5162_v38 = vpack.c.bf16 %v4044_v50, %v4043_v46 }
 0x29e   : > { %v4077_v49 = vsel %vm4075_vm9, %v5162_v38, %v4076_v36 }
 0x29f   : > { %4078 = vst [vmem:[%s7555_s8 + $0xc] sm:$0x11] %v4077_v49 }
 0x2a0 PF: > { %s13_s16 = sadd.s32 1, %s6037_s16   ;;  %s7622_s12 = smov %s6029_s14 }
 0x2a1   : > { %p10_p7 = scmp.ge.s32.totalorder %s13_s16, 20   ;;  %s7623_s13 = smov %s6033_s15 }
 0x2a2   : > { %s7624_s14 = smov %s7627_s17  ;;  %s7625_s15 = smov %s7631_s18 }
 0x2a3   :  { %12 = sbr.rel (!%p10_p7) target bundleno = 3 (0x3), region = 73 }

// kernel: reduction_b_forward.15
= control target key start
LH: loop header
LB: loop body
LE: loop exit
PB: predicated region body
PF: predicated region fallthrough
CT: control target
= control target key end

     0   :  { %s7493_s12 = smov 0   ;;  %s7495_s13 = smov 0   ;;  %s9257_s0 = inlined_call_operand.vmem [shape: bf16[2,4,5,5,288], index: 0, kind: input, shape index: {}]   ;;  %s9258_s1 = inlined_call_operand.vmem [shape: bf16[9,288,320], index: 1, kind: input, shape index: {}]   ;;  %s9259_s2 = inlined_call_operand.vmem [shape: f32[1,320], index: 2, kind: input, shape index: {}]   ;;  %s9260_s3 = inlined_call_operand.vmem [shape: f32[2,4,4,320], index: 3, kind: output, shape index: {}]  }
   0x1   :  { %s7497_s14 = smov 0   ;;  %s7499_s15 = smov 0  }
   0x2   :  { %s7501_s16 = smov 0  }
   0x3 LB: > { %s22_s17 = sadd.s32 1, %s7460_s14  ;;  %s25_s18 = sadd.s32 1, %s7464_s15  ;;  %s7468_s16 = sphi %s7501_s16, %s13_s16   ;;  %s7464_s15 = sphi %s7499_s15, %s9264_s15   ;;  %s7460_s14 = sphi %s7497_s14, %s9263_s14   ;;  %s7456_s13 = sphi %s7495_s13, %s9262_s13   ;;  %s7452_s12 = sphi %s7493_s12, %s9261_s12  }
   0x4   : > { %p23_p0 = scmp.ge.s32.totalorder %s22_s17, 4  ;;  %p5280_p1 = scmp.ge.s32.totalorder %s7468_s16, 1 }
   0x5   : > { %p151_p2 = scmp.lt.s32.totalorder %s7468_s16, 9 }
   0x6   : > { %s9266_s17 = smov (%p23_p0, %s22_s17), 0  ;;  %s9268_s18 = smov (!%p23_p0, %s25_s18), %s7464_s15 }
   0x7   : > { %p152_p3 = pnand %p5280_p1, %p151_p2  ;;  %p27_p4 = scmp.ge.s32.totalorder %s9268_s18, 2 }
   0x8   : > { %p179_p5 = scmp.lt.s32.totalorder (!%p152_p3), %s7456_s13, 1  ;;  %s6411_s29 = smul.u32 (!%p152_p3), 12, %s7452_s12 }
   0x9   : > { %s9270_s18 = smov (%p27_p4, %s9268_s18), 0  ;;  %155 = sbr.rel (%p152_p3) target bundleno = 725 (0x2d5), region = 32 }
   0xa   : > { %p186_p6 = scmp.lt.s32.totalorder (!%p152_p3), %s7452_s12, 3 }
   0xe   : > { %v6755_v0 = vld [vmem:[%s9258_s1 + $0x25c] ss:$12 sps:$4 sm:$0xff]   ;;  %v6757_v1 = vld [vmem:[%s9258_s1 + $0x34c] ss:$12 sps:$4 sm:$0xff]   ;;  %v7470_v2 = vmov 0   ;;  %s9272_s13 = smov (!%p179_p5, %s7456_s13), 1 }
   0xf   : > { %724 = vmatprep.mubr.bf16.mxu1 %v7470_v2  ;;  %651 = vmatprep.subr.bf16.mxu0 %v6755_v0  ;;  %v6759_v3 = vld [vmem:[%s9258_s1 + $0x258] ss:$12 sps:$4 sm:$0xff]   ;;  %v6760_v4 = vld [vmem:[%s9258_s1 + $0x348] ss:$12 sps:$4 sm:$0xff]   ;;  %v6765_v7 = vld [vmem:[%s9258_s1 + $0x240] ss:$12 sps:$4 sm:$0xff]  }
  0x10   : > { %704 = vmatprep.subr.bf16.mxu1 %v6757_v1  ;;  %v6761_v5 = vld [vmem:[%s9258_s1 + $0x244] ss:$12 sps:$4 sm:$0xff]   ;;  %652 = vmatpush1.bf16.msra.mxu0 %v6759_v3  ;;  %v6763_v6 = vld [vmem:[%s9258_s1 + $0x334] ss:$12 sps:$4 sm:$0xff]   ;;  %s6709_s7 = smul.u32 240, %s9272_s13  ;;  %vm647_vm0 = vcmask 261120  }
  0x11   : > { %705 = vmatpush1.bf16.msra.mxu1 %v6760_v4  ;;  %653 = vmatprep.subr.bf16.mxu0 %v6761_v5  ;;  %v6766_v8 = vld [vmem:[%s9258_s1 + $0x330] ss:$12 sps:$4 sm:$0xff]   ;;  %v6767_v9 = vld [vmem:[%s9258_s1 + $0x22c] ss:$12 sps:$4 sm:$0xff]   ;;  %v6771_v11 = vld [vmem:[%s9258_s1 + $0x228] ss:$12 sps:$4 sm:$0xff]  }
  0x12   : > { %706 = vmatprep.subr.bf16.mxu1 %v6763_v6  ;;  %s183_s21 = scalar_lea.vmem %s9257_s0, %s6709_s7  ;;  %v6770_v10 = vld [vmem:[%s9258_s1 + $0x320] ss:$12 sps:$4 sm:$0xff]   ;;  %v6775_v15 = vld [vmem:[%s9258_s1 + $0x308] ss:$12 sps:$4 sm:$0xff]   ;;  %v6776_v16 = vld [vmem:[%s9258_s1 + $0x210] ss:$12 sps:$4 sm:$0xff]  }
  0x13   : > { %s7560_s22 = scalar_lea.vmem %s183_s21, %s6411_s29  ;;  %v6772_v13 = vld [vmem:[%s9258_s1 + $0x260] ss:$12 sps:$4 sm:$0xff]   ;;  %v6777_v17 = vld [vmem:[%s9258_s1 + $0x248] ss:$12 sps:$4 sm:$0xff]   ;;  %v6780_v19 = vld [vmem:[%s9258_s1 + $0x2f0] ss:$12 sps:$4 sm:$0xff]  }
  0x14   : > { %654 = vmatpush1.bf16.msra.mxu0 %v6765_v7  ;;  %v7569_v12 = vld [vmem:[%s7560_s22 + $0x44] ss:$0 sps:$4 sm:$0x33]   ;;  %v6773_v14 = vld [vmem:[%s9258_s1 + $0x214] ss:$12 sps:$4 sm:$0xff]   ;;  %v7471_v48 = vmov 0.0  }
  0x15   : > { %707 = vmatpush1.bf16.msra.mxu1 %v6766_v8  ;;  %655 = vmatprep.subr.bf16.mxu0 %v6767_v9  ;;  %v6778_v18 = vld [vmem:[%s9258_s1 + $0x1fc] ss:$12 sps:$4 sm:$0xff]   ;;  %v6781_v20 = vld [vmem:[%s9258_s1 + $0x1f8] ss:$12 sps:$4 sm:$0xff]   ;;  %v6786_v24 = vld [vmem:[%s9258_s1 + $0x1e0] ss:$12 sps:$4 sm:$0xff]  }
  0x16   : > { %6412 = vmatprep.subr.bf16.mxu1 %v6770_v10  ;;  %v6782_v21 = vld [vmem:[%s9258_s1 + $0x230] ss:$12 sps:$4 sm:$0xff]   ;;  %v6785_v23 = vld [vmem:[%s9258_s1 + $0x2d8] ss:$12 sps:$4 sm:$0xff]   ;;  %v6790_v27 = vld [vmem:[%s9258_s1 + $0x2c0] ss:$12 sps:$4 sm:$0xff]  }
  0x17   : > { %v6783_v22 = vld [vmem:[%s9258_s1 + $0x1e4] ss:$12 sps:$4 sm:$0xff]   ;;  %v6788_v26 = vld [vmem:[%s9258_s1 + $0x1cc] ss:$12 sps:$4 sm:$0xff]   ;;  %v6791_v28 = vld [vmem:[%s9258_s1 + $0x1c8] ss:$12 sps:$4 sm:$0xff]  }
  0x18   : > { %5416 = vmatmul.mubr.msk.bf16.vlgmr.msra.gmra.mxu1 %vm647_vm0, %v7569_v12  ;;  %656 = vmatpush1.bf16.msra.mxu0 %v6771_v11  ;;  %v6787_v25 = vld [vmem:[%s9258_s1 + $0x218] ss:$12 sps:$4 sm:$0xff]   ;;  %v6792_v29 = vld [vmem:[%s9258_s1 + $0x200] ss:$12 sps:$4 sm:$0xff]   ;;  %v6795_v31 = vld [vmem:[%s9258_s1 + $0x2a8] ss:$12 sps:$4 sm:$0xff]  }
  0x19   : > { %6413 = vmatpush3.bf16.msra.mxu1 %v6772_v13  ;;  %657 = vmatprep.subr.bf16.mxu0 %v6773_v14  ;;  %v6793_v30 = vld [vmem:[%s9258_s1 + $0x1b4] ss:$12 sps:$4 sm:$0xff]   ;;  %v6796_v32 = vld [vmem:[%s9258_s1 + $0x1b0] ss:$12 sps:$4 sm:$0xff]   ;;  %v6801_v36 = vld [vmem:[%s9258_s1 + $0x318] ss:$12 sps:$4 sm:$0xff]  }
  0x1a   : > { %6414 = vmatprep.subr.bf16.mxu1 %v6775_v15  ;;  %v6797_v33 = vld [vmem:[%s9258_s1 + $0x1e8] ss:$12 sps:$4 sm:$0xff]   ;;  %v6800_v35 = vld [vmem:[%s9258_s1 + $0x290] ss:$12 sps:$4 sm:$0xff]   ;;  %v6805_v40 = vld [vmem:[%s9258_s1 + $0x278] ss:$12 sps:$4 sm:$0xff]  }
  0x1b   : > { %v6798_v34 = vld [vmem:[%s9258_s1 + $0x31c] ss:$12 sps:$4 sm:$0xff]   ;;  %v6803_v38 = vld [vmem:[%s9258_s1 + $0x304] ss:$12 sps:$4 sm:$0xff]   ;;  %v6806_v42 = vld [vmem:[%s9258_s1 + $0x300] ss:$12 sps:$4 sm:$0xff]  }
  0x1c   : > { %658 = vmatpush1.bf16.msra.mxu0 %v6776_v16  ;;  %v6802_v37 = vld [vmem:[%s9258_s1 + $0x1d0] ss:$12 sps:$4 sm:$0xff]   ;;  %v6807_v43 = vld [vmem:[%s9258_s1 + $0x1b8] ss:$12 sps:$4 sm:$0xff]   ;;  %v6812_v46 = vld [vmem:[%s9258_s1 + $0x2e8] ss:$12 sps:$4 sm:$0xff]  }
  0x1d   : > { %6415 = vmatpush3.bf16.msra.mxu1 %v6777_v17  ;;  %659 = vmatprep.subr.bf16.mxu0 %v6778_v18  ;;  %v5285_v39 = vld [vmem:[%s7560_s22 + $0x3c] sm:$0x33]  ;;  %v6810_v44 = vld [vmem:[%s9258_s1 + $0x2ec] ss:$12 sps:$4 sm:$0xff]   ;;  %vm7472_vm1 = vmmov 0   ;;  %s9274_s12 = smov (!%p186_p6, %s7452_s12), 3 }
  0x1e   : > { %6416 = vmatprep.subr.bf16.mxu1 %v6780_v19  ;;  %v5360_v41 = vcombine.high %v5285_v39, %v5285_v39  ;;  %v5359_v45 = vcombine.low %v5285_v39, %v5285_v39  ;;  %v6813_v47 = vld [vmem:[%s9258_s1 + $0x350] ss:$12 sps:$4 sm:$0xff]   ;;  %v6814_v49 = vld [vmem:[%s9258_s1 + $0x2d4] ss:$12 sps:$4 sm:$0xff]   ;;  %v6817_v51 = vld [vmem:[%s9258_s1 + $0x338] ss:$12 sps:$4 sm:$0xff]  }
  0x1f   : > { %v6816_v50 = vld [vmem:[%s9258_s1 + $0x2d0] ss:$12 sps:$4 sm:$0xff]   ;;  %v6822_v53 = vld [vmem:[%s9258_s1 + $0xac] ss:$12 sps:$4 sm:$0xff]   ;;  %v6820_v54 = vld [vmem:[%s9258_s1 + $0xa8] ss:$12 sps:$4 sm:$0xff]  }
  0x20   : > { %660 = vmatpush1.bf16.msra.mxu0 %v6781_v20  ;;  %765 = vmatprep.mubr.bf16.mxu1 %v5360_v41  ;;  %v6818_v52 = vld [vmem:[%s9258_s1 + $0x2bc] ss:$12 sps:$4 sm:$0xff]   ;;  %v6823_v55 = vld [vmem:[%s9258_s1 + $0x2b8] ss:$12 sps:$4 sm:$0xff]   ;;  %v6828_v57 = vld [vmem:[%s9258_s1 + $0x94] ss:$12 sps:$4 sm:$0xff]  }
  0x21   : > { %6417 = vmatpush3.bf16.msra.mxu1 %v6782_v21  ;;  %661 = vmatprep.subr.bf16.mxu0 %v6783_v22  ;;  %v6824_v56 = vld [vmem:[%s9258_s1 + $0x2a4] ss:$12 sps:$4 sm:$0xff]   ;;  %v6829_v59 = vld [vmem:[%s9258_s1 + $0x2a0] ss:$12 sps:$4 sm:$0xff]   ;;  %v6834_v61 = vld [vmem:[%s9258_s1 + $0x7c] ss:$12 sps:$4 sm:$0xff]  }
  0x22   : > { %6418 = vmatprep.subr.bf16.mxu1 %v6785_v23  ;;  %683 = vmatprep.mubr.bf16.mxu0 %v5360_v41  ;;  %v6826_v58 = vld [vmem:[%s9258_s1 + $0x90] ss:$12 sps:$4 sm:$0xff]   ;;  %v6830_v60 = vld [vmem:[%s9258_s1 + $0x28c] ss:$12 sps:$4 sm:$0xff]   ;;  %v6835_v63 = vld [vmem:[%s9258_s1 + $0x288] ss:$12 sps:$4 sm:$0xff]  }
  0x23   : > { %v6832_v62 = vld [vmem:[%s9258_s1 + $0x78] ss:$12 sps:$4 sm:$0xff]   ;;  %v6836_v0 = vld [vmem:[%s9258_s1 + $0x274] ss:$12 sps:$4 sm:$0xff]   ;;  %v6841_v4 = vld [vmem:[%s9258_s1 + $0x270] ss:$12 sps:$4 sm:$0xff]  }
  0x24   : > { %662 = vmatpush1.bf16.msra.mxu0 %v6786_v24  ;;  %v6840_v1 = vld [vmem:[%s9258_s1 + $0x64] ss:$12 sps:$4 sm:$0xff]   ;;  %v6838_v3 = vld [vmem:[%s9258_s1 + $0x60] ss:$12 sps:$4 sm:$0xff]   ;;  %v6842_v7 = vld [vmem:[%s9258_s1 + $0x48] ss:$12 sps:$4 sm:$0xff]  }
  0x25   : > { %6419 = vmatpush3.bf16.msra.mxu1 %v6787_v25  ;;  %663 = vmatprep.subr.bf16.mxu0 %v6788_v26  ;;  %v6844_v5 = vld [vmem:[%s9258_s1 + $0x4c] ss:$12 sps:$4 sm:$0xff]   ;;  %v6845_v6 = vld [vmem:[%s9258_s1 + $0x170] ss:$12 sps:$4 sm:$0xff]   ;;  %v6849_v9 = vld [vmem:[%s9258_s1 + $0x34] ss:$12 sps:$4 sm:$0xff]  }
  0x26   : > { %6420 = vmatprep.subr.bf16.mxu1 %v6790_v27  ;;  %v6846_v8 = vld [vmem:[%s9258_s1 + $0xb0] ss:$12 sps:$4 sm:$0xff]   ;;  %v6850_v10 = vld [vmem:[%s9258_s1 + $0x158] ss:$12 sps:$4 sm:$0xff]   ;;  %v6855_v14 = vld [vmem:[%s9258_s1 + $0x140] ss:$12 sps:$4 sm:$0xff]  }
  0x27   : > { %v6847_v11 = vld [vmem:[%s9258_s1 + $0x30] ss:$12 sps:$4 sm:$0xff]   ;;  %v6852_v15 = vld [vmem:[%s9258_s1 + $0x18] ss:$12 sps:$4 sm:$0xff]   ;;  %v6856_v16 = vld [vmem:[%s9258_s1 + $0x80] ss:$12 sps:$4 sm:$0xff]  }
  0x28   : > { %664 = vmatpush1.bf16.msra.mxu0 %v6791_v28  ;;  %v6854_v13 = vld [vmem:[%s9258_s1 + $0x1c] ss:$12 sps:$4 sm:$0xff]   ;;  %v6859_v17 = vld [vmem:[%s9258_s1 + $0x4] ss:$12 sps:$4 sm:$0xff]   ;;  %v6857_v19 = vld [vmem:[%s9258_s1] ss:$12 sps:$4 sm:$0xff]  }
  0x29   : > { %6421 = vmatpush3.bf16.msra.mxu1 %v6792_v29  ;;  %665 = vmatprep.subr.bf16.mxu0 %v6793_v30  ;;  %v6860_v18 = vld [vmem:[%s9258_s1 + $0x128] ss:$12 sps:$4 sm:$0xff]   ;;  %v197_v20 = vld [vmem:[%s7560_s22] sm:$0x33]  ;;  %v6864_v22 = vld [vmem:[%s9258_s1 + $0x16c] ss:$12 sps:$4 sm:$0xff]  }
  0x2a   : > { %6422 = vmatprep.subr.bf16.mxu1 %v6795_v31  ;;  %v6861_v21 = vld [vmem:[%s9258_s1 + $0x68] ss:$12 sps:$4 sm:$0xff]   ;;  %v5419_v23 = vcombine.high %v197_v20, %v197_v20  ;;  %v6865_v24 = vld [vmem:[%s9258_s1 + $0x110] ss:$12 sps:$4 sm:$0xff]   ;;  %v6870_v28 = vld [vmem:[%s9258_s1 + $0xf8] ss:$12 sps:$4 sm:$0xff]  }
  0x2b   : > { %v6862_v25 = vld [vmem:[%s9258_s1 + $0x168] ss:$12 sps:$4 sm:$0xff]   ;;  %v6866_v26 = vld [vmem:[%s9258_s1 + $0x50] ss:$12 sps:$4 sm:$0xff]   ;;  %v6871_v30 = vld [vmem:[%s9258_s1 + $0x38] ss:$12 sps:$4 sm:$0xff]  }
  0x2c   : > { %666 = vmatpush1.bf16.msra.mxu0 %v6796_v32  ;;  %v6869_v27 = vld [vmem:[%s9258_s1 + $0x154] ss:$12 sps:$4 sm:$0xff]   ;;  %v6867_v29 = vld [vmem:[%s9258_s1 + $0x150] ss:$12 sps:$4 sm:$0xff]   ;;  %v6886_v39 = vld [vmem:[%s9258_s1 + $0x10c] ss:$12 sps:$4 sm:$0xff]  }
  0x2d   : > { %6423 = vmatpush3.bf16.msra.mxu1 %v6797_v33  ;;  %667 = vmatprep.subr.bf16.mxu0 %v6798_v34  ;;  %v6874_v31 = vld [vmem:[%s9258_s1 + $0x13c] ss:$12 sps:$4 sm:$0xff]   ;;  %v6875_v32 = vld [vmem:[%s9258_s1 + $0xe0] ss:$12 sps:$4 sm:$0xff]   ;;  %v6872_v33 = vld [vmem:[%s9258_s1 + $0x138] ss:$12 sps:$4 sm:$0xff]  }
  0x2e   : > { %6424 = vmatprep.subr.bf16.mxu1 %v6800_v35  ;;  %v6876_v34 = vld [vmem:[%s9258_s1 + $0x20] ss:$12 sps:$4 sm:$0xff]   ;;  %v6879_v35 = vld [vmem:[%s9258_s1 + $0x124] ss:$12 sps:$4 sm:$0xff]   ;;  %v6884_v41 = vld [vmem:[%s9258_s1 + $0x108] ss:$12 sps:$4 sm:$0xff]  }
  0x2f   : > { %s6710_s21 = smul.u32 3, %s9274_s12  ;;  %vm5167_vm2 = vcmask 519168  }
  0x30   : > { %668 = vmatpush2.bf16.msra.mxu0 %v6801_v36  ;;  %v6880_v36 = vld [vmem:[%s9258_s1 + $0xc8] ss:$12 sps:$4 sm:$0xff]   ;;  %s6711_s23 = smul.u32 12, %s9272_s13 }
  0x31   : > { %6425 = vmatpush3.bf16.msra.mxu1 %v6802_v37  ;;  %669 = vmatprep.subr.bf16.mxu0 %v6803_v38  ;;  %v6877_v37 = vld [vmem:[%s9258_s1 + $0x120] ss:$12 sps:$4 sm:$0xff]   ;;  %v6881_v38 = vld [vmem:[%s9258_s1 + $0x8] ss:$12 sps:$4 sm:$0xff]  }
  0x32   : > { %6426 = vmatprep.subr.bf16.mxu1 %v6805_v40  ;;  %v5418_v40 = vcombine.low %v197_v20, %v197_v20  ;;  %s190_s26 = sadd.s32 %s6711_s23, %s6710_s21 }
  0x33   : > { %s5282_s12 = sshll.u32 %s190_s26, 2 }
  0x34   : > { %670 = vmatpush2.bf16.msra.mxu0 %v6806_v42  ;;  %v6887_v42 = vld [vmem:[%s9258_s1 + $0x1a0] ss:$12 sps:$4 sm:$0xff]   ;;  %s192_s28 = scalar_lea.vmem %s9260_s3, %s5282_s12 }
  0x35   : > { %6427 = vmatpush3.bf16.msra.mxu1 %v6807_v43  ;;  %671 = vmatprep.subr.bf16.mxu0 %v6810_v44  ;;  %v6890_v43 = vld [vmem:[%s9258_s1 + $0xf4] ss:$12 sps:$4 sm:$0xff]   ;;  %v6888_v44 = vld [vmem:[%s9258_s1 + $0xf0] ss:$12 sps:$4 sm:$0xff]  }
  0x36   : > { %6637 = vmatprep.subr.bf16.mxu1 %v7471_v48 }
  0x38   : > { %766 = vmatmul.mubr.bf16.vlgmr.msra.gmra.mxu1 %v5359_v45  ;;  %672 = vmatpush2.bf16.msra.mxu0 %v6812_v46  ;;  %v6894_v46 = vld [vmem:[%s9258_s1 + $0xdc] ss:$12 sps:$4 sm:$0xff]  }
  0x39   : > { %6638 = vmatpush3.bf16.msra.mxu1 %v6813_v47  ;;  %673 = vmatprep.subr.bf16.mxu0 %v6814_v49  ;;  %v6898_v47 = vld [vmem:[%s9258_s1 + $0x40c] ss:$12 sps:$4 sm:$0xff]   ;;  %v6895_v49 = vld [vmem:[%s7560_s22 + $0x8] ss:$0 sps:$4 sm:$0x33]  }
  0x3a   : > { %6639 = vmatprep.subr.bf16.mxu1 %v7471_v48  ;;  %6641 = vmatprep.mubr.msk.bf16.mxu1 %vm7472_vm1, %v7471_v48 }
  0x3c   : > { %674 = vmatpush2.bf16.msra.mxu0 %v6816_v50  ;;  %v6892_v50 = vld [vmem:[%s9258_s1 + $0xd8] ss:$12 sps:$4 sm:$0xff]  }
  0x3d   : > { %6640 = vmatpush3.bf16.msra.mxu1 %v6817_v51  ;;  %675 = vmatprep.subr.bf16.mxu0 %v6818_v52  ;;  %v6896_v51 = vld [vmem:[%s9258_s1 + $0x408] ss:$12 sps:$4 sm:$0xff]   ;;  %v6901_v52 = vld [vmem:[%s9258_s1 + $0xc4] ss:$12 sps:$4 sm:$0xff]  }
  0x3e   : > { %1114 = vmatprep.subr.bf16.mxu1 %v6822_v53  ;;  %v6904_v53 = vld [vmem:[%s9258_s1 + $0x3f4] ss:$12 sps:$4 sm:$0xff]  }
  0x40   : > { %6642 = vmatmul.mubr.msk.bf16.vlgmr.msra.gmra.mxu1 %vm647_vm0, %v7569_v12  ;;  %676 = vmatpush2.bf16.msra.mxu0 %v6823_v55  ;;  %v6851_v12 = vld [vmem:[%s9258_s1 + $0x98] ss:$12 sps:$4 sm:$0xff]   ;;  %v6902_v55 = vld [vmem:[%s9258_s1 + $0x3f0] ss:$12 sps:$4 sm:$0xff]  }
  0x41   : > { %1115 = vmatpush1.bf16.msra.mxu1 %v6820_v54  ;;  %677 = vmatprep.subr.bf16.mxu0 %v6824_v56  ;;  %v6899_v54 = vld [vmem:[%s9258_s1 + $0xc0] ss:$12 sps:$4 sm:$0xff]   ;;  %v6907_v56 = vld [vmem:[%s9258_s1 + $0x19c] ss:$12 sps:$4 sm:$0xff]  }
  0x42   : > { %1116 = vmatprep.subr.bf16.mxu1 %v6828_v57  ;;  %1146 = vmatprep.mubr.bf16.mxu1 %v5419_v23  ;;  %v6910_v57 = vld [vmem:[%s9258_s1 + $0x3dc] ss:$12 sps:$4 sm:$0xff]  }
  0x44   : > { %678 = vmatpush2.bf16.msra.mxu0 %v6829_v59  ;;  %v6908_v59 = vld [vmem:[%s9258_s1 + $0x3d8] ss:$12 sps:$4 sm:$0xff]  }
  0x45   : > { %1117 = vmatpush1.bf16.msra.mxu1 %v6826_v58  ;;  %679 = vmatprep.subr.bf16.mxu0 %v6830_v60  ;;  %v6905_v58 = vld [vmem:[%s9258_s1 + $0x198] ss:$12 sps:$4 sm:$0xff]  }
  0x46   : > { %1118 = vmatprep.subr.bf16.mxu1 %v6834_v61  ;;  %v6913_v60 = vld [vmem:[%s9258_s1 + $0x184] ss:$12 sps:$4 sm:$0xff]  }
  0x47   : > { %v6916_v61 = vld [vmem:[%s9258_s1 + $0x3c4] ss:$12 sps:$4 sm:$0xff]  }
  0x48   : > { %680 = vmatpush2.bf16.msra.mxu0 %v6835_v63  ;;  %v6914_v63 = vld [vmem:[%s9258_s1 + $0x3c0] ss:$12 sps:$4 sm:$0xff]  }
  0x49   : > { %1119 = vmatpush1.bf16.msra.mxu1 %v6832_v62  ;;  %681 = vmatprep.subr.bf16.mxu0 %v6836_v0  ;;  %v6911_v62 = vld [vmem:[%s9258_s1 + $0x180] ss:$12 sps:$4 sm:$0xff]   ;;  %v6932_v0 = vld [vmem:[%s7560_s22 + $0x8] ss:$0 sps:$4 sm:$0x77]  }
  0x4a   : > { %1120 = vmatprep.subr.bf16.mxu1 %v6840_v1  ;;  %v6919_v1 = vld [vmem:[%s9258_s1 + $0x3ac] ss:$12 sps:$4 sm:$0xff]  }
  0x4c   : > { %682 = vmatpush2.bf16.msra.mxu0 %v6841_v4  ;;  %v6917_v4 = vld [vmem:[%s9258_s1 + $0x3a8] ss:$12 sps:$4 sm:$0xff]  }
  0x4d   : > { %1121 = vmatpush1.bf16.msra.mxu1 %v6838_v3  ;;  %6437 = vmatprep.subr.bf16.mxu0 %v6845_v6  ;;  %v6922_v3 = vld [vmem:[%s9258_s1 + $0x4fc] ss:$12 sps:$4 sm:$0xff]   ;;  %v1376_v6 = vshll.u32 %v6932_v0, 16 }
  0x4e   : > { %1122 = vmatprep.subr.bf16.mxu1 %v6844_v5  ;;  %v6920_v5 = vld [vmem:[%s9258_s1 + $0x4f8] ss:$12 sps:$4 sm:$0xff]  }
  0x4f   : > { %684 = vmatmul.mubr.bf16.vlgmr.msra.gmra.mxu0 %v5359_v45  ;;  %v6891_v45 = vld [vmem:[%s9258_s1 + $0x188] ss:$12 sps:$4 sm:$0xff]  }
  0x50   : > { %6438 = vmatpush3.bf16.msra.mxu0 %v6846_v8  ;;  %1228 = vmatprep.mubr.bf16.mxu0 %v5419_v23  ;;  %v6928_v8 = vld [vmem:[%s9258_s1 + $0x4e4] ss:$12 sps:$4 sm:$0xff]  }
  0x51   : > { %1123 = vmatpush1.bf16.msra.mxu1 %v6842_v7  ;;  %6439 = vmatprep.subr.bf16.mxu0 %v6850_v10  ;;  %v6925_v7 = vld [vmem:[%s9258_s1 + $0x394] ss:$12 sps:$4 sm:$0xff]   ;;  %v1374_v10 = vshrl.u32 %v6932_v0, 16  ;;  %v6938_v23 = vld [vmem:[%s9258_s1 + $0x4b8] ss:$12 sps:$4 sm:$0xff]  }
  0x52   : > { %1124 = vmatprep.subr.bf16.mxu1 %v6849_v9  ;;  %v6923_v9 = vld [vmem:[%s9258_s1 + $0x390] ss:$12 sps:$4 sm:$0xff]  }
  0x53   : > { %v6982_v0 = vld [vmem:[%s9258_s1 + $0x5bc] ss:$12 sps:$4 sm:$0xff]  }
  0x54   : > { %6440 = vmatpush3.bf16.msra.mxu0 %v6851_v12  ;;  %v6926_v12 = vld [vmem:[%s9258_s1 + $0x4e0] ss:$12 sps:$4 sm:$0xff]  }
  0x55   : > { %1125 = vmatpush1.bf16.msra.mxu1 %v6847_v11  ;;  %6441 = vmatprep.subr.bf16.mxu0 %v6855_v14  ;;  %v1378_v11 = vrot.slane %v1376_v6, 1  ;;  %v6931_v14 = vld [vmem:[%s9258_s1 + $0x37c] ss:$12 sps:$4 sm:$0xff]   ;;  %v6991_v6 = vld [vmem:[%s9258_s1 + $0x694] ss:$12 sps:$4 sm:$0xff]  }
  0x56   : > { %1126 = vmatprep.subr.bf16.mxu1 %v6854_v13  ;;  %v1276_v13 = vld [vmem:[%s7560_s22] sm:$0x77] }
  0x58   : > { %6442 = vmatpush3.bf16.msra.mxu0 %v6856_v16  ;;  %v5550_v16 = vcombine.high %v1276_v13, %v1276_v13 }
  0x59   : > { %1127 = vmatpush1.bf16.msra.mxu1 %v6852_v15  ;;  %6443 = vmatprep.subr.bf16.mxu0 %v6860_v18  ;;  %v6933_v15 = vld [vmem:[%s9258_s1 + $0x4d0] ss:$12 sps:$4 sm:$0xff]   ;;  %v7940_v18 = vor.u32 %v1378_v11, %v1374_v10  ;;  %v6994_v10 = vld [vmem:[%s9258_s1 + $0x58c] ss:$12 sps:$4 sm:$0xff]  }
  0x5a   : > { %1128 = vmatprep.subr.bf16.mxu1 %v6859_v17  ;;  %v6929_v17 = vld [vmem:[%s9258_s1 + $0x378] ss:$12 sps:$4 sm:$0xff]   ;;  %v1369_v20 = vshll.u32 %v5550_v16, 16 }
  0x5c   : > { %6444 = vmatpush3.bf16.msra.mxu0 %v6861_v21  ;;  %v6934_v21 = vld [vmem:[%s9258_s1 + $0x410] ss:$12 sps:$4 sm:$0xff]  }
  0x5d   : > { %1129 = vmatpush1.bf16.msra.mxu1 %v6857_v19  ;;  %6445 = vmatprep.subr.bf16.mxu0 %v6865_v24  ;;  %v1367_v19 = vshrl.u32 %v5550_v16, 16  ;;  %v1371_v24 = vrot.slane %v1369_v20, 1  ;;  %v7000_v16 = vld [vmem:[%s9258_s1 + $0x574] ss:$12 sps:$4 sm:$0xff]   ;;  %v7005_v20 = vld [vmem:[%s9258_s1 + $0x55c] ss:$12 sps:$4 sm:$0xff]  }
  0x5e   : > { %1130 = vmatprep.subr.bf16.mxu1 %v6864_v22  ;;  %v6937_v22 = vld [vmem:[%s9258_s1 + $0x364] ss:$12 sps:$4 sm:$0xff]  }
  0x60   : > { %6446 = vmatpush3.bf16.msra.mxu0 %v6866_v26  ;;  %v6935_v26 = vld [vmem:[%s9258_s1 + $0x360] ss:$12 sps:$4 sm:$0xff]  }
  0x61   : > { %1131 = vmatpush2.bf16.msra.mxu1 %v6862_v25  ;;  %6447 = vmatprep.subr.bf16.mxu0 %v6870_v28  ;;  %v1372_v25 = vor.u32 %v1371_v24, %v1367_v19  ;;  %v6942_v28 = vld [vmem:[%s9258_s1 + $0x4cc] ss:$12 sps:$4 sm:$0xff]   ;;  %v7002_v19 = vld [vmem:[%s9258_s1 + $0x5a8] ss:$12 sps:$4 sm:$0xff]   ;;  %v7010_v24 = vld [vmem:[%s9258_s1 + $0x544] ss:$12 sps:$4 sm:$0xff]  }
  0x62   : > { %1132 = vmatprep.subr.bf16.mxu1 %v6869_v27  ;;  %v6939_v27 = vld [vmem:[%s9258_s1 + $0x3f8] ss:$12 sps:$4 sm:$0xff]  }
  0x64   : > { %6448 = vmatpush3.bf16.msra.mxu0 %v6871_v30  ;;  %v6940_v30 = vld [vmem:[%s9258_s1 + $0x4c8] ss:$12 sps:$4 sm:$0xff]  }
  0x65   : > { %1133 = vmatpush2.bf16.msra.mxu1 %v6867_v29  ;;  %6449 = vmatprep.subr.bf16.mxu0 %v6875_v32  ;;  %v6943_v29 = vld [vmem:[%s9258_s1 + $0x4a0] ss:$12 sps:$4 sm:$0xff]  }
  0x66   : > { %1134 = vmatprep.subr.bf16.mxu1 %v6874_v31  ;;  %v6944_v31 = vld [vmem:[%s9258_s1 + $0x3e0] ss:$12 sps:$4 sm:$0xff]  }
  0x67   : > { %v6947_v32 = vld [vmem:[%s9258_s1 + $0x4b4] ss:$12 sps:$4 sm:$0xff]  }
  0x68   : > { %6450 = vmatpush3.bf16.msra.mxu0 %v6876_v34  ;;  %v6945_v34 = vld [vmem:[%s9258_s1 + $0x4b0] ss:$12 sps:$4 sm:$0xff]  }
  0x69   : > { %1135 = vmatpush2.bf16.msra.mxu1 %v6872_v33  ;;  %6451 = vmatprep.subr.bf16.mxu0 %v6880_v36  ;;  %v6948_v33 = vld [vmem:[%s9258_s1 + $0x488] ss:$12 sps:$4 sm:$0xff]  }
  0x6a   : > { %1136 = vmatprep.subr.bf16.mxu1 %v6879_v35  ;;  %v6949_v35 = vld [vmem:[%s9258_s1 + $0x3c8] ss:$12 sps:$4 sm:$0xff]  }
  0x6b   : > { %v6952_v36 = vld [vmem:[%s9258_s1 + $0x49c] ss:$12 sps:$4 sm:$0xff]  }
  0x6c   : > { %6452 = vmatpush3.bf16.msra.mxu0 %v6881_v38  ;;  %v6950_v38 = vld [vmem:[%s9258_s1 + $0x498] ss:$12 sps:$4 sm:$0xff]  }
  0x6d   : > { %1137 = vmatpush2.bf16.msra.mxu1 %v6877_v37  ;;  %6645 = vmatprep.subr.bf16.mxu0 %v7471_v48  ;;  %v6953_v37 = vld [vmem:[%s9258_s1 + $0x470] ss:$12 sps:$4 sm:$0xff]  }
  0x6e   : > { %1138 = vmatprep.subr.bf16.mxu1 %v6886_v39  ;;  %v6954_v39 = vld [vmem:[%s9258_s1 + $0x3b0] ss:$12 sps:$4 sm:$0xff]  }
  0x6f   : > { %1229 = vmatmul.mubr.bf16.vlgmr.msra.gmra.mxu0 %v5418_v40 }
  0x70   : > { %6646 = vmatpush3.bf16.msra.mxu0 %v6887_v42  ;;  %6649 = vmatprep.mubr.msk.bf16.mxu0 %vm7472_vm1, %v7471_v48  ;;  %v6955_v42 = vld [vmem:[%s9258_s1 + $0x480] ss:$12 sps:$4 sm:$0xff]  }
  0x71   : > { %1139 = vmatpush2.bf16.msra.mxu1 %v6884_v41  ;;  %6647 = vmatprep.subr.bf16.mxu0 %v7471_v48  ;;  %v6958_v41 = vld [vmem:[%s9258_s1 + $0x458] ss:$12 sps:$4 sm:$0xff]  }
  0x72   : > { %1140 = vmatprep.subr.bf16.mxu1 %v6890_v43  ;;  %v6959_v43 = vld [vmem:[%s9258_s1 + $0x398] ss:$12 sps:$4 sm:$0xff]  }
  0x74   : > { %6648 = vmatpush3.bf16.msra.mxu0 %v6891_v45  ;;  %v6962_v45 = vld [vmem:[%s9258_s1 + $0x46c] ss:$12 sps:$4 sm:$0xff]  }
  0x75   : > { %1141 = vmatpush2.bf16.msra.mxu1 %v6888_v44  ;;  %1673 = vmatprep.subr.bf16.mxu0 %v6898_v47  ;;  %v5549_v44 = vcombine.low %v1276_v13, %v1276_v13  ;;  %v6960_v47 = vld [vmem:[%s9258_s1 + $0x468] ss:$12 sps:$4 sm:$0xff]  }
  0x76   : > { %1142 = vmatprep.subr.bf16.mxu1 %v6894_v46  ;;  %v6963_v46 = vld [vmem:[%s9258_s1 + $0x440] ss:$12 sps:$4 sm:$0xff]   ;;  %v6992_v13 = vld [vmem:[%s9258_s1 + $0x588] ss:$12 sps:$4 sm:$0xff]  }
  0x77   : > { %6650 = vmatmul.mubr.msk.bf16.vlgmr.msra.gmra.mxu0 %vm647_vm0, %v6895_v49 }
  0x78   : > { %1674 = vmatpush1.bf16.msra.mxu0 %v6896_v51  ;;  %1705 = vmatprep.mubr.bf16.mxu0 %v1372_v25  ;;  %v6967_v51 = vld [vmem:[%s9258_s1 + $0x454] ss:$12 sps:$4 sm:$0xff]  }
  0x79   : > { %1143 = vmatpush2.bf16.msra.mxu1 %v6892_v50  ;;  %1675 = vmatprep.subr.bf16.mxu0 %v6904_v53  ;;  %v6964_v50 = vld [vmem:[%s9258_s1 + $0x380] ss:$12 sps:$4 sm:$0xff]   ;;  %v6965_v53 = vld [vmem:[%s9258_s1 + $0x450] ss:$12 sps:$4 sm:$0xff]  }
  0x7a   : > { %1144 = vmatprep.subr.bf16.mxu1 %v6901_v52  ;;  %v6968_v52 = vld [vmem:[%s9258_s1 + $0x428] ss:$12 sps:$4 sm:$0xff]  }
  0x7c   : > { %1676 = vmatpush1.bf16.msra.mxu0 %v6902_v55 }
  0x7d   : > { %1145 = vmatpush2.bf16.msra.mxu1 %v6899_v54  ;;  %1677 = vmatprep.subr.bf16.mxu0 %v6910_v57  ;;  %v1360_v54 = vshrl.u32 %v5549_v44, 16  ;;  %v6974_v57 = vld [vmem:[%s9258_s1 + $0x43c] ss:$12 sps:$4 sm:$0xff]  }
  0x7e   : > { %1167 = vmatprep.subr.bf16.mxu1 %v6907_v56  ;;  %v6969_v56 = vld [vmem:[%s9258_s1 + $0x368] ss:$12 sps:$4 sm:$0xff]  }
  0x80   : > { %1147 = vmatmul.mubr.bf16.vlgmr.msra.gmra.mxu1 %v5418_v40  ;;  %1678 = vmatpush1.bf16.msra.mxu0 %v6908_v59  ;;  %v6957_v40 = vld [vmem:[%s9258_s1 + $0x484] ss:$12 sps:$4 sm:$0xff]  }
  0x81   : > { %1168 = vmatpush1.bf16.msra.mxu1 %v6905_v58  ;;  %1679 = vmatprep.subr.bf16.mxu0 %v6916_v61  ;;  %v6972_v59 = vld [vmem:[%s9258_s1 + $0x438] ss:$12 sps:$4 sm:$0xff]  }
  0x82   : > { %1169 = vmatprep.subr.bf16.mxu1 %v6913_v60  ;;  %1187 = vmatprep.mubr.bf16.mxu1 %v7470_v2  ;;  %v6975_v60 = vld [vmem:[%s9258_s1 + $0x500] ss:$12 sps:$4 sm:$0xff]   ;;  %v6978_v61 = vld [vmem:[%s9258_s1 + $0x424] ss:$12 sps:$4 sm:$0xff]  }
  0x84   : > { %1680 = vmatpush1.bf16.msra.mxu0 %v6914_v63  ;;  %v6979_v63 = vld [vmem:[%s9258_s1 + $0x4e8] ss:$12 sps:$4 sm:$0xff]  }
  0x85   : > { %1170 = vmatpush1.bf16.msra.mxu1 %v6911_v62  ;;  %1681 = vmatprep.subr.bf16.mxu0 %v6919_v1  ;;  %v6976_v62 = vld [vmem:[%s9258_s1 + $0x420] ss:$12 sps:$4 sm:$0xff]  }
  0x86   : > { %1726 = vmatprep.subr.bf16.mxu1 %v6922_v3  ;;  %v6985_v1 = vld [vmem:[%s9258_s1 + $0x6ac] ss:$12 sps:$4 sm:$0xff]  }
  0x87   : > { %v6980_v3 = vld [vmem:[%s9258_s1 + $0x5b8] ss:$12 sps:$4 sm:$0xff]  }
  0x88   : > { %5475 = vmatmul.mubr.msk.bf16.vlgmr.msra.gmra.mxu1 %vm647_vm0, %v6895_v49  ;;  %1682 = vmatpush1.bf16.msra.mxu0 %v6917_v4  ;;  %v1362_v49 = vshll.u32 %v5549_v44, 16  ;;  %v6983_v4 = vld [vmem:[%s9258_s1 + $0x6a8] ss:$12 sps:$4 sm:$0xff]   ;;  %v7032_v44 = vld [vmem:[%s9258_s1 + $0x518] ss:$12 sps:$4 sm:$0xff]  }
  0x89   : > { %1727 = vmatpush1.bf16.msra.mxu1 %v6920_v5  ;;  %1683 = vmatprep.subr.bf16.mxu0 %v6925_v7  ;;  %v6988_v5 = vld [vmem:[%s9258_s1 + $0x5a4] ss:$12 sps:$4 sm:$0xff]   ;;  %v8072_v7 = vld [vmem:[%s7560_s22 + $0x78] sm:$0x33] }
  0x8a   : > { %1728 = vmatprep.subr.bf16.mxu1 %v6928_v8  ;;  %1746 = vmatprep.mubr.bf16.mxu1 %v7470_v2  ;;  %v1364_v55 = vrot.slane %v1362_v49, 1  ;;  %v6986_v8 = vld [vmem:[%s9258_s1 + $0x5a0] ss:$12 sps:$4 sm:$0xff]   ;;  %v5684_v11 = vcombine.high %v8072_v7, %v8072_v7  ;;  %v8195_v49 = vcombine.low %v8072_v7, %v8072_v7 }
  0x8b   : > { %v7063_v7 = vld [vmem:[%s9258_s1 + $0x5d4] ss:$12 sps:$4 sm:$0xff]  }
  0x8c   : > { %1684 = vmatpush1.bf16.msra.mxu0 %v6923_v9  ;;  %v1365_v58 = vor.u32 %v1364_v55, %v1360_v54  ;;  %v6989_v9 = vld [vmem:[%s9258_s1 + $0x690] ss:$12 sps:$4 sm:$0xff]   ;;  %v7042_v55 = vld [vmem:[%s9258_s1 + $0x698] ss:$12 sps:$4 sm:$0xff]  }
  0x8d   : > { %1729 = vmatpush1.bf16.msra.mxu1 %v6926_v12  ;;  %1685 = vmatprep.subr.bf16.mxu0 %v6931_v14  ;;  %v6996_v12 = vld [vmem:[%s9258_s1 + $0x680] ss:$12 sps:$4 sm:$0xff]   ;;  %v7039_v54 = vld [vmem:[%s9258_s1 + $0x630] ss:$12 sps:$4 sm:$0xff]  }
  0x8e   : > { %6462 = vmatprep.subr.bf16.mxu1 %v6933_v15  ;;  %v8095_v14 = vld [vmem:[%s7560_s22 + $0x80] ss:$0 sps:$4 sm:$0x33]  }
  0x8f   : > { %v6997_v15 = vld [vmem:[%s9258_s1 + $0x5c0] ss:$12 sps:$4 sm:$0xff]  }
  0x90   : > { %5606 = vmatmul.mubr.msk.bf16.vlgmr.msra.gmra.mxu1 %vm647_vm0, %v7940_v18  ;;  %1686 = vmatpush1.bf16.msra.mxu0 %v6929_v17  ;;  %v7001_v17 = vld [vmem:[%s9258_s1 + $0x668] ss:$12 sps:$4 sm:$0xff]  }
  0x91   : > { %6463 = vmatpush3.bf16.msra.mxu1 %v6934_v21  ;;  %1687 = vmatprep.subr.bf16.mxu0 %v6937_v22  ;;  %v7006_v21 = vld [vmem:[%s9258_s1 + $0x650] ss:$12 sps:$4 sm:$0xff]   ;;  %v7003_v22 = vld [vmem:[%s9258_s1 + $0x558] ss:$12 sps:$4 sm:$0xff]  }
  0x92   : > { %6464 = vmatprep.subr.bf16.mxu1 %v6938_v23  ;;  %1787 = vmatprep.mubr.bf16.mxu1 %v1372_v25  ;;  %v7007_v23 = vld [vmem:[%s9258_s1 + $0x590] ss:$12 sps:$4 sm:$0xff]   ;;  %v7011_v25 = vld [vmem:[%s9258_s1 + $0x638] ss:$12 sps:$4 sm:$0xff]  }
  0x94   : > { %1688 = vmatpush1.bf16.msra.mxu0 %v6935_v26  ;;  %v7008_v26 = vld [vmem:[%s9258_s1 + $0x540] ss:$12 sps:$4 sm:$0xff]  }
  0x95   : > { %6465 = vmatpush3.bf16.msra.mxu1 %v6939_v27  ;;  %1689 = vmatprep.subr.bf16.mxu0 %v6942_v28  ;;  %v7012_v27 = vld [vmem:[%s9258_s1 + $0x578] ss:$12 sps:$4 sm:$0xff]  }
  0x96   : > { %6466 = vmatprep.subr.bf16.mxu1 %v6943_v29  ;;  %v7015_v28 = vld [vmem:[%s9258_s1 + $0x52c] ss:$12 sps:$4 sm:$0xff]  }
  0x97   : > { %v7016_v29 = vld [vmem:[%s9258_s1 + $0x620] ss:$12 sps:$4 sm:$0xff]  }
  0x98   : > { %1690 = vmatpush2.bf16.msra.mxu0 %v6940_v30  ;;  %v7013_v30 = vld [vmem:[%s9258_s1 + $0x528] ss:$12 sps:$4 sm:$0xff]  }
  0x99   : > { %6467 = vmatpush3.bf16.msra.mxu1 %v6944_v31  ;;  %1691 = vmatprep.subr.bf16.mxu0 %v6947_v32  ;;  %v7017_v31 = vld [vmem:[%s9258_s1 + $0x560] ss:$12 sps:$4 sm:$0xff]  }
  0x9a   : > { %6468 = vmatprep.subr.bf16.mxu1 %v6948_v33  ;;  %v7020_v32 = vld [vmem:[%s9258_s1 + $0x514] ss:$12 sps:$4 sm:$0xff]  }
  0x9b   : > { %v7021_v33 = vld [vmem:[%s9258_s1 + $0x608] ss:$12 sps:$4 sm:$0xff]  }
  0x9c   : > { %1692 = vmatpush2.bf16.msra.mxu0 %v6945_v34  ;;  %v7018_v34 = vld [vmem:[%s9258_s1 + $0x510] ss:$12 sps:$4 sm:$0xff]  }
  0x9d   : > { %6469 = vmatpush3.bf16.msra.mxu1 %v6949_v35  ;;  %1693 = vmatprep.subr.bf16.mxu0 %v6952_v36  ;;  %v7022_v35 = vld [vmem:[%s9258_s1 + $0x548] ss:$12 sps:$4 sm:$0xff]  }
  0x9e   : > { %6470 = vmatprep.subr.bf16.mxu1 %v6953_v37  ;;  %v7025_v36 = vld [vmem:[%s9258_s1 + $0x67c] ss:$12 sps:$4 sm:$0xff]  }
  0x9f   : > { %v7026_v37 = vld [vmem:[%s9258_s1 + $0x5f0] ss:$12 sps:$4 sm:$0xff]  }
  0xa0   : > { %1694 = vmatpush2.bf16.msra.mxu0 %v6950_v38  ;;  %v7023_v38 = vld [vmem:[%s9258_s1 + $0x678] ss:$12 sps:$4 sm:$0xff]  }
  0xa1   : > { %6471 = vmatpush3.bf16.msra.mxu1 %v6954_v39  ;;  %1695 = vmatprep.subr.bf16.mxu0 %v6957_v40  ;;  %v7027_v39 = vld [vmem:[%s9258_s1 + $0x530] ss:$12 sps:$4 sm:$0xff]  }
  0xa2   : > { %6472 = vmatprep.subr.bf16.mxu1 %v6958_v41  ;;  %v7030_v40 = vld [vmem:[%s9258_s1 + $0x664] ss:$12 sps:$4 sm:$0xff]  }
  0xa3   : > { %v7031_v41 = vld [vmem:[%s9258_s1 + $0x5d8] ss:$12 sps:$4 sm:$0xff]  }
  0xa4   : > { %1696 = vmatpush2.bf16.msra.mxu0 %v6955_v42 }
  0xa5   : > { %6473 = vmatpush3.bf16.msra.mxu1 %v6959_v43  ;;  %1697 = vmatprep.subr.bf16.mxu0 %v6962_v45  ;;  %v7028_v43 = vld [vmem:[%s9258_s1 + $0x660] ss:$12 sps:$4 sm:$0xff]  }
  0xa6   : > { %6474 = vmatprep.subr.bf16.mxu1 %v6963_v46  ;;  %v7037_v46 = vld [vmem:[%s9258_s1 + $0x64c] ss:$12 sps:$4 sm:$0xff]  }
  0xa8   : > { %1698 = vmatpush2.bf16.msra.mxu0 %v6960_v47 }
  0xa9   : > { %6475 = vmatpush3.bf16.msra.mxu1 %v6964_v50  ;;  %1699 = vmatprep.subr.bf16.mxu0 %v6967_v51  ;;  %v7035_v50 = vld [vmem:[%s9258_s1 + $0x648] ss:$12 sps:$4 sm:$0xff]   ;;  %v7038_v51 = vld [vmem:[%s9258_s1 + $0x6b0] ss:$12 sps:$4 sm:$0xff]  }
  0xaa   : > { %6476 = vmatprep.subr.bf16.mxu1 %v6968_v52 }
  0xac   : > { %1700 = vmatpush2.bf16.msra.mxu0 %v6965_v53  ;;  %v7041_v53 = vld [vmem:[%s9258_s1 + $0x634] ss:$12 sps:$4 sm:$0xff]  }
  0xad   : > { %6477 = vmatpush3.bf16.msra.mxu1 %v6969_v56  ;;  %1701 = vmatprep.subr.bf16.mxu0 %v6974_v57  ;;  %v7045_v56 = vld [vmem:[%s9258_s1 + $0x61c] ss:$12 sps:$4 sm:$0xff]   ;;  %v7048_v57 = vld [vmem:[%s9258_s1 + $0x76c] ss:$12 sps:$4 sm:$0xff]  }
  0xae   : > { %6653 = vmatprep.subr.bf16.mxu1 %v7471_v48 }
  0xb0   : > { %1788 = vmatmul.mubr.bf16.vlgmr.msra.gmra.mxu1 %v1365_v58  ;;  %1702 = vmatpush2.bf16.msra.mxu0 %v6972_v59  ;;  %v7046_v59 = vld [vmem:[%s9258_s1 + $0x768] ss:$12 sps:$4 sm:$0xff]  }
  0xb1   : > { %6654 = vmatpush3.bf16.msra.mxu1 %v6975_v60  ;;  %1703 = vmatprep.subr.bf16.mxu0 %v6978_v61  ;;  %v7051_v60 = vld [vmem:[%s9258_s1 + $0x604] ss:$12 sps:$4 sm:$0xff]   ;;  %v7054_v61 = vld [vmem:[%s9258_s1 + $0x754] ss:$12 sps:$4 sm:$0xff]  }
  0xb2   : > { %6655 = vmatprep.subr.bf16.mxu1 %v7471_v48  ;;  %6657 = vmatprep.mubr.msk.bf16.mxu1 %vm7472_vm1, %v7471_v48 }
  0xb4   : > { %1704 = vmatpush2.bf16.msra.mxu0 %v6976_v62  ;;  %v8236_v62 = vld [vmem:[%s7560_s22 + $0xb4] sm:$0x33] }
  0xb5   : > { %6656 = vmatpush3.bf16.msra.mxu1 %v6979_v63  ;;  %2270 = vmatprep.subr.bf16.mxu0 %v6985_v1  ;;  %v7049_v63 = vld [vmem:[%s9258_s1 + $0x600] ss:$12 sps:$4 sm:$0xff]  }
  0xb6   : > { %2217 = vmatprep.subr.bf16.mxu1 %v6982_v0  ;;  %v7052_v0 = vld [vmem:[%s9258_s1 + $0x750] ss:$12 sps:$4 sm:$0xff]   ;;  %v7057_v1 = vld [vmem:[%s9258_s1 + $0x5ec] ss:$12 sps:$4 sm:$0xff]  }
  0xb7   : > { %1706 = vmatmul.mubr.bf16.vlgmr.msra.gmra.mxu0 %v1365_v58  ;;  %v7043_v58 = vld [vmem:[%s9258_s1 + $0x618] ss:$12 sps:$4 sm:$0xff]  }
  0xb8   : > { %6658 = vmatmul.mubr.msk.bf16.vlgmr.msra.gmra.mxu1 %vm647_vm0, %v7940_v18  ;;  %2271 = vmatpush1.bf16.msra.mxu0 %v6983_v4  ;;  %v6998_v18 = vld [vmem:[%s9258_s1 + $0x570] ss:$12 sps:$4 sm:$0xff]  }
  0xb9   : > { %2218 = vmatpush1.bf16.msra.mxu1 %v6980_v3  ;;  %2272 = vmatprep.subr.bf16.mxu0 %v6991_v6  ;;  %v8251_v3 = vcombine.high %v8236_v62, %v8236_v62  ;;  %v7060_v4 = vld [vmem:[%s9258_s1 + $0x73c] ss:$12 sps:$4 sm:$0xff]   ;;  %v7058_v6 = vld [vmem:[%s9258_s1 + $0x738] ss:$12 sps:$4 sm:$0xff]  }
  0xba   : > { %2219 = vmatprep.subr.bf16.mxu1 %v6988_v5  ;;  %2290 = vmatprep.mubr.bf16.mxu0 %v7470_v2  ;;  %v7055_v5 = vld [vmem:[%s9258_s1 + $0x5e8] ss:$12 sps:$4 sm:$0xff]  }
  0xbb   : > { %2249 = vmatprep.mubr.bf16.mxu1 %v5684_v11 }
  0xbc   : > { %2273 = vmatpush1.bf16.msra.mxu0 %v6989_v9  ;;  %v7061_v9 = vld [vmem:[%s9258_s1 + $0x5d0] ss:$12 sps:$4 sm:$0xff]  }
  0xbd   : > { %2220 = vmatpush1.bf16.msra.mxu1 %v6986_v8  ;;  %6487 = vmatprep.subr.bf16.mxu0 %v6996_v12  ;;  %v7066_v8 = vld [vmem:[%s9258_s1 + $0x724] ss:$12 sps:$4 sm:$0xff]   ;;  %v7072_v12 = vld [vmem:[%s9258_s1 + $0x85c] ss:$12 sps:$4 sm:$0xff]  }
  0xbe   : > { %2221 = vmatprep.subr.bf16.mxu1 %v6994_v10  ;;  %v7064_v10 = vld [vmem:[%s9258_s1 + $0x720] ss:$12 sps:$4 sm:$0xff]  }
  0xbf   : > { %5740 = vmatmul.mubr.msk.bf16.vlgmr.msra.gmra.mxu0 %vm647_vm0, %v8095_v14 }
  0xc0   : > { %6488 = vmatpush3.bf16.msra.mxu0 %v6997_v15  ;;  %2331 = vmatprep.mubr.bf16.mxu0 %v5684_v11  ;;  %v7069_v11 = vld [vmem:[%s9258_s1 + $0x70c] ss:$12 sps:$4 sm:$0xff]   ;;  %v7075_v15 = vld [vmem:[%s9258_s1 + $0x6f4] ss:$12 sps:$4 sm:$0xff]  }
  0xc1   : > { %2222 = vmatpush1.bf16.msra.mxu1 %v6992_v13  ;;  %6489 = vmatprep.subr.bf16.mxu0 %v7001_v17  ;;  %v7067_v13 = vld [vmem:[%s9258_s1 + $0x708] ss:$12 sps:$4 sm:$0xff]  }
  0xc2   : > { %2223 = vmatprep.subr.bf16.mxu1 %v7000_v16  ;;  %v7078_v16 = vld [vmem:[%s9258_s1 + $0x844] ss:$12 sps:$4 sm:$0xff]  }
  0xc4   : > { %6490 = vmatpush3.bf16.msra.mxu0 %v7002_v19  ;;  %v7076_v19 = vld [vmem:[%s9258_s1 + $0x840] ss:$12 sps:$4 sm:$0xff]  }
  0xc5   : > { %2224 = vmatpush1.bf16.msra.mxu1 %v6998_v18  ;;  %6491 = vmatprep.subr.bf16.mxu0 %v7006_v21  ;;  %v7073_v18 = vld [vmem:[%s9258_s1 + $0x6f0] ss:$12 sps:$4 sm:$0xff]  }
  0xc6   : > { %2225 = vmatprep.subr.bf16.mxu1 %v7005_v20  ;;  %v7081_v20 = vld [vmem:[%s9258_s1 + $0x6dc] ss:$12 sps:$4 sm:$0xff]  }
  0xc8   : > { %6492 = vmatpush3.bf16.msra.mxu0 %v7007_v23  ;;  %v7083_v23 = vld [vmem:[%s9258_s1 + $0x830] ss:$12 sps:$4 sm:$0xff]  }
  0xc9   : > { %2226 = vmatpush1.bf16.msra.mxu1 %v7003_v22  ;;  %6493 = vmatprep.subr.bf16.mxu0 %v7011_v25  ;;  %v8304_v22 = vld [vmem:[%s7560_s22 + $0xbc] ss:$0 sps:$4 sm:$0x33]   ;;  %v7079_v25 = vld [vmem:[%s9258_s1 + $0x6d8] ss:$12 sps:$4 sm:$0xff]  }
  0xca   : > { %2227 = vmatprep.subr.bf16.mxu1 %v7010_v24 }
  0xcc   : > { %6494 = vmatpush3.bf16.msra.mxu0 %v7012_v27  ;;  %v7084_v27 = vld [vmem:[%s9258_s1 + $0x770] ss:$12 sps:$4 sm:$0xff]  }
  0xcd   : > { %2228 = vmatpush1.bf16.msra.mxu1 %v7008_v26  ;;  %6495 = vmatprep.subr.bf16.mxu0 %v7016_v29 }
  0xce   : > { %2229 = vmatprep.subr.bf16.mxu1 %v7015_v28  ;;  %v7087_v28 = vld [vmem:[%s9258_s1 + $0x6c4] ss:$12 sps:$4 sm:$0xff]  }
  0xd0   : > { %6496 = vmatpush3.bf16.msra.mxu0 %v7017_v31 }
  0xd1   : > { %2230 = vmatpush1.bf16.msra.mxu1 %v7013_v30  ;;  %6497 = vmatprep.subr.bf16.mxu0 %v7021_v33  ;;  %v7088_v30 = vld [vmem:[%s9258_s1 + $0x818] ss:$12 sps:$4 sm:$0xff]  }
  0xd2   : > { %2231 = vmatprep.subr.bf16.mxu1 %v7020_v32  ;;  %v7085_v32 = vld [vmem:[%s9258_s1 + $0x6c0] ss:$12 sps:$4 sm:$0xff]   ;;  %v7089_v33 = vld [vmem:[%s9258_s1 + $0x758] ss:$12 sps:$4 sm:$0xff]  }
  0xd4   : > { %6498 = vmatpush3.bf16.msra.mxu0 %v7022_v35  ;;  %v7092_v35 = vld [vmem:[%s9258_s1 + $0x82c] ss:$12 sps:$4 sm:$0xff]  }
  0xd5   : > { %2232 = vmatpush1.bf16.msra.mxu1 %v7018_v34  ;;  %6499 = vmatprep.subr.bf16.mxu0 %v7026_v37  ;;  %v7093_v37 = vld [vmem:[%s9258_s1 + $0x800] ss:$12 sps:$4 sm:$0xff]  }
  0xd6   : > { %2233 = vmatprep.subr.bf16.mxu1 %v7025_v36 }
  0xd8   : > { %v8180_v42 = vpop.f32.mrf.mxu1  ;;  %6500 = vmatpush3.bf16.msra.mxu0 %v7027_v39 }
  0xd9   : > { %2234 = vmatpush2.bf16.msra.mxu1 %v7023_v38  ;;  %6501 = vmatprep.subr.bf16.mxu0 %v7031_v41  ;;  %v7090_v38 = vld [vmem:[%s9258_s1 + $0x828] ss:$12 sps:$4 sm:$0xff]  }
  0xda   : > { %v8188_v45 = vpop.f32.mrf.mxu1  ;;  %2235 = vmatprep.subr.bf16.mxu1 %v7030_v40  ;;  %v7094_v40 = vld [vmem:[%s9258_s1 + $0x740] ss:$12 sps:$4 sm:$0xff]  }
  0xdb   : > { %v7097_v41 = vld [vmem:[%s9258_s1 + $0x814] ss:$12 sps:$4 sm:$0xff]  }
  0xdc   : > { %v730_v47 = vpop.f32.mrf.mxu1  ;;  %6502 = vmatpush3.bf16.msra.mxu0 %v7032_v44  ;;  %v7098_v44 = vld [vmem:[%s9258_s1 + $0x7e8] ss:$12 sps:$4 sm:$0xff]  }
  0xdd   : > { %2236 = vmatpush2.bf16.msra.mxu1 %v7028_v43  ;;  %6661 = vmatprep.subr.bf16.mxu0 %v7471_v48  ;;  %v7099_v47 = vld [vmem:[%s9258_s1 + $0x728] ss:$12 sps:$4 sm:$0xff]  }
  0xde   : > { %v731_v52 = vpop.f32.mrf.mxu1  ;;  %2237 = vmatprep.subr.bf16.mxu1 %v7037_v46  ;;  %v7095_v46 = vld [vmem:[%s9258_s1 + $0x810] ss:$12 sps:$4 sm:$0xff]  }
  0xdf   : > { %2332 = vmatmul.mubr.bf16.vlgmr.msra.gmra.mxu0 %v8195_v49  ;;  %v7104_v52 = vld [vmem:[%s9258_s1 + $0x710] ss:$12 sps:$4 sm:$0xff]  }
  0xe0   : > { %6662 = vmatpush3.bf16.msra.mxu0 %v7038_v51  ;;  %6665 = vmatprep.mubr.msk.bf16.mxu0 %vm7472_vm1, %v7471_v48  ;;  %v7100_v51 = vld [vmem:[%s9258_s1 + $0x7f8] ss:$12 sps:$4 sm:$0xff]  }
  0xe1   : > { %2238 = vmatpush2.bf16.msra.mxu1 %v7035_v50  ;;  %6663 = vmatprep.subr.bf16.mxu0 %v7471_v48  ;;  %v7103_v50 = vld [vmem:[%s9258_s1 + $0x7d0] ss:$12 sps:$4 sm:$0xff]  }
  0xe2   : > { %2239 = vmatprep.subr.bf16.mxu1 %v7041_v53  ;;  %v7107_v53 = vld [vmem:[%s9258_s1 + $0x7e4] ss:$12 sps:$4 sm:$0xff]  }
  0xe4   : > { %6664 = vmatpush3.bf16.msra.mxu0 %v7042_v55 }
  0xe5   : > { %2240 = vmatpush2.bf16.msra.mxu1 %v7039_v54  ;;  %2761 = vmatprep.subr.bf16.mxu0 %v7048_v57  ;;  %v7108_v54 = vld [vmem:[%s9258_s1 + $0x7b8] ss:$12 sps:$4 sm:$0xff]  }
  0xe6   : > { %2241 = vmatprep.subr.bf16.mxu1 %v7045_v56  ;;  %v7105_v56 = vld [vmem:[%s9258_s1 + $0x7e0] ss:$12 sps:$4 sm:$0xff]   ;;  %v7109_v57 = vld [vmem:[%s9258_s1 + $0x6f8] ss:$12 sps:$4 sm:$0xff]  }
  0xe7   : > { %6666 = vmatmul.mubr.msk.bf16.vlgmr.msra.gmra.mxu0 %vm647_vm0, %v8095_v14  ;;  %v7070_v14 = vld [vmem:[%s9258_s1 + $0x858] ss:$12 sps:$4 sm:$0xff]  }
  0xe8   : > { %2762 = vmatpush1.bf16.msra.mxu0 %v7046_v59  ;;  %2793 = vmatprep.mubr.bf16.mxu0 %v8251_v3  ;;  %v7112_v59 = vld [vmem:[%s9258_s1 + $0x7cc] ss:$12 sps:$4 sm:$0xff]  }
  0xe9   : > { %2242 = vmatpush2.bf16.msra.mxu1 %v7043_v58  ;;  %2763 = vmatprep.subr.bf16.mxu0 %v7054_v61  ;;  %v7113_v61 = vld [vmem:[%s9258_s1 + $0x7a0] ss:$12 sps:$4 sm:$0xff]  }
  0xea   : > { %2243 = vmatprep.subr.bf16.mxu1 %v7051_v60 }
  0xec   : > { %2764 = vmatpush1.bf16.msra.mxu0 %v7052_v0 }
  0xed   : > { %2244 = vmatpush2.bf16.msra.mxu1 %v7049_v63  ;;  %2765 = vmatprep.subr.bf16.mxu0 %v7060_v4 }
  0xee   : > { %2245 = vmatprep.subr.bf16.mxu1 %v7057_v1  ;;  %v7114_v1 = vld [vmem:[%s9258_s1 + $0x6e0] ss:$12 sps:$4 sm:$0xff]  }
  0xf0   : > { %2766 = vmatpush1.bf16.msra.mxu0 %v7058_v6  ;;  %v7119_v6 = vld [vmem:[%s9258_s1 + $0x6c8] ss:$12 sps:$4 sm:$0xff]  }
  0xf1   : > { %2246 = vmatpush2.bf16.msra.mxu1 %v7055_v5  ;;  %2767 = vmatprep.subr.bf16.mxu0 %v7066_v8  ;;  %v7115_v5 = vld [vmem:[%s9258_s1 + $0x7b0] ss:$12 sps:$4 sm:$0xff]  }
  0xf2   : > { %2247 = vmatprep.subr.bf16.mxu1 %v7063_v7  ;;  %v7124_v7 = vld [vmem:[%s9258_s1 + $0x79c] ss:$12 sps:$4 sm:$0xff]  }
  0xf3   : > { %v8415_v8 = vld [vmem:[%s7560_s22 + $0x78] sm:$0x77] }
  0xf4   : > { %2768 = vmatpush1.bf16.msra.mxu0 %v7064_v10  ;;  %v7122_v10 = vld [vmem:[%s9258_s1 + $0x798] ss:$12 sps:$4 sm:$0xff]  }
  0xf5   : > { %2248 = vmatpush2.bf16.msra.mxu1 %v7061_v9  ;;  %2769 = vmatprep.subr.bf16.mxu0 %v7069_v11  ;;  %v5817_v9 = vcombine.low %v8236_v62, %v8236_v62  ;;  %v7125_v11 = vld [vmem:[%s9258_s1 + $0x860] ss:$12 sps:$4 sm:$0xff]   ;;  %v7128_v62 = vld [vmem:[%s9258_s1 + $0x784] ss:$12 sps:$4 sm:$0xff]  }
  0xf6   : > { %2814 = vmatprep.subr.bf16.mxu1 %v7072_v12  ;;  %v5951_v12 = vcombine.high %v8415_v8, %v8415_v8 }
  0xf8   : > { %v6428_v17 = vpop.f32.mrf.mxu1  ;;  %2250 = vmatmul.mubr.bf16.vlgmr.msra.gmra.mxu1 %v8195_v49  ;;  %2770 = vmatpush1.bf16.msra.mxu0 %v7067_v13  ;;  %v7102_v49 = vld [vmem:[%s9258_s1 + $0x7fc] ss:$12 sps:$4 sm:$0xff]   ;;  %v7126_v13 = vld [vmem:[%s9258_s1 + $0x780] ss:$12 sps:$4 sm:$0xff]  }
  0xf9   : > { %2815 = vmatpush1.bf16.msra.mxu1 %v7070_v14  ;;  %2771 = vmatprep.subr.bf16.mxu0 %v7075_v15  ;;  %v7129_v14 = vld [vmem:[%s9258_s1 + $0x848] ss:$12 sps:$4 sm:$0xff]  }
  0xfa   : > { %v6429_v21 = vpop.f32.mrf.mxu1  ;;  %2816 = vmatprep.subr.bf16.mxu1 %v7078_v16  ;;  %2834 = vmatprep.mubr.bf16.mxu1 %v7470_v2  ;;  %v7132_v15 = vld [vmem:[%s9258_s1 + $0x91c] ss:$12 sps:$4 sm:$0xff]   ;;  %v7145_v16 = vld [vmem:[%s7560_s22 + $0x80] ss:$0 sps:$4 sm:$0x77]  }
  0xfb   : > { %v6430_v24 = vadd.f32 %v6429_v21, %v6428_v17  ;;  %v3019_v17 = vshll.u32 %v5951_v12, 16  ;;  %v7138_v21 = vld [vmem:[%s9258_s1 + $0x904] ss:$12 sps:$4 sm:$0xff]  }
  0xfc   : > { %v6431_v26 = vpop.f32.mrf.mxu1  ;;  %2772 = vmatpush1.bf16.msra.mxu0 %v7073_v18  ;;  %v7135_v18 = vld [vmem:[%s9258_s1 + $0xa0c] ss:$12 sps:$4 sm:$0xff]  }
  0xfd   : > { %2817 = vmatpush1.bf16.msra.mxu1 %v7076_v19  ;;  %2773 = vmatprep.subr.bf16.mxu0 %v7081_v20  ;;  %v7130_v19 = vld [vmem:[%s9258_s1 + $0x918] ss:$12 sps:$4 sm:$0xff]   ;;  %v7133_v20 = vld [vmem:[%s9258_s1 + $0xa08] ss:$12 sps:$4 sm:$0xff]  }
  0xfe   : > { %v6432_v29 = vpop.f32.mrf.mxu1  ;;  %6512 = vmatprep.subr.bf16.mxu1 %v7083_v23  ;;  %v3026_v23 = vshll.u32 %v7145_v16, 16  ;;  %v7141_v26 = vld [vmem:[%s9258_s1 + $0x9f4] ss:$12 sps:$4 sm:$0xff]  }
 0x100   : > { %v807_v31 = vpop.f32.mrf.mxu1  ;;  %5874 = vmatmul.mubr.msk.bf16.vlgmr.msra.gmra.mxu1 %vm647_vm0, %v8304_v22  ;;  %2774 = vmatpush1.bf16.msra.mxu0 %v7079_v25  ;;  %v3021_v25 = vrot.slane %v3019_v17, 1  ;;  %v3028_v29 = vrot.slane %v3026_v23, 1 }
 0x101   : > { %v8330_v34 = vadd.f32 %v6430_v24, %v807_v31  ;;  %6513 = vmatpush3.bf16.msra.mxu1 %v7084_v27  ;;  %2775 = vmatprep.subr.bf16.mxu0 %v7087_v28  ;;  %v3017_v24 = vshrl.u32 %v5951_v12, 16  ;;  %v7136_v27 = vld [vmem:[%s9258_s1 + $0x900] ss:$12 sps:$4 sm:$0xff]   ;;  %v3024_v28 = vshrl.u32 %v7145_v16, 16  ;;  %v7177_v16 = vld [vmem:[%s9258_s1 + $0x890] ss:$12 sps:$4 sm:$0xff]  }
 0x102   : > { %v6643_v36 = vpop.f32.mrf.mxu1  ;;  %6514 = vmatprep.subr.bf16.mxu1 %v7088_v30  ;;  %2875 = vmatprep.mubr.bf16.mxu1 %v8251_v3  ;;  %v7117_v3 = vld [vmem:[%s9258_s1 + $0x7b4] ss:$12 sps:$4 sm:$0xff]   ;;  %v7139_v30 = vld [vmem:[%s9258_s1 + $0x9f0] ss:$12 sps:$4 sm:$0xff]  }
 0x103   : > { %v3022_v31 = vor.u32 %v3021_v25, %v3017_v24  ;;  %v7147_v36 = vld [vmem:[%s9258_s1 + $0x920] ss:$12 sps:$4 sm:$0xff]   ;;  %v7182_v25 = vld [vmem:[%s9258_s1 + $0x878] ss:$12 sps:$4 sm:$0xff]  }
 0x104   : > { %v810_v39 = vpop.f32.mrf.mxu1  ;;  %2776 = vmatpush1.bf16.msra.mxu0 %v7085_v32  ;;  %v7144_v32 = vld [vmem:[%s9258_s1 + $0x8ec] ss:$12 sps:$4 sm:$0xff]  }
 0x105   : > { %6515 = vmatpush3.bf16.msra.mxu1 %v7089_v33  ;;  %2777 = vmatprep.subr.bf16.mxu0 %v7092_v35  ;;  %v7146_v33 = vld [vmem:[%s9258_s1 + $0x9e0] ss:$12 sps:$4 sm:$0xff]   ;;  %v8477_v35 = vor.u32 %v3028_v29, %v3024_v28 }
 0x106   : > { %v6644_v43 = vpop.f32.mrf.mxu1  ;;  %6516 = vmatprep.subr.bf16.mxu1 %v7093_v37  ;;  %v7150_v37 = vld [vmem:[%s9258_s1 + $0x8d4] ss:$12 sps:$4 sm:$0xff]  }
 0x107   : > { %v7155_v43 = vld [vmem:[%s9258_s1 + $0x8bc] ss:$12 sps:$4 sm:$0xff]   ;;  %v7178_v24 = vld [vmem:[%s9258_s1 + $0x9c0] ss:$12 sps:$4 sm:$0xff]  }
 0x108   : > { %2778 = vmatpush2.bf16.msra.mxu0 %v7090_v38  ;;  %v7151_v38 = vld [vmem:[%s9258_s1 + $0x9c8] ss:$12 sps:$4 sm:$0xff]  }
 0x109   : > { %6517 = vmatpush3.bf16.msra.mxu1 %v7094_v40  ;;  %2779 = vmatprep.subr.bf16.mxu0 %v7097_v41  ;;  %v7148_v40 = vld [vmem:[%s9258_s1 + $0x8d0] ss:$12 sps:$4 sm:$0xff]   ;;  %v7152_v41 = vld [vmem:[%s9258_s1 + $0x908] ss:$12 sps:$4 sm:$0xff]  }
 0x10a   : > { %6518 = vmatprep.subr.bf16.mxu1 %v7098_v44 }
 0x10c   : > { %2780 = vmatpush2.bf16.msra.mxu0 %v7095_v46  ;;  %v7156_v46 = vld [vmem:[%s9258_s1 + $0x9b0] ss:$12 sps:$4 sm:$0xff]  }
 0x10d   : > { %6519 = vmatpush3.bf16.msra.mxu1 %v7099_v47  ;;  %2781 = vmatprep.subr.bf16.mxu0 %v7102_v49 }
 0x10e   : > { %6520 = vmatprep.subr.bf16.mxu1 %v7103_v50  ;;  %v7153_v50 = vld [vmem:[%s9258_s1 + $0x8b8] ss:$12 sps:$4 sm:$0xff]  }
 0x10f   : > { %v685_v55 = vpop.f32.mrf.mxu0 }
 0x110   : > { %v8382_v58 = vadd.f32 %v8180_v42, %v685_v55  ;;  %2782 = vmatpush2.bf16.msra.mxu0 %v7100_v51  ;;  %v7110_v42 = vld [vmem:[%s9258_s1 + $0x7c8] ss:$12 sps:$4 sm:$0xff]   ;;  %v7157_v51 = vld [vmem:[%s9258_s1 + $0x8f0] ss:$12 sps:$4 sm:$0xff]   ;;  %v7161_v55 = vld [vmem:[%s9258_s1 + $0x998] ss:$12 sps:$4 sm:$0xff]  }
 0x111   : > { %6521 = vmatpush3.bf16.msra.mxu1 %v7104_v52  ;;  %v687_v60 = vpop.f32.mrf.mxu0  ;;  %2783 = vmatprep.subr.bf16.mxu0 %v7107_v53  ;;  %v7160_v53 = vld [vmem:[%s9258_s1 + $0x8a4] ss:$12 sps:$4 sm:$0xff]  }
 0x112   : > { %6522 = vmatprep.subr.bf16.mxu1 %v7108_v54  ;;  %v8391_v63 = vadd.f32 %v8188_v45, %v687_v60  ;;  %v7118_v45 = vld [vmem:[%s9258_s1 + $0x788] ss:$12 sps:$4 sm:$0xff]  }
 0x113   : > { %v689_v0 = vpop.f32.mrf.mxu0 }
 0x114   : > { %2784 = vmatpush2.bf16.msra.mxu0 %v7105_v56  ;;  %v7166_v0 = vld [vmem:[%s9258_s1 + $0x980] ss:$12 sps:$4 sm:$0xff]  }
 0x115   : > { %6523 = vmatpush3.bf16.msra.mxu1 %v7109_v57  ;;  %v690_v4 = vpop.f32.mrf.mxu0  ;;  %2785 = vmatprep.subr.bf16.mxu0 %v7112_v59  ;;  %v7158_v57 = vld [vmem:[%s9258_s1 + $0x8a0] ss:$12 sps:$4 sm:$0xff]  }
 0x116   : > { %6524 = vmatprep.subr.bf16.mxu1 %v7113_v61  ;;  %v7165_v61 = vld [vmem:[%s9258_s1 + $0x88c] ss:$12 sps:$4 sm:$0xff]  }
 0x118   : > { %2786 = vmatpush2.bf16.msra.mxu0 %v7110_v42 }
 0x119   : > { %6525 = vmatpush3.bf16.msra.mxu1 %v7114_v1  ;;  %2787 = vmatprep.subr.bf16.mxu0 %v7117_v3  ;;  %v7163_v1 = vld [vmem:[%s9258_s1 + $0x888] ss:$12 sps:$4 sm:$0xff]   ;;  %v7167_v3 = vld [vmem:[%s9258_s1 + $0x8c0] ss:$12 sps:$4 sm:$0xff]  }
 0x11a   : > { %6526 = vmatprep.subr.bf16.mxu1 %v7118_v45  ;;  %v7170_v45 = vld [vmem:[%s9258_s1 + $0x874] ss:$12 sps:$4 sm:$0xff]  }
 0x11c   : > { %2788 = vmatpush2.bf16.msra.mxu0 %v7115_v5  ;;  %v7171_v5 = vld [vmem:[%s9258_s1 + $0x968] ss:$12 sps:$4 sm:$0xff]  }
 0x11d   : > { %6527 = vmatpush3.bf16.msra.mxu1 %v7119_v6  ;;  %2789 = vmatprep.subr.bf16.mxu0 %v7124_v7  ;;  %v7168_v7 = vld [vmem:[%s9258_s1 + $0x870] ss:$12 sps:$4 sm:$0xff]  }
 0x11e   : > { %6669 = vmatprep.subr.bf16.mxu1 %v7471_v48 }
 0x120   : > { %2876 = vmatmul.mubr.bf16.vlgmr.msra.gmra.mxu1 %v5817_v9  ;;  %2790 = vmatpush2.bf16.msra.mxu0 %v7122_v10 }
 0x121   : > { %6670 = vmatpush3.bf16.msra.mxu1 %v7125_v11  ;;  %2791 = vmatprep.subr.bf16.mxu0 %v7128_v62  ;;  %v7172_v11 = vld [vmem:[%s9258_s1 + $0x8a8] ss:$12 sps:$4 sm:$0xff]  }
 0x122   : > { %6671 = vmatprep.subr.bf16.mxu1 %v7471_v48  ;;  %6673 = vmatprep.mubr.msk.bf16.mxu1 %vm7472_vm1, %v7471_v48  ;;  %v7175_v62 = vld [vmem:[%s9258_s1 + $0x9dc] ss:$12 sps:$4 sm:$0xff]  }
 0x124   : > { %2792 = vmatpush2.bf16.msra.mxu0 %v7126_v13  ;;  %v7176_v13 = vld [vmem:[%s9258_s1 + $0x950] ss:$12 sps:$4 sm:$0xff]  }
 0x125   : > { %6672 = vmatpush3.bf16.msra.mxu1 %v7129_v14  ;;  %3376 = vmatprep.subr.bf16.mxu0 %v7135_v18  ;;  %v7180_v18 = vld [vmem:[%s9258_s1 + $0x9c4] ss:$12 sps:$4 sm:$0xff]  }
 0x126   : > { %3323 = vmatprep.subr.bf16.mxu1 %v7132_v15 }
 0x127   : > { %2794 = vmatmul.mubr.bf16.vlgmr.msra.gmra.mxu0 %v5817_v9  ;;  %v5950_v9 = vcombine.low %v8415_v8, %v8415_v8 }
 0x128   : > { %6674 = vmatmul.mubr.msk.bf16.vlgmr.msra.gmra.mxu1 %vm647_vm0, %v8304_v22  ;;  %3377 = vmatpush1.bf16.msra.mxu0 %v7133_v20  ;;  %v7142_v22 = vld [vmem:[%s9258_s1 + $0x8e8] ss:$12 sps:$4 sm:$0xff]  }
 0x129   : > { %3324 = vmatpush1.bf16.msra.mxu1 %v7130_v19  ;;  %3378 = vmatprep.subr.bf16.mxu0 %v7141_v26  ;;  %v3012_v15 = vshll.u32 %v5950_v9, 16  ;;  %v3010_v20 = vshrl.u32 %v5950_v9, 16  ;;  %v7231_v9 = vld [vmem:[%s9258_s1 + $0xa3c] ss:$12 sps:$4 sm:$0xff]  }
 0x12a   : > { %3325 = vmatprep.subr.bf16.mxu1 %v7138_v21  ;;  %3396 = vmatprep.mubr.bf16.mxu0 %v7470_v2 }
 0x12b   : > { %3355 = vmatprep.mubr.bf16.mxu1 %v3022_v31  ;;  %v3014_v21 = vrot.slane %v3012_v15, 1  ;;  %v7239_v15 = vld [vmem:[%s9258_s1 + $0xab8] ss:$12 sps:$4 sm:$0xff]  }
 0x12c   : > { %3379 = vmatpush1.bf16.msra.mxu0 %v7139_v30  ;;  %v7185_v30 = vld [vmem:[%s9258_s1 + $0x9a8] ss:$12 sps:$4 sm:$0xff]  }
 0x12d   : > { %3326 = vmatpush1.bf16.msra.mxu1 %v7136_v27  ;;  %6537 = vmatprep.subr.bf16.mxu0 %v7146_v33  ;;  %v7187_v27 = vld [vmem:[%s9258_s1 + $0x9ac] ss:$12 sps:$4 sm:$0xff]  }
 0x12e   : > { %3327 = vmatprep.subr.bf16.mxu1 %v7144_v32  ;;  %v7188_v32 = vld [vmem:[%s9258_s1 + $0xa10] ss:$12 sps:$4 sm:$0xff]  }
 0x12f   : > { %v6453_v39 = vpop.f32.mrf.mxu0  ;;  %6007 = vmatmul.mubr.msk.bf16.vlgmr.msra.gmra.mxu0 %vm647_vm0, %v8477_v35 }
 0x130   : > { %6538 = vmatpush3.bf16.msra.mxu0 %v7147_v36  ;;  %3437 = vmatprep.mubr.bf16.mxu0 %v3022_v31  ;;  %v8585_v31 = vor.u32 %v3014_v21, %v3010_v20  ;;  %v7240_v20 = vld [vmem:[%s9258_s1 + $0xb88] ss:$12 sps:$4 sm:$0xff]   ;;  %v7244_v21 = vld [vmem:[%s9258_s1 + $0xaa0] ss:$12 sps:$4 sm:$0xff]  }
 0x131   : > { %3328 = vmatpush1.bf16.msra.mxu1 %v7142_v22  ;;  %v6454_v44 = vpop.f32.mrf.mxu0  ;;  %6539 = vmatprep.subr.bf16.mxu0 %v7151_v38  ;;  %v7191_v22 = vld [vmem:[%s9258_s1 + $0x994] ss:$12 sps:$4 sm:$0xff]   ;;  %v7192_v38 = vld [vmem:[%s9258_s1 + $0x9f8] ss:$12 sps:$4 sm:$0xff]  }
 0x132   : > { %3329 = vmatprep.subr.bf16.mxu1 %v7150_v37  ;;  %v6455_v47 = vadd.f32 %v6454_v44, %v6453_v39  ;;  %v7189_v37 = vld [vmem:[%s9258_s1 + $0x990] ss:$12 sps:$4 sm:$0xff]   ;;  %v7196_v44 = vld [vmem:[%s9258_s1 + $0xac8] ss:$12 sps:$4 sm:$0xff]  }
 0x133   : > { %v6456_v49 = vpop.f32.mrf.mxu0  ;;  %v7195_v39 = vld [vmem:[%s9258_s1 + $0x97c] ss:$12 sps:$4 sm:$0xff]  }
 0x134   : > { %6540 = vmatpush3.bf16.msra.mxu0 %v7152_v41  ;;  %v1231_v52 = vadd.f32 %v6455_v47, %v8330_v34  ;;  %v7162_v34 = vld [vmem:[%s9258_s1 + $0x8d8] ss:$12 sps:$4 sm:$0xff]   ;;  %v7204_v49 = vld [vmem:[%s9258_s1 + $0xab4] ss:$12 sps:$4 sm:$0xff]  }
 0x135   : > { %3330 = vmatpush1.bf16.msra.mxu1 %v7148_v40  ;;  %v6457_v54 = vpop.f32.mrf.mxu0  ;;  %6541 = vmatprep.subr.bf16.mxu0 %v7156_v46  ;;  %v7198_v41 = vld [vmem:[%s9258_s1 + $0xacc] ss:$12 sps:$4 sm:$0xff]   ;;  %v7201_v47 = vld [vmem:[%s9258_s1 + $0x964] ss:$12 sps:$4 sm:$0xff]  }
 0x136   : > { %3331 = vmatprep.subr.bf16.mxu1 %v7155_v43  ;;  %v7193_v43 = vld [vmem:[%s9258_s1 + $0x978] ss:$12 sps:$4 sm:$0xff]  }
 0x137   : > { %v1270_v56 = vpop.f32.mrf.mxu0 }
 0x138   : > { %v8518_v59 = vadd.f32 %v1270_v56, %v1231_v52  ;;  %6542 = vmatpush3.bf16.msra.mxu0 %v7157_v51  ;;  %v8627_v51 = vld [vmem:[%s7560_s22 + $0xc] sm:$0x33]  ;;  %v7205_v56 = vld [vmem:[%s9258_s1 + $0x948] ss:$12 sps:$4 sm:$0xff]  }
 0x139   : > { %3332 = vmatpush1.bf16.msra.mxu1 %v7153_v50  ;;  %v6651_v60 = vpop.f32.mrf.mxu0  ;;  %6543 = vmatprep.subr.bf16.mxu0 %v7161_v55  ;;  %v7199_v52 = vld [vmem:[%s9258_s1 + $0x960] ss:$12 sps:$4 sm:$0xff]   ;;  %v6084_v54 = vcombine.high %v8627_v51, %v8627_v51 }
 0x13a   : > { %3333 = vmatprep.subr.bf16.mxu1 %v7160_v53  ;;  %v7202_v53 = vld [vmem:[%s9258_s1 + $0xab0] ss:$12 sps:$4 sm:$0xff]   ;;  %v7207_v55 = vld [vmem:[%s9258_s1 + $0x94c] ss:$12 sps:$4 sm:$0xff]  }
 0x13b   : > { %v1273_v42 = vpop.f32.mrf.mxu0  ;;  %v7216_v60 = vld [vmem:[%s9258_s1 + $0xa84] ss:$12 sps:$4 sm:$0xff]  }
 0x13c   : > { %6544 = vmatpush3.bf16.msra.mxu0 %v7162_v34  ;;  %v7213_v34 = vld [vmem:[%s9258_s1 + $0x934] ss:$12 sps:$4 sm:$0xff]   ;;  %v7219_v42 = vld [vmem:[%s9258_s1 + $0xa6c] ss:$12 sps:$4 sm:$0xff]  }
 0x13d   : > { %3334 = vmatpush1.bf16.msra.mxu1 %v7158_v57  ;;  %v6652_v4 = vpop.f32.mrf.mxu0  ;;  %6545 = vmatprep.subr.bf16.mxu0 %v7166_v0  ;;  %v7208_v57 = vld [vmem:[%s9258_s1 + $0xa98] ss:$12 sps:$4 sm:$0xff]   ;;  %v7214_v0 = vld [vmem:[%s9258_s1 + $0xa80] ss:$12 sps:$4 sm:$0xff]  }
 0x13e   : > { %3335 = vmatprep.subr.bf16.mxu1 %v7165_v61  ;;  %v7211_v61 = vld [vmem:[%s9258_s1 + $0x930] ss:$12 sps:$4 sm:$0xff]   ;;  %v7220_v4 = vld [vmem:[%s9258_s1 + $0xbb8] ss:$12 sps:$4 sm:$0xff]  }
 0x140   : > { %v1148_v6 = vpop.f32.mrf.mxu1  ;;  %6546 = vmatpush3.bf16.msra.mxu0 %v7167_v3  ;;  %v7217_v3 = vld [vmem:[%s9258_s1 + $0xa68] ss:$12 sps:$4 sm:$0xff]  }
 0x141   : > { %v1149_v10 = vadd.f32 %v1148_v6, %v8382_v58  ;;  %3336 = vmatpush1.bf16.msra.mxu1 %v7163_v1  ;;  %6547 = vmatprep.subr.bf16.mxu0 %v7171_v5  ;;  %v7173_v58 = vld [vmem:[%s9258_s1 + $0x9d8] ss:$12 sps:$4 sm:$0xff]   ;;  %v7222_v1 = vld [vmem:[%s9258_s1 + $0xbbc] ss:$12 sps:$4 sm:$0xff]  }
 0x142   : > { %v1150_v12 = vpop.f32.mrf.mxu1  ;;  %3337 = vmatprep.subr.bf16.mxu1 %v7170_v45  ;;  %v7225_v45 = vld [vmem:[%s9258_s1 + $0xa54] ss:$12 sps:$4 sm:$0xff]   ;;  %v7228_v5 = vld [vmem:[%s9258_s1 + $0xba4] ss:$12 sps:$4 sm:$0xff]  }
 0x143   : > { %v1151_v8 = vadd.f32 %v1150_v12, %v8391_v63  ;;  %v7181_v63 = vld [vmem:[%s9258_s1 + $0x938] ss:$12 sps:$4 sm:$0xff]   ;;  %v7223_v6 = vld [vmem:[%s9258_s1 + $0xa50] ss:$12 sps:$4 sm:$0xff]  }
 0x144   : > { %v1152_v14 = vpop.f32.mrf.mxu1  ;;  %6548 = vmatpush3.bf16.msra.mxu0 %v7172_v11  ;;  %v8696_v11 = vld [vmem:[%s7560_s22 + $0x14] ss:$0 sps:$4 sm:$0x33]   ;;  %v7229_v12 = vld [vmem:[%s9258_s1 + $0xa38] ss:$12 sps:$4 sm:$0xff]  }
 0x145   : > { %3338 = vmatpush1.bf16.msra.mxu1 %v7168_v7  ;;  %6549 = vmatprep.subr.bf16.mxu0 %v7176_v13  ;;  %v7226_v7 = vld [vmem:[%s9258_s1 + $0xba0] ss:$12 sps:$4 sm:$0xff]   ;;  %v7237_v13 = vld [vmem:[%s9258_s1 + $0xa24] ss:$12 sps:$4 sm:$0xff]  }
 0x146   : > { %v1153_v17 = vpop.f32.mrf.mxu1  ;;  %3339 = vmatprep.subr.bf16.mxu1 %v7175_v62  ;;  %v7234_v62 = vld [vmem:[%s9258_s1 + $0xad0] ss:$12 sps:$4 sm:$0xff]   ;;  %v7235_v14 = vld [vmem:[%s9258_s1 + $0xa20] ss:$12 sps:$4 sm:$0xff]  }
 0x147   : > { %v7242_v17 = vld [vmem:[%s9258_s1 + $0xb8c] ss:$12 sps:$4 sm:$0xff]  }
 0x148   : > { %v1189_v19 = vpop.f32.mrf.mxu1  ;;  %6550 = vmatpush3.bf16.msra.mxu0 %v7177_v16 }
 0x149   : > { %v8569_v23 = vadd.f32 %v1189_v19, %v1149_v10  ;;  %3340 = vmatpush2.bf16.msra.mxu1 %v7173_v58  ;;  %6551 = vmatprep.subr.bf16.mxu0 %v7181_v63  ;;  %v7233_v10 = vld [vmem:[%s9258_s1 + $0xb90] ss:$12 sps:$4 sm:$0xff]  }
 0x14a   : > { %v1191_v26 = vpop.f32.mrf.mxu1  ;;  %3341 = vmatprep.subr.bf16.mxu1 %v7180_v18  ;;  %v7243_v18 = vld [vmem:[%s9258_s1 + $0xb60] ss:$12 sps:$4 sm:$0xff]  }
 0x14b   : > { %v8580_v28 = vadd.f32 %v1191_v26, %v1151_v8  ;;  %v7238_v8 = vld [vmem:[%s9258_s1 + $0xb78] ss:$12 sps:$4 sm:$0xff]   ;;  %v7248_v26 = vld [vmem:[%s9258_s1 + $0xb48] ss:$12 sps:$4 sm:$0xff]  }
 0x14c   : > { %v1193_v29 = vpop.f32.mrf.mxu1  ;;  %6552 = vmatpush3.bf16.msra.mxu0 %v7182_v25  ;;  %v7247_v25 = vld [vmem:[%s9258_s1 + $0xb74] ss:$12 sps:$4 sm:$0xff]  }
 0x14d   : > { %3342 = vmatpush2.bf16.msra.mxu1 %v7178_v24  ;;  %6677 = vmatprep.subr.bf16.mxu0 %v7471_v48 }
 0x14e   : > { %v1194_v33 = vpop.f32.mrf.mxu1  ;;  %3343 = vmatprep.subr.bf16.mxu1 %v7187_v27 }
 0x14f   : > { %3438 = vmatmul.mubr.bf16.vlgmr.msra.gmra.mxu0 %v8585_v31  ;;  %v7249_v33 = vld [vmem:[%s9258_s1 + $0xa88] ss:$12 sps:$4 sm:$0xff]  }
 0x150   : > { %v8594_v36 = vpop.f32.mrf.mxu1  ;;  %6678 = vmatpush3.bf16.msra.mxu0 %v7188_v32  ;;  %6681 = vmatprep.mubr.msk.bf16.mxu0 %vm7472_vm1, %v7471_v48 }
 0x151   : > { %3344 = vmatpush2.bf16.msra.mxu1 %v7185_v30  ;;  %6679 = vmatprep.subr.bf16.mxu0 %v7471_v48  ;;  %v7245_v30 = vld [vmem:[%s9258_s1 + $0xb70] ss:$12 sps:$4 sm:$0xff]  }
 0x152   : > { %v8606_v40 = vpop.f32.mrf.mxu1  ;;  %3345 = vmatprep.subr.bf16.mxu1 %v7191_v22 }
 0x154   : > { %v1752_v46 = vpop.f32.mrf.mxu1  ;;  %6680 = vmatpush3.bf16.msra.mxu0 %v7192_v38  ;;  %v7252_v38 = vld [vmem:[%s9258_s1 + $0xb5c] ss:$12 sps:$4 sm:$0xff]  }
 0x155   : > { %3346 = vmatpush2.bf16.msra.mxu1 %v7189_v37  ;;  %3868 = vmatprep.subr.bf16.mxu0 %v7198_v41 }
 0x156   : > { %v1753_v50 = vpop.f32.mrf.mxu1  ;;  %3347 = vmatprep.subr.bf16.mxu1 %v7195_v39  ;;  %v7253_v39 = vld [vmem:[%s9258_s1 + $0xb30] ss:$12 sps:$4 sm:$0xff]  }
 0x157   : > { %6682 = vmatmul.mubr.msk.bf16.vlgmr.msra.gmra.mxu0 %vm647_vm0, %v8477_v35  ;;  %v7210_v35 = vld [vmem:[%s9258_s1 + $0xa9c] ss:$12 sps:$4 sm:$0xff]  }
 0x158   : > { %3869 = vmatpush1.bf16.msra.mxu0 %v7196_v44  ;;  %3900 = vmatprep.mubr.bf16.mxu0 %v6084_v54 }
 0x159   : > { %3348 = vmatpush2.bf16.msra.mxu1 %v7193_v43  ;;  %3870 = vmatprep.subr.bf16.mxu0 %v7204_v49 }
 0x15a   : > { %3349 = vmatprep.subr.bf16.mxu1 %v7201_v47  ;;  %v7250_v47 = vld [vmem:[%s9258_s1 + $0xb58] ss:$12 sps:$4 sm:$0xff]  }
 0x15c   : > { %3871 = vmatpush1.bf16.msra.mxu0 %v7202_v53 }
 0x15d   : > { %3350 = vmatpush2.bf16.msra.mxu1 %v7199_v52  ;;  %3872 = vmatprep.subr.bf16.mxu0 %v7210_v35  ;;  %v7258_v52 = vld [vmem:[%s9258_s1 + $0xb18] ss:$12 sps:$4 sm:$0xff]  }
 0x15e   : > { %3351 = vmatprep.subr.bf16.mxu1 %v7207_v55  ;;  %v7262_v55 = vld [vmem:[%s9258_s1 + $0xb2c] ss:$12 sps:$4 sm:$0xff]  }
 0x160   : > { %3873 = vmatpush1.bf16.msra.mxu0 %v7208_v57 }
 0x161   : > { %3352 = vmatpush2.bf16.msra.mxu1 %v7205_v56  ;;  %3874 = vmatprep.subr.bf16.mxu0 %v7216_v60  ;;  %v7263_v56 = vld [vmem:[%s9258_s1 + $0xb00] ss:$12 sps:$4 sm:$0xff]  }
 0x162   : > { %3353 = vmatprep.subr.bf16.mxu1 %v7213_v34  ;;  %v7260_v34 = vld [vmem:[%s9258_s1 + $0xb28] ss:$12 sps:$4 sm:$0xff]   ;;  %v7264_v60 = vld [vmem:[%s9258_s1 + $0xa40] ss:$12 sps:$4 sm:$0xff]  }
 0x164   : > { %3875 = vmatpush1.bf16.msra.mxu0 %v7214_v0 }
 0x165   : > { %3354 = vmatpush2.bf16.msra.mxu1 %v7211_v61  ;;  %3876 = vmatprep.subr.bf16.mxu0 %v7219_v42  ;;  %v7267_v61 = vld [vmem:[%s9258_s1 + $0xb14] ss:$12 sps:$4 sm:$0xff]  }
 0x166   : > { %3921 = vmatprep.subr.bf16.mxu1 %v7222_v1  ;;  %v7268_v42 = vld [vmem:[%s9258_s1 + $0xae8] ss:$12 sps:$4 sm:$0xff]   ;;  %v7265_v1 = vld [vmem:[%s9258_s1 + $0xb10] ss:$12 sps:$4 sm:$0xff]  }
 0x168   : > { %3356 = vmatmul.mubr.bf16.vlgmr.msra.gmra.mxu1 %v8585_v31  ;;  %3877 = vmatpush1.bf16.msra.mxu0 %v7217_v3  ;;  %v7269_v3 = vld [vmem:[%s9258_s1 + $0xa28] ss:$12 sps:$4 sm:$0xff]  }
 0x169   : > { %3922 = vmatpush1.bf16.msra.mxu1 %v7220_v4  ;;  %3878 = vmatprep.subr.bf16.mxu0 %v7225_v45  ;;  %v7274_v4 = vld [vmem:[%s9258_s1 + $0xafc] ss:$12 sps:$4 sm:$0xff]   ;;  %v6083_v45 = vcombine.low %v8627_v51, %v8627_v51  ;;  %v7276_v51 = vld [vmem:[%s9258_s1 + $0xae0] ss:$12 sps:$4 sm:$0xff]  }
 0x16a   : > { %3923 = vmatprep.subr.bf16.mxu1 %v7228_v5  ;;  %3941 = vmatprep.mubr.bf16.mxu1 %v7470_v2  ;;  %v7272_v5 = vld [vmem:[%s9258_s1 + $0xaf8] ss:$12 sps:$4 sm:$0xff]  }
 0x16c   : > { %3879 = vmatpush1.bf16.msra.mxu0 %v7223_v6  ;;  %v7275_v6 = vld [vmem:[%s9258_s1 + $0xbc0] ss:$12 sps:$4 sm:$0xff]  }
 0x16d   : > { %3924 = vmatpush1.bf16.msra.mxu1 %v7226_v7  ;;  %3880 = vmatprep.subr.bf16.mxu0 %v7231_v9  ;;  %v7278_v7 = vld [vmem:[%s9258_s1 + $0xae4] ss:$12 sps:$4 sm:$0xff]   ;;  %v7279_v9 = vld [vmem:[%s9258_s1 + $0xba8] ss:$12 sps:$4 sm:$0xff]  }
 0x16e   : > { %6562 = vmatprep.subr.bf16.mxu1 %v7233_v10  ;;  %v7282_v10 = vld [vmem:[%s9258_s1 + $0xc7c] ss:$12 sps:$4 sm:$0xff]  }
 0x170   : > { %v6478_v58 = vpop.f32.mrf.mxu1  ;;  %6140 = vmatmul.mubr.msk.bf16.vlgmr.msra.gmra.mxu1 %vm647_vm0, %v8696_v11  ;;  %3881 = vmatpush1.bf16.msra.mxu0 %v7229_v12  ;;  %v7285_v12 = vld [vmem:[%s9258_s1 + $0xd6c] ss:$12 sps:$4 sm:$0xff]  }
 0x171   : > { %6563 = vmatpush3.bf16.msra.mxu1 %v7234_v62  ;;  %3882 = vmatprep.subr.bf16.mxu0 %v7237_v13  ;;  %v7280_v62 = vld [vmem:[%s9258_s1 + $0xc78] ss:$12 sps:$4 sm:$0xff]   ;;  %v7283_v13 = vld [vmem:[%s9258_s1 + $0xd68] ss:$12 sps:$4 sm:$0xff]  }
 0x172   : > { %v6479_v16 = vpop.f32.mrf.mxu1  ;;  %6564 = vmatprep.subr.bf16.mxu1 %v7238_v8  ;;  %3982 = vmatprep.mubr.bf16.mxu1 %v6084_v54  ;;  %v7259_v54 = vld [vmem:[%s9258_s1 + $0xa58] ss:$12 sps:$4 sm:$0xff]  }
 0x173   : > { %v6480_v63 = vadd.f32 %v6479_v16, %v6478_v58  ;;  %v7288_v8 = vld [vmem:[%s9258_s1 + $0xc64] ss:$12 sps:$4 sm:$0xff]   ;;  %v7291_v58 = vld [vmem:[%s9258_s1 + $0xd54] ss:$12 sps:$4 sm:$0xff]  }
 0x174   : > { %v6481_v19 = vpop.f32.mrf.mxu1  ;;  %3883 = vmatpush1.bf16.msra.mxu0 %v7235_v14  ;;  %v8848_v14 = vld [vmem:[%s7560_s22 + $0x48] sm:$0x33]  ;;  %v7289_v16 = vld [vmem:[%s9258_s1 + $0xd50] ss:$12 sps:$4 sm:$0xff]  }
 0x175   : > { %6565 = vmatpush3.bf16.msra.mxu1 %v7239_v15  ;;  %3884 = vmatprep.subr.bf16.mxu0 %v7242_v17  ;;  %v7286_v15 = vld [vmem:[%s9258_s1 + $0xc60] ss:$12 sps:$4 sm:$0xff]   ;;  %v6218_v17 = vcombine.high %v8848_v14, %v8848_v14  ;;  %v7292_v19 = vld [vmem:[%s9258_s1 + $0xc48] ss:$12 sps:$4 sm:$0xff]  }
 0x176   : > { %v6482_v24 = vpop.f32.mrf.mxu1  ;;  %6566 = vmatprep.subr.bf16.mxu1 %v7243_v18  ;;  %v7294_v18 = vld [vmem:[%s9258_s1 + $0xc4c] ss:$12 sps:$4 sm:$0xff]  }
 0x177   : > { %v1707_v27 = vpop.f32.mrf.mxu0  ;;  %v7301_v24 = vld [vmem:[%s9258_s1 + $0xd28] ss:$12 sps:$4 sm:$0xff]  }
 0x178   : > { %v1829_v29 = vpop.f32.mrf.mxu1  ;;  %v1749_v31 = vadd.f32 %v8594_v36, %v1707_v27  ;;  %3885 = vmatpush2.bf16.msra.mxu0 %v7240_v20  ;;  %v7297_v20 = vld [vmem:[%s9258_s1 + $0xc80] ss:$12 sps:$4 sm:$0xff]   ;;  %v7302_v27 = vld [vmem:[%s9258_s1 + $0xc68] ss:$12 sps:$4 sm:$0xff]  }
 0x179   : > { %v1830_v32 = vadd.f32 %v6480_v63, %v1829_v29  ;;  %6567 = vmatpush3.bf16.msra.mxu1 %v7244_v21  ;;  %v1709_v22 = vpop.f32.mrf.mxu0  ;;  %3886 = vmatprep.subr.bf16.mxu0 %v7247_v25  ;;  %v8868_v63 = vld [vmem:[%s7560_s22 + $0x50] ss:$0 sps:$4 sm:$0x33]   ;;  %v7300_v21 = vld [vmem:[%s9258_s1 + $0xc34] ss:$12 sps:$4 sm:$0xff]  }
 0x17a   : > { %v6659_v37 = vpop.f32.mrf.mxu1  ;;  %6568 = vmatprep.subr.bf16.mxu1 %v7248_v26  ;;  %v8750_v36 = vadd.f32 %v1749_v31, %v8569_v23  ;;  %v1751_v43 = vadd.f32 %v8606_v40, %v1709_v22  ;;  %v7254_v23 = vld [vmem:[%s9258_s1 + $0xa70] ss:$12 sps:$4 sm:$0xff]   ;;  %v7303_v22 = vld [vmem:[%s9258_s1 + $0xc18] ss:$12 sps:$4 sm:$0xff]  }
 0x17b   : > { %v8753_v41 = vadd.f32 %v1830_v32, %v8518_v59  ;;  %v1711_v44 = vpop.f32.mrf.mxu0  ;;  %v7257_v59 = vld [vmem:[%s9258_s1 + $0xb44] ss:$12 sps:$4 sm:$0xff]  }
 0x17c   : > { %v1832_v46 = vpop.f32.mrf.mxu1  ;;  %v8760_v49 = vadd.f32 %v1751_v43, %v8580_v28  ;;  %3887 = vmatpush2.bf16.msra.mxu0 %v7245_v30  ;;  %v7255_v28 = vld [vmem:[%s9258_s1 + $0xb40] ss:$12 sps:$4 sm:$0xff]   ;;  %v7298_v26 = vld [vmem:[%s9258_s1 + $0xc30] ss:$12 sps:$4 sm:$0xff]   ;;  %v7311_v43 = vld [vmem:[%s9258_s1 + $0xcf8] ss:$12 sps:$4 sm:$0xff]  }
 0x17d   : > { %6569 = vmatpush3.bf16.msra.mxu1 %v7249_v33  ;;  %v1712_v40 = vpop.f32.mrf.mxu0  ;;  %3888 = vmatprep.subr.bf16.mxu0 %v7252_v38  ;;  %v7305_v30 = vld [vmem:[%s9258_s1 + $0xc1c] ss:$12 sps:$4 sm:$0xff]  }
 0x17e   : > { %v6660_v50 = vpop.f32.mrf.mxu1  ;;  %6570 = vmatprep.subr.bf16.mxu1 %v7253_v39  ;;  %v7306_v31 = vld [vmem:[%s9258_s1 + $0xd10] ss:$12 sps:$4 sm:$0xff]   ;;  %v7315_v40 = vld [vmem:[%s9258_s1 + $0xbec] ss:$12 sps:$4 sm:$0xff]  }
 0x17f   : > { %v8774_v53 = vpop.f32.mrf.mxu0  ;;  %v7307_v37 = vld [vmem:[%s9258_s1 + $0xc50] ss:$12 sps:$4 sm:$0xff]   ;;  %v7316_v50 = vld [vmem:[%s9258_s1 + $0xce0] ss:$12 sps:$4 sm:$0xff]  }
 0x180   : > { %3889 = vmatpush2.bf16.msra.mxu0 %v7250_v47  ;;  %v7310_v39 = vld [vmem:[%s9258_s1 + $0xc04] ss:$12 sps:$4 sm:$0xff]   ;;  %v7308_v47 = vld [vmem:[%s9258_s1 + $0xc00] ss:$12 sps:$4 sm:$0xff]  }
 0x181   : > { %6571 = vmatpush3.bf16.msra.mxu1 %v7254_v23  ;;  %v8782_v35 = vpop.f32.mrf.mxu0  ;;  %3890 = vmatprep.subr.bf16.mxu0 %v7257_v59  ;;  %v7312_v23 = vld [vmem:[%s9258_s1 + $0xc38] ss:$12 sps:$4 sm:$0xff]  }
 0x182   : > { %6572 = vmatprep.subr.bf16.mxu1 %v7258_v52 }
 0x183   : > { %v2296_v57 = vpop.f32.mrf.mxu0 }
 0x184   : > { %3891 = vmatpush2.bf16.msra.mxu0 %v7255_v28  ;;  %v7320_v57 = vld [vmem:[%s9258_s1 + $0xbd4] ss:$12 sps:$4 sm:$0xff]  }
 0x185   : > { %6573 = vmatpush3.bf16.msra.mxu1 %v7259_v54  ;;  %v2297_v0 = vpop.f32.mrf.mxu0  ;;  %3892 = vmatprep.subr.bf16.mxu0 %v7262_v55  ;;  %v7313_v54 = vld [vmem:[%s9258_s1 + $0xbe8] ss:$12 sps:$4 sm:$0xff]   ;;  %v7317_v55 = vld [vmem:[%s9258_s1 + $0xc20] ss:$12 sps:$4 sm:$0xff]  }
 0x186   : > { %6574 = vmatprep.subr.bf16.mxu1 %v7263_v56  ;;  %v7326_v0 = vld [vmem:[%s9258_s1 + $0xcb0] ss:$12 sps:$4 sm:$0xff]  }
 0x188   : > { %3893 = vmatpush2.bf16.msra.mxu0 %v7260_v34  ;;  %v7318_v34 = vld [vmem:[%s9258_s1 + $0xbd0] ss:$12 sps:$4 sm:$0xff]  }
 0x189   : > { %6575 = vmatpush3.bf16.msra.mxu1 %v7264_v60  ;;  %3894 = vmatprep.subr.bf16.mxu0 %v7267_v61  ;;  %v7322_v60 = vld [vmem:[%s9258_s1 + $0xc08] ss:$12 sps:$4 sm:$0xff]  }
 0x18a   : > { %6576 = vmatprep.subr.bf16.mxu1 %v7268_v42  ;;  %v7325_v61 = vld [vmem:[%s9258_s1 + $0xd3c] ss:$12 sps:$4 sm:$0xff]   ;;  %v7323_v42 = vld [vmem:[%s9258_s1 + $0xd38] ss:$12 sps:$4 sm:$0xff]  }
 0x18c   : > { %3895 = vmatpush2.bf16.msra.mxu0 %v7265_v1  ;;  %v7327_v1 = vld [vmem:[%s9258_s1 + $0xbf0] ss:$12 sps:$4 sm:$0xff]  }
 0x18d   : > { %6577 = vmatpush3.bf16.msra.mxu1 %v7269_v3  ;;  %3896 = vmatprep.subr.bf16.mxu0 %v7274_v4  ;;  %v7330_v3 = vld [vmem:[%s9258_s1 + $0xd24] ss:$12 sps:$4 sm:$0xff]  }
 0x18e   : > { %6685 = vmatprep.subr.bf16.mxu1 %v7471_v48  ;;  %v7331_v4 = vld [vmem:[%s9258_s1 + $0xc98] ss:$12 sps:$4 sm:$0xff]  }
 0x190   : > { %3983 = vmatmul.mubr.bf16.vlgmr.msra.gmra.mxu1 %v6083_v45  ;;  %3897 = vmatpush2.bf16.msra.mxu0 %v7272_v5 }
 0x191   : > { %6686 = vmatpush3.bf16.msra.mxu1 %v7275_v6  ;;  %3898 = vmatprep.subr.bf16.mxu0 %v7278_v7  ;;  %v7328_v6 = vld [vmem:[%s9258_s1 + $0xd20] ss:$12 sps:$4 sm:$0xff]   ;;  %v7332_v7 = vld [vmem:[%s9258_s1 + $0xbd8] ss:$12 sps:$4 sm:$0xff]  }
 0x192   : > { %6687 = vmatprep.subr.bf16.mxu1 %v7471_v48  ;;  %6689 = vmatprep.mubr.msk.bf16.mxu1 %vm7472_vm1, %v7471_v48 }
 0x194   : > { %3899 = vmatpush2.bf16.msra.mxu0 %v7276_v51 }
 0x195   : > { %6688 = vmatpush3.bf16.msra.mxu1 %v7279_v9  ;;  %4465 = vmatprep.subr.bf16.mxu0 %v7285_v12  ;;  %v7337_v9 = vld [vmem:[%s9258_s1 + $0xd0c] ss:$12 sps:$4 sm:$0xff]  }
 0x196   : > { %4412 = vmatprep.subr.bf16.mxu1 %v7282_v10  ;;  %v8970_v10 = vld [vmem:[%s7560_s22 + $0xc] sm:$0x77] }
 0x197   : > { %3901 = vmatmul.mubr.bf16.vlgmr.msra.gmra.mxu0 %v6083_v45 }
 0x198   : > { %6690 = vmatmul.mubr.msk.bf16.vlgmr.msra.gmra.mxu1 %vm647_vm0, %v8696_v11  ;;  %4466 = vmatpush1.bf16.msra.mxu0 %v7283_v13  ;;  %v7296_v11 = vld [vmem:[%s9258_s1 + $0xd40] ss:$12 sps:$4 sm:$0xff]   ;;  %v8978_v13 = vcombine.low %v8848_v14, %v8848_v14 }
 0x199   : > { %4413 = vmatpush1.bf16.msra.mxu1 %v7280_v62  ;;  %4467 = vmatprep.subr.bf16.mxu0 %v7291_v58  ;;  %v7335_v58 = vld [vmem:[%s9258_s1 + $0xd08] ss:$12 sps:$4 sm:$0xff]  }
 0x19a   : > { %4414 = vmatprep.subr.bf16.mxu1 %v7288_v8  ;;  %4485 = vmatprep.mubr.bf16.mxu0 %v7470_v2 }
 0x19b   : > { %4444 = vmatprep.mubr.bf16.mxu1 %v6218_v17 }
 0x19c   : > { %4468 = vmatpush1.bf16.msra.mxu0 %v7289_v16  ;;  %v7339_v16 = vld [vmem:[%s9258_s1 + $0xcf0] ss:$12 sps:$4 sm:$0xff]  }
 0x19d   : > { %4415 = vmatpush1.bf16.msra.mxu1 %v7286_v15  ;;  %6587 = vmatprep.subr.bf16.mxu0 %v7296_v11 }
 0x19e   : > { %4416 = vmatprep.subr.bf16.mxu1 %v7294_v18 }
 0x19f   : > { %v6503_v25 = vpop.f32.mrf.mxu0  ;;  %6274 = vmatmul.mubr.msk.bf16.vlgmr.msra.gmra.mxu0 %vm647_vm0, %v8868_v63 }
 0x1a0   : > { %6588 = vmatpush3.bf16.msra.mxu0 %v7297_v20  ;;  %4526 = vmatprep.mubr.bf16.mxu0 %v6218_v17  ;;  %v7342_v17 = vld [vmem:[%s9258_s1 + $0xd58] ss:$12 sps:$4 sm:$0xff]  }
 0x1a1   : > { %4417 = vmatpush1.bf16.msra.mxu1 %v7292_v19  ;;  %v6504_v29 = vpop.f32.mrf.mxu0  ;;  %6589 = vmatprep.subr.bf16.mxu0 %v7301_v24  ;;  %v7345_v19 = vld [vmem:[%s9258_s1 + $0xcdc] ss:$12 sps:$4 sm:$0xff]   ;;  %v7348_v20 = vld [vmem:[%s9258_s1 + $0xe2c] ss:$12 sps:$4 sm:$0xff]  }
 0x1a2   : > { %4418 = vmatprep.subr.bf16.mxu1 %v7300_v21  ;;  %v6505_v32 = vadd.f32 %v6504_v29, %v6503_v25  ;;  %v7343_v24 = vld [vmem:[%s9258_s1 + $0xcd8] ss:$12 sps:$4 sm:$0xff]   ;;  %v7346_v25 = vld [vmem:[%s9258_s1 + $0xe28] ss:$12 sps:$4 sm:$0xff]  }
 0x1a3   : > { %v6506_v33 = vpop.f32.mrf.mxu0 }
 0x1a4   : > { %6590 = vmatpush3.bf16.msra.mxu0 %v7302_v27  ;;  %v7352_v33 = vld [vmem:[%s9258_s1 + $0xe10] ss:$12 sps:$4 sm:$0xff]  }
 0x1a5   : > { %4419 = vmatpush1.bf16.msra.mxu1 %v7298_v26  ;;  %v6507_v38 = vpop.f32.mrf.mxu0  ;;  %6591 = vmatprep.subr.bf16.mxu0 %v7306_v31  ;;  %v7354_v31 = vld [vmem:[%s9258_s1 + $0xe14] ss:$12 sps:$4 sm:$0xff]  }
 0x1a6   : > { %4420 = vmatprep.subr.bf16.mxu1 %v7305_v30  ;;  %v7351_v30 = vld [vmem:[%s9258_s1 + $0xcc4] ss:$12 sps:$4 sm:$0xff]   ;;  %v7355_v38 = vld [vmem:[%s9258_s1 + $0xca8] ss:$12 sps:$4 sm:$0xff]  }
 0x1a7   : > { %v2373_v44 = vpop.f32.mrf.mxu0 }
 0x1a8   : > { %v2374_v46 = vadd.f32 %v6505_v32, %v2373_v44  ;;  %6592 = vmatpush3.bf16.msra.mxu0 %v7307_v37  ;;  %v7349_v32 = vld [vmem:[%s9258_s1 + $0xcc0] ss:$12 sps:$4 sm:$0xff]   ;;  %v7366_v44 = vld [vmem:[%s9258_s1 + $0xde4] ss:$12 sps:$4 sm:$0xff]  }
 0x1a9   : > { %4421 = vmatpush1.bf16.msra.mxu1 %v7303_v22  ;;  %v6667_v59 = vpop.f32.mrf.mxu0  ;;  %6593 = vmatprep.subr.bf16.mxu0 %v7311_v43  ;;  %v7357_v37 = vld [vmem:[%s9258_s1 + $0xcac] ss:$12 sps:$4 sm:$0xff]   ;;  %v7363_v43 = vld [vmem:[%s9258_s1 + $0xc94] ss:$12 sps:$4 sm:$0xff]  }
 0x1aa   : > { %4422 = vmatprep.subr.bf16.mxu1 %v7310_v39  ;;  %v8921_v52 = vadd.f32 %v2374_v46, %v8753_v41  ;;  %v7321_v41 = vld [vmem:[%s9258_s1 + $0xcc8] ss:$12 sps:$4 sm:$0xff]   ;;  %v7358_v39 = vld [vmem:[%s9258_s1 + $0xdf8] ss:$12 sps:$4 sm:$0xff]  }
 0x1ab   : > { %v2376_v28 = vpop.f32.mrf.mxu0  ;;  %v7382_v46 = vld [vmem:[%s7560_s22 + $0x14] ss:$0 sps:$4 sm:$0x77]   ;;  %v7369_v59 = vld [vmem:[%s9258_s1 + $0xdcc] ss:$12 sps:$4 sm:$0xff]  }
 0x1ac   : > { %6594 = vmatpush3.bf16.msra.mxu0 %v7312_v23  ;;  %v7364_v23 = vld [vmem:[%s9258_s1 + $0xde0] ss:$12 sps:$4 sm:$0xff]   ;;  %v7367_v28 = vld [vmem:[%s9258_s1 + $0xdc8] ss:$12 sps:$4 sm:$0xff]  }
 0x1ad   : > { %4423 = vmatpush1.bf16.msra.mxu1 %v7308_v47  ;;  %v6668_v56 = vpop.f32.mrf.mxu0  ;;  %6595 = vmatprep.subr.bf16.mxu0 %v7316_v50  ;;  %v7361_v47 = vld [vmem:[%s9258_s1 + $0xc90] ss:$12 sps:$4 sm:$0xff]   ;;  %v4677_v50 = vshll.u32 %v7382_v46, 16 }
 0x1ae   : > { %4424 = vmatprep.subr.bf16.mxu1 %v7315_v40  ;;  %v7372_v40 = vld [vmem:[%s9258_s1 + $0xf1c] ss:$12 sps:$4 sm:$0xff]   ;;  %v7378_v56 = vld [vmem:[%s9258_s1 + $0xf04] ss:$12 sps:$4 sm:$0xff]  }
 0x1b0   : > { %6596 = vmatpush3.bf16.msra.mxu0 %v7317_v55  ;;  %v7375_v55 = vld [vmem:[%s9258_s1 + $0xdb4] ss:$12 sps:$4 sm:$0xff]  }
 0x1b1   : > { %4425 = vmatpush1.bf16.msra.mxu1 %v7313_v54  ;;  %6597 = vmatprep.subr.bf16.mxu0 %v7321_v41  ;;  %v7370_v54 = vld [vmem:[%s9258_s1 + $0xf18] ss:$12 sps:$4 sm:$0xff]   ;;  %v4679_v41 = vrot.slane %v4677_v50, 1  ;;  %v7417_v50 = vld [vmem:[%s9258_s1 + $0xe74] ss:$12 sps:$4 sm:$0xff]  }
 0x1b2   : > { %4426 = vmatprep.subr.bf16.mxu1 %v7320_v57  ;;  %v4675_v57 = vshrl.u32 %v7382_v46, 16 }
 0x1b4   : > { %6598 = vmatpush3.bf16.msra.mxu0 %v7322_v60  ;;  %v7376_v60 = vld [vmem:[%s9258_s1 + $0xf00] ss:$12 sps:$4 sm:$0xff]  }
 0x1b5   : > { %4427 = vmatpush1.bf16.msra.mxu1 %v7318_v34  ;;  %6599 = vmatprep.subr.bf16.mxu0 %v7326_v0  ;;  %v7373_v34 = vld [vmem:[%s9258_s1 + $0xdb0] ss:$12 sps:$4 sm:$0xff]  }
 0x1b6   : > { %4428 = vmatprep.subr.bf16.mxu1 %v7325_v61  ;;  %v7381_v61 = vld [vmem:[%s9258_s1 + $0xd9c] ss:$12 sps:$4 sm:$0xff]  }
 0x1b7   : > { %v7383_v0 = vld [vmem:[%s9258_s1 + $0xef0] ss:$12 sps:$4 sm:$0xff]  }
 0x1b8   : > { %v2251_v45 = vpop.f32.mrf.mxu1  ;;  %6600 = vmatpush3.bf16.msra.mxu0 %v7327_v1  ;;  %v7379_v1 = vld [vmem:[%s9258_s1 + $0xd98] ss:$12 sps:$4 sm:$0xff]  }
 0x1b9   : > { %v2293_v5 = vadd.f32 %v8774_v53, %v2251_v45  ;;  %4429 = vmatpush2.bf16.msra.mxu1 %v7323_v42  ;;  %6601 = vmatprep.subr.bf16.mxu0 %v7331_v4  ;;  %v9095_v42 = vor.u32 %v4679_v41, %v4675_v57  ;;  %v7387_v4 = vld [vmem:[%s9258_s1 + $0xd84] ss:$12 sps:$4 sm:$0xff]   ;;  %v7419_v57 = vld [vmem:[%s9258_s1 + $0xd88] ss:$12 sps:$4 sm:$0xff]  }
 0x1ba   : > { %v2253_v51 = vpop.f32.mrf.mxu1  ;;  %4430 = vmatprep.subr.bf16.mxu1 %v7330_v3  ;;  %v7384_v3 = vld [vmem:[%s9258_s1 + $0xe30] ss:$12 sps:$4 sm:$0xff]  }
 0x1bb   : > { %v8973_v53 = vadd.f32 %v2293_v5, %v8750_v36  ;;  %v2295_v12 = vadd.f32 %v8782_v35, %v2253_v51  ;;  %v7338_v36 = vld [vmem:[%s9258_s1 + $0xd70] ss:$12 sps:$4 sm:$0xff]   ;;  %v6351_v35 = vcombine.high %v8970_v10, %v8970_v10  ;;  %v7385_v5 = vld [vmem:[%s9258_s1 + $0xd80] ss:$12 sps:$4 sm:$0xff]  }
 0x1bc   : > { %v2255_v62 = vpop.f32.mrf.mxu1  ;;  %6602 = vmatpush3.bf16.msra.mxu0 %v7332_v7  ;;  %v7392_v51 = vld [vmem:[%s9258_s1 + $0xeec] ss:$12 sps:$4 sm:$0xff]   ;;  %v7424_v41 = vld [vmem:[%s9258_s1 + $0xe5c] ss:$12 sps:$4 sm:$0xff]  }
 0x1bd   : > { %v8981_v8 = vadd.f32 %v2295_v12, %v8760_v49  ;;  %4431 = vmatpush2.bf16.msra.mxu1 %v7328_v6  ;;  %6693 = vmatprep.subr.bf16.mxu0 %v7471_v48  ;;  %v7341_v49 = vld [vmem:[%s9258_s1 + $0xcf4] ss:$12 sps:$4 sm:$0xff]   ;;  %v4670_v18 = vshll.u32 %v6351_v35, 16  ;;  %v4668_v26 = vshrl.u32 %v6351_v35, 16  ;;  %v7389_v6 = vld [vmem:[%s9258_s1 + $0xe18] ss:$12 sps:$4 sm:$0xff]  }
 0x1be   : > { %v2256_v15 = vpop.f32.mrf.mxu1  ;;  %4432 = vmatprep.subr.bf16.mxu1 %v7337_v9  ;;  %v7393_v9 = vld [vmem:[%s9258_s1 + $0xec0] ss:$12 sps:$4 sm:$0xff]  }
 0x1bf   : > { %4527 = vmatmul.mubr.bf16.vlgmr.msra.gmra.mxu0 %v8978_v13  ;;  %v4672_v27 = vrot.slane %v4670_v18, 1  ;;  %v7397_v35 = vld [vmem:[%s9258_s1 + $0xed4] ss:$12 sps:$4 sm:$0xff]  }
 0x1c0   : > { %v8995_v14 = vpop.f32.mrf.mxu1  ;;  %6694 = vmatpush3.bf16.msra.mxu0 %v7338_v36  ;;  %6697 = vmatprep.mubr.msk.bf16.mxu0 %vm7472_vm1, %v7471_v48  ;;  %v7398_v15 = vld [vmem:[%s9258_s1 + $0xea8] ss:$12 sps:$4 sm:$0xff]  }
 0x1c1   : > { %4433 = vmatpush2.bf16.msra.mxu1 %v7335_v58  ;;  %6695 = vmatprep.subr.bf16.mxu0 %v7471_v48  ;;  %v9035_v22 = vor.u32 %v4672_v27, %v4668_v26  ;;  %v7394_v58 = vld [vmem:[%s9258_s1 + $0xe00] ss:$12 sps:$4 sm:$0xff]  }
 0x1c2   : > { %v9004_v11 = vpop.f32.mrf.mxu1  ;;  %4434 = vmatprep.subr.bf16.mxu1 %v7341_v49 }
 0x1c4   : > { %v2840_v21 = vpop.f32.mrf.mxu1  ;;  %6696 = vmatpush3.bf16.msra.mxu0 %v7342_v17 }
 0x1c5   : > { %4435 = vmatpush2.bf16.msra.mxu1 %v7339_v16  ;;  %4974 = vmatprep.subr.bf16.mxu0 %v7348_v20  ;;  %v7399_v20 = vld [vmem:[%s9258_s1 + $0xde8] ss:$12 sps:$4 sm:$0xff]  }
 0x1c6   : > { %v2841_v29 = vpop.f32.mrf.mxu1  ;;  %4436 = vmatprep.subr.bf16.mxu1 %v7345_v19  ;;  %v7395_v19 = vld [vmem:[%s9258_s1 + $0xed0] ss:$12 sps:$4 sm:$0xff]  }
 0x1c7   : > { %6698 = vmatmul.mubr.msk.bf16.vlgmr.msra.gmra.mxu0 %vm647_vm0, %v8868_v63  ;;  %v7360_v63 = vld [vmem:[%s9258_s1 + $0xdfc] ss:$12 sps:$4 sm:$0xff]  }
 0x1c8   : > { %4975 = vmatpush1.bf16.msra.mxu0 %v7346_v25  ;;  %5006 = vmatprep.mubr.bf16.mxu0 %v9035_v22  ;;  %v7402_v25 = vld [vmem:[%s9258_s1 + $0xebc] ss:$12 sps:$4 sm:$0xff]  }
 0x1c9   : > { %4437 = vmatpush2.bf16.msra.mxu1 %v7343_v24  ;;  %4976 = vmatprep.subr.bf16.mxu0 %v7354_v31 }
 0x1ca   : > { %4438 = vmatprep.subr.bf16.mxu1 %v7351_v30 }
 0x1cc   : > { %4977 = vmatpush1.bf16.msra.mxu0 %v7352_v33  ;;  %v7400_v33 = vld [vmem:[%s9258_s1 + $0xeb8] ss:$12 sps:$4 sm:$0xff]  }
 0x1cd   : > { %4439 = vmatpush2.bf16.msra.mxu1 %v7349_v32  ;;  %4978 = vmatprep.subr.bf16.mxu0 %v7360_v63  ;;  %v6350_v63 = vcombine.low %v8970_v10, %v8970_v10  ;;  %v7413_v10 = vld [vmem:[%s9258_s1 + $0xe60] ss:$12 sps:$4 sm:$0xff]  }
 0x1ce   : > { %4440 = vmatprep.subr.bf16.mxu1 %v7357_v37 }
 0x1d0   : > { %4979 = vmatpush1.bf16.msra.mxu0 %v7358_v39  ;;  %v7409_v39 = vld [vmem:[%s9258_s1 + $0xdb8] ss:$12 sps:$4 sm:$0xff]  }
 0x1d1   : > { %4441 = vmatpush2.bf16.msra.mxu1 %v7355_v38  ;;  %4980 = vmatprep.subr.bf16.mxu0 %v7366_v44  ;;  %v7405_v38 = vld [vmem:[%s9258_s1 + $0xea0] ss:$12 sps:$4 sm:$0xff]  }
 0x1d2   : > { %4442 = vmatprep.subr.bf16.mxu1 %v7363_v43  ;;  %v7412_v44 = vld [vmem:[%s9258_s1 + $0xe8c] ss:$12 sps:$4 sm:$0xff]  }
 0x1d4   : > { %4981 = vmatpush1.bf16.msra.mxu0 %v7364_v23  ;;  %v7410_v23 = vld [vmem:[%s9258_s1 + $0xe88] ss:$12 sps:$4 sm:$0xff]  }
 0x1d5   : > { %4443 = vmatpush2.bf16.msra.mxu1 %v7361_v47  ;;  %4982 = vmatprep.subr.bf16.mxu0 %v7369_v59  ;;  %v4663_v47 = vshll.u32 %v6350_v63, 16  ;;  %v7414_v59 = vld [vmem:[%s9258_s1 + $0xda0] ss:$12 sps:$4 sm:$0xff]  }
 0x1d6   : > { %5027 = vmatprep.subr.bf16.mxu1 %v7372_v40 }
 0x1d8   : > { %4445 = vmatmul.mubr.bf16.vlgmr.msra.gmra.mxu1 %v8978_v13  ;;  %4983 = vmatpush1.bf16.msra.mxu0 %v7367_v28  ;;  %v7390_v13 = vld [vmem:[%s9258_s1 + $0xee8] ss:$12 sps:$4 sm:$0xff]  }
 0x1d9   : > { %5028 = vmatpush1.bf16.msra.mxu1 %v7370_v54  ;;  %4984 = vmatprep.subr.bf16.mxu0 %v7375_v55  ;;  %v7418_v28 = vld [vmem:[%s9258_s1 + $0xe48] ss:$12 sps:$4 sm:$0xff]   ;;  %v4661_v54 = vshrl.u32 %v6350_v63, 16  ;;  %v4665_v55 = vrot.slane %v4663_v47, 1 }
 0x1da   : > { %5029 = vmatprep.subr.bf16.mxu1 %v7378_v56  ;;  %5047 = vmatprep.mubr.bf16.mxu1 %v7470_v2  ;;  %v7388_v2 = vld [vmem:[%s9258_s1 + $0xed8] ss:$12 sps:$4 sm:$0xff]   ;;  %v7415_v56 = vld [vmem:[%s9258_s1 + $0xe70] ss:$12 sps:$4 sm:$0xff]  }
 0x1dc   : > { %4985 = vmatpush1.bf16.msra.mxu0 %v7373_v34  ;;  %v4666_v34 = vor.u32 %v4665_v55, %v4661_v54 }
 0x1dd   : > { %5030 = vmatpush1.bf16.msra.mxu1 %v7376_v60  ;;  %4986 = vmatprep.subr.bf16.mxu0 %v7381_v61  ;;  %v7422_v60 = vld [vmem:[%s9258_s1 + $0xe58] ss:$12 sps:$4 sm:$0xff]   ;;  %v7425_v61 = vld [vmem:[%s9258_s1 + $0xf20] ss:$12 sps:$4 sm:$0xff]  }
 0x1de   : > { %6612 = vmatprep.subr.bf16.mxu1 %v7383_v0  ;;  %v7428_v0 = vld [vmem:[%s9258_s1 + $0xe44] ss:$12 sps:$4 sm:$0xff]  }
 0x1e0   : > { %v6528_v45 = vpop.f32.mrf.mxu1  ;;  %6407 = vmatmul.mubr.msk.bf16.vlgmr.msra.gmra.mxu1 %vm647_vm0, %v9095_v42  ;;  %4987 = vmatpush1.bf16.msra.mxu0 %v7379_v1  ;;  %v7426_v1 = vld [vmem:[%s9258_s1 + $0xe40] ss:$12 sps:$4 sm:$0xff]  }
 0x1e1   : > { %6613 = vmatpush3.bf16.msra.mxu1 %v7384_v3  ;;  %4988 = vmatprep.subr.bf16.mxu0 %v7387_v4  ;;  %v7429_v3 = vld [vmem:[%s9258_s1 + $0xf08] ss:$12 sps:$4 sm:$0xff]  }
 0x1e2   : > { %v6529_v7 = vpop.f32.mrf.mxu1  ;;  %6614 = vmatprep.subr.bf16.mxu1 %v7388_v2  ;;  %5088 = vmatprep.mubr.bf16.mxu1 %v9035_v22 }
 0x1e3   : > { %v6530_v12 = vadd.f32 %v6529_v7, %v6528_v45 }
 0x1e4   : > { %v6531_v62 = vpop.f32.mrf.mxu1  ;;  %4989 = vmatpush1.bf16.msra.mxu0 %v7385_v5 }
 0x1e5   : > { %6615 = vmatpush3.bf16.msra.mxu1 %v7389_v6  ;;  %4990 = vmatprep.subr.bf16.mxu0 %v7392_v51 }
 0x1e6   : > { %v6532_v36 = vpop.f32.mrf.mxu1  ;;  %6616 = vmatprep.subr.bf16.mxu1 %v7393_v9 }
 0x1e7   : > { %v2795_v49 = vpop.f32.mrf.mxu0 }
 0x1e8   : > { %v2917_v16 = vpop.f32.mrf.mxu1  ;;  %v2837_v17 = vadd.f32 %v8995_v14, %v2795_v49  ;;  %4991 = vmatpush2.bf16.msra.mxu0 %v7390_v13  ;;  %v7403_v14 = vld [vmem:[%s9258_s1 + $0xe90] ss:$12 sps:$4 sm:$0xff]  }
 0x1e9   : > { %v2918_v18 = vadd.f32 %v6530_v12, %v2917_v16  ;;  %6617 = vmatpush3.bf16.msra.mxu1 %v7394_v58  ;;  %v2797_v21 = vpop.f32.mrf.mxu0  ;;  %4992 = vmatprep.subr.bf16.mxu0 %v7397_v35 }
 0x1ea   : > { %v6675_v24 = vpop.f32.mrf.mxu1  ;;  %6618 = vmatprep.subr.bf16.mxu1 %v7398_v15  ;;  %v9150_v26 = vadd.f32 %v2837_v17, %v8973_v53  ;;  %v2839_v29 = vadd.f32 %v9004_v11, %v2797_v21  ;;  %v7404_v53 = vld [vmem:[%s9258_s1 + $0xdd0] ss:$12 sps:$4 sm:$0xff]  }
 0x1eb   : > { %v9153_v27 = vadd.f32 %v2918_v18, %v8921_v52  ;;  %v2799_v30 = vpop.f32.mrf.mxu0  ;;  %v7407_v11 = vld [vmem:[%s9258_s1 + $0xea4] ss:$12 sps:$4 sm:$0xff]  }
 0x1ec   : > { %v2920_v31 = vpop.f32.mrf.mxu1  ;;  %v9157_v32 = vadd.f32 %v2839_v29, %v8981_v8  ;;  %4993 = vmatpush2.bf16.msra.mxu0 %v7395_v19  ;;  %v7408_v8 = vld [vmem:[%s9258_s1 + $0xe78] ss:$12 sps:$4 sm:$0xff]  }
 0x1ed   : > { %6619 = vmatpush3.bf16.msra.mxu1 %v7399_v20  ;;  %v2800_v22 = vpop.f32.mrf.mxu0  ;;  %4994 = vmatprep.subr.bf16.mxu0 %v7402_v25 }
 0x1ee   : > { %v6676_v52 = vpop.f32.mrf.mxu1  ;;  %6620 = vmatprep.subr.bf16.mxu1 %v7403_v14 }
 0x1ef   : > { %v9171_v37 = vpop.f32.mrf.mxu0 }
 0x1f0   : > { %4995 = vmatpush2.bf16.msra.mxu0 %v7400_v33 }
 0x1f1   : > { %6621 = vmatpush3.bf16.msra.mxu1 %v7404_v53  ;;  %v3400_v43 = vpop.f32.mrf.mxu0  ;;  %4996 = vmatprep.subr.bf16.mxu0 %v7407_v11 }
 0x1f2   : > { %6622 = vmatprep.subr.bf16.mxu1 %v7408_v8 }
 0x1f3   : > { %v3402_v46 = vpop.f32.mrf.mxu0 }
 0x1f4   : > { %4997 = vmatpush2.bf16.msra.mxu0 %v7405_v38 }
 0x1f5   : > { %6623 = vmatpush3.bf16.msra.mxu1 %v7409_v39  ;;  %v3403_v40 = vpop.f32.mrf.mxu0  ;;  %4998 = vmatprep.subr.bf16.mxu0 %v7412_v44 }
 0x1f6   : > { %6624 = vmatprep.subr.bf16.mxu1 %v7413_v10 }
 0x1f8   : > { %4999 = vmatpush2.bf16.msra.mxu0 %v7410_v23 }
 0x1f9   : > { %6625 = vmatpush3.bf16.msra.mxu1 %v7414_v59  ;;  %5000 = vmatprep.subr.bf16.mxu0 %v7417_v50 }
 0x1fa   : > { %6626 = vmatprep.subr.bf16.mxu1 %v7418_v28 }
 0x1fc   : > { %5001 = vmatpush2.bf16.msra.mxu0 %v7415_v56 }
 0x1fd   : > { %6627 = vmatpush3.bf16.msra.mxu1 %v7419_v57  ;;  %5002 = vmatprep.subr.bf16.mxu0 %v7424_v41 }
 0x1fe   : > { %6701 = vmatprep.subr.bf16.mxu1 %v7471_v48 }
 0x200   : > { %5089 = vmatmul.mubr.bf16.vlgmr.msra.gmra.mxu1 %v4666_v34  ;;  %5003 = vmatpush2.bf16.msra.mxu0 %v7422_v60 }
 0x201   : > { %6702 = vmatpush3.bf16.msra.mxu1 %v7425_v61  ;;  %5004 = vmatprep.subr.bf16.mxu0 %v7428_v0 }
 0x202   : > { %6703 = vmatprep.subr.bf16.mxu1 %v7471_v48  ;;  %6705 = vmatprep.mubr.msk.bf16.mxu1 %vm7472_vm1, %v7471_v48 }
 0x204   : > { %5005 = vmatpush2.bf16.msra.mxu0 %v7426_v1 }
 0x205   : > { %6704 = vmatpush3.bf16.msra.mxu1 %v7429_v3 }
 0x207   : > { %5007 = vmatmul.mubr.bf16.vlgmr.msra.gmra.mxu0 %v4666_v34 }
 0x208   : > { %6706 = vmatmul.mubr.msk.bf16.vlgmr.msra.gmra.mxu1 %vm647_vm0, %v9095_v42 }
 0x20f   : > { %v6553_v4 = vpop.f32.mrf.mxu0 }
 0x211   : > { %v6554_v2 = vpop.f32.mrf.mxu0 }
 0x212   : > { %v6555_v45 = vadd.f32 %v6554_v2, %v6553_v4 }
 0x213   : > { %v6556_v5 = vpop.f32.mrf.mxu0 }
 0x215   : > { %v6557_v6 = vpop.f32.mrf.mxu0 }
 0x217   : > { %v3479_v7 = vpop.f32.mrf.mxu0 }
 0x218   : > { %v3480_v51 = vadd.f32 %v6555_v45, %v3479_v7  ;;  %v5141_v7 = vlaneseq }
 0x219   : > { %v6683_v9 = vpop.f32.mrf.mxu0 }
 0x21a   : > { %v3487_v12 = vadd.f32 %v3480_v51, %v9153_v27  ;;  %v5142_v9 = vshrl.u32 %v5141_v7, 7 }
 0x21b   : > { %v3482_v62 = vpop.f32.mrf.mxu0 }
 0x21d   : > { %v6684_v13 = vpop.f32.mrf.mxu0 }
 0x21e   : > { %v5143_v13 = vsub.s32 0, %v5142_v9 }
 0x228   : > { %v3357_v58 = vpop.f32.mrf.mxu1 }
 0x229   : > { %v3399_v48 = vadd.f32 %v9171_v37, %v3357_v58  ;;  %v5151_v58 = vsub.s32 2, %v5142_v9 }
 0x22a   : > { %v3359_v36 = vpop.f32.mrf.mxu1 }
 0x22b   : > { %v3485_v35 = vadd.f32 %v3399_v48, %v9150_v26  ;;  %v3401_v15 = vadd.f32 %v3400_v43, %v3359_v36  ;;  %v5139_v36 = vld [vmem:[%s9259_s2] sm:$0x7] }
 0x22c   : > { %v3361_v42 = vpop.f32.mrf.mxu1 }
 0x22d   : > { %v3486_v49 = vadd.f32 %v3401_v15, %v9157_v32  ;;  %v5147_v15 = vsub.s32 1, %v5142_v9 }
 0x22e   : > { %v3362_v16 = vpop.f32.mrf.mxu1 }
 0x230   : > { %v3943_v17 = vpop.f32.mrf.mxu1 }
 0x232   : > { %v3945_v18 = vpop.f32.mrf.mxu1 }
 0x234   : > { %v3947_v19 = vpop.f32.mrf.mxu1 }
 0x235   : > { %v5152_v19 = vrot.slane %v5139_v36, %v5151_v58 }
 0x236   : > { %v3948_v20 = vpop.f32.mrf.mxu1 }
 0x250   : > { %v6578_v21 = vpop.f32.mrf.mxu1 }
 0x252   : > { %v6579_v24 = vpop.f32.mrf.mxu1 }
 0x253   : > { %v6580_v25 = vadd.f32 %v6579_v24, %v6578_v21 }
 0x254   : > { %v6581_v14 = vpop.f32.mrf.mxu1 }
 0x256   : > { %v6582_v27 = vpop.f32.mrf.mxu1 }
 0x257   : > { %v3902_v29 = vpop.f32.mrf.mxu0  ;;  %v5148_v27 = vrot.slane %v5139_v36, %v5147_v15 }
 0x258   : > { %v4024_v30 = vpop.f32.mrf.mxu1  ;;  %v3944_v31 = vadd.f32 %v3943_v17, %v3902_v29  ;;  %v5144_v17 = vrot.slane %v5139_v36, %v5143_v13 }
 0x259   : > { %v4025_v33 = vadd.f32 %v6580_v25, %v4024_v30  ;;  %v3904_v53 = vpop.f32.mrf.mxu0 }
 0x25a   : > { %v6691_v26 = vpop.f32.mrf.mxu1  ;;  %v4030_v22 = vadd.f32 %v3944_v31, %v3485_v35  ;;  %v3946_v11 = vadd.f32 %v3945_v18, %v3904_v53 }
 0x25b   : > { %v4032_v52 = vadd.f32 %v4025_v33, %v3487_v12  ;;  %v3906_v32 = vpop.f32.mrf.mxu0 }
 0x25c   : > { %v4027_v8 = vpop.f32.mrf.mxu1  ;;  %v4031_v37 = vadd.f32 %v3946_v11, %v3486_v49 }
 0x25d   : > { %v3907_v63 = vpop.f32.mrf.mxu0 }
 0x25e   : > { %v6692_v38 = vpop.f32.mrf.mxu1 }
 0x25f   : > { %v4487_v39 = vpop.f32.mrf.mxu0 }
 0x261   : > { %v4489_v43 = vpop.f32.mrf.mxu0 }
 0x263   : > { %v4491_v44 = vpop.f32.mrf.mxu0 }
 0x265   : > { %v4492_v10 = vpop.f32.mrf.mxu0 }
 0x27f   : > { %v6603_v46 = vpop.f32.mrf.mxu0 }
 0x281   : > { %v6604_v47 = vpop.f32.mrf.mxu0 }
 0x282   : > { %v6605_v23 = vadd.f32 %v6604_v47, %v6603_v46 }
 0x283   : > { %v6606_v59 = vpop.f32.mrf.mxu0 }
 0x285   : > { %v6607_v40 = vpop.f32.mrf.mxu0 }
 0x287   : > { %v4568_v50 = vpop.f32.mrf.mxu0 }
 0x288   : > { %v4569_v28 = vadd.f32 %v6605_v23, %v4568_v50 }
 0x289   : > { %v6699_v54 = vpop.f32.mrf.mxu0 }
 0x28a   : > { %v4576_v55 = vadd.f32 %v4569_v28, %v4032_v52 }
 0x28b   : > { %v4571_v56 = vpop.f32.mrf.mxu0 }
 0x28d   : > { %v6700_v57 = vpop.f32.mrf.mxu0 }
 0x298   : > { %v4446_v41 = vpop.f32.mrf.mxu1 }
 0x299   : > { %v4488_v34 = vadd.f32 %v4487_v39, %v4446_v41 }
 0x29a   : > { %v4448_v60 = vpop.f32.mrf.mxu1 }
 0x29b   : > { %v4574_v61 = vadd.f32 %v4488_v34, %v4030_v22  ;;  %v4490_v0 = vadd.f32 %v4489_v43, %v4448_v60 }
 0x29c   : > { %v4450_v1 = vpop.f32.mrf.mxu1 }
 0x29d   : > { %v4575_v3 = vadd.f32 %v4490_v0, %v4031_v37 }
 0x29e   : > { %v4451_v4 = vpop.f32.mrf.mxu1 }
 0x2a0   : > { %v5049_v2 = vpop.f32.mrf.mxu1 }
 0x2a2   : > { %v5051_v45 = vpop.f32.mrf.mxu1 }
 0x2a4   : > { %v5053_v5 = vpop.f32.mrf.mxu1 }
 0x2a6   : > { %v5054_v6 = vpop.f32.mrf.mxu1 }
 0x2c0   : > { %v6628_v51 = vpop.f32.mrf.mxu1 }
 0x2c2   : > { %v6629_v12 = vpop.f32.mrf.mxu1 }
 0x2c3   : > { %v6630_v35 = vadd.f32 %v6629_v12, %v6628_v51 }
 0x2c4   : > { %v6631_v62 = vpop.f32.mrf.mxu1 }
 0x2c6   : > { %v6632_v48 = vpop.f32.mrf.mxu1 }
 0x2c7   : > { %v5008_v42 = vpop.f32.mrf.mxu0 }
 0x2c8   : > { %v5130_v49 = vpop.f32.mrf.mxu1  ;;  %v5050_v16 = vadd.f32 %v5049_v2, %v5008_v42 }
 0x2c9   : > { %v5131_v18 = vadd.f32 %v6630_v35, %v5130_v49  ;;  %v5010_v20 = vpop.f32.mrf.mxu0 }
 0x2ca   : > { %v6707_v21 = vpop.f32.mrf.mxu1  ;;  %v5136_v24 = vadd.f32 %v5050_v16, %v4574_v61  ;;  %v5052_v14 = vadd.f32 %v5051_v45, %v5010_v20 }
 0x2cb   : > { %v5138_v25 = vadd.f32 %v5131_v18, %v4576_v55  ;;  %v5012_v29 = vpop.f32.mrf.mxu0 }
 0x2cc   : > { %v5133_v30 = vpop.f32.mrf.mxu1  ;;  %v5156_v31 = vadd.f32 %v5144_v17, %v5136_v24  ;;  %v5137_v53 = vadd.f32 %v5052_v14, %v4575_v3 }
 0x2cd   : > { %v5158_v33 = vadd.f32 %v5152_v19, %v5138_v25  ;;  %v5013_v26 = vpop.f32.mrf.mxu0 }
 0x2ce   : > { %v6708_v22 = vpop.f32.mrf.mxu1  ;;  %v5157_v11 = vadd.f32 %v5148_v27, %v5137_v53  ;;  %v5159_v32 = vmax.f32 %v5156_v31, 0.0 }
 0x2cf   : > { %v5161_v52 = vmax.f32 %v5158_v33, 0.0 }
 0x2d0   : > { %v5160_v8 = vmax.f32 %v5157_v11, 0.0 }
 0x2d1   : > { %5168 = vst.msk [vmem:[%s192_s28 + $0x8] sm:$0xf] %vm5167_vm2, %v5161_v52 }
 0x2d2   : > { %v5164_v37 = vcombine.low %v5159_v32, %v5160_v8 }
 0x2d4   : > { %5166 = vst [vmem:[%s192_s28] sm:$0xff] %v5164_v37 }
 0x2d5 PF: > { %s13_s16 = sadd.s32 1, %s7468_s16   ;;  %s9261_s12 = smov %s7460_s14 }
 0x2d6   : > { %p10_p7 = scmp.ge.s32.totalorder %s13_s16, 10   ;;  %s9262_s13 = smov %s7464_s15 }
 0x2d7   : > { %s9263_s14 = smov %s9266_s17  ;;  %s9264_s15 = smov %s9270_s18 }
 0x2d8   :  { %12 = sbr.rel (!%p10_p7) target bundleno = 3 (0x3), region = 76 }

// kernel: reduction_b_forward.12
= control target key start
LH: loop header
LB: loop body
LE: loop exit
PB: predicated region body
PF: predicated region fallthrough
CT: control target
= control target key end

     0   :  { %s5991_s12 = smov 0   ;;  %s5993_s13 = smov 0   ;;  %s7459_s0 = inlined_call_operand.vmem [shape: bf16[2,4,5,5,256], index: 0, kind: input, shape index: {}]   ;;  %s7460_s1 = inlined_call_operand.vmem [shape: bf16[9,256,288], index: 1, kind: input, shape index: {}]   ;;  %s7461_s2 = inlined_call_operand.vmem [shape: f32[1,288], index: 2, kind: input, shape index: {}]   ;;  %s7462_s3 = inlined_call_operand.vmem [shape: f32[2,4,4,288], index: 3, kind: output, shape index: {}]  }
   0x1   :  { %s5995_s14 = smov 0   ;;  %s5997_s15 = smov 0  }
   0x2   :  { %s5999_s16 = smov 0  }
   0x3 LB: > { %s22_s17 = sadd.s32 1, %s5961_s14  ;;  %s25_s18 = sadd.s32 1, %s5965_s15  ;;  %s5969_s16 = sphi %s5999_s16, %s13_s16   ;;  %s5965_s15 = sphi %s5997_s15, %s7466_s15   ;;  %s5961_s14 = sphi %s5995_s14, %s7465_s14   ;;  %s5957_s13 = sphi %s5993_s13, %s7464_s13   ;;  %s5953_s12 = sphi %s5991_s12, %s7463_s12  }
   0x4   : > { %p23_p0 = scmp.ge.s32.totalorder %s22_s17, 4  ;;  %p4106_p1 = scmp.ge.s32.totalorder %s5969_s16, 1 }
   0x5   : > { %p151_p2 = scmp.lt.s32.totalorder %s5969_s16, 9 }
   0x6   : > { %s7468_s17 = smov (%p23_p0, %s22_s17), 0  ;;  %s7470_s18 = smov (!%p23_p0, %s25_s18), %s5965_s15 }
   0x7   : > { %p152_p3 = pnand %p4106_p1, %p151_p2  ;;  %p27_p4 = scmp.ge.s32.totalorder %s7470_s18, 2 }
   0x8   : > { %p179_p5 = scmp.lt.s32.totalorder (!%p152_p3), %s5957_s13, 1  ;;  %s5091_s28 = sshll.u32 (!%p152_p3), %s5953_s12, 3 }
   0x9   : > { %s7472_s18 = smov (%p27_p4, %s7470_s18), 0  ;;  %155 = sbr.rel (%p152_p3) target bundleno = 667 (0x29b), region = 32 }
   0xa   : > { %p186_p6 = scmp.lt.s32.totalorder (!%p152_p3), %s5953_s12, 3 }
   0xe   : > { %v5337_v0 = vld [vmem:[%s7460_s1 + $0x22c] ss:$12 sps:$4 sm:$0xff]   ;;  %v5339_v1 = vld [vmem:[%s7460_s1 + $0x2f0] ss:$12 sps:$4 sm:$0xff]   ;;  %v5340_v2 = vld [vmem:[%s7460_s1 + $0x228] ss:$12 sps:$4 sm:$0xff]  }
   0xf   : > { %594 = vmatprep.subr.bf16.mxu0 %v5337_v0  ;;  %5096 = vmatprep.subr.bf16.mxu1 %v5339_v1  ;;  %v5341_v3 = vld [vmem:[%s7460_s1 + $0x230] ss:$12 sps:$4 sm:$0xff]   ;;  %v5342_v4 = vld [vmem:[%s7460_s1 + $0x214] ss:$12 sps:$4 sm:$0xff]   ;;  %v5344_v5 = vld [vmem:[%s7460_s1 + $0x2d8] ss:$12 sps:$4 sm:$0xff]  }
  0x10   : > { %595 = vmatpush1.bf16.msra.mxu0 %v5340_v2  ;;  %5097 = vmatpush3.bf16.msra.mxu1 %v5341_v3  ;;  %v5345_v6 = vld [vmem:[%s7460_s1 + $0x210] ss:$12 sps:$4 sm:$0xff]   ;;  %v5346_v7 = vld [vmem:[%s7460_s1 + $0x218] ss:$12 sps:$4 sm:$0xff]   ;;  %v5349_v9 = vld [vmem:[%s7460_s1 + $0x2c0] ss:$12 sps:$4 sm:$0xff]  }
  0x11   : > { %596 = vmatprep.subr.bf16.mxu0 %v5342_v4  ;;  %5098 = vmatprep.subr.bf16.mxu1 %v5344_v5  ;;  %v5347_v8 = vld [vmem:[%s7460_s1 + $0x1fc] ss:$12 sps:$4 sm:$0xff]   ;;  %v5350_v10 = vld [vmem:[%s7460_s1 + $0x1f8] ss:$12 sps:$4 sm:$0xff]   ;;  %v5351_v11 = vld [vmem:[%s7460_s1 + $0x200] ss:$12 sps:$4 sm:$0xff]  }
  0x12   : > { %v5352_v12 = vld [vmem:[%s7460_s1 + $0x1e4] ss:$12 sps:$4 sm:$0xff]   ;;  %v5354_v13 = vld [vmem:[%s7460_s1 + $0x2a8] ss:$12 sps:$4 sm:$0xff]   ;;  %v5355_v14 = vld [vmem:[%s7460_s1 + $0x1e0] ss:$12 sps:$4 sm:$0xff]  }
  0x13   : > { %v5356_v15 = vld [vmem:[%s7460_s1 + $0x1e8] ss:$12 sps:$4 sm:$0xff]   ;;  %s7474_s13 = smov (!%p179_p5, %s5957_s13), 1  ;;  %v5357_v16 = vld [vmem:[%s7460_s1 + $0x1cc] ss:$12 sps:$4 sm:$0xff]   ;;  %s7476_s12 = smov (!%p186_p6, %s5953_s12), 3 }
  0x14   : > { %597 = vmatpush1.bf16.msra.mxu0 %v5345_v6  ;;  %5099 = vmatpush3.bf16.msra.mxu1 %v5346_v7  ;;  %v5359_v17 = vld [vmem:[%s7460_s1 + $0x290] ss:$12 sps:$4 sm:$0xff]   ;;  %v5360_v18 = vld [vmem:[%s7460_s1 + $0x1c8] ss:$12 sps:$4 sm:$0xff]   ;;  %s5294_s21 = smul.u32 160, %s7474_s13  ;;  %vm3993_vm0 = vcmask 257024  }
  0x15   : > { %598 = vmatprep.subr.bf16.mxu0 %v5347_v8  ;;  %5100 = vmatprep.subr.bf16.mxu1 %v5349_v9  ;;  %v5361_v19 = vld [vmem:[%s7460_s1 + $0x1d0] ss:$12 sps:$4 sm:$0xff]   ;;  %v5362_v20 = vld [vmem:[%s7460_s1 + $0x1b4] ss:$12 sps:$4 sm:$0xff]   ;;  %v5364_v21 = vld [vmem:[%s7460_s1 + $0x278] ss:$12 sps:$4 sm:$0xff]  }
  0x16   : > { %v5365_v22 = vld [vmem:[%s7460_s1 + $0x1b0] ss:$12 sps:$4 sm:$0xff]   ;;  %v5366_v23 = vld [vmem:[%s7460_s1 + $0x1b8] ss:$12 sps:$4 sm:$0xff]   ;;  %s183_s6 = scalar_lea.vmem %s7459_s0, %s5294_s21  ;;  %v5369_v25 = vld [vmem:[%s7460_s1 + $0x260] ss:$12 sps:$4 sm:$0xff]  }
  0x17   : > { %v5367_v24 = vld [vmem:[%s7460_s1 + $0x19c] ss:$12 sps:$4 sm:$0xff]   ;;  %v5370_v26 = vld [vmem:[%s7460_s1 + $0x198] ss:$12 sps:$4 sm:$0xff]   ;;  %s6117_s11 = scalar_lea.vmem %s183_s6, %s5091_s28  ;;  %v5371_v27 = vld [vmem:[%s7460_s1 + $0x1a0] ss:$12 sps:$4 sm:$0xff]  }
  0x18   : > { %599 = vmatpush1.bf16.msra.mxu0 %v5350_v10  ;;  %5101 = vmatpush3.bf16.msra.mxu1 %v5351_v11  ;;  %v5372_v28 = vld [vmem:[%s7460_s1 + $0x184] ss:$12 sps:$4 sm:$0xff]   ;;  %v5374_v29 = vld [vmem:[%s7460_s1 + $0x248] ss:$12 sps:$4 sm:$0xff]   ;;  %v5375_v31 = vld [vmem:[%s7460_s1 + $0x180] ss:$12 sps:$4 sm:$0xff]  }
  0x19   : > { %600 = vmatprep.subr.bf16.mxu0 %v5352_v12  ;;  %5102 = vmatprep.subr.bf16.mxu1 %v5354_v13  ;;  %v4113_v30 = vld [vmem:[%s6117_s11 + $0x28] sm:$0x33]  ;;  %v5385_v39 = vld [vmem:[%s7460_s1 + $0x2d4] ss:$12 sps:$4 sm:$0xff]   ;;  %v5390_v41 = vld [vmem:[%s7460_s1 + $0x2d0] ss:$12 sps:$4 sm:$0xff]  }
  0x1a   : > { %v4179_v32 = vcombine.high %v4113_v30, %v4113_v30  ;;  %v5376_v33 = vld [vmem:[%s7460_s1 + $0x188] ss:$12 sps:$4 sm:$0xff]   ;;  %v5377_v34 = vld [vmem:[%s7460_s1 + $0x2ec] ss:$12 sps:$4 sm:$0xff]   ;;  %v6144_v37 = vcombine.low %v4113_v30, %v4113_v30  ;;  %v5387_v42 = vld [vmem:[%s7460_s1 + $0x90] ss:$12 sps:$4 sm:$0xff]  }
  0x1b   : > { %v5383_v35 = vld [vmem:[%s7460_s1 + $0xac] ss:$12 sps:$4 sm:$0xff]   ;;  %v5381_v36 = vld [vmem:[%s7460_s1 + $0xa8] ss:$12 sps:$4 sm:$0xff]   ;;  %v5397_v47 = vld [vmem:[%s7460_s1 + $0x2a4] ss:$12 sps:$4 sm:$0xff]  }
  0x1c   : > { %601 = vmatpush1.bf16.msra.mxu0 %v5355_v14  ;;  %5103 = vmatpush3.bf16.msra.mxu1 %v5356_v15  ;;  %v5384_v38 = vld [vmem:[%s7460_s1 + $0x2e8] ss:$12 sps:$4 sm:$0xff]   ;;  %v5393_v45 = vld [vmem:[%s7460_s1 + $0x78] ss:$12 sps:$4 sm:$0xff]   ;;  %v5402_v49 = vld [vmem:[%s7460_s1 + $0x2a0] ss:$12 sps:$4 sm:$0xff]  }
  0x1d   : > { %602 = vmatprep.subr.bf16.mxu0 %v5357_v16  ;;  %5104 = vmatprep.subr.bf16.mxu1 %v5359_v17  ;;  %v5389_v40 = vld [vmem:[%s7460_s1 + $0x94] ss:$12 sps:$4 sm:$0xff]   ;;  %v5391_v43 = vld [vmem:[%s7460_s1 + $0x2bc] ss:$12 sps:$4 sm:$0xff]   ;;  %v5396_v46 = vld [vmem:[%s7460_s1 + $0x2b8] ss:$12 sps:$4 sm:$0xff]  }
  0x1e   : > { %667 = vmatprep.mubr.bf16.mxu1 %v4179_v32  ;;  %626 = vmatprep.mubr.bf16.mxu0 %v4179_v32  ;;  %v5395_v44 = vld [vmem:[%s7460_s1 + $0x7c] ss:$12 sps:$4 sm:$0xff]   ;;  %v5401_v48 = vld [vmem:[%s7460_s1 + $0x64] ss:$12 sps:$4 sm:$0xff]   ;;  %v5399_v50 = vld [vmem:[%s7460_s1 + $0x60] ss:$12 sps:$4 sm:$0xff]  }
  0x1f   : > { %v5403_v51 = vld [vmem:[%s7460_s1 + $0x28c] ss:$12 sps:$4 sm:$0xff]   ;;  %v5408_v53 = vld [vmem:[%s7460_s1 + $0x288] ss:$12 sps:$4 sm:$0xff]   ;;  %v5411_v57 = vld [vmem:[%s7460_s1 + $0x30] ss:$12 sps:$4 sm:$0xff]  }
  0x20   : > { %603 = vmatpush1.bf16.msra.mxu0 %v5360_v18  ;;  %5105 = vmatpush3.bf16.msra.mxu1 %v5361_v19  ;;  %v5407_v52 = vld [vmem:[%s7460_s1 + $0x4c] ss:$12 sps:$4 sm:$0xff]   ;;  %v5405_v54 = vld [vmem:[%s7460_s1 + $0x48] ss:$12 sps:$4 sm:$0xff]   ;;  %v5414_v58 = vld [vmem:[%s7460_s1 + $0x270] ss:$12 sps:$4 sm:$0xff]  }
  0x21   : > { %604 = vmatprep.subr.bf16.mxu0 %v5362_v20  ;;  %5106 = vmatprep.subr.bf16.mxu1 %v5364_v21  ;;  %v5409_v55 = vld [vmem:[%s7460_s1 + $0x274] ss:$12 sps:$4 sm:$0xff]   ;;  %v5415_v59 = vld [vmem:[%s7460_s1 + $0x25c] ss:$12 sps:$4 sm:$0xff]   ;;  %v5417_v61 = vld [vmem:[%s7460_s1 + $0x18] ss:$12 sps:$4 sm:$0xff]  }
  0x22   : > { %v5413_v56 = vld [vmem:[%s7460_s1 + $0x34] ss:$12 sps:$4 sm:$0xff]   ;;  %v5419_v60 = vld [vmem:[%s7460_s1 + $0x1c] ss:$12 sps:$4 sm:$0xff]   ;;  %v5420_v62 = vld [vmem:[%s7460_s1 + $0x258] ss:$12 sps:$4 sm:$0xff]  }
  0x23   : > { %v5421_v63 = vld [vmem:[%s7460_s1 + $0x244] ss:$12 sps:$4 sm:$0xff]   ;;  %v5423_v1 = vld [vmem:[%s7460_s1] ss:$12 sps:$4 sm:$0xff]   ;;  %v5427_v5 = vld [vmem:[%s7460_s1 + $0x168] ss:$12 sps:$4 sm:$0xff]  }
  0x24   : > { %605 = vmatpush1.bf16.msra.mxu0 %v5365_v22  ;;  %5107 = vmatpush3.bf16.msra.mxu1 %v5366_v23  ;;  %v5425_v0 = vld [vmem:[%s7460_s1 + $0x4] ss:$12 sps:$4 sm:$0xff]   ;;  %v5426_v2 = vld [vmem:[%s7460_s1 + $0x240] ss:$12 sps:$4 sm:$0xff]   ;;  %v5439_v12 = vld [vmem:[%s7460_s1 + $0x13c] ss:$12 sps:$4 sm:$0xff]  }
  0x25   : > { %606 = vmatprep.subr.bf16.mxu0 %v5367_v24  ;;  %5108 = vmatprep.subr.bf16.mxu1 %v5369_v25  ;;  %v5430_v3 = vld [vmem:[%s7460_s1 + $0x170] ss:$12 sps:$4 sm:$0xff]   ;;  %v5429_v4 = vld [vmem:[%s7460_s1 + $0x16c] ss:$12 sps:$4 sm:$0xff]   ;;  %v5434_v8 = vld [vmem:[%s7460_s1 + $0x154] ss:$12 sps:$4 sm:$0xff]  }
  0x26   : > { %v5431_v6 = vld [vmem:[%s7460_s1 + $0xb0] ss:$12 sps:$4 sm:$0xff]   ;;  %v5435_v7 = vld [vmem:[%s7460_s1 + $0x158] ss:$12 sps:$4 sm:$0xff]   ;;  %v5440_v11 = vld [vmem:[%s7460_s1 + $0x140] ss:$12 sps:$4 sm:$0xff]  }
  0x27   : > { %v5436_v9 = vld [vmem:[%s7460_s1 + $0x98] ss:$12 sps:$4 sm:$0xff]   ;;  %v5432_v10 = vld [vmem:[%s7460_s1 + $0x150] ss:$12 sps:$4 sm:$0xff]   ;;  %v5441_v14 = vld [vmem:[%s7460_s1 + $0x80] ss:$12 sps:$4 sm:$0xff]  }
  0x28   : > { %607 = vmatpush1.bf16.msra.mxu0 %v5370_v26  ;;  %5109 = vmatpush3.bf16.msra.mxu1 %v5371_v27  ;;  %v5437_v13 = vld [vmem:[%s7460_s1 + $0x138] ss:$12 sps:$4 sm:$0xff]   ;;  %v5445_v15 = vld [vmem:[%s7460_s1 + $0x128] ss:$12 sps:$4 sm:$0xff]   ;;  %v5442_v18 = vld [vmem:[%s7460_s1 + $0x120] ss:$12 sps:$4 sm:$0xff]  }
  0x29   : > { %608 = vmatprep.subr.bf16.mxu0 %v5372_v28  ;;  %5110 = vmatprep.subr.bf16.mxu1 %v5374_v29  ;;  %v5444_v16 = vld [vmem:[%s7460_s1 + $0x124] ss:$12 sps:$4 sm:$0xff]   ;;  %v5446_v19 = vld [vmem:[%s7460_s1 + $0x68] ss:$12 sps:$4 sm:$0xff]   ;;  %v5449_v22 = vld [vmem:[%s7460_s1 + $0x10c] ss:$12 sps:$4 sm:$0xff]  }
  0x2a   : > { %v197_v17 = vld [vmem:[%s6117_s11] sm:$0x33]  ;;  %v5450_v21 = vld [vmem:[%s7460_s1 + $0x110] ss:$12 sps:$4 sm:$0xff]   ;;  %v5447_v23 = vld [vmem:[%s7460_s1 + $0x108] ss:$12 sps:$4 sm:$0xff]  }
  0x2b   : > { %v4229_v20 = vcombine.high %v197_v17, %v197_v17  ;;  %v5451_v24 = vld [vmem:[%s7460_s1 + $0x50] ss:$12 sps:$4 sm:$0xff]   ;;  %v5455_v25 = vld [vmem:[%s7460_s1 + $0xf8] ss:$12 sps:$4 sm:$0xff]   ;;  %v5454_v26 = vld [vmem:[%s7460_s1 + $0xf4] ss:$12 sps:$4 sm:$0xff]  }
  0x2c   : > { %609 = vmatpush1.bf16.msra.mxu0 %v5375_v31  ;;  %5111 = vmatpush3.bf16.msra.mxu1 %v5376_v33  ;;  %v5452_v27 = vld [vmem:[%s7460_s1 + $0xf0] ss:$12 sps:$4 sm:$0xff]   ;;  %v5456_v28 = vld [vmem:[%s7460_s1 + $0x38] ss:$12 sps:$4 sm:$0xff]   ;;  %v5460_v29 = vld [vmem:[%s7460_s1 + $0xe0] ss:$12 sps:$4 sm:$0xff]  }
  0x2d   : > { %610 = vmatprep.subr.bf16.mxu0 %v5377_v34  ;;  %938 = vmatprep.subr.bf16.mxu1 %v5383_v35  ;;  %v5459_v30 = vld [vmem:[%s7460_s1 + $0xdc] ss:$12 sps:$4 sm:$0xff]   ;;  %v5461_v31 = vld [vmem:[%s7460_s1 + $0x20] ss:$12 sps:$4 sm:$0xff]   ;;  %v5457_v32 = vld [vmem:[%s7460_s1 + $0xd8] ss:$12 sps:$4 sm:$0xff]  }
  0x2e   : > { %v5465_v33 = vld [vmem:[%s7460_s1 + $0xc8] ss:$12 sps:$4 sm:$0xff]   ;;  %v5464_v34 = vld [vmem:[%s7460_s1 + $0xc4] ss:$12 sps:$4 sm:$0xff]   ;;  %v5462_v35 = vld [vmem:[%s7460_s1 + $0xc0] ss:$12 sps:$4 sm:$0xff]  }
  0x2f   : > { %668 = vmatmul.mubr.bf16.vlgmr.msra.gmra.mxu1 %v6144_v37  ;;  %s5295_s25 = smul.u32 3, %s7476_s12 }
  0x30   : > { %611 = vmatpush2.bf16.msra.mxu0 %v5384_v38  ;;  %939 = vmatpush1.bf16.msra.mxu1 %v5381_v36  ;;  %v5466_v36 = vld [vmem:[%s7460_s1 + $0x8] ss:$12 sps:$4 sm:$0xff]   ;;  %v5472_v38 = vld [vmem:[%s7460_s1 + $0x470] ss:$12 sps:$4 sm:$0xff]   ;;  %s5296_s26 = smul.u32 12, %s7474_s13 }
  0x31   : > { %612 = vmatprep.subr.bf16.mxu0 %v5385_v39  ;;  %940 = vmatprep.subr.bf16.mxu1 %v5389_v40  ;;  %v4228_v39 = vcombine.low %v197_v17, %v197_v17  ;;  %v5469_v40 = vld [vmem:[%s7460_s1 + $0x3a8] ss:$12 sps:$4 sm:$0xff]   ;;  %v5516_v17 = vld [vmem:[%s7460_s1 + $0x52c] ss:$12 sps:$4 sm:$0xff]  }
  0x32   : > { %970 = vmatprep.mubr.bf16.mxu1 %v4229_v20  ;;  %s190_s29 = sadd.s32 %s5296_s26, %s5295_s25 }
  0x33   : > { %s4108_s30 = sshll.u32 %s190_s29, 2 }
  0x34   : > { %613 = vmatpush2.bf16.msra.mxu0 %v5390_v41  ;;  %941 = vmatpush1.bf16.msra.mxu1 %v5387_v42  ;;  %v5473_v41 = vld [vmem:[%s7460_s1 + $0x3b0] ss:$12 sps:$4 sm:$0xff]   ;;  %v5476_v42 = vld [vmem:[%s7460_s1 + $0x394] ss:$12 sps:$4 sm:$0xff]   ;;  %s192_s13 = scalar_lea.vmem %s7462_s3, %s4108_s30 }
  0x35   : > { %614 = vmatprep.subr.bf16.mxu0 %v5391_v43  ;;  %942 = vmatprep.subr.bf16.mxu1 %v5395_v44  ;;  %v5477_v43 = vld [vmem:[%s7460_s1 + $0x458] ss:$12 sps:$4 sm:$0xff]   ;;  %v5474_v44 = vld [vmem:[%s7460_s1 + $0x390] ss:$12 sps:$4 sm:$0xff]  }
  0x38   : > { %615 = vmatpush2.bf16.msra.mxu0 %v5396_v46  ;;  %943 = vmatpush1.bf16.msra.mxu1 %v5393_v45  ;;  %v5478_v45 = vld [vmem:[%s7460_s1 + $0x398] ss:$12 sps:$4 sm:$0xff]   ;;  %v5481_v46 = vld [vmem:[%s7460_s1 + $0x37c] ss:$12 sps:$4 sm:$0xff]  }
  0x39   : > { %616 = vmatprep.subr.bf16.mxu0 %v5397_v47  ;;  %944 = vmatprep.subr.bf16.mxu1 %v5401_v48  ;;  %v5482_v47 = vld [vmem:[%s7460_s1 + $0x440] ss:$12 sps:$4 sm:$0xff]  }
  0x3a   : > { %v1019_v48 = vld [vmem:[%s6117_s11] sm:$0x77] }
  0x3c   : > { %617 = vmatpush2.bf16.msra.mxu0 %v5402_v49  ;;  %945 = vmatpush1.bf16.msra.mxu1 %v5399_v50  ;;  %v4343_v49 = vcombine.high %v1019_v48, %v1019_v48  ;;  %v5479_v50 = vld [vmem:[%s7460_s1 + $0x378] ss:$12 sps:$4 sm:$0xff]  }
  0x3d   : > { %618 = vmatprep.subr.bf16.mxu0 %v5403_v51  ;;  %946 = vmatprep.subr.bf16.mxu1 %v5407_v52  ;;  %v5483_v51 = vld [vmem:[%s7460_s1 + $0x380] ss:$12 sps:$4 sm:$0xff]   ;;  %v5486_v52 = vld [vmem:[%s7460_s1 + $0x364] ss:$12 sps:$4 sm:$0xff]  }
  0x40   : > { %619 = vmatpush2.bf16.msra.mxu0 %v5408_v53  ;;  %947 = vmatpush1.bf16.msra.mxu1 %v5405_v54  ;;  %v1098_v53 = vshrl.u32 %v4343_v49, 16  ;;  %v1100_v54 = vshll.u32 %v4343_v49, 16  ;;  %v5553_v49 = vld [vmem:[%s7460_s1 + $0x3c0] ss:$12 sps:$4 sm:$0xff]  }
  0x41   : > { %620 = vmatprep.subr.bf16.mxu0 %v5409_v55  ;;  %948 = vmatprep.subr.bf16.mxu1 %v5413_v56  ;;  %v5487_v55 = vld [vmem:[%s7460_s1 + $0x428] ss:$12 sps:$4 sm:$0xff]  }
  0x42   : > { %v1102_v56 = vrot.slane %v1100_v54, 1  ;;  %v5563_v54 = vld [vmem:[%s7460_s1 + $0x530] ss:$12 sps:$4 sm:$0xff]  }
  0x44   : > { %621 = vmatpush2.bf16.msra.mxu0 %v5414_v58  ;;  %949 = vmatpush1.bf16.msra.mxu1 %v5411_v57  ;;  %v5484_v57 = vld [vmem:[%s7460_s1 + $0x360] ss:$12 sps:$4 sm:$0xff]   ;;  %v5488_v58 = vld [vmem:[%s7460_s1 + $0x368] ss:$12 sps:$4 sm:$0xff]  }
  0x45   : > { %622 = vmatprep.subr.bf16.mxu0 %v5415_v59  ;;  %950 = vmatprep.subr.bf16.mxu1 %v5419_v60  ;;  %v5491_v59 = vld [vmem:[%s7460_s1 + $0x34c] ss:$12 sps:$4 sm:$0xff]   ;;  %v1103_v60 = vor.u32 %v1102_v56, %v1098_v53  ;;  %v5559_v53 = vld [vmem:[%s7460_s1 + $0x5e8] ss:$12 sps:$4 sm:$0xff]  }
  0x46   : > { %v5566_v56 = vld [vmem:[%s7460_s1 + $0x5d4] ss:$12 sps:$4 sm:$0xff]  }
  0x48   : > { %623 = vmatpush2.bf16.msra.mxu0 %v5420_v62  ;;  %951 = vmatpush1.bf16.msra.mxu1 %v5417_v61  ;;  %v5492_v61 = vld [vmem:[%s7460_s1 + $0x410] ss:$12 sps:$4 sm:$0xff]   ;;  %v5489_v62 = vld [vmem:[%s7460_s1 + $0x348] ss:$12 sps:$4 sm:$0xff]  }
  0x49   : > { %624 = vmatprep.subr.bf16.mxu0 %v5421_v63  ;;  %952 = vmatprep.subr.bf16.mxu1 %v5425_v0  ;;  %v5493_v63 = vld [vmem:[%s7460_s1 + $0x350] ss:$12 sps:$4 sm:$0xff]   ;;  %v5496_v0 = vld [vmem:[%s7460_s1 + $0x334] ss:$12 sps:$4 sm:$0xff]  }
  0x4c   : > { %625 = vmatpush2.bf16.msra.mxu0 %v5426_v2  ;;  %953 = vmatpush1.bf16.msra.mxu1 %v5423_v1  ;;  %v5497_v1 = vld [vmem:[%s7460_s1 + $0x3f8] ss:$12 sps:$4 sm:$0xff]   ;;  %v5494_v2 = vld [vmem:[%s7460_s1 + $0x330] ss:$12 sps:$4 sm:$0xff]  }
  0x4d   : > { %5118 = vmatprep.subr.bf16.mxu0 %v5430_v3  ;;  %954 = vmatprep.subr.bf16.mxu1 %v5429_v4  ;;  %v5498_v3 = vld [vmem:[%s7460_s1 + $0x338] ss:$12 sps:$4 sm:$0xff]   ;;  %v4342_v4 = vcombine.low %v1019_v48, %v1019_v48 }
  0x4e   : > { %v5558_v48 = vld [vmem:[%s7460_s1 + $0x484] ss:$12 sps:$4 sm:$0xff]  }
  0x4f   : > { %627 = vmatmul.mubr.bf16.vlgmr.msra.gmra.mxu0 %v6144_v37  ;;  %v5471_v37 = vld [vmem:[%s7460_s1 + $0x3ac] ss:$12 sps:$4 sm:$0xff]  }
  0x50   : > { %5119 = vmatpush3.bf16.msra.mxu0 %v5431_v6  ;;  %955 = vmatpush2.bf16.msra.mxu1 %v5427_v5  ;;  %v5501_v5 = vld [vmem:[%s7460_s1 + $0x31c] ss:$12 sps:$4 sm:$0xff]   ;;  %v5502_v6 = vld [vmem:[%s7460_s1 + $0x3e0] ss:$12 sps:$4 sm:$0xff]  }
  0x51   : > { %5120 = vmatprep.subr.bf16.mxu0 %v5435_v7  ;;  %956 = vmatprep.subr.bf16.mxu1 %v5434_v8  ;;  %v5499_v7 = vld [vmem:[%s7460_s1 + $0x318] ss:$12 sps:$4 sm:$0xff]   ;;  %v5503_v8 = vld [vmem:[%s7460_s1 + $0x320] ss:$12 sps:$4 sm:$0xff]  }
  0x52   : > { %1011 = vmatprep.mubr.bf16.mxu0 %v4229_v20  ;;  %v5514_v20 = vld [vmem:[%s7460_s1 + $0x528] ss:$12 sps:$4 sm:$0xff]  }
  0x54   : > { %5121 = vmatpush3.bf16.msra.mxu0 %v5436_v9  ;;  %957 = vmatpush2.bf16.msra.mxu1 %v5432_v10  ;;  %v1093_v9 = vshll.u32 %v4342_v4, 16  ;;  %v5506_v10 = vld [vmem:[%s7460_s1 + $0x304] ss:$12 sps:$4 sm:$0xff]  }
  0x55   : > { %5122 = vmatprep.subr.bf16.mxu0 %v5440_v11  ;;  %958 = vmatprep.subr.bf16.mxu1 %v5439_v12  ;;  %v5507_v11 = vld [vmem:[%s7460_s1 + $0x3c8] ss:$12 sps:$4 sm:$0xff]   ;;  %v5504_v12 = vld [vmem:[%s7460_s1 + $0x300] ss:$12 sps:$4 sm:$0xff]  }
  0x58   : > { %5123 = vmatpush3.bf16.msra.mxu0 %v5441_v14  ;;  %959 = vmatpush2.bf16.msra.mxu1 %v5437_v13  ;;  %v5508_v13 = vld [vmem:[%s7460_s1 + $0x308] ss:$12 sps:$4 sm:$0xff]   ;;  %v1091_v14 = vshrl.u32 %v4342_v4, 16  ;;  %v5581_v4 = vld [vmem:[%s7460_s1 + $0x58c] ss:$12 sps:$4 sm:$0xff]  }
  0x59   : > { %5124 = vmatprep.subr.bf16.mxu0 %v5445_v15  ;;  %960 = vmatprep.subr.bf16.mxu1 %v5444_v16  ;;  %v1095_v15 = vrot.slane %v1093_v9, 1  ;;  %v5513_v16 = vld [vmem:[%s7460_s1 + $0x46c] ss:$12 sps:$4 sm:$0xff]  }
  0x5a   : > { %v5588_v9 = vld [vmem:[%s7460_s1 + $0x4b8] ss:$12 sps:$4 sm:$0xff]  }
  0x5c   : > { %5125 = vmatpush3.bf16.msra.mxu0 %v5446_v19  ;;  %961 = vmatpush2.bf16.msra.mxu1 %v5442_v18  ;;  %v5511_v18 = vld [vmem:[%s7460_s1 + $0x468] ss:$12 sps:$4 sm:$0xff]   ;;  %v6438_v19 = vor.u32 %v1095_v15, %v1091_v14  ;;  %v5589_v14 = vld [vmem:[%s7460_s1 + $0x558] ss:$12 sps:$4 sm:$0xff]  }
  0x5d   : > { %5126 = vmatprep.subr.bf16.mxu0 %v5450_v21  ;;  %962 = vmatprep.subr.bf16.mxu1 %v5449_v22  ;;  %v5519_v21 = vld [vmem:[%s7460_s1 + $0x454] ss:$12 sps:$4 sm:$0xff]  }
  0x5e   : > { %v5522_v22 = vld [vmem:[%s7460_s1 + $0x514] ss:$12 sps:$4 sm:$0xff]  }
  0x5f   : > { %v5597_v15 = vld [vmem:[%s7460_s1 + $0x548] ss:$12 sps:$4 sm:$0xff]  }
  0x60   : > { %5127 = vmatpush3.bf16.msra.mxu0 %v5451_v24  ;;  %963 = vmatpush2.bf16.msra.mxu1 %v5447_v23  ;;  %v5517_v23 = vld [vmem:[%s7460_s1 + $0x450] ss:$12 sps:$4 sm:$0xff]  }
  0x61   : > { %5128 = vmatprep.subr.bf16.mxu0 %v5455_v25  ;;  %964 = vmatprep.subr.bf16.mxu1 %v5454_v26  ;;  %v5520_v24 = vld [vmem:[%s7460_s1 + $0x510] ss:$12 sps:$4 sm:$0xff]  }
  0x62   : > { %v5525_v25 = vld [vmem:[%s7460_s1 + $0x43c] ss:$12 sps:$4 sm:$0xff]  }
  0x63   : > { %v5528_v26 = vld [vmem:[%s7460_s1 + $0x4fc] ss:$12 sps:$4 sm:$0xff]  }
  0x64   : > { %5129 = vmatpush3.bf16.msra.mxu0 %v5456_v28  ;;  %965 = vmatpush2.bf16.msra.mxu1 %v5452_v27  ;;  %v5523_v27 = vld [vmem:[%s7460_s1 + $0x438] ss:$12 sps:$4 sm:$0xff]  }
  0x65   : > { %5130 = vmatprep.subr.bf16.mxu0 %v5460_v29  ;;  %966 = vmatprep.subr.bf16.mxu1 %v5459_v30  ;;  %v5526_v28 = vld [vmem:[%s7460_s1 + $0x4f8] ss:$12 sps:$4 sm:$0xff]  }
  0x66   : > { %v5531_v29 = vld [vmem:[%s7460_s1 + $0x424] ss:$12 sps:$4 sm:$0xff]  }
  0x67   : > { %v5534_v30 = vld [vmem:[%s7460_s1 + $0x4e4] ss:$12 sps:$4 sm:$0xff]  }
  0x68   : > { %5131 = vmatpush3.bf16.msra.mxu0 %v5461_v31  ;;  %967 = vmatpush2.bf16.msra.mxu1 %v5457_v32  ;;  %v5529_v31 = vld [vmem:[%s7460_s1 + $0x420] ss:$12 sps:$4 sm:$0xff]  }
  0x69   : > { %5132 = vmatprep.subr.bf16.mxu0 %v5465_v33  ;;  %968 = vmatprep.subr.bf16.mxu1 %v5464_v34  ;;  %v5532_v32 = vld [vmem:[%s7460_s1 + $0x4e0] ss:$12 sps:$4 sm:$0xff]  }
  0x6a   : > { %v5537_v33 = vld [vmem:[%s7460_s1 + $0x40c] ss:$12 sps:$4 sm:$0xff]  }
  0x6b   : > { %v5540_v34 = vld [vmem:[%s7460_s1 + $0x4cc] ss:$12 sps:$4 sm:$0xff]  }
  0x6c   : > { %5133 = vmatpush3.bf16.msra.mxu0 %v5466_v36  ;;  %969 = vmatpush2.bf16.msra.mxu1 %v5462_v35  ;;  %v5535_v35 = vld [vmem:[%s7460_s1 + $0x408] ss:$12 sps:$4 sm:$0xff]  }
  0x6d   : > { %1362 = vmatprep.subr.bf16.mxu0 %v5471_v37  ;;  %5140 = vmatprep.subr.bf16.mxu1 %v5472_v38  ;;  %v5538_v36 = vld [vmem:[%s7460_s1 + $0x4c8] ss:$12 sps:$4 sm:$0xff]  }
  0x6e   : > { %v5543_v37 = vld [vmem:[%s7460_s1 + $0x3f4] ss:$12 sps:$4 sm:$0xff]  }
  0x6f   : > { %1012 = vmatmul.mubr.bf16.vlgmr.msra.gmra.mxu0 %v4228_v39  ;;  %971 = vmatmul.mubr.bf16.vlgmr.msra.gmra.mxu1 %v4228_v39  ;;  %v5546_v38 = vld [vmem:[%s7460_s1 + $0x4b4] ss:$12 sps:$4 sm:$0xff]   ;;  %v5541_v39 = vld [vmem:[%s7460_s1 + $0x3f0] ss:$12 sps:$4 sm:$0xff]  }
  0x70   : > { %1363 = vmatpush1.bf16.msra.mxu0 %v5469_v40  ;;  %5141 = vmatpush3.bf16.msra.mxu1 %v5473_v41  ;;  %v5544_v40 = vld [vmem:[%s7460_s1 + $0x4b0] ss:$12 sps:$4 sm:$0xff]  }
  0x71   : > { %1364 = vmatprep.subr.bf16.mxu0 %v5476_v42  ;;  %5142 = vmatprep.subr.bf16.mxu1 %v5477_v43  ;;  %v5549_v41 = vld [vmem:[%s7460_s1 + $0x3dc] ss:$12 sps:$4 sm:$0xff]   ;;  %v6511_v43 = vld [vmem:[%s6117_s11 + $0x50] sm:$0x33] }
  0x72   : > { %1435 = vmatprep.mubr.bf16.mxu1 %v1103_v60  ;;  %1394 = vmatprep.mubr.bf16.mxu0 %v1103_v60  ;;  %v5552_v42 = vld [vmem:[%s7460_s1 + $0x49c] ss:$12 sps:$4 sm:$0xff]  }
  0x73   : > { %v5571_v60 = vld [vmem:[%s7460_s1 + $0x5bc] ss:$12 sps:$4 sm:$0xff]  }
  0x74   : > { %1365 = vmatpush1.bf16.msra.mxu0 %v5474_v44  ;;  %5143 = vmatpush3.bf16.msra.mxu1 %v5478_v45  ;;  %v5547_v44 = vld [vmem:[%s7460_s1 + $0x3d8] ss:$12 sps:$4 sm:$0xff]   ;;  %v4460_v45 = vcombine.high %v6511_v43, %v6511_v43 }
  0x75   : > { %1366 = vmatprep.subr.bf16.mxu0 %v5481_v46  ;;  %5144 = vmatprep.subr.bf16.mxu1 %v5482_v47  ;;  %v5550_v46 = vld [vmem:[%s7460_s1 + $0x498] ss:$12 sps:$4 sm:$0xff]  }
  0x76   : > { %v5555_v47 = vld [vmem:[%s7460_s1 + $0x3c4] ss:$12 sps:$4 sm:$0xff]  }
  0x78   : > { %1367 = vmatpush1.bf16.msra.mxu0 %v5479_v50  ;;  %5145 = vmatpush3.bf16.msra.mxu1 %v5483_v51  ;;  %v5556_v50 = vld [vmem:[%s7460_s1 + $0x480] ss:$12 sps:$4 sm:$0xff]   ;;  %v5562_v51 = vld [vmem:[%s7460_s1 + $0x5f0] ss:$12 sps:$4 sm:$0xff]  }
  0x79   : > { %1368 = vmatprep.subr.bf16.mxu0 %v5486_v52  ;;  %5146 = vmatprep.subr.bf16.mxu1 %v5487_v55  ;;  %v5561_v52 = vld [vmem:[%s7460_s1 + $0x5ec] ss:$12 sps:$4 sm:$0xff]  }
  0x7a   : > { %v5567_v55 = vld [vmem:[%s7460_s1 + $0x5d8] ss:$12 sps:$4 sm:$0xff]  }
  0x7c   : > { %1369 = vmatpush1.bf16.msra.mxu0 %v5484_v57  ;;  %5147 = vmatpush3.bf16.msra.mxu1 %v5488_v58  ;;  %v5568_v57 = vld [vmem:[%s7460_s1 + $0x518] ss:$12 sps:$4 sm:$0xff]   ;;  %v5564_v58 = vld [vmem:[%s7460_s1 + $0x5d0] ss:$12 sps:$4 sm:$0xff]  }
  0x7d   : > { %1370 = vmatprep.subr.bf16.mxu0 %v5491_v59  ;;  %5148 = vmatprep.subr.bf16.mxu1 %v5492_v61  ;;  %v5572_v59 = vld [vmem:[%s7460_s1 + $0x5c0] ss:$12 sps:$4 sm:$0xff]   ;;  %v5569_v61 = vld [vmem:[%s7460_s1 + $0x5b8] ss:$12 sps:$4 sm:$0xff]  }
  0x80   : > { %1371 = vmatpush1.bf16.msra.mxu0 %v5489_v62  ;;  %5149 = vmatpush3.bf16.msra.mxu1 %v5493_v63  ;;  %v5573_v62 = vld [vmem:[%s7460_s1 + $0x500] ss:$12 sps:$4 sm:$0xff]   ;;  %v5577_v63 = vld [vmem:[%s7460_s1 + $0x5a8] ss:$12 sps:$4 sm:$0xff]  }
  0x81   : > { %1372 = vmatprep.subr.bf16.mxu0 %v5496_v0  ;;  %5150 = vmatprep.subr.bf16.mxu1 %v5497_v1  ;;  %v5576_v0 = vld [vmem:[%s7460_s1 + $0x5a4] ss:$12 sps:$4 sm:$0xff]   ;;  %v5574_v1 = vld [vmem:[%s7460_s1 + $0x5a0] ss:$12 sps:$4 sm:$0xff]  }
  0x84   : > { %1373 = vmatpush1.bf16.msra.mxu0 %v5494_v2  ;;  %5151 = vmatpush3.bf16.msra.mxu1 %v5498_v3  ;;  %v5578_v2 = vld [vmem:[%s7460_s1 + $0x4e8] ss:$12 sps:$4 sm:$0xff]   ;;  %v5582_v3 = vld [vmem:[%s7460_s1 + $0x590] ss:$12 sps:$4 sm:$0xff]  }
  0x85   : > { %1374 = vmatprep.subr.bf16.mxu0 %v5501_v5  ;;  %5152 = vmatprep.subr.bf16.mxu1 %v5502_v6  ;;  %v5583_v5 = vld [vmem:[%s7460_s1 + $0x4d0] ss:$12 sps:$4 sm:$0xff]   ;;  %v5579_v6 = vld [vmem:[%s7460_s1 + $0x588] ss:$12 sps:$4 sm:$0xff]  }
  0x88   : > { %1375 = vmatpush1.bf16.msra.mxu0 %v5499_v7  ;;  %5153 = vmatpush3.bf16.msra.mxu1 %v5503_v8  ;;  %v5587_v7 = vld [vmem:[%s7460_s1 + $0x578] ss:$12 sps:$4 sm:$0xff]   ;;  %v5586_v8 = vld [vmem:[%s7460_s1 + $0x574] ss:$12 sps:$4 sm:$0xff]  }
  0x89   : > { %1376 = vmatprep.subr.bf16.mxu0 %v5506_v10  ;;  %5154 = vmatprep.subr.bf16.mxu1 %v5507_v11  ;;  %v5584_v10 = vld [vmem:[%s7460_s1 + $0x570] ss:$12 sps:$4 sm:$0xff]   ;;  %v5592_v11 = vld [vmem:[%s7460_s1 + $0x560] ss:$12 sps:$4 sm:$0xff]  }
  0x8c   : > { %1377 = vmatpush1.bf16.msra.mxu0 %v5504_v12  ;;  %5155 = vmatpush3.bf16.msra.mxu1 %v5508_v13  ;;  %v5591_v12 = vld [vmem:[%s7460_s1 + $0x55c] ss:$12 sps:$4 sm:$0xff]   ;;  %v5593_v13 = vld [vmem:[%s7460_s1 + $0x4a0] ss:$12 sps:$4 sm:$0xff]  }
  0x8d   : > { %1378 = vmatprep.subr.bf16.mxu0 %v5513_v16  ;;  %1778 = vmatprep.subr.bf16.mxu1 %v5516_v17  ;;  %v5596_v16 = vld [vmem:[%s7460_s1 + $0x544] ss:$12 sps:$4 sm:$0xff]   ;;  %v5598_v17 = vld [vmem:[%s7460_s1 + $0x488] ss:$12 sps:$4 sm:$0xff]  }
  0x8f   : > { %1436 = vmatmul.mubr.bf16.vlgmr.msra.gmra.mxu1 %v6438_v19 }
  0x90   : > { %1379 = vmatpush2.bf16.msra.mxu0 %v5511_v18  ;;  %1779 = vmatpush1.bf16.msra.mxu1 %v5514_v20  ;;  %v5594_v18 = vld [vmem:[%s7460_s1 + $0x540] ss:$12 sps:$4 sm:$0xff]   ;;  %v5604_v20 = vld [vmem:[%s7460_s1 + $0x770] ss:$12 sps:$4 sm:$0xff]  }
  0x91   : > { %1380 = vmatprep.subr.bf16.mxu0 %v5519_v21  ;;  %1780 = vmatprep.subr.bf16.mxu1 %v5522_v22  ;;  %v4459_v21 = vcombine.low %v6511_v43, %v6511_v43  ;;  %v6639_v22 = vld [vmem:[%s6117_s11 + $0x78] sm:$0x33] }
  0x92   : > { %1810 = vmatprep.mubr.bf16.mxu1 %v4460_v45  ;;  %v5629_v43 = vld [vmem:[%s7460_s1 + $0x6f8] ss:$12 sps:$4 sm:$0xff]  }
  0x94   : > { %1381 = vmatpush2.bf16.msra.mxu0 %v5517_v23  ;;  %1781 = vmatpush1.bf16.msra.mxu1 %v5520_v24  ;;  %v5601_v23 = vld [vmem:[%s7460_s1 + $0x6a8] ss:$12 sps:$4 sm:$0xff]   ;;  %v5605_v24 = vld [vmem:[%s7460_s1 + $0x6b0] ss:$12 sps:$4 sm:$0xff]  }
  0x95   : > { %1382 = vmatprep.subr.bf16.mxu0 %v5525_v25  ;;  %1782 = vmatprep.subr.bf16.mxu1 %v5528_v26  ;;  %v5608_v25 = vld [vmem:[%s7460_s1 + $0x694] ss:$12 sps:$4 sm:$0xff]   ;;  %v5609_v26 = vld [vmem:[%s7460_s1 + $0x758] ss:$12 sps:$4 sm:$0xff]  }
  0x98   : > { %1383 = vmatpush2.bf16.msra.mxu0 %v5523_v27  ;;  %1783 = vmatpush1.bf16.msra.mxu1 %v5526_v28  ;;  %v4577_v27 = vcombine.high %v6639_v22, %v6639_v22  ;;  %v5606_v28 = vld [vmem:[%s7460_s1 + $0x690] ss:$12 sps:$4 sm:$0xff]  }
  0x99   : > { %1384 = vmatprep.subr.bf16.mxu0 %v5531_v29  ;;  %1784 = vmatprep.subr.bf16.mxu1 %v5534_v30  ;;  %v5610_v29 = vld [vmem:[%s7460_s1 + $0x698] ss:$12 sps:$4 sm:$0xff]   ;;  %v5613_v30 = vld [vmem:[%s7460_s1 + $0x67c] ss:$12 sps:$4 sm:$0xff]  }
  0x9c   : > { %1385 = vmatpush2.bf16.msra.mxu0 %v5529_v31  ;;  %1785 = vmatpush1.bf16.msra.mxu1 %v5532_v32  ;;  %v5614_v31 = vld [vmem:[%s7460_s1 + $0x740] ss:$12 sps:$4 sm:$0xff]   ;;  %v5611_v32 = vld [vmem:[%s7460_s1 + $0x678] ss:$12 sps:$4 sm:$0xff]  }
  0x9d   : > { %1386 = vmatprep.subr.bf16.mxu0 %v5537_v33  ;;  %1786 = vmatprep.subr.bf16.mxu1 %v5540_v34  ;;  %v5615_v33 = vld [vmem:[%s7460_s1 + $0x680] ss:$12 sps:$4 sm:$0xff]   ;;  %v5618_v34 = vld [vmem:[%s7460_s1 + $0x664] ss:$12 sps:$4 sm:$0xff]  }
  0xa0   : > { %1387 = vmatpush2.bf16.msra.mxu0 %v5535_v35  ;;  %1787 = vmatpush1.bf16.msra.mxu1 %v5538_v36  ;;  %v5619_v35 = vld [vmem:[%s7460_s1 + $0x728] ss:$12 sps:$4 sm:$0xff]   ;;  %v5616_v36 = vld [vmem:[%s7460_s1 + $0x660] ss:$12 sps:$4 sm:$0xff]  }
  0xa1   : > { %1388 = vmatprep.subr.bf16.mxu0 %v5543_v37  ;;  %1788 = vmatprep.subr.bf16.mxu1 %v5546_v38  ;;  %v5620_v37 = vld [vmem:[%s7460_s1 + $0x668] ss:$12 sps:$4 sm:$0xff]   ;;  %v5623_v38 = vld [vmem:[%s7460_s1 + $0x64c] ss:$12 sps:$4 sm:$0xff]  }
  0xa4   : > { %1389 = vmatpush2.bf16.msra.mxu0 %v5541_v39  ;;  %1789 = vmatpush1.bf16.msra.mxu1 %v5544_v40  ;;  %v5624_v39 = vld [vmem:[%s7460_s1 + $0x710] ss:$12 sps:$4 sm:$0xff]   ;;  %v5621_v40 = vld [vmem:[%s7460_s1 + $0x648] ss:$12 sps:$4 sm:$0xff]  }
  0xa5   : > { %1390 = vmatprep.subr.bf16.mxu0 %v5549_v41  ;;  %1790 = vmatprep.subr.bf16.mxu1 %v5552_v42  ;;  %v5625_v41 = vld [vmem:[%s7460_s1 + $0x650] ss:$12 sps:$4 sm:$0xff]   ;;  %v5628_v42 = vld [vmem:[%s7460_s1 + $0x634] ss:$12 sps:$4 sm:$0xff]  }
  0xa8   : > { %1391 = vmatpush2.bf16.msra.mxu0 %v5547_v44  ;;  %1791 = vmatpush1.bf16.msra.mxu1 %v5550_v46  ;;  %v5626_v44 = vld [vmem:[%s7460_s1 + $0x630] ss:$12 sps:$4 sm:$0xff]  }
  0xa9   : > { %1392 = vmatprep.subr.bf16.mxu0 %v5555_v47  ;;  %1792 = vmatprep.subr.bf16.mxu1 %v5558_v48  ;;  %v5633_v46 = vld [vmem:[%s7460_s1 + $0x61c] ss:$12 sps:$4 sm:$0xff]   ;;  %v5634_v47 = vld [vmem:[%s7460_s1 + $0x6e0] ss:$12 sps:$4 sm:$0xff]   ;;  %v5631_v48 = vld [vmem:[%s7460_s1 + $0x618] ss:$12 sps:$4 sm:$0xff]  }
  0xac   : > { %1393 = vmatpush2.bf16.msra.mxu0 %v5553_v49  ;;  %1793 = vmatpush1.bf16.msra.mxu1 %v5556_v50  ;;  %v5635_v49 = vld [vmem:[%s7460_s1 + $0x620] ss:$12 sps:$4 sm:$0xff]   ;;  %v5638_v50 = vld [vmem:[%s7460_s1 + $0x604] ss:$12 sps:$4 sm:$0xff]  }
  0xad   : > { %5162 = vmatprep.subr.bf16.mxu0 %v5562_v51  ;;  %1794 = vmatprep.subr.bf16.mxu1 %v5561_v52  ;;  %v5639_v51 = vld [vmem:[%s7460_s1 + $0x6c8] ss:$12 sps:$4 sm:$0xff]   ;;  %v5636_v52 = vld [vmem:[%s7460_s1 + $0x600] ss:$12 sps:$4 sm:$0xff]  }
  0xaf   : > { %1395 = vmatmul.mubr.bf16.vlgmr.msra.gmra.mxu0 %v6438_v19  ;;  %v5603_v19 = vld [vmem:[%s7460_s1 + $0x6ac] ss:$12 sps:$4 sm:$0xff]  }
  0xb0   : > { %5163 = vmatpush3.bf16.msra.mxu0 %v5563_v54  ;;  %1851 = vmatprep.mubr.bf16.mxu0 %v4460_v45  ;;  %v5630_v45 = vld [vmem:[%s7460_s1 + $0x638] ss:$12 sps:$4 sm:$0xff]  }
  0xb1   : > { %1795 = vmatpush2.bf16.msra.mxu1 %v5559_v53  ;;  %5164 = vmatprep.subr.bf16.mxu0 %v5567_v55  ;;  %v5640_v53 = vld [vmem:[%s7460_s1 + $0x608] ss:$12 sps:$4 sm:$0xff]   ;;  %v5645_v54 = vld [vmem:[%s7460_s1 + $0x76c] ss:$12 sps:$4 sm:$0xff]  }
  0xb2   : > { %1796 = vmatprep.subr.bf16.mxu1 %v5566_v56  ;;  %v5648_v55 = vld [vmem:[%s7460_s1 + $0x82c] ss:$12 sps:$4 sm:$0xff]   ;;  %v5643_v56 = vld [vmem:[%s7460_s1 + $0x768] ss:$12 sps:$4 sm:$0xff]  }
  0xb4   : > { %5165 = vmatpush3.bf16.msra.mxu0 %v5568_v57  ;;  %v5646_v57 = vld [vmem:[%s7460_s1 + $0x828] ss:$12 sps:$4 sm:$0xff]  }
  0xb5   : > { %1797 = vmatpush2.bf16.msra.mxu1 %v5564_v58  ;;  %5166 = vmatprep.subr.bf16.mxu0 %v5572_v59  ;;  %v6747_v58 = vcombine.low %v6639_v22, %v6639_v22  ;;  %v5651_v59 = vld [vmem:[%s7460_s1 + $0x754] ss:$12 sps:$4 sm:$0xff]  }
  0xb6   : > { %1798 = vmatprep.subr.bf16.mxu1 %v5571_v60  ;;  %v5654_v60 = vld [vmem:[%s7460_s1 + $0x814] ss:$12 sps:$4 sm:$0xff]  }
  0xb7   : > { %v5675_v22 = vld [vmem:[%s7460_s1 + $0x6f4] ss:$12 sps:$4 sm:$0xff]  }
  0xb8   : > { %5167 = vmatpush3.bf16.msra.mxu0 %v5573_v62  ;;  %v5649_v62 = vld [vmem:[%s7460_s1 + $0x750] ss:$12 sps:$4 sm:$0xff]  }
  0xb9   : > { %1799 = vmatpush2.bf16.msra.mxu1 %v5569_v61  ;;  %5168 = vmatprep.subr.bf16.mxu0 %v5577_v63  ;;  %v6756_v61 = vld [vmem:[%s6117_s11 + $0x50] sm:$0x77] }
  0xba   : > { %1800 = vmatprep.subr.bf16.mxu1 %v5576_v0  ;;  %v4692_v63 = vcombine.high %v6756_v61, %v6756_v61  ;;  %v5652_v0 = vld [vmem:[%s7460_s1 + $0x810] ss:$12 sps:$4 sm:$0xff]  }
  0xbc   : > { %5169 = vmatpush3.bf16.msra.mxu0 %v5578_v2  ;;  %v5657_v2 = vld [vmem:[%s7460_s1 + $0x73c] ss:$12 sps:$4 sm:$0xff]  }
  0xbd   : > { %1801 = vmatpush2.bf16.msra.mxu1 %v5574_v1  ;;  %5170 = vmatprep.subr.bf16.mxu0 %v5582_v3  ;;  %v2357_v3 = vshrl.u32 %v4692_v63, 16 }
  0xbe   : > { %1802 = vmatprep.subr.bf16.mxu1 %v5581_v4  ;;  %v2359_v4 = vshll.u32 %v4692_v63, 16  ;;  %v5720_v63 = vld [vmem:[%s7460_s1 + $0x7b8] ss:$12 sps:$4 sm:$0xff]  }
  0xc0   : > { %5171 = vmatpush3.bf16.msra.mxu0 %v5583_v5  ;;  %v5660_v5 = vld [vmem:[%s7460_s1 + $0x7fc] ss:$12 sps:$4 sm:$0xff]  }
  0xc1   : > { %1803 = vmatpush2.bf16.msra.mxu1 %v5579_v6  ;;  %5172 = vmatprep.subr.bf16.mxu0 %v5587_v7  ;;  %v5655_v7 = vld [vmem:[%s7460_s1 + $0x738] ss:$12 sps:$4 sm:$0xff]  }
  0xc2   : > { %1804 = vmatprep.subr.bf16.mxu1 %v5586_v8 }
  0xc4   : > { %5173 = vmatpush3.bf16.msra.mxu0 %v5588_v9  ;;  %v2361_v9 = vrot.slane %v2359_v4, 1  ;;  %v5729_v4 = vld [vmem:[%s7460_s1 + $0x848] ss:$12 sps:$4 sm:$0xff]  }
  0xc5   : > { %1805 = vmatpush2.bf16.msra.mxu1 %v5584_v10  ;;  %5174 = vmatprep.subr.bf16.mxu0 %v5592_v11  ;;  %v5658_v10 = vld [vmem:[%s7460_s1 + $0x7f8] ss:$12 sps:$4 sm:$0xff]  }
  0xc6   : > { %1806 = vmatprep.subr.bf16.mxu1 %v5591_v12  ;;  %v5663_v12 = vld [vmem:[%s7460_s1 + $0x724] ss:$12 sps:$4 sm:$0xff]  }
  0xc8   : > { %5175 = vmatpush3.bf16.msra.mxu0 %v5593_v13  ;;  %v2362_v13 = vor.u32 %v2361_v9, %v2357_v3  ;;  %v5725_v3 = vld [vmem:[%s7460_s1 + $0x7a0] ss:$12 sps:$4 sm:$0xff]  }
  0xc9   : > { %1807 = vmatpush2.bf16.msra.mxu1 %v5589_v14  ;;  %5176 = vmatprep.subr.bf16.mxu0 %v5597_v15  ;;  %v5666_v14 = vld [vmem:[%s7460_s1 + $0x7e4] ss:$12 sps:$4 sm:$0xff]  }
  0xca   : > { %1808 = vmatprep.subr.bf16.mxu1 %v5596_v16  ;;  %v5661_v16 = vld [vmem:[%s7460_s1 + $0x720] ss:$12 sps:$4 sm:$0xff]  }
  0xcc   : > { %5177 = vmatpush3.bf16.msra.mxu0 %v5598_v17  ;;  %v5664_v17 = vld [vmem:[%s7460_s1 + $0x7e0] ss:$12 sps:$4 sm:$0xff]  }
  0xcd   : > { %1809 = vmatpush2.bf16.msra.mxu1 %v5594_v18  ;;  %2194 = vmatprep.subr.bf16.mxu0 %v5603_v19  ;;  %v5669_v18 = vld [vmem:[%s7460_s1 + $0x70c] ss:$12 sps:$4 sm:$0xff]  }
  0xce   : > { %5184 = vmatprep.subr.bf16.mxu1 %v5604_v20  ;;  %v5672_v19 = vld [vmem:[%s7460_s1 + $0x7cc] ss:$12 sps:$4 sm:$0xff]   ;;  %v5667_v20 = vld [vmem:[%s7460_s1 + $0x708] ss:$12 sps:$4 sm:$0xff]  }
  0xcf   : > { %1852 = vmatmul.mubr.bf16.vlgmr.msra.gmra.mxu0 %v4459_v21 }
  0xd0   : > { %1811 = vmatmul.mubr.bf16.vlgmr.msra.gmra.mxu1 %v4459_v21  ;;  %2195 = vmatpush1.bf16.msra.mxu0 %v5601_v23  ;;  %v5670_v21 = vld [vmem:[%s7460_s1 + $0x7c8] ss:$12 sps:$4 sm:$0xff]  }
  0xd1   : > { %5185 = vmatpush3.bf16.msra.mxu1 %v5605_v24  ;;  %2196 = vmatprep.subr.bf16.mxu0 %v5608_v25  ;;  %v5678_v23 = vld [vmem:[%s7460_s1 + $0x7b4] ss:$12 sps:$4 sm:$0xff]   ;;  %v5673_v24 = vld [vmem:[%s7460_s1 + $0x6f0] ss:$12 sps:$4 sm:$0xff]  }
  0xd2   : > { %5186 = vmatprep.subr.bf16.mxu1 %v5609_v26  ;;  %2267 = vmatprep.mubr.bf16.mxu1 %v4577_v27  ;;  %v5676_v25 = vld [vmem:[%s7460_s1 + $0x7b0] ss:$12 sps:$4 sm:$0xff]  }
  0xd3   : > { %2226 = vmatprep.mubr.bf16.mxu0 %v4577_v27  ;;  %v5681_v26 = vld [vmem:[%s7460_s1 + $0x6dc] ss:$12 sps:$4 sm:$0xff]  }
  0xd4   : > { %2197 = vmatpush1.bf16.msra.mxu0 %v5606_v28  ;;  %v5684_v27 = vld [vmem:[%s7460_s1 + $0x79c] ss:$12 sps:$4 sm:$0xff]   ;;  %v5679_v28 = vld [vmem:[%s7460_s1 + $0x6d8] ss:$12 sps:$4 sm:$0xff]  }
  0xd5   : > { %5187 = vmatpush3.bf16.msra.mxu1 %v5610_v29  ;;  %2198 = vmatprep.subr.bf16.mxu0 %v5613_v30  ;;  %v5682_v29 = vld [vmem:[%s7460_s1 + $0x798] ss:$12 sps:$4 sm:$0xff]  }
  0xd6   : > { %5188 = vmatprep.subr.bf16.mxu1 %v5614_v31  ;;  %v5687_v30 = vld [vmem:[%s7460_s1 + $0x6c4] ss:$12 sps:$4 sm:$0xff]  }
  0xd7   : > { %v5690_v31 = vld [vmem:[%s7460_s1 + $0x784] ss:$12 sps:$4 sm:$0xff]  }
  0xd8   : > { %2199 = vmatpush1.bf16.msra.mxu0 %v5611_v32  ;;  %v5685_v32 = vld [vmem:[%s7460_s1 + $0x6c0] ss:$12 sps:$4 sm:$0xff]  }
  0xd9   : > { %5189 = vmatpush3.bf16.msra.mxu1 %v5615_v33  ;;  %2200 = vmatprep.subr.bf16.mxu0 %v5618_v34  ;;  %v5688_v33 = vld [vmem:[%s7460_s1 + $0x780] ss:$12 sps:$4 sm:$0xff]   ;;  %v5694_v34 = vld [vmem:[%s7460_s1 + $0x8f0] ss:$12 sps:$4 sm:$0xff]  }
  0xda   : > { %5190 = vmatprep.subr.bf16.mxu1 %v5619_v35  ;;  %v5693_v35 = vld [vmem:[%s7460_s1 + $0x8ec] ss:$12 sps:$4 sm:$0xff]  }
  0xdc   : > { %2201 = vmatpush1.bf16.msra.mxu0 %v5616_v36  ;;  %v5691_v36 = vld [vmem:[%s7460_s1 + $0x8e8] ss:$12 sps:$4 sm:$0xff]  }
  0xdd   : > { %5191 = vmatpush3.bf16.msra.mxu1 %v5620_v37  ;;  %2202 = vmatprep.subr.bf16.mxu0 %v5623_v38  ;;  %v5695_v37 = vld [vmem:[%s7460_s1 + $0x830] ss:$12 sps:$4 sm:$0xff]   ;;  %v5699_v38 = vld [vmem:[%s7460_s1 + $0x8d8] ss:$12 sps:$4 sm:$0xff]  }
  0xde   : > { %5192 = vmatprep.subr.bf16.mxu1 %v5624_v39  ;;  %v5698_v39 = vld [vmem:[%s7460_s1 + $0x8d4] ss:$12 sps:$4 sm:$0xff]  }
  0xe0   : > { %2203 = vmatpush1.bf16.msra.mxu0 %v5621_v40 }
  0xe1   : > { %5193 = vmatpush3.bf16.msra.mxu1 %v5625_v41  ;;  %2204 = vmatprep.subr.bf16.mxu0 %v5628_v42  ;;  %v5696_v41 = vld [vmem:[%s7460_s1 + $0x8d0] ss:$12 sps:$4 sm:$0xff]   ;;  %v5700_v42 = vld [vmem:[%s7460_s1 + $0x818] ss:$12 sps:$4 sm:$0xff]  }
  0xe2   : > { %5194 = vmatprep.subr.bf16.mxu1 %v5629_v43 }
  0xe4   : > { %2205 = vmatpush1.bf16.msra.mxu0 %v5626_v44  ;;  %v5704_v44 = vld [vmem:[%s7460_s1 + $0x8c0] ss:$12 sps:$4 sm:$0xff]  }
  0xe5   : > { %5195 = vmatpush3.bf16.msra.mxu1 %v5630_v45  ;;  %2206 = vmatprep.subr.bf16.mxu0 %v5633_v46  ;;  %v5703_v45 = vld [vmem:[%s7460_s1 + $0x8bc] ss:$12 sps:$4 sm:$0xff]  }
  0xe6   : > { %5196 = vmatprep.subr.bf16.mxu1 %v5634_v47  ;;  %v5701_v47 = vld [vmem:[%s7460_s1 + $0x8b8] ss:$12 sps:$4 sm:$0xff]  }
  0xe8   : > { %2207 = vmatpush1.bf16.msra.mxu0 %v5631_v48  ;;  %v5705_v48 = vld [vmem:[%s7460_s1 + $0x800] ss:$12 sps:$4 sm:$0xff]  }
  0xe9   : > { %5197 = vmatpush3.bf16.msra.mxu1 %v5635_v49  ;;  %2208 = vmatprep.subr.bf16.mxu0 %v5638_v50  ;;  %v5709_v50 = vld [vmem:[%s7460_s1 + $0x8a8] ss:$12 sps:$4 sm:$0xff]  }
  0xea   : > { %5198 = vmatprep.subr.bf16.mxu1 %v5639_v51  ;;  %v5708_v51 = vld [vmem:[%s7460_s1 + $0x8a4] ss:$12 sps:$4 sm:$0xff]  }
  0xec   : > { %2209 = vmatpush1.bf16.msra.mxu0 %v5636_v52  ;;  %v5706_v52 = vld [vmem:[%s7460_s1 + $0x8a0] ss:$12 sps:$4 sm:$0xff]  }
  0xed   : > { %5199 = vmatpush3.bf16.msra.mxu1 %v5640_v53  ;;  %2210 = vmatprep.subr.bf16.mxu0 %v5645_v54  ;;  %v5710_v53 = vld [vmem:[%s7460_s1 + $0x7e8] ss:$12 sps:$4 sm:$0xff]   ;;  %v5714_v54 = vld [vmem:[%s7460_s1 + $0x890] ss:$12 sps:$4 sm:$0xff]  }
  0xee   : > { %2621 = vmatprep.subr.bf16.mxu1 %v5648_v55  ;;  %v5713_v55 = vld [vmem:[%s7460_s1 + $0x88c] ss:$12 sps:$4 sm:$0xff]  }
  0xef   : > { %v5112_v1 = vpop.f32.mrf.mxu1 }
  0xf0   : > { %2268 = vmatmul.mubr.bf16.vlgmr.msra.gmra.mxu1 %v6747_v58  ;;  %2211 = vmatpush2.bf16.msra.mxu0 %v5643_v56  ;;  %v5711_v56 = vld [vmem:[%s7460_s1 + $0x888] ss:$12 sps:$4 sm:$0xff]  }
  0xf1   : > { %2622 = vmatpush1.bf16.msra.mxu1 %v5646_v57  ;;  %2212 = vmatprep.subr.bf16.mxu0 %v5651_v59  ;;  %v5113_v6 = vpop.f32.mrf.mxu1  ;;  %v5715_v57 = vld [vmem:[%s7460_s1 + $0x7d0] ss:$12 sps:$4 sm:$0xff]   ;;  %v5718_v59 = vld [vmem:[%s7460_s1 + $0x874] ss:$12 sps:$4 sm:$0xff]  }
  0xf2   : > { %2623 = vmatprep.subr.bf16.mxu1 %v5654_v60  ;;  %v6776_v8 = vadd.f32 %v5113_v6, %v5112_v1  ;;  %2653 = vmatprep.mubr.bf16.mxu1 %v2362_v13  ;;  %v4691_v60 = vcombine.low %v6756_v61, %v6756_v61  ;;  %v5723_v61 = vld [vmem:[%s7460_s1 + $0x85c] ss:$12 sps:$4 sm:$0xff]   ;;  %v5721_v1 = vld [vmem:[%s7460_s1 + $0x858] ss:$12 sps:$4 sm:$0xff]   ;;  %v5726_v6 = vld [vmem:[%s7460_s1 + $0x840] ss:$12 sps:$4 sm:$0xff]  }
  0xf3   : > { %v5115_v11 = vpop.f32.mrf.mxu1 }
  0xf4   : > { %2213 = vmatpush2.bf16.msra.mxu0 %v5649_v62  ;;  %v5716_v62 = vld [vmem:[%s7460_s1 + $0x870] ss:$12 sps:$4 sm:$0xff]   ;;  %v5735_v11 = vld [vmem:[%s7460_s1 + $0x9ac] ss:$12 sps:$4 sm:$0xff]  }
  0xf5   : > { %2624 = vmatpush1.bf16.msra.mxu1 %v5652_v0  ;;  %2214 = vmatprep.subr.bf16.mxu0 %v5657_v2  ;;  %v5116_v15 = vpop.f32.mrf.mxu1  ;;  %v5724_v0 = vld [vmem:[%s7460_s1 + $0x860] ss:$12 sps:$4 sm:$0xff]   ;;  %v2352_v2 = vshll.u32 %v4691_v60, 16 }
  0xf6   : > { %2625 = vmatprep.subr.bf16.mxu1 %v5660_v5  ;;  %v5728_v5 = vld [vmem:[%s7460_s1 + $0x844] ss:$12 sps:$4 sm:$0xff]   ;;  %v6954_v15 = vld [vmem:[%s6117_s11 + $0x8] sm:$0x33] }
  0xf7   : > { %v2354_v9 = vrot.slane %v2352_v2, 1  ;;  %v5781_v2 = vld [vmem:[%s7460_s1 + $0xa50] ss:$12 sps:$4 sm:$0xff]  }
  0xf8   : > { %2215 = vmatpush2.bf16.msra.mxu0 %v5655_v7  ;;  %v2350_v7 = vshrl.u32 %v4691_v60, 16  ;;  %v7065_v60 = vcombine.low %v6954_v15, %v6954_v15 }
  0xf9   : > { %2626 = vmatpush1.bf16.msra.mxu1 %v5658_v10  ;;  %2216 = vmatprep.subr.bf16.mxu0 %v5663_v12  ;;  %v5730_v10 = vld [vmem:[%s7460_s1 + $0x788] ss:$12 sps:$4 sm:$0xff]  }
  0xfa   : > { %2627 = vmatprep.subr.bf16.mxu1 %v5666_v14  ;;  %v5733_v12 = vld [vmem:[%s7460_s1 + $0x9a8] ss:$12 sps:$4 sm:$0xff]   ;;  %v2355_v14 = vor.u32 %v2354_v9, %v2350_v7 }
  0xfb   : > { %v5792_v7 = vld [vmem:[%s7460_s1 + $0xafc] ss:$12 sps:$4 sm:$0xff]  }
  0xfc   : > { %2217 = vmatpush2.bf16.msra.mxu0 %v5661_v16  ;;  %v5737_v16 = vld [vmem:[%s7460_s1 + $0x9b0] ss:$12 sps:$4 sm:$0xff]  }
  0xfd   : > { %2628 = vmatpush1.bf16.msra.mxu1 %v5664_v17  ;;  %2218 = vmatprep.subr.bf16.mxu0 %v5669_v18  ;;  %v5740_v17 = vld [vmem:[%s7460_s1 + $0x994] ss:$12 sps:$4 sm:$0xff]   ;;  %v5741_v18 = vld [vmem:[%s7460_s1 + $0xa58] ss:$12 sps:$4 sm:$0xff]  }
  0xfe   : > { %2629 = vmatprep.subr.bf16.mxu1 %v5672_v19  ;;  %v4808_v19 = vcombine.high %v6954_v15, %v6954_v15  ;;  %v5798_v15 = vld [vmem:[%s7460_s1 + $0xae4] ss:$12 sps:$4 sm:$0xff]  }
 0x100   : > { %2219 = vmatpush2.bf16.msra.mxu0 %v5667_v20 }
 0x101   : > { %2630 = vmatpush1.bf16.msra.mxu1 %v5670_v21  ;;  %2220 = vmatprep.subr.bf16.mxu0 %v5675_v22  ;;  %v5738_v22 = vld [vmem:[%s7460_s1 + $0x990] ss:$12 sps:$4 sm:$0xff]  }
 0x102   : > { %2631 = vmatprep.subr.bf16.mxu1 %v5678_v23 }
 0x104   : > { %2221 = vmatpush2.bf16.msra.mxu0 %v5673_v24 }
 0x105   : > { %2632 = vmatpush1.bf16.msra.mxu1 %v5676_v25  ;;  %2222 = vmatprep.subr.bf16.mxu0 %v5681_v26  ;;  %v5742_v25 = vld [vmem:[%s7460_s1 + $0x998] ss:$12 sps:$4 sm:$0xff]   ;;  %v5745_v26 = vld [vmem:[%s7460_s1 + $0x97c] ss:$12 sps:$4 sm:$0xff]  }
 0x106   : > { %2633 = vmatprep.subr.bf16.mxu1 %v5684_v27 }
 0x108   : > { %2223 = vmatpush2.bf16.msra.mxu0 %v5679_v28 }
 0x109   : > { %2634 = vmatpush1.bf16.msra.mxu1 %v5682_v29  ;;  %2224 = vmatprep.subr.bf16.mxu0 %v5687_v30  ;;  %v5746_v29 = vld [vmem:[%s7460_s1 + $0xa40] ss:$12 sps:$4 sm:$0xff]  }
 0x10a   : > { %2635 = vmatprep.subr.bf16.mxu1 %v5690_v31 }
 0x10c   : > { %2225 = vmatpush2.bf16.msra.mxu0 %v5685_v32 }
 0x10d   : > { %2636 = vmatpush1.bf16.msra.mxu1 %v5688_v33  ;;  %5206 = vmatprep.subr.bf16.mxu0 %v5694_v34  ;;  %v5743_v33 = vld [vmem:[%s7460_s1 + $0x978] ss:$12 sps:$4 sm:$0xff]   ;;  %v5747_v34 = vld [vmem:[%s7460_s1 + $0x980] ss:$12 sps:$4 sm:$0xff]  }
 0x10e   : > { %2637 = vmatprep.subr.bf16.mxu1 %v5693_v35 }
 0x10f   : > { %v6859_v40 = vpop.f32.mrf.mxu0  ;;  %2227 = vmatmul.mubr.bf16.vlgmr.msra.gmra.mxu0 %v6747_v58  ;;  %v5719_v58 = vld [vmem:[%s7460_s1 + $0x878] ss:$12 sps:$4 sm:$0xff]  }
 0x110   : > { %5207 = vmatpush3.bf16.msra.mxu0 %v5695_v37  ;;  %2694 = vmatprep.mubr.bf16.mxu0 %v2362_v13  ;;  %v5736_v13 = vld [vmem:[%s7460_s1 + $0xa70] ss:$12 sps:$4 sm:$0xff]  }
 0x111   : > { %2638 = vmatpush2.bf16.msra.mxu1 %v5691_v36  ;;  %v6868_v43 = vpop.f32.mrf.mxu0  ;;  %5208 = vmatprep.subr.bf16.mxu0 %v5699_v38  ;;  %v5750_v37 = vld [vmem:[%s7460_s1 + $0x964] ss:$12 sps:$4 sm:$0xff]  }
 0x112   : > { %2639 = vmatprep.subr.bf16.mxu1 %v5698_v39  ;;  %v5748_v39 = vld [vmem:[%s7460_s1 + $0x960] ss:$12 sps:$4 sm:$0xff]  }
 0x113   : > { %v632_v46 = vpop.f32.mrf.mxu0 }
 0x114   : > { %5209 = vmatpush3.bf16.msra.mxu0 %v5700_v42  ;;  %v5756_v42 = vld [vmem:[%s7460_s1 + $0xa10] ss:$12 sps:$4 sm:$0xff]   ;;  %v5761_v46 = vld [vmem:[%s7460_s1 + $0x9f8] ss:$12 sps:$4 sm:$0xff]  }
 0x115   : > { %2640 = vmatpush2.bf16.msra.mxu1 %v5696_v41  ;;  %v633_v49 = vpop.f32.mrf.mxu0  ;;  %5210 = vmatprep.subr.bf16.mxu0 %v5704_v44  ;;  %v5755_v41 = vld [vmem:[%s7460_s1 + $0x94c] ss:$12 sps:$4 sm:$0xff]   ;;  %v5757_v44 = vld [vmem:[%s7460_s1 + $0x950] ss:$12 sps:$4 sm:$0xff]  }
 0x116   : > { %2641 = vmatprep.subr.bf16.mxu1 %v5703_v45  ;;  %v5760_v45 = vld [vmem:[%s7460_s1 + $0x934] ss:$12 sps:$4 sm:$0xff]   ;;  %v5765_v49 = vld [vmem:[%s7460_s1 + $0x91c] ss:$12 sps:$4 sm:$0xff]  }
 0x118   : > { %5211 = vmatpush3.bf16.msra.mxu0 %v5705_v48  ;;  %v5762_v48 = vld [vmem:[%s7460_s1 + $0x938] ss:$12 sps:$4 sm:$0xff]  }
 0x119   : > { %2642 = vmatpush2.bf16.msra.mxu1 %v5701_v47  ;;  %5212 = vmatprep.subr.bf16.mxu0 %v5709_v50  ;;  %v5758_v47 = vld [vmem:[%s7460_s1 + $0x930] ss:$12 sps:$4 sm:$0xff]   ;;  %v5766_v50 = vld [vmem:[%s7460_s1 + $0x9e0] ss:$12 sps:$4 sm:$0xff]  }
 0x11a   : > { %2643 = vmatprep.subr.bf16.mxu1 %v5708_v51  ;;  %v5763_v51 = vld [vmem:[%s7460_s1 + $0x918] ss:$12 sps:$4 sm:$0xff]  }
 0x11c   : > { %5213 = vmatpush3.bf16.msra.mxu0 %v5710_v53  ;;  %v5770_v53 = vld [vmem:[%s7460_s1 + $0x904] ss:$12 sps:$4 sm:$0xff]  }
 0x11d   : > { %2644 = vmatpush2.bf16.msra.mxu1 %v5706_v52  ;;  %5214 = vmatprep.subr.bf16.mxu0 %v5714_v54  ;;  %v5767_v52 = vld [vmem:[%s7460_s1 + $0x920] ss:$12 sps:$4 sm:$0xff]   ;;  %v5771_v54 = vld [vmem:[%s7460_s1 + $0x9c8] ss:$12 sps:$4 sm:$0xff]  }
 0x11e   : > { %2645 = vmatprep.subr.bf16.mxu1 %v5713_v55  ;;  %v5768_v55 = vld [vmem:[%s7460_s1 + $0x900] ss:$12 sps:$4 sm:$0xff]  }
 0x120   : > { %5215 = vmatpush3.bf16.msra.mxu0 %v5715_v57  ;;  %v5777_v57 = vld [vmem:[%s7460_s1 + $0xa6c] ss:$12 sps:$4 sm:$0xff]  }
 0x121   : > { %2646 = vmatpush2.bf16.msra.mxu1 %v5711_v56  ;;  %5216 = vmatprep.subr.bf16.mxu0 %v5719_v58  ;;  %v5772_v56 = vld [vmem:[%s7460_s1 + $0x908] ss:$12 sps:$4 sm:$0xff]   ;;  %v5780_v58 = vld [vmem:[%s7460_s1 + $0xb2c] ss:$12 sps:$4 sm:$0xff]  }
 0x122   : > { %2647 = vmatprep.subr.bf16.mxu1 %v5718_v59  ;;  %v7061_v59 = vld [vmem:[%s6117_s11 + $0x30] sm:$0x33] }
 0x124   : > { %5217 = vmatpush3.bf16.msra.mxu0 %v5720_v63  ;;  %v5778_v63 = vld [vmem:[%s7460_s1 + $0xb28] ss:$12 sps:$4 sm:$0xff]  }
 0x125   : > { %2648 = vmatpush2.bf16.msra.mxu1 %v5716_v62  ;;  %5218 = vmatprep.subr.bf16.mxu0 %v5724_v0  ;;  %v5775_v62 = vld [vmem:[%s7460_s1 + $0xa68] ss:$12 sps:$4 sm:$0xff]  }
 0x126   : > { %2649 = vmatprep.subr.bf16.mxu1 %v5723_v61  ;;  %v5783_v0 = vld [vmem:[%s7460_s1 + $0xa54] ss:$12 sps:$4 sm:$0xff]  }
 0x127   : > { %v5786_v61 = vld [vmem:[%s7460_s1 + $0xb14] ss:$12 sps:$4 sm:$0xff]  }
 0x128   : > { %5219 = vmatpush3.bf16.msra.mxu0 %v5725_v3 }
 0x129   : > { %2650 = vmatpush2.bf16.msra.mxu1 %v5721_v1  ;;  %5220 = vmatprep.subr.bf16.mxu0 %v5729_v4  ;;  %v7081_v1 = vcombine.high %v7061_v59, %v7061_v59  ;;  %v5784_v4 = vld [vmem:[%s7460_s1 + $0xb10] ss:$12 sps:$4 sm:$0xff]  }
 0x12a   : > { %2651 = vmatprep.subr.bf16.mxu1 %v5728_v5  ;;  %v5789_v5 = vld [vmem:[%s7460_s1 + $0xa3c] ss:$12 sps:$4 sm:$0xff]  }
 0x12c   : > { %5221 = vmatpush3.bf16.msra.mxu0 %v5730_v10  ;;  %v5787_v10 = vld [vmem:[%s7460_s1 + $0xa38] ss:$12 sps:$4 sm:$0xff]  }
 0x12d   : > { %2652 = vmatpush2.bf16.msra.mxu1 %v5726_v6  ;;  %3038 = vmatprep.subr.bf16.mxu0 %v5735_v11 }
 0x12e   : > { %5228 = vmatprep.subr.bf16.mxu1 %v5736_v13  ;;  %v5790_v13 = vld [vmem:[%s7460_s1 + $0xaf8] ss:$12 sps:$4 sm:$0xff]  }
 0x12f   : > { %v5134_v20 = vpop.f32.mrf.mxu0  ;;  %2695 = vmatmul.mubr.bf16.vlgmr.msra.gmra.mxu0 %v2355_v14  ;;  %v972_v21 = vpop.f32.mrf.mxu1 }
 0x130   : > { %2654 = vmatmul.mubr.bf16.vlgmr.msra.gmra.mxu1 %v2355_v14  ;;  %3039 = vmatpush1.bf16.msra.mxu0 %v5733_v12  ;;  %v6971_v23 = vadd.f32 %v972_v21, %v6859_v40  ;;  %v5752_v40 = vld [vmem:[%s7460_s1 + $0x968] ss:$12 sps:$4 sm:$0xff]   ;;  %v5795_v14 = vld [vmem:[%s7460_s1 + $0xa24] ss:$12 sps:$4 sm:$0xff]  }
 0x131   : > { %5229 = vmatpush3.bf16.msra.mxu1 %v5737_v16  ;;  %v5135_v24 = vpop.f32.mrf.mxu0  ;;  %3040 = vmatprep.subr.bf16.mxu0 %v5740_v17  ;;  %v974_v27 = vpop.f32.mrf.mxu1  ;;  %v5793_v17 = vld [vmem:[%s7460_s1 + $0xa20] ss:$12 sps:$4 sm:$0xff]   ;;  %v5799_v21 = vld [vmem:[%s7460_s1 + $0xa08] ss:$12 sps:$4 sm:$0xff]  }
 0x132   : > { %v5136_v28 = vadd.f32 %v5135_v24, %v5134_v20  ;;  %5230 = vmatprep.subr.bf16.mxu1 %v5741_v18  ;;  %3111 = vmatprep.mubr.bf16.mxu1 %v4808_v19  ;;  %v6983_v30 = vadd.f32 %v974_v27, %v6868_v43  ;;  %v5753_v43 = vld [vmem:[%s7460_s1 + $0x948] ss:$12 sps:$4 sm:$0xff]   ;;  %v5796_v18 = vld [vmem:[%s7460_s1 + $0xae0] ss:$12 sps:$4 sm:$0xff]   ;;  %v5808_v27 = vld [vmem:[%s7460_s1 + $0xab0] ss:$12 sps:$4 sm:$0xff]  }
 0x133   : > { %v5137_v31 = vpop.f32.mrf.mxu0  ;;  %3070 = vmatprep.mubr.bf16.mxu0 %v4808_v19  ;;  %v976_v35 = vpop.f32.mrf.mxu1  ;;  %v5801_v19 = vld [vmem:[%s7460_s1 + $0xa0c] ss:$12 sps:$4 sm:$0xff]   ;;  %v5807_v24 = vld [vmem:[%s7460_s1 + $0x9f4] ss:$12 sps:$4 sm:$0xff]  }
 0x134   : > { %v6986_v32 = vadd.f32 %v5136_v28, %v6776_v8  ;;  %3041 = vmatpush1.bf16.msra.mxu0 %v5738_v22  ;;  %v5751_v8 = vld [vmem:[%s7460_s1 + $0xa28] ss:$12 sps:$4 sm:$0xff]   ;;  %v5804_v20 = vld [vmem:[%s7460_s1 + $0xacc] ss:$12 sps:$4 sm:$0xff]  }
 0x135   : > { %5231 = vmatpush3.bf16.msra.mxu1 %v5742_v25  ;;  %v5138_v36 = vpop.f32.mrf.mxu0  ;;  %3042 = vmatprep.subr.bf16.mxu0 %v5745_v26  ;;  %v977_v38 = vpop.f32.mrf.mxu1  ;;  %v5802_v22 = vld [vmem:[%s7460_s1 + $0xac8] ss:$12 sps:$4 sm:$0xff]   ;;  %v5805_v26 = vld [vmem:[%s7460_s1 + $0x9f0] ss:$12 sps:$4 sm:$0xff]   ;;  %v5811_v31 = vld [vmem:[%s7460_s1 + $0x9d8] ss:$12 sps:$4 sm:$0xff]  }
 0x136   : > { %5232 = vmatprep.subr.bf16.mxu1 %v5746_v29  ;;  %v5810_v25 = vld [vmem:[%s7460_s1 + $0xab4] ss:$12 sps:$4 sm:$0xff]   ;;  %v5813_v28 = vld [vmem:[%s7460_s1 + $0x9dc] ss:$12 sps:$4 sm:$0xff]  }
 0x137   : > { %v5816_v29 = vld [vmem:[%s7460_s1 + $0xa9c] ss:$12 sps:$4 sm:$0xff]   ;;  %v5817_v35 = vld [vmem:[%s7460_s1 + $0x9c0] ss:$12 sps:$4 sm:$0xff]  }
 0x138   : > { %3043 = vmatpush1.bf16.msra.mxu0 %v5743_v33  ;;  %v5819_v33 = vld [vmem:[%s7460_s1 + $0x9c4] ss:$12 sps:$4 sm:$0xff]   ;;  %v5820_v36 = vld [vmem:[%s7460_s1 + $0xa80] ss:$12 sps:$4 sm:$0xff]  }
 0x139   : > { %5233 = vmatpush3.bf16.msra.mxu1 %v5747_v34  ;;  %3044 = vmatprep.subr.bf16.mxu0 %v5750_v37  ;;  %v5822_v34 = vld [vmem:[%s7460_s1 + $0xa84] ss:$12 sps:$4 sm:$0xff]  }
 0x13a   : > { %5234 = vmatprep.subr.bf16.mxu1 %v5751_v8  ;;  %v5826_v37 = vld [vmem:[%s7460_s1 + $0xbf0] ss:$12 sps:$4 sm:$0xff]   ;;  %v5825_v8 = vld [vmem:[%s7460_s1 + $0xbec] ss:$12 sps:$4 sm:$0xff]  }
 0x13b   : > { %v5827_v38 = vld [vmem:[%s7460_s1 + $0xb30] ss:$12 sps:$4 sm:$0xff]  }
 0x13c   : > { %3045 = vmatpush1.bf16.msra.mxu0 %v5748_v39  ;;  %v5823_v39 = vld [vmem:[%s7460_s1 + $0xbe8] ss:$12 sps:$4 sm:$0xff]  }
 0x13d   : > { %5235 = vmatpush3.bf16.msra.mxu1 %v5752_v40  ;;  %3046 = vmatprep.subr.bf16.mxu0 %v5755_v41  ;;  %v5831_v40 = vld [vmem:[%s7460_s1 + $0xbd8] ss:$12 sps:$4 sm:$0xff]   ;;  %v5830_v41 = vld [vmem:[%s7460_s1 + $0xbd4] ss:$12 sps:$4 sm:$0xff]  }
 0x13e   : > { %5236 = vmatprep.subr.bf16.mxu1 %v5756_v42 }
 0x140   : > { %3047 = vmatpush1.bf16.msra.mxu0 %v5753_v43 }
 0x141   : > { %5237 = vmatpush3.bf16.msra.mxu1 %v5757_v44  ;;  %3048 = vmatprep.subr.bf16.mxu0 %v5760_v45  ;;  %v5832_v44 = vld [vmem:[%s7460_s1 + $0xb18] ss:$12 sps:$4 sm:$0xff]  }
 0x142   : > { %5238 = vmatprep.subr.bf16.mxu1 %v5761_v46  ;;  %v5828_v46 = vld [vmem:[%s7460_s1 + $0xbd0] ss:$12 sps:$4 sm:$0xff]  }
 0x144   : > { %3049 = vmatpush1.bf16.msra.mxu0 %v5758_v47  ;;  %v5836_v47 = vld [vmem:[%s7460_s1 + $0xbc0] ss:$12 sps:$4 sm:$0xff]  }
 0x145   : > { %5239 = vmatpush3.bf16.msra.mxu1 %v5762_v48  ;;  %3050 = vmatprep.subr.bf16.mxu0 %v5765_v49  ;;  %v5835_v48 = vld [vmem:[%s7460_s1 + $0xbbc] ss:$12 sps:$4 sm:$0xff]  }
 0x146   : > { %5240 = vmatprep.subr.bf16.mxu1 %v5766_v50  ;;  %v5837_v50 = vld [vmem:[%s7460_s1 + $0xb00] ss:$12 sps:$4 sm:$0xff]  }
 0x148   : > { %3051 = vmatpush1.bf16.msra.mxu0 %v5763_v51 }
 0x149   : > { %5241 = vmatpush3.bf16.msra.mxu1 %v5767_v52  ;;  %3052 = vmatprep.subr.bf16.mxu0 %v5770_v53  ;;  %v5833_v52 = vld [vmem:[%s7460_s1 + $0xbb8] ss:$12 sps:$4 sm:$0xff]  }
 0x14a   : > { %5242 = vmatprep.subr.bf16.mxu1 %v5771_v54  ;;  %v5840_v53 = vld [vmem:[%s7460_s1 + $0xba4] ss:$12 sps:$4 sm:$0xff]   ;;  %v5842_v54 = vld [vmem:[%s7460_s1 + $0xae8] ss:$12 sps:$4 sm:$0xff]  }
 0x14c   : > { %3053 = vmatpush1.bf16.msra.mxu0 %v5768_v55  ;;  %v5838_v55 = vld [vmem:[%s7460_s1 + $0xba0] ss:$12 sps:$4 sm:$0xff]  }
 0x14d   : > { %5243 = vmatpush3.bf16.msra.mxu1 %v5772_v56  ;;  %3054 = vmatprep.subr.bf16.mxu0 %v5777_v57  ;;  %v5846_v56 = vld [vmem:[%s7460_s1 + $0xb90] ss:$12 sps:$4 sm:$0xff]   ;;  %v5845_v57 = vld [vmem:[%s7460_s1 + $0xb8c] ss:$12 sps:$4 sm:$0xff]  }
 0x14e   : > { %3454 = vmatprep.subr.bf16.mxu1 %v5780_v58  ;;  %v5847_v58 = vld [vmem:[%s7460_s1 + $0xad0] ss:$12 sps:$4 sm:$0xff]  }
 0x14f   : > { %v5156_v3 = vpop.f32.mrf.mxu1 }
 0x150   : > { %3112 = vmatmul.mubr.bf16.vlgmr.msra.gmra.mxu1 %v7065_v60  ;;  %3055 = vmatpush2.bf16.msra.mxu0 %v5775_v62  ;;  %v5851_v62 = vld [vmem:[%s7460_s1 + $0xb78] ss:$12 sps:$4 sm:$0xff]  }
 0x151   : > { %3455 = vmatpush1.bf16.msra.mxu1 %v5778_v63  ;;  %3056 = vmatprep.subr.bf16.mxu0 %v5783_v0  ;;  %v5157_v6 = vpop.f32.mrf.mxu1  ;;  %v5850_v63 = vld [vmem:[%s7460_s1 + $0xb74] ss:$12 sps:$4 sm:$0xff]   ;;  %v7241_v0 = vld [vmem:[%s6117_s11 + $0x8] sm:$0x77] }
 0x152   : > { %3456 = vmatprep.subr.bf16.mxu1 %v5786_v61  ;;  %3486 = vmatprep.mubr.bf16.mxu1 %v7081_v1  ;;  %v5158_v9 = vadd.f32 %v5157_v6, %v5156_v3  ;;  %v5852_v61 = vld [vmem:[%s7460_s1 + $0xab8] ss:$12 sps:$4 sm:$0xff]   ;;  %v5855_v3 = vld [vmem:[%s7460_s1 + $0xb5c] ss:$12 sps:$4 sm:$0xff]  }
 0x153   : > { %v5159_v11 = vpop.f32.mrf.mxu1  ;;  %v5853_v6 = vld [vmem:[%s7460_s1 + $0xb58] ss:$12 sps:$4 sm:$0xff]  }
 0x154   : > { %3057 = vmatpush2.bf16.msra.mxu0 %v5781_v2  ;;  %v7101_v12 = vadd.f32 %v5158_v9, %v6986_v32  ;;  %v5814_v32 = vld [vmem:[%s7460_s1 + $0xa98] ss:$12 sps:$4 sm:$0xff]   ;;  %v5856_v2 = vld [vmem:[%s7460_s1 + $0xb60] ss:$12 sps:$4 sm:$0xff]   ;;  %v5862_v11 = vld [vmem:[%s7460_s1 + $0xa88] ss:$12 sps:$4 sm:$0xff]  }
 0x155   : > { %3457 = vmatpush1.bf16.msra.mxu1 %v5784_v4  ;;  %3058 = vmatprep.subr.bf16.mxu0 %v5789_v5  ;;  %v5160_v16 = vpop.f32.mrf.mxu1  ;;  %v5040_v4 = vcombine.high %v7241_v0, %v7241_v0  ;;  %v5857_v5 = vld [vmem:[%s7460_s1 + $0xaa0] ss:$12 sps:$4 sm:$0xff]   ;;  %v5860_v9 = vld [vmem:[%s7460_s1 + $0xb44] ss:$12 sps:$4 sm:$0xff]  }
 0x156   : > { %3458 = vmatprep.subr.bf16.mxu1 %v5792_v7  ;;  %v5861_v7 = vld [vmem:[%s7460_s1 + $0xb48] ss:$12 sps:$4 sm:$0xff]  }
 0x157   : > { %v3617_v16 = vshrl.u32 %v5040_v4, 16 }
 0x158   : > { %3059 = vmatpush2.bf16.msra.mxu0 %v5787_v10  ;;  %v3619_v10 = vshll.u32 %v5040_v4, 16 }
 0x159   : > { %3459 = vmatpush1.bf16.msra.mxu1 %v5790_v13  ;;  %3060 = vmatprep.subr.bf16.mxu0 %v5795_v14  ;;  %v5858_v13 = vld [vmem:[%s7460_s1 + $0xb40] ss:$12 sps:$4 sm:$0xff]  }
 0x15a   : > { %3460 = vmatprep.subr.bf16.mxu1 %v5798_v15  ;;  %v5867_v14 = vld [vmem:[%s7460_s1 + $0xcac] ss:$12 sps:$4 sm:$0xff]   ;;  %v5868_v15 = vld [vmem:[%s7460_s1 + $0xd70] ss:$12 sps:$4 sm:$0xff]  }
 0x15c   : > { %3061 = vmatpush2.bf16.msra.mxu0 %v5793_v17  ;;  %v3621_v17 = vrot.slane %v3619_v10, 1  ;;  %v5913_v10 = vld [vmem:[%s7460_s1 + $0xd38] ss:$12 sps:$4 sm:$0xff]  }
 0x15d   : > { %3461 = vmatpush1.bf16.msra.mxu1 %v5796_v18  ;;  %3062 = vmatprep.subr.bf16.mxu0 %v5801_v19  ;;  %v4924_v18 = vcombine.low %v7061_v59, %v7061_v59  ;;  %v5865_v19 = vld [vmem:[%s7460_s1 + $0xca8] ss:$12 sps:$4 sm:$0xff]   ;;  %v5873_v59 = vld [vmem:[%s7460_s1 + $0xd58] ss:$12 sps:$4 sm:$0xff]  }
 0x15e   : > { %3462 = vmatprep.subr.bf16.mxu1 %v5804_v20  ;;  %v5869_v20 = vld [vmem:[%s7460_s1 + $0xcb0] ss:$12 sps:$4 sm:$0xff]  }
 0x160   : > { %3063 = vmatpush2.bf16.msra.mxu0 %v5799_v21  ;;  %v5872_v21 = vld [vmem:[%s7460_s1 + $0xc94] ss:$12 sps:$4 sm:$0xff]  }
 0x161   : > { %3463 = vmatpush1.bf16.msra.mxu1 %v5802_v22  ;;  %3064 = vmatprep.subr.bf16.mxu0 %v5807_v24  ;;  %v3622_v22 = vor.u32 %v3621_v17, %v3617_v16  ;;  %v5916_v16 = vld [vmem:[%s7460_s1 + $0xd20] ss:$12 sps:$4 sm:$0xff]  }
 0x162   : > { %3464 = vmatprep.subr.bf16.mxu1 %v5810_v25  ;;  %v5921_v17 = vld [vmem:[%s7460_s1 + $0xd0c] ss:$12 sps:$4 sm:$0xff]  }
 0x164   : > { %3065 = vmatpush2.bf16.msra.mxu0 %v5805_v26  ;;  %v5870_v26 = vld [vmem:[%s7460_s1 + $0xc90] ss:$12 sps:$4 sm:$0xff]  }
 0x165   : > { %3465 = vmatpush1.bf16.msra.mxu1 %v5808_v27  ;;  %3066 = vmatprep.subr.bf16.mxu0 %v5813_v28 }
 0x166   : > { %3466 = vmatprep.subr.bf16.mxu1 %v5816_v29  ;;  %v5874_v29 = vld [vmem:[%s7460_s1 + $0xc98] ss:$12 sps:$4 sm:$0xff]  }
 0x168   : > { %3067 = vmatpush2.bf16.msra.mxu0 %v5811_v31  ;;  %v5877_v31 = vld [vmem:[%s7460_s1 + $0xc7c] ss:$12 sps:$4 sm:$0xff]  }
 0x169   : > { %3467 = vmatpush1.bf16.msra.mxu1 %v5814_v32  ;;  %3068 = vmatprep.subr.bf16.mxu0 %v5819_v33 }
 0x16a   : > { %3468 = vmatprep.subr.bf16.mxu1 %v5822_v34  ;;  %v5878_v34 = vld [vmem:[%s7460_s1 + $0xd40] ss:$12 sps:$4 sm:$0xff]  }
 0x16c   : > { %3069 = vmatpush2.bf16.msra.mxu0 %v5817_v35 }
 0x16d   : > { %3469 = vmatpush1.bf16.msra.mxu1 %v5820_v36  ;;  %5250 = vmatprep.subr.bf16.mxu0 %v5826_v37 }
 0x16e   : > { %3470 = vmatprep.subr.bf16.mxu1 %v5825_v8  ;;  %v5875_v8 = vld [vmem:[%s7460_s1 + $0xc78] ss:$12 sps:$4 sm:$0xff]  }
 0x16f   : > { %v1396_v42 = vpop.f32.mrf.mxu0  ;;  %3071 = vmatmul.mubr.bf16.vlgmr.msra.gmra.mxu0 %v7065_v60  ;;  %v5843_v60 = vld [vmem:[%s7460_s1 + $0xb88] ss:$12 sps:$4 sm:$0xff]  }
 0x170   : > { %v7186_v43 = vadd.f32 %v1396_v42, %v6971_v23  ;;  %5251 = vmatpush3.bf16.msra.mxu0 %v5827_v38  ;;  %3527 = vmatprep.mubr.bf16.mxu0 %v7081_v1  ;;  %v5848_v1 = vld [vmem:[%s7460_s1 + $0xb70] ss:$12 sps:$4 sm:$0xff]  }
 0x171   : > { %3471 = vmatpush2.bf16.msra.mxu1 %v5823_v39  ;;  %v1398_v45 = vpop.f32.mrf.mxu0  ;;  %5252 = vmatprep.subr.bf16.mxu0 %v5831_v40  ;;  %v5879_v40 = vld [vmem:[%s7460_s1 + $0xc80] ss:$12 sps:$4 sm:$0xff]  }
 0x172   : > { %v7199_v23 = vadd.f32 %v1398_v45, %v6983_v30  ;;  %3472 = vmatprep.subr.bf16.mxu1 %v5830_v41  ;;  %v5841_v30 = vld [vmem:[%s7460_s1 + $0xba8] ss:$12 sps:$4 sm:$0xff]   ;;  %v5882_v41 = vld [vmem:[%s7460_s1 + $0xc64] ss:$12 sps:$4 sm:$0xff]   ;;  %v5887_v45 = vld [vmem:[%s7460_s1 + $0xc4c] ss:$12 sps:$4 sm:$0xff]  }
 0x173   : > { %v1400_v49 = vpop.f32.mrf.mxu0 }
 0x174   : > { %5253 = vmatpush3.bf16.msra.mxu0 %v5832_v44  ;;  %v5884_v44 = vld [vmem:[%s7460_s1 + $0xc68] ss:$12 sps:$4 sm:$0xff]   ;;  %v5893_v49 = vld [vmem:[%s7460_s1 + $0xcf8] ss:$12 sps:$4 sm:$0xff]  }
 0x175   : > { %3473 = vmatpush2.bf16.msra.mxu1 %v5828_v46  ;;  %v1401_v51 = vpop.f32.mrf.mxu0  ;;  %5254 = vmatprep.subr.bf16.mxu0 %v5836_v47  ;;  %v5888_v46 = vld [vmem:[%s7460_s1 + $0xd10] ss:$12 sps:$4 sm:$0xff]   ;;  %v5885_v47 = vld [vmem:[%s7460_s1 + $0xc48] ss:$12 sps:$4 sm:$0xff]  }
 0x176   : > { %3474 = vmatprep.subr.bf16.mxu1 %v5835_v48  ;;  %v5892_v48 = vld [vmem:[%s7460_s1 + $0xc34] ss:$12 sps:$4 sm:$0xff]   ;;  %v5039_v51 = vcombine.low %v7241_v0, %v7241_v0 }
 0x177   : > { %v5904_v0 = vld [vmem:[%s7460_s1 + $0xc08] ss:$12 sps:$4 sm:$0xff]  }
 0x178   : > { %5255 = vmatpush3.bf16.msra.mxu0 %v5837_v50  ;;  %v5890_v50 = vld [vmem:[%s7460_s1 + $0xc30] ss:$12 sps:$4 sm:$0xff]  }
 0x179   : > { %3475 = vmatpush2.bf16.msra.mxu1 %v5833_v52  ;;  %5256 = vmatprep.subr.bf16.mxu0 %v5841_v30  ;;  %v5894_v52 = vld [vmem:[%s7460_s1 + $0xc38] ss:$12 sps:$4 sm:$0xff]   ;;  %v5897_v30 = vld [vmem:[%s7460_s1 + $0xc1c] ss:$12 sps:$4 sm:$0xff]  }
 0x17a   : > { %3476 = vmatprep.subr.bf16.mxu1 %v5840_v53  ;;  %v5898_v53 = vld [vmem:[%s7460_s1 + $0xce0] ss:$12 sps:$4 sm:$0xff]  }
 0x17c   : > { %5257 = vmatpush3.bf16.msra.mxu0 %v5842_v54  ;;  %v5895_v54 = vld [vmem:[%s7460_s1 + $0xc18] ss:$12 sps:$4 sm:$0xff]  }
 0x17d   : > { %3477 = vmatpush2.bf16.msra.mxu1 %v5838_v55  ;;  %5258 = vmatprep.subr.bf16.mxu0 %v5846_v56  ;;  %v3612_v55 = vshll.u32 %v5039_v51, 16  ;;  %v5899_v56 = vld [vmem:[%s7460_s1 + $0xc20] ss:$12 sps:$4 sm:$0xff]  }
 0x17e   : > { %3478 = vmatprep.subr.bf16.mxu1 %v5845_v57  ;;  %v5902_v57 = vld [vmem:[%s7460_s1 + $0xc04] ss:$12 sps:$4 sm:$0xff]  }
 0x180   : > { %5259 = vmatpush3.bf16.msra.mxu0 %v5847_v58  ;;  %v5903_v58 = vld [vmem:[%s7460_s1 + $0xcc8] ss:$12 sps:$4 sm:$0xff]  }
 0x181   : > { %3479 = vmatpush2.bf16.msra.mxu1 %v5843_v60  ;;  %5260 = vmatprep.subr.bf16.mxu0 %v5851_v62  ;;  %v5900_v60 = vld [vmem:[%s7460_s1 + $0xc00] ss:$12 sps:$4 sm:$0xff]   ;;  %v3610_v62 = vshrl.u32 %v5039_v51, 16 }
 0x182   : > { %3480 = vmatprep.subr.bf16.mxu1 %v5850_v63  ;;  %v3614_v63 = vrot.slane %v3612_v55, 1 }
 0x184   : > { %5261 = vmatpush3.bf16.msra.mxu0 %v5852_v61  ;;  %v5909_v61 = vld [vmem:[%s7460_s1 + $0xd6c] ss:$12 sps:$4 sm:$0xff]  }
 0x185   : > { %3481 = vmatpush2.bf16.msra.mxu1 %v5848_v1  ;;  %5262 = vmatprep.subr.bf16.mxu0 %v5856_v2  ;;  %v5907_v1 = vld [vmem:[%s7460_s1 + $0xd68] ss:$12 sps:$4 sm:$0xff]   ;;  %v3615_v2 = vor.u32 %v3614_v63, %v3610_v62  ;;  %v3967_v62 = vlaneseq }
 0x186   : > { %3482 = vmatprep.subr.bf16.mxu1 %v5855_v3  ;;  %v5912_v3 = vld [vmem:[%s7460_s1 + $0xd54] ss:$12 sps:$4 sm:$0xff]  }
 0x187   : > { %v3968_v63 = vshrl.u32 %v3967_v62, 7 }
 0x188   : > { %5263 = vmatpush3.bf16.msra.mxu0 %v5857_v5  ;;  %v5910_v5 = vld [vmem:[%s7460_s1 + $0xd50] ss:$12 sps:$4 sm:$0xff]  }
 0x189   : > { %3483 = vmatpush2.bf16.msra.mxu1 %v5853_v6  ;;  %5264 = vmatprep.subr.bf16.mxu0 %v5861_v7  ;;  %v5915_v6 = vld [vmem:[%s7460_s1 + $0xd3c] ss:$12 sps:$4 sm:$0xff]  }
 0x18a   : > { %3484 = vmatprep.subr.bf16.mxu1 %v5860_v9 }
 0x18c   : > { %5265 = vmatpush3.bf16.msra.mxu0 %v5862_v11 }
 0x18d   : > { %3485 = vmatpush2.bf16.msra.mxu1 %v5858_v13  ;;  %3881 = vmatprep.subr.bf16.mxu0 %v5867_v14  ;;  %v5918_v14 = vld [vmem:[%s7460_s1 + $0xd24] ss:$12 sps:$4 sm:$0xff]  }
 0x18e   : > { %5272 = vmatprep.subr.bf16.mxu1 %v5868_v15 }
 0x18f   : > { %v5178_v24 = vpop.f32.mrf.mxu0  ;;  %3528 = vmatmul.mubr.bf16.vlgmr.msra.gmra.mxu0 %v4924_v18 }
 0x190   : > { %v1812_v25 = vpop.f32.mrf.mxu1  ;;  %3487 = vmatmul.mubr.bf16.vlgmr.msra.gmra.mxu1 %v4924_v18  ;;  %3882 = vmatpush1.bf16.msra.mxu0 %v5865_v19  ;;  %v5919_v18 = vld [vmem:[%s7460_s1 + $0xd08] ss:$12 sps:$4 sm:$0xff]  }
 0x191   : > { %v7299_v27 = vadd.f32 %v1812_v25, %v7186_v43  ;;  %5273 = vmatpush3.bf16.msra.mxu1 %v5869_v20  ;;  %v5179_v28 = vpop.f32.mrf.mxu0  ;;  %3883 = vmatprep.subr.bf16.mxu0 %v5872_v21  ;;  %v5880_v43 = vld [vmem:[%s7460_s1 + $0xc60] ss:$12 sps:$4 sm:$0xff]   ;;  %v5922_v20 = vld [vmem:[%s7460_s1 + $0xcf0] ss:$12 sps:$4 sm:$0xff]  }
 0x192   : > { %v1814_v32 = vpop.f32.mrf.mxu1  ;;  %v5180_v33 = vadd.f32 %v5179_v28, %v5178_v24  ;;  %5274 = vmatprep.subr.bf16.mxu1 %v5873_v59  ;;  %3954 = vmatprep.mubr.bf16.mxu1 %v3622_v22  ;;  %v5924_v19 = vld [vmem:[%s7460_s1 + $0xcf4] ss:$12 sps:$4 sm:$0xff]   ;;  %v5927_v21 = vld [vmem:[%s7460_s1 + $0xcdc] ss:$12 sps:$4 sm:$0xff]   ;;  %v5925_v59 = vld [vmem:[%s7460_s1 + $0xcd8] ss:$12 sps:$4 sm:$0xff]  }
 0x193   : > { %v7311_v35 = vadd.f32 %v1814_v32, %v7199_v23  ;;  %v5181_v36 = vpop.f32.mrf.mxu0  ;;  %3913 = vmatprep.mubr.bf16.mxu0 %v3622_v22  ;;  %v5889_v23 = vld [vmem:[%s7460_s1 + $0xc50] ss:$12 sps:$4 sm:$0xff]   ;;  %v5928_v24 = vld [vmem:[%s7460_s1 + $0xcc0] ss:$12 sps:$4 sm:$0xff]  }
 0x194   : > { %v7314_v37 = vadd.f32 %v5180_v33, %v7101_v12  ;;  %3884 = vmatpush1.bf16.msra.mxu0 %v5870_v26  ;;  %v1816_v38 = vpop.f32.mrf.mxu1  ;;  %v5883_v12 = vld [vmem:[%s7460_s1 + $0xd28] ss:$12 sps:$4 sm:$0xff]   ;;  %v5930_v22 = vld [vmem:[%s7460_s1 + $0xcc4] ss:$12 sps:$4 sm:$0xff]  }
 0x195   : > { %5275 = vmatpush3.bf16.msra.mxu1 %v5874_v29  ;;  %v5182_v39 = vpop.f32.mrf.mxu0  ;;  %3885 = vmatprep.subr.bf16.mxu0 %v5877_v31 }
 0x196   : > { %5276 = vmatprep.subr.bf16.mxu1 %v5878_v34  ;;  %v1817_v42 = vpop.f32.mrf.mxu1 }
 0x198   : > { %3886 = vmatpush1.bf16.msra.mxu0 %v5875_v8 }
 0x199   : > { %5277 = vmatpush3.bf16.msra.mxu1 %v5879_v40  ;;  %3887 = vmatprep.subr.bf16.mxu0 %v5882_v41 }
 0x19a   : > { %5278 = vmatprep.subr.bf16.mxu1 %v5883_v12 }
 0x19c   : > { %3888 = vmatpush1.bf16.msra.mxu0 %v5880_v43 }
 0x19d   : > { %5279 = vmatpush3.bf16.msra.mxu1 %v5884_v44  ;;  %3889 = vmatprep.subr.bf16.mxu0 %v5887_v45 }
 0x19e   : > { %5280 = vmatprep.subr.bf16.mxu1 %v5888_v46 }
 0x1a0   : > { %3890 = vmatpush1.bf16.msra.mxu0 %v5885_v47 }
 0x1a1   : > { %5281 = vmatpush3.bf16.msra.mxu1 %v5889_v23  ;;  %3891 = vmatprep.subr.bf16.mxu0 %v5892_v48 }
 0x1a2   : > { %5282 = vmatprep.subr.bf16.mxu1 %v5893_v49 }
 0x1a4   : > { %3892 = vmatpush1.bf16.msra.mxu0 %v5890_v50 }
 0x1a5   : > { %5283 = vmatpush3.bf16.msra.mxu1 %v5894_v52  ;;  %3893 = vmatprep.subr.bf16.mxu0 %v5897_v30 }
 0x1a6   : > { %5284 = vmatprep.subr.bf16.mxu1 %v5898_v53 }
 0x1a8   : > { %3894 = vmatpush1.bf16.msra.mxu0 %v5895_v54 }
 0x1a9   : > { %5285 = vmatpush3.bf16.msra.mxu1 %v5899_v56  ;;  %3895 = vmatprep.subr.bf16.mxu0 %v5902_v57 }
 0x1aa   : > { %5286 = vmatprep.subr.bf16.mxu1 %v5903_v58 }
 0x1ac   : > { %3896 = vmatpush1.bf16.msra.mxu0 %v5900_v60 }
 0x1ad   : > { %5287 = vmatpush3.bf16.msra.mxu1 %v5904_v0  ;;  %3897 = vmatprep.subr.bf16.mxu0 %v5909_v61  ;;  %v3977_v61 = vsub.s32 2, %v3968_v63 }
 0x1b0   : > { %v5200_v4 = vpop.f32.mrf.mxu1  ;;  %3955 = vmatmul.mubr.bf16.vlgmr.msra.gmra.mxu1 %v3615_v2  ;;  %3898 = vmatpush2.bf16.msra.mxu0 %v5907_v1 }
 0x1b1   : > { %3899 = vmatprep.subr.bf16.mxu0 %v5912_v3 }
 0x1b2   : > { %v5201_v7 = vpop.f32.mrf.mxu1 }
 0x1b3   : > { %v5202_v9 = vadd.f32 %v5201_v7, %v5200_v4 }
 0x1b4   : > { %3900 = vmatpush2.bf16.msra.mxu0 %v5910_v5  ;;  %v5203_v11 = vpop.f32.mrf.mxu1 }
 0x1b5   : > { %v2277_v13 = vadd.f32 %v5202_v9, %v7314_v37  ;;  %3901 = vmatprep.subr.bf16.mxu0 %v5915_v6 }
 0x1b6   : > { %v5204_v15 = vpop.f32.mrf.mxu1 }
 0x1b7   : > { %v3973_v15 = vsub.s32 1, %v3968_v63 }
 0x1b8   : > { %3902 = vmatpush2.bf16.msra.mxu0 %v5913_v10 }
 0x1b9   : > { %3903 = vmatprep.subr.bf16.mxu0 %v5918_v14  ;;  %v3969_v14 = vsub.s32 0, %v3968_v63 }
 0x1bc   : > { %3904 = vmatpush2.bf16.msra.mxu0 %v5916_v16 }
 0x1bd   : > { %3905 = vmatprep.subr.bf16.mxu0 %v5921_v17 }
 0x1c0   : > { %3906 = vmatpush2.bf16.msra.mxu0 %v5919_v18 }
 0x1c1   : > { %3907 = vmatprep.subr.bf16.mxu0 %v5924_v19 }
 0x1c4   : > { %3908 = vmatpush2.bf16.msra.mxu0 %v5922_v20 }
 0x1c5   : > { %3909 = vmatprep.subr.bf16.mxu0 %v5927_v21 }
 0x1c8   : > { %3910 = vmatpush2.bf16.msra.mxu0 %v5925_v59 }
 0x1c9   : > { %3911 = vmatprep.subr.bf16.mxu0 %v5930_v22 }
 0x1cc   : > { %3912 = vmatpush2.bf16.msra.mxu0 %v5928_v24 }
 0x1cf   : > { %v2228_v25 = vpop.f32.mrf.mxu0  ;;  %3914 = vmatmul.mubr.bf16.vlgmr.msra.gmra.mxu0 %v3615_v2  ;;  %v3965_v2 = vld [vmem:[%s7461_s2] sm:$0x7] }
 0x1d0   : > { %v2275_v26 = vadd.f32 %v2228_v25, %v7299_v27  ;;  %v3978_v6 = vrot.slane %v3965_v2, %v3977_v61  ;;  %v3970_v17 = vrot.slane %v3965_v2, %v3969_v14  ;;  %v3974_v21 = vrot.slane %v3965_v2, %v3973_v15 }
 0x1d1   : > { %v2230_v28 = vpop.f32.mrf.mxu0 }
 0x1d2   : > { %v2276_v29 = vadd.f32 %v2230_v28, %v7311_v35 }
 0x1d3   : > { %v2232_v31 = vpop.f32.mrf.mxu0 }
 0x1d5   : > { %v2233_v32 = vpop.f32.mrf.mxu0 }
 0x1ef   : > { %v5222_v33 = vpop.f32.mrf.mxu0 }
 0x1f0   : > { %v2655_v34 = vpop.f32.mrf.mxu1 }
 0x1f1   : > { %v2702_v36 = vadd.f32 %v2655_v34, %v2275_v26  ;;  %v5223_v37 = vpop.f32.mrf.mxu0 }
 0x1f2   : > { %v2657_v8 = vpop.f32.mrf.mxu1  ;;  %v5224_v38 = vadd.f32 %v5223_v37, %v5222_v33 }
 0x1f3   : > { %v2703_v39 = vadd.f32 %v2657_v8, %v2276_v29  ;;  %v5225_v40 = vpop.f32.mrf.mxu0 }
 0x1f4   : > { %v2704_v41 = vadd.f32 %v5224_v38, %v2277_v13  ;;  %v2659_v12 = vpop.f32.mrf.mxu1 }
 0x1f5   : > { %v5226_v42 = vpop.f32.mrf.mxu0 }
 0x1f6   : > { %v2660_v43 = vpop.f32.mrf.mxu1 }
 0x210   : > { %v5244_v44 = vpop.f32.mrf.mxu1 }
 0x212   : > { %v5245_v45 = vpop.f32.mrf.mxu1 }
 0x213   : > { %v5246_v27 = vadd.f32 %v5245_v45, %v5244_v44 }
 0x214   : > { %v5247_v46 = vpop.f32.mrf.mxu1 }
 0x215   : > { %v3121_v47 = vadd.f32 %v5246_v27, %v2704_v41 }
 0x216   : > { %v5248_v35 = vpop.f32.mrf.mxu1 }
 0x22f   : > { %v3072_v23 = vpop.f32.mrf.mxu0 }
 0x230   : > { %v3119_v48 = vadd.f32 %v3072_v23, %v2702_v36 }
 0x231   : > { %v3074_v49 = vpop.f32.mrf.mxu0 }
 0x232   : > { %v3120_v50 = vadd.f32 %v3074_v49, %v2703_v39 }
 0x233   : > { %v3076_v51 = vpop.f32.mrf.mxu0 }
 0x235   : > { %v3077_v52 = vpop.f32.mrf.mxu0 }
 0x24f   : > { %v5266_v30 = vpop.f32.mrf.mxu0 }
 0x250   : > { %v3488_v53 = vpop.f32.mrf.mxu1 }
 0x251   : > { %v5267_v54 = vpop.f32.mrf.mxu0  ;;  %v3535_v16 = vadd.f32 %v3488_v53, %v3119_v48 }
 0x252   : > { %v3490_v55 = vpop.f32.mrf.mxu1  ;;  %v5268_v0 = vadd.f32 %v5267_v54, %v5266_v30 }
 0x253   : > { %v5269_v56 = vpop.f32.mrf.mxu0  ;;  %v3536_v19 = vadd.f32 %v3490_v55, %v3120_v50 }
 0x254   : > { %v3492_v57 = vpop.f32.mrf.mxu1  ;;  %v3537_v4 = vadd.f32 %v5268_v0, %v3121_v47 }
 0x255   : > { %v5270_v58 = vpop.f32.mrf.mxu0 }
 0x256   : > { %v3493_v60 = vpop.f32.mrf.mxu1 }
 0x270   : > { %v5288_v1 = vpop.f32.mrf.mxu1 }
 0x272   : > { %v5289_v3 = vpop.f32.mrf.mxu1 }
 0x273   : > { %v5290_v5 = vadd.f32 %v5289_v3, %v5288_v1 }
 0x274   : > { %v5291_v7 = vpop.f32.mrf.mxu1 }
 0x275   : > { %v3964_v9 = vadd.f32 %v5290_v5, %v3537_v4 }
 0x276   : > { %v5292_v10 = vpop.f32.mrf.mxu1 }
 0x277   : > { %v3984_v11 = vadd.f32 %v3978_v6, %v3964_v9 }
 0x279   : > { %v3987_v13 = vmax.f32 %v3984_v11, 0.0 }
 0x27b   : > { %3994 = vst.msk [vmem:[%s192_s13 + $0x8] sm:$0xf] %vm3993_vm0, %v3987_v13 }
 0x28f   : > { %v3915_v18 = vpop.f32.mrf.mxu0 }
 0x290   : > { %v3962_v20 = vadd.f32 %v3915_v18, %v3535_v16 }
 0x291   : > { %v3917_v59 = vpop.f32.mrf.mxu0 }
 0x292   : > { %v3982_v22 = vadd.f32 %v3970_v17, %v3962_v20  ;;  %v3963_v24 = vadd.f32 %v3917_v59, %v3536_v19 }
 0x293   : > { %v3919_v25 = vpop.f32.mrf.mxu0 }
 0x294   : > { %v3983_v26 = vadd.f32 %v3974_v21, %v3963_v24  ;;  %v3985_v29 = vmax.f32 %v3982_v22, 0.0 }
 0x295   : > { %v3920_v28 = vpop.f32.mrf.mxu0 }
 0x296   : > { %v3986_v31 = vmax.f32 %v3983_v26, 0.0 }
 0x298   : > { %v3990_v32 = vcombine.low %v3985_v29, %v3986_v31 }
 0x29a   : > { %3992 = vst [vmem:[%s192_s13] sm:$0xff] %v3990_v32 }
 0x29b PF: > { %s13_s16 = sadd.s32 1, %s5969_s16   ;;  %s7463_s12 = smov %s5961_s14 }
 0x29c   : > { %p10_p7 = scmp.ge.s32.totalorder %s13_s16, 10   ;;  %s7464_s13 = smov %s5965_s15 }
 0x29d   : > { %s7465_s14 = smov %s7468_s17  ;;  %s7466_s15 = smov %s7472_s18 }
 0x29e   :  { %12 = sbr.rel (!%p10_p7) target bundleno = 3 (0x3), region = 76 }

// kernel: reduction_b_forward.8
= control target key start
LH: loop header
LB: loop body
LE: loop exit
PB: predicated region body
PF: predicated region fallthrough
CT: control target
= control target key end

     0   :  { %s316_s6 = smov 0   ;;  %s379_s0 = inlined_call_operand.vmem [shape: f32[2,4,5,5,4], index: 0, kind: input, shape index: {}]   ;;  %s380_s1 = inlined_call_operand.vmem [shape: f32[2,4,4,4], index: 1, kind: output, shape index: {}]  }
   0x1 LB: > { %s250_s7 = sadd.s32 4294967295, %s304_s6   ;;  %p254_p0 = scmp.ge.s32.totalorder %s304_s6, 1  ;;  %s304_s6 = sphi %s316_s6, %s11_s6  }
   0x2   : > { %p87_p1 = scmp.lt.s32.totalorder %s304_s6, 3 }
   0x4   : > { %p88_p2 = pnand %p254_p0, %p87_p1 }
   0x5   : > { %p107_p3 = scmp.lt.s32.totalorder (!%p88_p2), %s250_s7, 1 }
   0x6   : > { %91 = sbr.rel (%p88_p2) target bundleno = 39 (0x27), region = 24 }
   0xb   : > { %s382_s7 = smov (!%p107_p3, %s250_s7), 1  ;;  %vm190_vm0 = vcmask 27648  }
   0xc   : > { %s289_s8 = smul.u32 160, %s382_s7  ;;  %s288_s12 = sshll.u32 %s382_s7, 4 }
   0xd   : > { %s116_s15 = scalar_lea.vmem %s380_s1, %s288_s12 }
   0xe   : > { %s330_s11 = scalar_lea.vmem %s379_s0, %s289_s8 }
   0xf   : > { %v117_v0 = vld [vmem:[%s330_s11] sm:$0xf]  ;;  %v258_v1 = vld [vmem:[%s330_s11 + $0x28] sm:$0xf]  ;;  %v262_v4 = vld [vmem:[%s330_s11 + $0x50] sm:$0xf] }
  0x10   : > { %v130_v2 = vld [vmem:[%s330_s11 + $0x1] sm:$0xf]  ;;  %v126_v3 = vmax.f32 %v117_v0, %v258_v1  ;;  %v118_v6 = vld [vmem:[%s330_s11 + $0x8] sm:$0xf]  ;;  %v259_v7 = vld [vmem:[%s330_s11 + $0x30] sm:$0xf] }
  0x11   : > { %v131_v8 = vld [vmem:[%s330_s11 + $0x9] sm:$0xf]  ;;  %v266_v9 = vld [vmem:[%s330_s11 + $0x78] sm:$0xf]  ;;  %v127_v10 = vmax.f32 %v118_v6, %v259_v7  ;;  %v270_v12 = vld [vmem:[%s330_s11 + $0x51] sm:$0xf] }
  0x12   : > { %v134_v5 = vmax.f32 %v126_v3, %v130_v2  ;;  %v263_v13 = vld [vmem:[%s330_s11 + $0x58] sm:$0xf]  ;;  %v119_v15 = vld [vmem:[%s330_s11 + $0x10] sm:$0xf]  ;;  %v267_v19 = vld [vmem:[%s330_s11 + $0x80] sm:$0xf] }
  0x13   : > { %v135_v14 = vmax.f32 %v127_v10, %v131_v8  ;;  %v260_v16 = vld [vmem:[%s330_s11 + $0x38] sm:$0xf]  ;;  %v132_v17 = vld [vmem:[%s330_s11 + $0x11] sm:$0xf]  ;;  %v274_v21 = vld [vmem:[%s330_s11 + $0x8] sm:$0xf] }
  0x14   : > { %v143_v11 = vmax.f32 %v134_v5, %v262_v4  ;;  %v128_v20 = vmax.f32 %v119_v15, %v260_v16  ;;  %v271_v23 = vld [vmem:[%s330_s11 + $0x59] sm:$0xf]  ;;  %v264_v24 = vld [vmem:[%s330_s11 + $0x60] sm:$0xf]  ;;  %v278_v30 = vld [vmem:[%s330_s11 + $0x30] sm:$0xf] }
  0x15   : > { %v144_v22 = vmax.f32 %v135_v14, %v263_v13  ;;  %v120_v27 = vld [vmem:[%s330_s11 + $0x18] sm:$0xf]  ;;  %v261_v28 = vld [vmem:[%s330_s11 + $0x40] sm:$0xf]  ;;  %v268_v32 = vld [vmem:[%s330_s11 + $0x88] sm:$0xf] }
  0x16   : > { %v152_v18 = vmax.f32 %v143_v11, %v266_v9  ;;  %v136_v26 = vmax.f32 %v128_v20, %v132_v17  ;;  %v133_v29 = vld [vmem:[%s330_s11 + $0x19] sm:$0xf]  ;;  %v129_v33 = vmax.f32 %v120_v27, %v261_v28  ;;  %v275_v35 = vld [vmem:[%s330_s11 + $0x10] sm:$0xf]  ;;  %v265_v37 = vld [vmem:[%s330_s11 + $0x68] sm:$0xf] }
  0x17   : > { %v153_v31 = vmax.f32 %v144_v22, %v267_v19  ;;  %v282_v38 = vld [vmem:[%s330_s11 + $0x9] sm:$0xf]  ;;  %v272_v40 = vld [vmem:[%s330_s11 + $0x61] sm:$0xf]  ;;  %v279_v43 = vld [vmem:[%s330_s11 + $0x38] sm:$0xf] }
  0x18   : > { %v160_v25 = vmax.f32 %v152_v18, %v270_v12  ;;  %v145_v36 = vmax.f32 %v136_v26, %v264_v24  ;;  %v137_v41 = vmax.f32 %v129_v33, %v133_v29  ;;  %v269_v45 = vld [vmem:[%s330_s11 + $0x90] sm:$0xf]  ;;  %v276_v47 = vld [vmem:[%s330_s11 + $0x18] sm:$0xf]  ;;  %v273_v52 = vld [vmem:[%s330_s11 + $0x69] sm:$0xf] }
  0x19   : > { %v161_v39 = vmax.f32 %v153_v31, %v271_v23  ;;  %v283_v50 = vld [vmem:[%s330_s11 + $0x11] sm:$0xf]  ;;  %v280_v54 = vld [vmem:[%s330_s11 + $0x40] sm:$0xf]  ;;  %v284_v59 = vld [vmem:[%s330_s11 + $0x19] sm:$0xf] }
  0x1a   : > { %v169_v34 = vmax.f32 %v160_v25, %v274_v21  ;;  %v154_v44 = vmax.f32 %v145_v36, %v268_v32  ;;  %v146_v48 = vmax.f32 %v137_v41, %v265_v37  ;;  %v277_v57 = vld [vmem:[%s330_s11 + $0x20] sm:$0xf]  ;;  %v281_v62 = vld [vmem:[%s330_s11 + $0x48] sm:$0xf] }
  0x1b   : > { %v170_v46 = vmax.f32 %v161_v39, %v275_v35  ;;  %v285_v1 = vld [vmem:[%s330_s11 + $0x21] sm:$0xf] }
  0x1c   : > { %v178_v42 = vmax.f32 %v169_v34, %v278_v30  ;;  %v162_v51 = vmax.f32 %v154_v44, %v272_v40  ;;  %v155_v55 = vmax.f32 %v146_v48, %v269_v45 }
  0x1d   : > { %v179_v53 = vmax.f32 %v170_v46, %v279_v43 }
  0x1e   : > { %v186_v49 = vmax.f32 %v178_v42, %v282_v38  ;;  %v171_v56 = vmax.f32 %v162_v51, %v276_v47  ;;  %v163_v60 = vmax.f32 %v155_v55, %v273_v52 }
  0x1f   : > { %v187_v58 = vmax.f32 %v179_v53, %v283_v50 }
  0x20   : > { %191 = vst.msk [vmem:[%s116_s15] sm:$0xf] %vm190_vm0, %v186_v49  ;;  %v180_v61 = vmax.f32 %v171_v56, %v280_v54  ;;  %v172_v63 = vmax.f32 %v163_v60, %v277_v57 }
  0x21   : > { %192 = vst.msk [vmem:[%s116_s15 + $0x4] sm:$0xf] %vm190_vm0, %v187_v58 }
  0x22   : > { %v188_v0 = vmax.f32 %v180_v61, %v284_v59  ;;  %v181_v2 = vmax.f32 %v172_v63, %v281_v62 }
  0x24   : > { %193 = vst.msk [vmem:[%s116_s15 + $0x8] sm:$0xf] %vm190_vm0, %v188_v0  ;;  %v189_v3 = vmax.f32 %v181_v2, %v285_v1 }
  0x26   : > { %194 = vst.msk [vmem:[%s116_s15 + $0xc] sm:$0xf] %vm190_vm0, %v189_v3 }
  0x27 PF: > { %s11_s6 = sadd.s32 1, %s304_s6  }
  0x28   : > { %p8_p4 = scmp.ge.s32.totalorder %s11_s6, 4  }
  0x2a   :  { %10 = sbr.rel (!%p8_p4) target bundleno = 1 (0x1), region = 59 }

// kernel: reduction_b_forward.10
= control target key start
LH: loop header
LB: loop body
LE: loop exit
PB: predicated region body
PF: predicated region fallthrough
CT: control target
= control target key end

     0   :  { %s5990_s12 = smov 0   ;;  %s5992_s13 = smov 0   ;;  %s7458_s0 = inlined_call_operand.vmem [shape: bf16[2,4,5,5,256], index: 0, kind: input, shape index: {}]   ;;  %s7459_s1 = inlined_call_operand.vmem [shape: bf16[9,256,384], index: 1, kind: input, shape index: {}]   ;;  %s7460_s2 = inlined_call_operand.vmem [shape: f32[1,384], index: 2, kind: input, shape index: {}]   ;;  %s7461_s3 = inlined_call_operand.vmem [shape: f32[2,4,4,384], index: 3, kind: output, shape index: {}]  }
   0x1   :  { %s5994_s14 = smov 0   ;;  %s5996_s15 = smov 0  }
   0x2   :  { %s5998_s16 = smov 0  }
   0x3 LB: > { %s22_s17 = sadd.s32 1, %s5960_s14  ;;  %s25_s18 = sadd.s32 1, %s5964_s15  ;;  %s5968_s16 = sphi %s5998_s16, %s13_s16   ;;  %s5964_s15 = sphi %s5996_s15, %s7465_s15   ;;  %s5960_s14 = sphi %s5994_s14, %s7464_s14   ;;  %s5956_s13 = sphi %s5992_s13, %s7463_s13   ;;  %s5952_s12 = sphi %s5990_s12, %s7462_s12  }
   0x4   : > { %p23_p0 = scmp.ge.s32.totalorder %s22_s17, 4  ;;  %p4105_p1 = scmp.ge.s32.totalorder %s5968_s16, 1 }
   0x5   : > { %p151_p2 = scmp.lt.s32.totalorder %s5968_s16, 9 }
   0x6   : > { %s7467_s17 = smov (%p23_p0, %s22_s17), 0  ;;  %s7469_s18 = smov (!%p23_p0, %s25_s18), %s5964_s15 }
   0x7   : > { %p152_p3 = pnand %p4105_p1, %p151_p2  ;;  %p27_p4 = scmp.ge.s32.totalorder %s7469_s18, 2 }
   0x8   : > { %p179_p5 = scmp.lt.s32.totalorder (!%p152_p3), %s5956_s13, 1  ;;  %s5090_s28 = sshll.u32 (!%p152_p3), %s5952_s12, 3 }
   0x9   : > { %s7471_s18 = smov (%p27_p4, %s7469_s18), 0  ;;  %155 = sbr.rel (%p152_p3) target bundleno = 667 (0x29b), region = 32 }
   0xa   : > { %p186_p6 = scmp.lt.s32.totalorder (!%p152_p3), %s5952_s12, 3 }
   0xe   : > { %v5336_v0 = vld [vmem:[%s7459_s1 + $0x22c] ss:$12 sps:$4 sm:$0xff]   ;;  %v5338_v1 = vld [vmem:[%s7459_s1 + $0x2f0] ss:$12 sps:$4 sm:$0xff]   ;;  %v5339_v2 = vld [vmem:[%s7459_s1 + $0x228] ss:$12 sps:$4 sm:$0xff]  }
   0xf   : > { %594 = vmatprep.subr.bf16.mxu0 %v5336_v0  ;;  %5095 = vmatprep.subr.bf16.mxu1 %v5338_v1  ;;  %v5340_v3 = vld [vmem:[%s7459_s1 + $0x230] ss:$12 sps:$4 sm:$0xff]   ;;  %v5341_v4 = vld [vmem:[%s7459_s1 + $0x214] ss:$12 sps:$4 sm:$0xff]   ;;  %v5343_v5 = vld [vmem:[%s7459_s1 + $0x2d8] ss:$12 sps:$4 sm:$0xff]  }
  0x10   : > { %595 = vmatpush1.bf16.msra.mxu0 %v5339_v2  ;;  %5096 = vmatpush3.bf16.msra.mxu1 %v5340_v3  ;;  %v5344_v6 = vld [vmem:[%s7459_s1 + $0x210] ss:$12 sps:$4 sm:$0xff]   ;;  %v5345_v7 = vld [vmem:[%s7459_s1 + $0x218] ss:$12 sps:$4 sm:$0xff]   ;;  %v5348_v9 = vld [vmem:[%s7459_s1 + $0x2c0] ss:$12 sps:$4 sm:$0xff]  }
  0x11   : > { %596 = vmatprep.subr.bf16.mxu0 %v5341_v4  ;;  %5097 = vmatprep.subr.bf16.mxu1 %v5343_v5  ;;  %v5346_v8 = vld [vmem:[%s7459_s1 + $0x1fc] ss:$12 sps:$4 sm:$0xff]   ;;  %v5349_v10 = vld [vmem:[%s7459_s1 + $0x1f8] ss:$12 sps:$4 sm:$0xff]   ;;  %v5350_v11 = vld [vmem:[%s7459_s1 + $0x200] ss:$12 sps:$4 sm:$0xff]  }
  0x12   : > { %v5351_v12 = vld [vmem:[%s7459_s1 + $0x1e4] ss:$12 sps:$4 sm:$0xff]   ;;  %v5353_v13 = vld [vmem:[%s7459_s1 + $0x2a8] ss:$12 sps:$4 sm:$0xff]   ;;  %v5354_v14 = vld [vmem:[%s7459_s1 + $0x1e0] ss:$12 sps:$4 sm:$0xff]  }
  0x13   : > { %v5355_v15 = vld [vmem:[%s7459_s1 + $0x1e8] ss:$12 sps:$4 sm:$0xff]   ;;  %s7473_s13 = smov (!%p179_p5, %s5956_s13), 1  ;;  %v5356_v16 = vld [vmem:[%s7459_s1 + $0x1cc] ss:$12 sps:$4 sm:$0xff]   ;;  %s7475_s12 = smov (!%p186_p6, %s5952_s12), 3 }
  0x14   : > { %597 = vmatpush1.bf16.msra.mxu0 %v5344_v6  ;;  %5098 = vmatpush3.bf16.msra.mxu1 %v5345_v7  ;;  %v5358_v17 = vld [vmem:[%s7459_s1 + $0x290] ss:$12 sps:$4 sm:$0xff]   ;;  %v5359_v18 = vld [vmem:[%s7459_s1 + $0x1c8] ss:$12 sps:$4 sm:$0xff]   ;;  %s5293_s21 = smul.u32 160, %s7473_s13 }
  0x15   : > { %598 = vmatprep.subr.bf16.mxu0 %v5346_v8  ;;  %5099 = vmatprep.subr.bf16.mxu1 %v5348_v9  ;;  %v5360_v19 = vld [vmem:[%s7459_s1 + $0x1d0] ss:$12 sps:$4 sm:$0xff]   ;;  %v5361_v20 = vld [vmem:[%s7459_s1 + $0x1b4] ss:$12 sps:$4 sm:$0xff]   ;;  %v5363_v21 = vld [vmem:[%s7459_s1 + $0x278] ss:$12 sps:$4 sm:$0xff]  }
  0x16   : > { %v5364_v22 = vld [vmem:[%s7459_s1 + $0x1b0] ss:$12 sps:$4 sm:$0xff]   ;;  %v5365_v23 = vld [vmem:[%s7459_s1 + $0x1b8] ss:$12 sps:$4 sm:$0xff]   ;;  %s183_s6 = scalar_lea.vmem %s7458_s0, %s5293_s21  ;;  %v5368_v25 = vld [vmem:[%s7459_s1 + $0x260] ss:$12 sps:$4 sm:$0xff]  }
  0x17   : > { %v5366_v24 = vld [vmem:[%s7459_s1 + $0x19c] ss:$12 sps:$4 sm:$0xff]   ;;  %v5369_v26 = vld [vmem:[%s7459_s1 + $0x198] ss:$12 sps:$4 sm:$0xff]   ;;  %s6116_s11 = scalar_lea.vmem %s183_s6, %s5090_s28  ;;  %v5370_v27 = vld [vmem:[%s7459_s1 + $0x1a0] ss:$12 sps:$4 sm:$0xff]  }
  0x18   : > { %599 = vmatpush1.bf16.msra.mxu0 %v5349_v10  ;;  %5100 = vmatpush3.bf16.msra.mxu1 %v5350_v11  ;;  %v5371_v28 = vld [vmem:[%s7459_s1 + $0x184] ss:$12 sps:$4 sm:$0xff]   ;;  %v5373_v29 = vld [vmem:[%s7459_s1 + $0x248] ss:$12 sps:$4 sm:$0xff]   ;;  %v5374_v31 = vld [vmem:[%s7459_s1 + $0x180] ss:$12 sps:$4 sm:$0xff]  }
  0x19   : > { %600 = vmatprep.subr.bf16.mxu0 %v5351_v12  ;;  %5101 = vmatprep.subr.bf16.mxu1 %v5353_v13  ;;  %v4112_v30 = vld [vmem:[%s6116_s11 + $0x28] sm:$0x33]  ;;  %v5384_v39 = vld [vmem:[%s7459_s1 + $0x2d4] ss:$12 sps:$4 sm:$0xff]   ;;  %v5389_v41 = vld [vmem:[%s7459_s1 + $0x2d0] ss:$12 sps:$4 sm:$0xff]  }
  0x1a   : > { %v4178_v32 = vcombine.high %v4112_v30, %v4112_v30  ;;  %v5375_v33 = vld [vmem:[%s7459_s1 + $0x188] ss:$12 sps:$4 sm:$0xff]   ;;  %v5376_v34 = vld [vmem:[%s7459_s1 + $0x2ec] ss:$12 sps:$4 sm:$0xff]   ;;  %v6143_v37 = vcombine.low %v4112_v30, %v4112_v30  ;;  %v5386_v42 = vld [vmem:[%s7459_s1 + $0x90] ss:$12 sps:$4 sm:$0xff]  }
  0x1b   : > { %v5382_v35 = vld [vmem:[%s7459_s1 + $0xac] ss:$12 sps:$4 sm:$0xff]   ;;  %v5380_v36 = vld [vmem:[%s7459_s1 + $0xa8] ss:$12 sps:$4 sm:$0xff]   ;;  %v5396_v47 = vld [vmem:[%s7459_s1 + $0x2a4] ss:$12 sps:$4 sm:$0xff]  }
  0x1c   : > { %601 = vmatpush1.bf16.msra.mxu0 %v5354_v14  ;;  %5102 = vmatpush3.bf16.msra.mxu1 %v5355_v15  ;;  %v5383_v38 = vld [vmem:[%s7459_s1 + $0x2e8] ss:$12 sps:$4 sm:$0xff]   ;;  %v5392_v45 = vld [vmem:[%s7459_s1 + $0x78] ss:$12 sps:$4 sm:$0xff]   ;;  %v5401_v49 = vld [vmem:[%s7459_s1 + $0x2a0] ss:$12 sps:$4 sm:$0xff]  }
  0x1d   : > { %602 = vmatprep.subr.bf16.mxu0 %v5356_v16  ;;  %5103 = vmatprep.subr.bf16.mxu1 %v5358_v17  ;;  %v5388_v40 = vld [vmem:[%s7459_s1 + $0x94] ss:$12 sps:$4 sm:$0xff]   ;;  %v5390_v43 = vld [vmem:[%s7459_s1 + $0x2bc] ss:$12 sps:$4 sm:$0xff]   ;;  %v5395_v46 = vld [vmem:[%s7459_s1 + $0x2b8] ss:$12 sps:$4 sm:$0xff]  }
  0x1e   : > { %667 = vmatprep.mubr.bf16.mxu1 %v4178_v32  ;;  %626 = vmatprep.mubr.bf16.mxu0 %v4178_v32  ;;  %v5394_v44 = vld [vmem:[%s7459_s1 + $0x7c] ss:$12 sps:$4 sm:$0xff]   ;;  %v5400_v48 = vld [vmem:[%s7459_s1 + $0x64] ss:$12 sps:$4 sm:$0xff]   ;;  %v5398_v50 = vld [vmem:[%s7459_s1 + $0x60] ss:$12 sps:$4 sm:$0xff]  }
  0x1f   : > { %v5402_v51 = vld [vmem:[%s7459_s1 + $0x28c] ss:$12 sps:$4 sm:$0xff]   ;;  %v5407_v53 = vld [vmem:[%s7459_s1 + $0x288] ss:$12 sps:$4 sm:$0xff]   ;;  %v5410_v57 = vld [vmem:[%s7459_s1 + $0x30] ss:$12 sps:$4 sm:$0xff]  }
  0x20   : > { %603 = vmatpush1.bf16.msra.mxu0 %v5359_v18  ;;  %5104 = vmatpush3.bf16.msra.mxu1 %v5360_v19  ;;  %v5406_v52 = vld [vmem:[%s7459_s1 + $0x4c] ss:$12 sps:$4 sm:$0xff]   ;;  %v5404_v54 = vld [vmem:[%s7459_s1 + $0x48] ss:$12 sps:$4 sm:$0xff]   ;;  %v5413_v58 = vld [vmem:[%s7459_s1 + $0x270] ss:$12 sps:$4 sm:$0xff]  }
  0x21   : > { %604 = vmatprep.subr.bf16.mxu0 %v5361_v20  ;;  %5105 = vmatprep.subr.bf16.mxu1 %v5363_v21  ;;  %v5408_v55 = vld [vmem:[%s7459_s1 + $0x274] ss:$12 sps:$4 sm:$0xff]   ;;  %v5414_v59 = vld [vmem:[%s7459_s1 + $0x25c] ss:$12 sps:$4 sm:$0xff]   ;;  %v5416_v61 = vld [vmem:[%s7459_s1 + $0x18] ss:$12 sps:$4 sm:$0xff]  }
  0x22   : > { %v5412_v56 = vld [vmem:[%s7459_s1 + $0x34] ss:$12 sps:$4 sm:$0xff]   ;;  %v5418_v60 = vld [vmem:[%s7459_s1 + $0x1c] ss:$12 sps:$4 sm:$0xff]   ;;  %v5419_v62 = vld [vmem:[%s7459_s1 + $0x258] ss:$12 sps:$4 sm:$0xff]  }
  0x23   : > { %v5420_v63 = vld [vmem:[%s7459_s1 + $0x244] ss:$12 sps:$4 sm:$0xff]   ;;  %v5422_v1 = vld [vmem:[%s7459_s1] ss:$12 sps:$4 sm:$0xff]   ;;  %v5426_v5 = vld [vmem:[%s7459_s1 + $0x168] ss:$12 sps:$4 sm:$0xff]  }
  0x24   : > { %605 = vmatpush1.bf16.msra.mxu0 %v5364_v22  ;;  %5106 = vmatpush3.bf16.msra.mxu1 %v5365_v23  ;;  %v5424_v0 = vld [vmem:[%s7459_s1 + $0x4] ss:$12 sps:$4 sm:$0xff]   ;;  %v5425_v2 = vld [vmem:[%s7459_s1 + $0x240] ss:$12 sps:$4 sm:$0xff]   ;;  %v5438_v12 = vld [vmem:[%s7459_s1 + $0x13c] ss:$12 sps:$4 sm:$0xff]  }
  0x25   : > { %606 = vmatprep.subr.bf16.mxu0 %v5366_v24  ;;  %5107 = vmatprep.subr.bf16.mxu1 %v5368_v25  ;;  %v5429_v3 = vld [vmem:[%s7459_s1 + $0x170] ss:$12 sps:$4 sm:$0xff]   ;;  %v5428_v4 = vld [vmem:[%s7459_s1 + $0x16c] ss:$12 sps:$4 sm:$0xff]   ;;  %v5433_v8 = vld [vmem:[%s7459_s1 + $0x154] ss:$12 sps:$4 sm:$0xff]  }
  0x26   : > { %v5430_v6 = vld [vmem:[%s7459_s1 + $0xb0] ss:$12 sps:$4 sm:$0xff]   ;;  %v5434_v7 = vld [vmem:[%s7459_s1 + $0x158] ss:$12 sps:$4 sm:$0xff]   ;;  %v5439_v11 = vld [vmem:[%s7459_s1 + $0x140] ss:$12 sps:$4 sm:$0xff]  }
  0x27   : > { %v5435_v9 = vld [vmem:[%s7459_s1 + $0x98] ss:$12 sps:$4 sm:$0xff]   ;;  %v5431_v10 = vld [vmem:[%s7459_s1 + $0x150] ss:$12 sps:$4 sm:$0xff]   ;;  %v5440_v14 = vld [vmem:[%s7459_s1 + $0x80] ss:$12 sps:$4 sm:$0xff]  }
  0x28   : > { %607 = vmatpush1.bf16.msra.mxu0 %v5369_v26  ;;  %5108 = vmatpush3.bf16.msra.mxu1 %v5370_v27  ;;  %v5436_v13 = vld [vmem:[%s7459_s1 + $0x138] ss:$12 sps:$4 sm:$0xff]   ;;  %v5444_v15 = vld [vmem:[%s7459_s1 + $0x128] ss:$12 sps:$4 sm:$0xff]   ;;  %v5441_v18 = vld [vmem:[%s7459_s1 + $0x120] ss:$12 sps:$4 sm:$0xff]  }
  0x29   : > { %608 = vmatprep.subr.bf16.mxu0 %v5371_v28  ;;  %5109 = vmatprep.subr.bf16.mxu1 %v5373_v29  ;;  %v5443_v16 = vld [vmem:[%s7459_s1 + $0x124] ss:$12 sps:$4 sm:$0xff]   ;;  %v5445_v19 = vld [vmem:[%s7459_s1 + $0x68] ss:$12 sps:$4 sm:$0xff]   ;;  %v5448_v22 = vld [vmem:[%s7459_s1 + $0x10c] ss:$12 sps:$4 sm:$0xff]  }
  0x2a   : > { %v197_v17 = vld [vmem:[%s6116_s11] sm:$0x33]  ;;  %v5449_v21 = vld [vmem:[%s7459_s1 + $0x110] ss:$12 sps:$4 sm:$0xff]   ;;  %v5446_v23 = vld [vmem:[%s7459_s1 + $0x108] ss:$12 sps:$4 sm:$0xff]  }
  0x2b   : > { %v4228_v20 = vcombine.high %v197_v17, %v197_v17  ;;  %v5450_v24 = vld [vmem:[%s7459_s1 + $0x50] ss:$12 sps:$4 sm:$0xff]   ;;  %v5454_v25 = vld [vmem:[%s7459_s1 + $0xf8] ss:$12 sps:$4 sm:$0xff]   ;;  %v5453_v26 = vld [vmem:[%s7459_s1 + $0xf4] ss:$12 sps:$4 sm:$0xff]  }
  0x2c   : > { %609 = vmatpush1.bf16.msra.mxu0 %v5374_v31  ;;  %5110 = vmatpush3.bf16.msra.mxu1 %v5375_v33  ;;  %v5451_v27 = vld [vmem:[%s7459_s1 + $0xf0] ss:$12 sps:$4 sm:$0xff]   ;;  %v5455_v28 = vld [vmem:[%s7459_s1 + $0x38] ss:$12 sps:$4 sm:$0xff]   ;;  %v5459_v29 = vld [vmem:[%s7459_s1 + $0xe0] ss:$12 sps:$4 sm:$0xff]  }
  0x2d   : > { %610 = vmatprep.subr.bf16.mxu0 %v5376_v34  ;;  %938 = vmatprep.subr.bf16.mxu1 %v5382_v35  ;;  %v5458_v30 = vld [vmem:[%s7459_s1 + $0xdc] ss:$12 sps:$4 sm:$0xff]   ;;  %v5460_v31 = vld [vmem:[%s7459_s1 + $0x20] ss:$12 sps:$4 sm:$0xff]   ;;  %v5456_v32 = vld [vmem:[%s7459_s1 + $0xd8] ss:$12 sps:$4 sm:$0xff]  }
  0x2e   : > { %v5464_v33 = vld [vmem:[%s7459_s1 + $0xc8] ss:$12 sps:$4 sm:$0xff]   ;;  %v5463_v34 = vld [vmem:[%s7459_s1 + $0xc4] ss:$12 sps:$4 sm:$0xff]   ;;  %v5461_v35 = vld [vmem:[%s7459_s1 + $0xc0] ss:$12 sps:$4 sm:$0xff]  }
  0x2f   : > { %668 = vmatmul.mubr.bf16.vlgmr.msra.gmra.mxu1 %v6143_v37  ;;  %s5295_s25 = smul.u32 12, %s7473_s13 }
  0x30   : > { %611 = vmatpush2.bf16.msra.mxu0 %v5383_v38  ;;  %939 = vmatpush1.bf16.msra.mxu1 %v5380_v36  ;;  %v5465_v36 = vld [vmem:[%s7459_s1 + $0x8] ss:$12 sps:$4 sm:$0xff]   ;;  %v5471_v38 = vld [vmem:[%s7459_s1 + $0x470] ss:$12 sps:$4 sm:$0xff]   ;;  %s5294_s26 = smul.u32 3, %s7475_s12 }
  0x31   : > { %612 = vmatprep.subr.bf16.mxu0 %v5384_v39  ;;  %940 = vmatprep.subr.bf16.mxu1 %v5388_v40  ;;  %v4227_v39 = vcombine.low %v197_v17, %v197_v17  ;;  %v5468_v40 = vld [vmem:[%s7459_s1 + $0x3a8] ss:$12 sps:$4 sm:$0xff]   ;;  %v5515_v17 = vld [vmem:[%s7459_s1 + $0x52c] ss:$12 sps:$4 sm:$0xff]  }
  0x32   : > { %970 = vmatprep.mubr.bf16.mxu1 %v4228_v20  ;;  %s190_s29 = sadd.s32 %s5295_s25, %s5294_s26 }
  0x33   : > { %s4107_s30 = sshll.u32 %s190_s29, 2 }
  0x34   : > { %613 = vmatpush2.bf16.msra.mxu0 %v5389_v41  ;;  %941 = vmatpush1.bf16.msra.mxu1 %v5386_v42  ;;  %v5472_v41 = vld [vmem:[%s7459_s1 + $0x3b0] ss:$12 sps:$4 sm:$0xff]   ;;  %v5475_v42 = vld [vmem:[%s7459_s1 + $0x394] ss:$12 sps:$4 sm:$0xff]   ;;  %s192_s12 = scalar_lea.vmem %s7461_s3, %s4107_s30 }
  0x35   : > { %614 = vmatprep.subr.bf16.mxu0 %v5390_v43  ;;  %942 = vmatprep.subr.bf16.mxu1 %v5394_v44  ;;  %v5476_v43 = vld [vmem:[%s7459_s1 + $0x458] ss:$12 sps:$4 sm:$0xff]   ;;  %v5473_v44 = vld [vmem:[%s7459_s1 + $0x390] ss:$12 sps:$4 sm:$0xff]  }
  0x38   : > { %615 = vmatpush2.bf16.msra.mxu0 %v5395_v46  ;;  %943 = vmatpush1.bf16.msra.mxu1 %v5392_v45  ;;  %v5477_v45 = vld [vmem:[%s7459_s1 + $0x398] ss:$12 sps:$4 sm:$0xff]   ;;  %v5480_v46 = vld [vmem:[%s7459_s1 + $0x37c] ss:$12 sps:$4 sm:$0xff]  }
  0x39   : > { %616 = vmatprep.subr.bf16.mxu0 %v5396_v47  ;;  %944 = vmatprep.subr.bf16.mxu1 %v5400_v48  ;;  %v5481_v47 = vld [vmem:[%s7459_s1 + $0x440] ss:$12 sps:$4 sm:$0xff]  }
  0x3a   : > { %v1019_v48 = vld [vmem:[%s6116_s11] sm:$0x77] }
  0x3c   : > { %617 = vmatpush2.bf16.msra.mxu0 %v5401_v49  ;;  %945 = vmatpush1.bf16.msra.mxu1 %v5398_v50  ;;  %v4342_v49 = vcombine.high %v1019_v48, %v1019_v48  ;;  %v5478_v50 = vld [vmem:[%s7459_s1 + $0x378] ss:$12 sps:$4 sm:$0xff]  }
  0x3d   : > { %618 = vmatprep.subr.bf16.mxu0 %v5402_v51  ;;  %946 = vmatprep.subr.bf16.mxu1 %v5406_v52  ;;  %v5482_v51 = vld [vmem:[%s7459_s1 + $0x380] ss:$12 sps:$4 sm:$0xff]   ;;  %v5485_v52 = vld [vmem:[%s7459_s1 + $0x364] ss:$12 sps:$4 sm:$0xff]  }
  0x40   : > { %619 = vmatpush2.bf16.msra.mxu0 %v5407_v53  ;;  %947 = vmatpush1.bf16.msra.mxu1 %v5404_v54  ;;  %v1098_v53 = vshrl.u32 %v4342_v49, 16  ;;  %v1100_v54 = vshll.u32 %v4342_v49, 16  ;;  %v5552_v49 = vld [vmem:[%s7459_s1 + $0x3c0] ss:$12 sps:$4 sm:$0xff]  }
  0x41   : > { %620 = vmatprep.subr.bf16.mxu0 %v5408_v55  ;;  %948 = vmatprep.subr.bf16.mxu1 %v5412_v56  ;;  %v5486_v55 = vld [vmem:[%s7459_s1 + $0x428] ss:$12 sps:$4 sm:$0xff]  }
  0x42   : > { %v1102_v56 = vrot.slane %v1100_v54, 1  ;;  %v5562_v54 = vld [vmem:[%s7459_s1 + $0x530] ss:$12 sps:$4 sm:$0xff]  }
  0x44   : > { %621 = vmatpush2.bf16.msra.mxu0 %v5413_v58  ;;  %949 = vmatpush1.bf16.msra.mxu1 %v5410_v57  ;;  %v5483_v57 = vld [vmem:[%s7459_s1 + $0x360] ss:$12 sps:$4 sm:$0xff]   ;;  %v5487_v58 = vld [vmem:[%s7459_s1 + $0x368] ss:$12 sps:$4 sm:$0xff]  }
  0x45   : > { %622 = vmatprep.subr.bf16.mxu0 %v5414_v59  ;;  %950 = vmatprep.subr.bf16.mxu1 %v5418_v60  ;;  %v5490_v59 = vld [vmem:[%s7459_s1 + $0x34c] ss:$12 sps:$4 sm:$0xff]   ;;  %v1103_v60 = vor.u32 %v1102_v56, %v1098_v53  ;;  %v5558_v53 = vld [vmem:[%s7459_s1 + $0x5e8] ss:$12 sps:$4 sm:$0xff]  }
  0x46   : > { %v5565_v56 = vld [vmem:[%s7459_s1 + $0x5d4] ss:$12 sps:$4 sm:$0xff]  }
  0x48   : > { %623 = vmatpush2.bf16.msra.mxu0 %v5419_v62  ;;  %951 = vmatpush1.bf16.msra.mxu1 %v5416_v61  ;;  %v5491_v61 = vld [vmem:[%s7459_s1 + $0x410] ss:$12 sps:$4 sm:$0xff]   ;;  %v5488_v62 = vld [vmem:[%s7459_s1 + $0x348] ss:$12 sps:$4 sm:$0xff]  }
  0x49   : > { %624 = vmatprep.subr.bf16.mxu0 %v5420_v63  ;;  %952 = vmatprep.subr.bf16.mxu1 %v5424_v0  ;;  %v5492_v63 = vld [vmem:[%s7459_s1 + $0x350] ss:$12 sps:$4 sm:$0xff]   ;;  %v5495_v0 = vld [vmem:[%s7459_s1 + $0x334] ss:$12 sps:$4 sm:$0xff]  }
  0x4c   : > { %625 = vmatpush2.bf16.msra.mxu0 %v5425_v2  ;;  %953 = vmatpush1.bf16.msra.mxu1 %v5422_v1  ;;  %v5496_v1 = vld [vmem:[%s7459_s1 + $0x3f8] ss:$12 sps:$4 sm:$0xff]   ;;  %v5493_v2 = vld [vmem:[%s7459_s1 + $0x330] ss:$12 sps:$4 sm:$0xff]  }
  0x4d   : > { %5117 = vmatprep.subr.bf16.mxu0 %v5429_v3  ;;  %954 = vmatprep.subr.bf16.mxu1 %v5428_v4  ;;  %v5497_v3 = vld [vmem:[%s7459_s1 + $0x338] ss:$12 sps:$4 sm:$0xff]   ;;  %v4341_v4 = vcombine.low %v1019_v48, %v1019_v48 }
  0x4e   : > { %v5557_v48 = vld [vmem:[%s7459_s1 + $0x484] ss:$12 sps:$4 sm:$0xff]  }
  0x4f   : > { %627 = vmatmul.mubr.bf16.vlgmr.msra.gmra.mxu0 %v6143_v37  ;;  %v5470_v37 = vld [vmem:[%s7459_s1 + $0x3ac] ss:$12 sps:$4 sm:$0xff]  }
  0x50   : > { %5118 = vmatpush3.bf16.msra.mxu0 %v5430_v6  ;;  %955 = vmatpush2.bf16.msra.mxu1 %v5426_v5  ;;  %v5500_v5 = vld [vmem:[%s7459_s1 + $0x31c] ss:$12 sps:$4 sm:$0xff]   ;;  %v5501_v6 = vld [vmem:[%s7459_s1 + $0x3e0] ss:$12 sps:$4 sm:$0xff]  }
  0x51   : > { %5119 = vmatprep.subr.bf16.mxu0 %v5434_v7  ;;  %956 = vmatprep.subr.bf16.mxu1 %v5433_v8  ;;  %v5498_v7 = vld [vmem:[%s7459_s1 + $0x318] ss:$12 sps:$4 sm:$0xff]   ;;  %v5502_v8 = vld [vmem:[%s7459_s1 + $0x320] ss:$12 sps:$4 sm:$0xff]  }
  0x52   : > { %1011 = vmatprep.mubr.bf16.mxu0 %v4228_v20  ;;  %v5513_v20 = vld [vmem:[%s7459_s1 + $0x528] ss:$12 sps:$4 sm:$0xff]  }
  0x54   : > { %5120 = vmatpush3.bf16.msra.mxu0 %v5435_v9  ;;  %957 = vmatpush2.bf16.msra.mxu1 %v5431_v10  ;;  %v1093_v9 = vshll.u32 %v4341_v4, 16  ;;  %v5505_v10 = vld [vmem:[%s7459_s1 + $0x304] ss:$12 sps:$4 sm:$0xff]  }
  0x55   : > { %5121 = vmatprep.subr.bf16.mxu0 %v5439_v11  ;;  %958 = vmatprep.subr.bf16.mxu1 %v5438_v12  ;;  %v5506_v11 = vld [vmem:[%s7459_s1 + $0x3c8] ss:$12 sps:$4 sm:$0xff]   ;;  %v5503_v12 = vld [vmem:[%s7459_s1 + $0x300] ss:$12 sps:$4 sm:$0xff]  }
  0x58   : > { %5122 = vmatpush3.bf16.msra.mxu0 %v5440_v14  ;;  %959 = vmatpush2.bf16.msra.mxu1 %v5436_v13  ;;  %v5507_v13 = vld [vmem:[%s7459_s1 + $0x308] ss:$12 sps:$4 sm:$0xff]   ;;  %v1091_v14 = vshrl.u32 %v4341_v4, 16  ;;  %v5580_v4 = vld [vmem:[%s7459_s1 + $0x58c] ss:$12 sps:$4 sm:$0xff]  }
  0x59   : > { %5123 = vmatprep.subr.bf16.mxu0 %v5444_v15  ;;  %960 = vmatprep.subr.bf16.mxu1 %v5443_v16  ;;  %v1095_v15 = vrot.slane %v1093_v9, 1  ;;  %v5512_v16 = vld [vmem:[%s7459_s1 + $0x46c] ss:$12 sps:$4 sm:$0xff]  }
  0x5a   : > { %v5587_v9 = vld [vmem:[%s7459_s1 + $0x4b8] ss:$12 sps:$4 sm:$0xff]  }
  0x5c   : > { %5124 = vmatpush3.bf16.msra.mxu0 %v5445_v19  ;;  %961 = vmatpush2.bf16.msra.mxu1 %v5441_v18  ;;  %v5510_v18 = vld [vmem:[%s7459_s1 + $0x468] ss:$12 sps:$4 sm:$0xff]   ;;  %v6437_v19 = vor.u32 %v1095_v15, %v1091_v14  ;;  %v5588_v14 = vld [vmem:[%s7459_s1 + $0x558] ss:$12 sps:$4 sm:$0xff]  }
  0x5d   : > { %5125 = vmatprep.subr.bf16.mxu0 %v5449_v21  ;;  %962 = vmatprep.subr.bf16.mxu1 %v5448_v22  ;;  %v5518_v21 = vld [vmem:[%s7459_s1 + $0x454] ss:$12 sps:$4 sm:$0xff]  }
  0x5e   : > { %v5521_v22 = vld [vmem:[%s7459_s1 + $0x514] ss:$12 sps:$4 sm:$0xff]  }
  0x5f   : > { %v5596_v15 = vld [vmem:[%s7459_s1 + $0x548] ss:$12 sps:$4 sm:$0xff]  }
  0x60   : > { %5126 = vmatpush3.bf16.msra.mxu0 %v5450_v24  ;;  %963 = vmatpush2.bf16.msra.mxu1 %v5446_v23  ;;  %v5516_v23 = vld [vmem:[%s7459_s1 + $0x450] ss:$12 sps:$4 sm:$0xff]  }
  0x61   : > { %5127 = vmatprep.subr.bf16.mxu0 %v5454_v25  ;;  %964 = vmatprep.subr.bf16.mxu1 %v5453_v26  ;;  %v5519_v24 = vld [vmem:[%s7459_s1 + $0x510] ss:$12 sps:$4 sm:$0xff]  }
  0x62   : > { %v5524_v25 = vld [vmem:[%s7459_s1 + $0x43c] ss:$12 sps:$4 sm:$0xff]  }
  0x63   : > { %v5527_v26 = vld [vmem:[%s7459_s1 + $0x4fc] ss:$12 sps:$4 sm:$0xff]  }
  0x64   : > { %5128 = vmatpush3.bf16.msra.mxu0 %v5455_v28  ;;  %965 = vmatpush2.bf16.msra.mxu1 %v5451_v27  ;;  %v5522_v27 = vld [vmem:[%s7459_s1 + $0x438] ss:$12 sps:$4 sm:$0xff]  }
  0x65   : > { %5129 = vmatprep.subr.bf16.mxu0 %v5459_v29  ;;  %966 = vmatprep.subr.bf16.mxu1 %v5458_v30  ;;  %v5525_v28 = vld [vmem:[%s7459_s1 + $0x4f8] ss:$12 sps:$4 sm:$0xff]  }
  0x66   : > { %v5530_v29 = vld [vmem:[%s7459_s1 + $0x424] ss:$12 sps:$4 sm:$0xff]  }
  0x67   : > { %v5533_v30 = vld [vmem:[%s7459_s1 + $0x4e4] ss:$12 sps:$4 sm:$0xff]  }
  0x68   : > { %5130 = vmatpush3.bf16.msra.mxu0 %v5460_v31  ;;  %967 = vmatpush2.bf16.msra.mxu1 %v5456_v32  ;;  %v5528_v31 = vld [vmem:[%s7459_s1 + $0x420] ss:$12 sps:$4 sm:$0xff]  }
  0x69   : > { %5131 = vmatprep.subr.bf16.mxu0 %v5464_v33  ;;  %968 = vmatprep.subr.bf16.mxu1 %v5463_v34  ;;  %v5531_v32 = vld [vmem:[%s7459_s1 + $0x4e0] ss:$12 sps:$4 sm:$0xff]  }
  0x6a   : > { %v5536_v33 = vld [vmem:[%s7459_s1 + $0x40c] ss:$12 sps:$4 sm:$0xff]  }
  0x6b   : > { %v5539_v34 = vld [vmem:[%s7459_s1 + $0x4cc] ss:$12 sps:$4 sm:$0xff]  }
  0x6c   : > { %5132 = vmatpush3.bf16.msra.mxu0 %v5465_v36  ;;  %969 = vmatpush2.bf16.msra.mxu1 %v5461_v35  ;;  %v5534_v35 = vld [vmem:[%s7459_s1 + $0x408] ss:$12 sps:$4 sm:$0xff]  }
  0x6d   : > { %1362 = vmatprep.subr.bf16.mxu0 %v5470_v37  ;;  %5139 = vmatprep.subr.bf16.mxu1 %v5471_v38  ;;  %v5537_v36 = vld [vmem:[%s7459_s1 + $0x4c8] ss:$12 sps:$4 sm:$0xff]  }
  0x6e   : > { %v5542_v37 = vld [vmem:[%s7459_s1 + $0x3f4] ss:$12 sps:$4 sm:$0xff]  }
  0x6f   : > { %1012 = vmatmul.mubr.bf16.vlgmr.msra.gmra.mxu0 %v4227_v39  ;;  %971 = vmatmul.mubr.bf16.vlgmr.msra.gmra.mxu1 %v4227_v39  ;;  %v5545_v38 = vld [vmem:[%s7459_s1 + $0x4b4] ss:$12 sps:$4 sm:$0xff]   ;;  %v5540_v39 = vld [vmem:[%s7459_s1 + $0x3f0] ss:$12 sps:$4 sm:$0xff]  }
  0x70   : > { %1363 = vmatpush1.bf16.msra.mxu0 %v5468_v40  ;;  %5140 = vmatpush3.bf16.msra.mxu1 %v5472_v41  ;;  %v5543_v40 = vld [vmem:[%s7459_s1 + $0x4b0] ss:$12 sps:$4 sm:$0xff]  }
  0x71   : > { %1364 = vmatprep.subr.bf16.mxu0 %v5475_v42  ;;  %5141 = vmatprep.subr.bf16.mxu1 %v5476_v43  ;;  %v5548_v41 = vld [vmem:[%s7459_s1 + $0x3dc] ss:$12 sps:$4 sm:$0xff]   ;;  %v6510_v43 = vld [vmem:[%s6116_s11 + $0x50] sm:$0x33] }
  0x72   : > { %1435 = vmatprep.mubr.bf16.mxu1 %v1103_v60  ;;  %1394 = vmatprep.mubr.bf16.mxu0 %v1103_v60  ;;  %v5551_v42 = vld [vmem:[%s7459_s1 + $0x49c] ss:$12 sps:$4 sm:$0xff]  }
  0x73   : > { %v5570_v60 = vld [vmem:[%s7459_s1 + $0x5bc] ss:$12 sps:$4 sm:$0xff]  }
  0x74   : > { %1365 = vmatpush1.bf16.msra.mxu0 %v5473_v44  ;;  %5142 = vmatpush3.bf16.msra.mxu1 %v5477_v45  ;;  %v5546_v44 = vld [vmem:[%s7459_s1 + $0x3d8] ss:$12 sps:$4 sm:$0xff]   ;;  %v4459_v45 = vcombine.high %v6510_v43, %v6510_v43 }
  0x75   : > { %1366 = vmatprep.subr.bf16.mxu0 %v5480_v46  ;;  %5143 = vmatprep.subr.bf16.mxu1 %v5481_v47  ;;  %v5549_v46 = vld [vmem:[%s7459_s1 + $0x498] ss:$12 sps:$4 sm:$0xff]  }
  0x76   : > { %v5554_v47 = vld [vmem:[%s7459_s1 + $0x3c4] ss:$12 sps:$4 sm:$0xff]  }
  0x78   : > { %1367 = vmatpush1.bf16.msra.mxu0 %v5478_v50  ;;  %5144 = vmatpush3.bf16.msra.mxu1 %v5482_v51  ;;  %v5555_v50 = vld [vmem:[%s7459_s1 + $0x480] ss:$12 sps:$4 sm:$0xff]   ;;  %v5561_v51 = vld [vmem:[%s7459_s1 + $0x5f0] ss:$12 sps:$4 sm:$0xff]  }
  0x79   : > { %1368 = vmatprep.subr.bf16.mxu0 %v5485_v52  ;;  %5145 = vmatprep.subr.bf16.mxu1 %v5486_v55  ;;  %v5560_v52 = vld [vmem:[%s7459_s1 + $0x5ec] ss:$12 sps:$4 sm:$0xff]  }
  0x7a   : > { %v5566_v55 = vld [vmem:[%s7459_s1 + $0x5d8] ss:$12 sps:$4 sm:$0xff]  }
  0x7c   : > { %1369 = vmatpush1.bf16.msra.mxu0 %v5483_v57  ;;  %5146 = vmatpush3.bf16.msra.mxu1 %v5487_v58  ;;  %v5567_v57 = vld [vmem:[%s7459_s1 + $0x518] ss:$12 sps:$4 sm:$0xff]   ;;  %v5563_v58 = vld [vmem:[%s7459_s1 + $0x5d0] ss:$12 sps:$4 sm:$0xff]  }
  0x7d   : > { %1370 = vmatprep.subr.bf16.mxu0 %v5490_v59  ;;  %5147 = vmatprep.subr.bf16.mxu1 %v5491_v61  ;;  %v5571_v59 = vld [vmem:[%s7459_s1 + $0x5c0] ss:$12 sps:$4 sm:$0xff]   ;;  %v5568_v61 = vld [vmem:[%s7459_s1 + $0x5b8] ss:$12 sps:$4 sm:$0xff]  }
  0x80   : > { %1371 = vmatpush1.bf16.msra.mxu0 %v5488_v62  ;;  %5148 = vmatpush3.bf16.msra.mxu1 %v5492_v63  ;;  %v5572_v62 = vld [vmem:[%s7459_s1 + $0x500] ss:$12 sps:$4 sm:$0xff]   ;;  %v5576_v63 = vld [vmem:[%s7459_s1 + $0x5a8] ss:$12 sps:$4 sm:$0xff]  }
  0x81   : > { %1372 = vmatprep.subr.bf16.mxu0 %v5495_v0  ;;  %5149 = vmatprep.subr.bf16.mxu1 %v5496_v1  ;;  %v5575_v0 = vld [vmem:[%s7459_s1 + $0x5a4] ss:$12 sps:$4 sm:$0xff]   ;;  %v5573_v1 = vld [vmem:[%s7459_s1 + $0x5a0] ss:$12 sps:$4 sm:$0xff]  }
  0x84   : > { %1373 = vmatpush1.bf16.msra.mxu0 %v5493_v2  ;;  %5150 = vmatpush3.bf16.msra.mxu1 %v5497_v3  ;;  %v5577_v2 = vld [vmem:[%s7459_s1 + $0x4e8] ss:$12 sps:$4 sm:$0xff]   ;;  %v5581_v3 = vld [vmem:[%s7459_s1 + $0x590] ss:$12 sps:$4 sm:$0xff]  }
  0x85   : > { %1374 = vmatprep.subr.bf16.mxu0 %v5500_v5  ;;  %5151 = vmatprep.subr.bf16.mxu1 %v5501_v6  ;;  %v5582_v5 = vld [vmem:[%s7459_s1 + $0x4d0] ss:$12 sps:$4 sm:$0xff]   ;;  %v5578_v6 = vld [vmem:[%s7459_s1 + $0x588] ss:$12 sps:$4 sm:$0xff]  }
  0x88   : > { %1375 = vmatpush1.bf16.msra.mxu0 %v5498_v7  ;;  %5152 = vmatpush3.bf16.msra.mxu1 %v5502_v8  ;;  %v5586_v7 = vld [vmem:[%s7459_s1 + $0x578] ss:$12 sps:$4 sm:$0xff]   ;;  %v5585_v8 = vld [vmem:[%s7459_s1 + $0x574] ss:$12 sps:$4 sm:$0xff]  }
  0x89   : > { %1376 = vmatprep.subr.bf16.mxu0 %v5505_v10  ;;  %5153 = vmatprep.subr.bf16.mxu1 %v5506_v11  ;;  %v5583_v10 = vld [vmem:[%s7459_s1 + $0x570] ss:$12 sps:$4 sm:$0xff]   ;;  %v5591_v11 = vld [vmem:[%s7459_s1 + $0x560] ss:$12 sps:$4 sm:$0xff]  }
  0x8c   : > { %1377 = vmatpush1.bf16.msra.mxu0 %v5503_v12  ;;  %5154 = vmatpush3.bf16.msra.mxu1 %v5507_v13  ;;  %v5590_v12 = vld [vmem:[%s7459_s1 + $0x55c] ss:$12 sps:$4 sm:$0xff]   ;;  %v5592_v13 = vld [vmem:[%s7459_s1 + $0x4a0] ss:$12 sps:$4 sm:$0xff]  }
  0x8d   : > { %1378 = vmatprep.subr.bf16.mxu0 %v5512_v16  ;;  %1778 = vmatprep.subr.bf16.mxu1 %v5515_v17  ;;  %v5595_v16 = vld [vmem:[%s7459_s1 + $0x544] ss:$12 sps:$4 sm:$0xff]   ;;  %v5597_v17 = vld [vmem:[%s7459_s1 + $0x488] ss:$12 sps:$4 sm:$0xff]  }
  0x8f   : > { %1436 = vmatmul.mubr.bf16.vlgmr.msra.gmra.mxu1 %v6437_v19 }
  0x90   : > { %1379 = vmatpush2.bf16.msra.mxu0 %v5510_v18  ;;  %1779 = vmatpush1.bf16.msra.mxu1 %v5513_v20  ;;  %v5593_v18 = vld [vmem:[%s7459_s1 + $0x540] ss:$12 sps:$4 sm:$0xff]   ;;  %v5603_v20 = vld [vmem:[%s7459_s1 + $0x770] ss:$12 sps:$4 sm:$0xff]  }
  0x91   : > { %1380 = vmatprep.subr.bf16.mxu0 %v5518_v21  ;;  %1780 = vmatprep.subr.bf16.mxu1 %v5521_v22  ;;  %v4458_v21 = vcombine.low %v6510_v43, %v6510_v43  ;;  %v6638_v22 = vld [vmem:[%s6116_s11 + $0x78] sm:$0x33] }
  0x92   : > { %1810 = vmatprep.mubr.bf16.mxu1 %v4459_v45  ;;  %v5628_v43 = vld [vmem:[%s7459_s1 + $0x6f8] ss:$12 sps:$4 sm:$0xff]  }
  0x94   : > { %1381 = vmatpush2.bf16.msra.mxu0 %v5516_v23  ;;  %1781 = vmatpush1.bf16.msra.mxu1 %v5519_v24  ;;  %v5600_v23 = vld [vmem:[%s7459_s1 + $0x6a8] ss:$12 sps:$4 sm:$0xff]   ;;  %v5604_v24 = vld [vmem:[%s7459_s1 + $0x6b0] ss:$12 sps:$4 sm:$0xff]  }
  0x95   : > { %1382 = vmatprep.subr.bf16.mxu0 %v5524_v25  ;;  %1782 = vmatprep.subr.bf16.mxu1 %v5527_v26  ;;  %v5607_v25 = vld [vmem:[%s7459_s1 + $0x694] ss:$12 sps:$4 sm:$0xff]   ;;  %v5608_v26 = vld [vmem:[%s7459_s1 + $0x758] ss:$12 sps:$4 sm:$0xff]  }
  0x98   : > { %1383 = vmatpush2.bf16.msra.mxu0 %v5522_v27  ;;  %1783 = vmatpush1.bf16.msra.mxu1 %v5525_v28  ;;  %v4576_v27 = vcombine.high %v6638_v22, %v6638_v22  ;;  %v5605_v28 = vld [vmem:[%s7459_s1 + $0x690] ss:$12 sps:$4 sm:$0xff]  }
  0x99   : > { %1384 = vmatprep.subr.bf16.mxu0 %v5530_v29  ;;  %1784 = vmatprep.subr.bf16.mxu1 %v5533_v30  ;;  %v5609_v29 = vld [vmem:[%s7459_s1 + $0x698] ss:$12 sps:$4 sm:$0xff]   ;;  %v5612_v30 = vld [vmem:[%s7459_s1 + $0x67c] ss:$12 sps:$4 sm:$0xff]  }
  0x9c   : > { %1385 = vmatpush2.bf16.msra.mxu0 %v5528_v31  ;;  %1785 = vmatpush1.bf16.msra.mxu1 %v5531_v32  ;;  %v5613_v31 = vld [vmem:[%s7459_s1 + $0x740] ss:$12 sps:$4 sm:$0xff]   ;;  %v5610_v32 = vld [vmem:[%s7459_s1 + $0x678] ss:$12 sps:$4 sm:$0xff]  }
  0x9d   : > { %1386 = vmatprep.subr.bf16.mxu0 %v5536_v33  ;;  %1786 = vmatprep.subr.bf16.mxu1 %v5539_v34  ;;  %v5614_v33 = vld [vmem:[%s7459_s1 + $0x680] ss:$12 sps:$4 sm:$0xff]   ;;  %v5617_v34 = vld [vmem:[%s7459_s1 + $0x664] ss:$12 sps:$4 sm:$0xff]  }
  0xa0   : > { %1387 = vmatpush2.bf16.msra.mxu0 %v5534_v35  ;;  %1787 = vmatpush1.bf16.msra.mxu1 %v5537_v36  ;;  %v5618_v35 = vld [vmem:[%s7459_s1 + $0x728] ss:$12 sps:$4 sm:$0xff]   ;;  %v5615_v36 = vld [vmem:[%s7459_s1 + $0x660] ss:$12 sps:$4 sm:$0xff]  }
  0xa1   : > { %1388 = vmatprep.subr.bf16.mxu0 %v5542_v37  ;;  %1788 = vmatprep.subr.bf16.mxu1 %v5545_v38  ;;  %v5619_v37 = vld [vmem:[%s7459_s1 + $0x668] ss:$12 sps:$4 sm:$0xff]   ;;  %v5622_v38 = vld [vmem:[%s7459_s1 + $0x64c] ss:$12 sps:$4 sm:$0xff]  }
  0xa4   : > { %1389 = vmatpush2.bf16.msra.mxu0 %v5540_v39  ;;  %1789 = vmatpush1.bf16.msra.mxu1 %v5543_v40  ;;  %v5623_v39 = vld [vmem:[%s7459_s1 + $0x710] ss:$12 sps:$4 sm:$0xff]   ;;  %v5620_v40 = vld [vmem:[%s7459_s1 + $0x648] ss:$12 sps:$4 sm:$0xff]  }
  0xa5   : > { %1390 = vmatprep.subr.bf16.mxu0 %v5548_v41  ;;  %1790 = vmatprep.subr.bf16.mxu1 %v5551_v42  ;;  %v5624_v41 = vld [vmem:[%s7459_s1 + $0x650] ss:$12 sps:$4 sm:$0xff]   ;;  %v5627_v42 = vld [vmem:[%s7459_s1 + $0x634] ss:$12 sps:$4 sm:$0xff]  }
  0xa8   : > { %1391 = vmatpush2.bf16.msra.mxu0 %v5546_v44  ;;  %1791 = vmatpush1.bf16.msra.mxu1 %v5549_v46  ;;  %v5625_v44 = vld [vmem:[%s7459_s1 + $0x630] ss:$12 sps:$4 sm:$0xff]  }
  0xa9   : > { %1392 = vmatprep.subr.bf16.mxu0 %v5554_v47  ;;  %1792 = vmatprep.subr.bf16.mxu1 %v5557_v48  ;;  %v5632_v46 = vld [vmem:[%s7459_s1 + $0x61c] ss:$12 sps:$4 sm:$0xff]   ;;  %v5633_v47 = vld [vmem:[%s7459_s1 + $0x6e0] ss:$12 sps:$4 sm:$0xff]   ;;  %v5630_v48 = vld [vmem:[%s7459_s1 + $0x618] ss:$12 sps:$4 sm:$0xff]  }
  0xac   : > { %1393 = vmatpush2.bf16.msra.mxu0 %v5552_v49  ;;  %1793 = vmatpush1.bf16.msra.mxu1 %v5555_v50  ;;  %v5634_v49 = vld [vmem:[%s7459_s1 + $0x620] ss:$12 sps:$4 sm:$0xff]   ;;  %v5637_v50 = vld [vmem:[%s7459_s1 + $0x604] ss:$12 sps:$4 sm:$0xff]  }
  0xad   : > { %5161 = vmatprep.subr.bf16.mxu0 %v5561_v51  ;;  %1794 = vmatprep.subr.bf16.mxu1 %v5560_v52  ;;  %v5638_v51 = vld [vmem:[%s7459_s1 + $0x6c8] ss:$12 sps:$4 sm:$0xff]   ;;  %v5635_v52 = vld [vmem:[%s7459_s1 + $0x600] ss:$12 sps:$4 sm:$0xff]  }
  0xaf   : > { %1395 = vmatmul.mubr.bf16.vlgmr.msra.gmra.mxu0 %v6437_v19  ;;  %v5602_v19 = vld [vmem:[%s7459_s1 + $0x6ac] ss:$12 sps:$4 sm:$0xff]  }
  0xb0   : > { %5162 = vmatpush3.bf16.msra.mxu0 %v5562_v54  ;;  %1851 = vmatprep.mubr.bf16.mxu0 %v4459_v45  ;;  %v5629_v45 = vld [vmem:[%s7459_s1 + $0x638] ss:$12 sps:$4 sm:$0xff]  }
  0xb1   : > { %1795 = vmatpush2.bf16.msra.mxu1 %v5558_v53  ;;  %5163 = vmatprep.subr.bf16.mxu0 %v5566_v55  ;;  %v5639_v53 = vld [vmem:[%s7459_s1 + $0x608] ss:$12 sps:$4 sm:$0xff]   ;;  %v5644_v54 = vld [vmem:[%s7459_s1 + $0x76c] ss:$12 sps:$4 sm:$0xff]  }
  0xb2   : > { %1796 = vmatprep.subr.bf16.mxu1 %v5565_v56  ;;  %v5647_v55 = vld [vmem:[%s7459_s1 + $0x82c] ss:$12 sps:$4 sm:$0xff]   ;;  %v5642_v56 = vld [vmem:[%s7459_s1 + $0x768] ss:$12 sps:$4 sm:$0xff]  }
  0xb4   : > { %5164 = vmatpush3.bf16.msra.mxu0 %v5567_v57  ;;  %v5645_v57 = vld [vmem:[%s7459_s1 + $0x828] ss:$12 sps:$4 sm:$0xff]  }
  0xb5   : > { %1797 = vmatpush2.bf16.msra.mxu1 %v5563_v58  ;;  %5165 = vmatprep.subr.bf16.mxu0 %v5571_v59  ;;  %v6746_v58 = vcombine.low %v6638_v22, %v6638_v22  ;;  %v5650_v59 = vld [vmem:[%s7459_s1 + $0x754] ss:$12 sps:$4 sm:$0xff]  }
  0xb6   : > { %1798 = vmatprep.subr.bf16.mxu1 %v5570_v60  ;;  %v5653_v60 = vld [vmem:[%s7459_s1 + $0x814] ss:$12 sps:$4 sm:$0xff]  }
  0xb7   : > { %v5674_v22 = vld [vmem:[%s7459_s1 + $0x6f4] ss:$12 sps:$4 sm:$0xff]  }
  0xb8   : > { %5166 = vmatpush3.bf16.msra.mxu0 %v5572_v62  ;;  %v5648_v62 = vld [vmem:[%s7459_s1 + $0x750] ss:$12 sps:$4 sm:$0xff]  }
  0xb9   : > { %1799 = vmatpush2.bf16.msra.mxu1 %v5568_v61  ;;  %5167 = vmatprep.subr.bf16.mxu0 %v5576_v63  ;;  %v6755_v61 = vld [vmem:[%s6116_s11 + $0x50] sm:$0x77] }
  0xba   : > { %1800 = vmatprep.subr.bf16.mxu1 %v5575_v0  ;;  %v4691_v63 = vcombine.high %v6755_v61, %v6755_v61  ;;  %v5651_v0 = vld [vmem:[%s7459_s1 + $0x810] ss:$12 sps:$4 sm:$0xff]  }
  0xbc   : > { %5168 = vmatpush3.bf16.msra.mxu0 %v5577_v2  ;;  %v5656_v2 = vld [vmem:[%s7459_s1 + $0x73c] ss:$12 sps:$4 sm:$0xff]  }
  0xbd   : > { %1801 = vmatpush2.bf16.msra.mxu1 %v5573_v1  ;;  %5169 = vmatprep.subr.bf16.mxu0 %v5581_v3  ;;  %v2357_v3 = vshrl.u32 %v4691_v63, 16 }
  0xbe   : > { %1802 = vmatprep.subr.bf16.mxu1 %v5580_v4  ;;  %v2359_v4 = vshll.u32 %v4691_v63, 16  ;;  %v5719_v63 = vld [vmem:[%s7459_s1 + $0x7b8] ss:$12 sps:$4 sm:$0xff]  }
  0xc0   : > { %5170 = vmatpush3.bf16.msra.mxu0 %v5582_v5  ;;  %v5659_v5 = vld [vmem:[%s7459_s1 + $0x7fc] ss:$12 sps:$4 sm:$0xff]  }
  0xc1   : > { %1803 = vmatpush2.bf16.msra.mxu1 %v5578_v6  ;;  %5171 = vmatprep.subr.bf16.mxu0 %v5586_v7  ;;  %v5654_v7 = vld [vmem:[%s7459_s1 + $0x738] ss:$12 sps:$4 sm:$0xff]  }
  0xc2   : > { %1804 = vmatprep.subr.bf16.mxu1 %v5585_v8 }
  0xc4   : > { %5172 = vmatpush3.bf16.msra.mxu0 %v5587_v9  ;;  %v2361_v9 = vrot.slane %v2359_v4, 1  ;;  %v5728_v4 = vld [vmem:[%s7459_s1 + $0x848] ss:$12 sps:$4 sm:$0xff]  }
  0xc5   : > { %1805 = vmatpush2.bf16.msra.mxu1 %v5583_v10  ;;  %5173 = vmatprep.subr.bf16.mxu0 %v5591_v11  ;;  %v5657_v10 = vld [vmem:[%s7459_s1 + $0x7f8] ss:$12 sps:$4 sm:$0xff]  }
  0xc6   : > { %1806 = vmatprep.subr.bf16.mxu1 %v5590_v12  ;;  %v5662_v12 = vld [vmem:[%s7459_s1 + $0x724] ss:$12 sps:$4 sm:$0xff]  }
  0xc8   : > { %5174 = vmatpush3.bf16.msra.mxu0 %v5592_v13  ;;  %v2362_v13 = vor.u32 %v2361_v9, %v2357_v3  ;;  %v5724_v3 = vld [vmem:[%s7459_s1 + $0x7a0] ss:$12 sps:$4 sm:$0xff]  }
  0xc9   : > { %1807 = vmatpush2.bf16.msra.mxu1 %v5588_v14  ;;  %5175 = vmatprep.subr.bf16.mxu0 %v5596_v15  ;;  %v5665_v14 = vld [vmem:[%s7459_s1 + $0x7e4] ss:$12 sps:$4 sm:$0xff]  }
  0xca   : > { %1808 = vmatprep.subr.bf16.mxu1 %v5595_v16  ;;  %v5660_v16 = vld [vmem:[%s7459_s1 + $0x720] ss:$12 sps:$4 sm:$0xff]  }
  0xcc   : > { %5176 = vmatpush3.bf16.msra.mxu0 %v5597_v17  ;;  %v5663_v17 = vld [vmem:[%s7459_s1 + $0x7e0] ss:$12 sps:$4 sm:$0xff]  }
  0xcd   : > { %1809 = vmatpush2.bf16.msra.mxu1 %v5593_v18  ;;  %2194 = vmatprep.subr.bf16.mxu0 %v5602_v19  ;;  %v5668_v18 = vld [vmem:[%s7459_s1 + $0x70c] ss:$12 sps:$4 sm:$0xff]  }
  0xce   : > { %5183 = vmatprep.subr.bf16.mxu1 %v5603_v20  ;;  %v5671_v19 = vld [vmem:[%s7459_s1 + $0x7cc] ss:$12 sps:$4 sm:$0xff]   ;;  %v5666_v20 = vld [vmem:[%s7459_s1 + $0x708] ss:$12 sps:$4 sm:$0xff]  }
  0xcf   : > { %1852 = vmatmul.mubr.bf16.vlgmr.msra.gmra.mxu0 %v4458_v21 }
  0xd0   : > { %1811 = vmatmul.mubr.bf16.vlgmr.msra.gmra.mxu1 %v4458_v21  ;;  %2195 = vmatpush1.bf16.msra.mxu0 %v5600_v23  ;;  %v5669_v21 = vld [vmem:[%s7459_s1 + $0x7c8] ss:$12 sps:$4 sm:$0xff]  }
  0xd1   : > { %5184 = vmatpush3.bf16.msra.mxu1 %v5604_v24  ;;  %2196 = vmatprep.subr.bf16.mxu0 %v5607_v25  ;;  %v5677_v23 = vld [vmem:[%s7459_s1 + $0x7b4] ss:$12 sps:$4 sm:$0xff]   ;;  %v5672_v24 = vld [vmem:[%s7459_s1 + $0x6f0] ss:$12 sps:$4 sm:$0xff]  }
  0xd2   : > { %5185 = vmatprep.subr.bf16.mxu1 %v5608_v26  ;;  %2267 = vmatprep.mubr.bf16.mxu1 %v4576_v27  ;;  %v5675_v25 = vld [vmem:[%s7459_s1 + $0x7b0] ss:$12 sps:$4 sm:$0xff]  }
  0xd3   : > { %2226 = vmatprep.mubr.bf16.mxu0 %v4576_v27  ;;  %v5680_v26 = vld [vmem:[%s7459_s1 + $0x6dc] ss:$12 sps:$4 sm:$0xff]  }
  0xd4   : > { %2197 = vmatpush1.bf16.msra.mxu0 %v5605_v28  ;;  %v5683_v27 = vld [vmem:[%s7459_s1 + $0x79c] ss:$12 sps:$4 sm:$0xff]   ;;  %v5678_v28 = vld [vmem:[%s7459_s1 + $0x6d8] ss:$12 sps:$4 sm:$0xff]  }
  0xd5   : > { %5186 = vmatpush3.bf16.msra.mxu1 %v5609_v29  ;;  %2198 = vmatprep.subr.bf16.mxu0 %v5612_v30  ;;  %v5681_v29 = vld [vmem:[%s7459_s1 + $0x798] ss:$12 sps:$4 sm:$0xff]  }
  0xd6   : > { %5187 = vmatprep.subr.bf16.mxu1 %v5613_v31  ;;  %v5686_v30 = vld [vmem:[%s7459_s1 + $0x6c4] ss:$12 sps:$4 sm:$0xff]  }
  0xd7   : > { %v5689_v31 = vld [vmem:[%s7459_s1 + $0x784] ss:$12 sps:$4 sm:$0xff]  }
  0xd8   : > { %2199 = vmatpush1.bf16.msra.mxu0 %v5610_v32  ;;  %v5684_v32 = vld [vmem:[%s7459_s1 + $0x6c0] ss:$12 sps:$4 sm:$0xff]  }
  0xd9   : > { %5188 = vmatpush3.bf16.msra.mxu1 %v5614_v33  ;;  %2200 = vmatprep.subr.bf16.mxu0 %v5617_v34  ;;  %v5687_v33 = vld [vmem:[%s7459_s1 + $0x780] ss:$12 sps:$4 sm:$0xff]   ;;  %v5693_v34 = vld [vmem:[%s7459_s1 + $0x8f0] ss:$12 sps:$4 sm:$0xff]  }
  0xda   : > { %5189 = vmatprep.subr.bf16.mxu1 %v5618_v35  ;;  %v5692_v35 = vld [vmem:[%s7459_s1 + $0x8ec] ss:$12 sps:$4 sm:$0xff]  }
  0xdc   : > { %2201 = vmatpush1.bf16.msra.mxu0 %v5615_v36  ;;  %v5690_v36 = vld [vmem:[%s7459_s1 + $0x8e8] ss:$12 sps:$4 sm:$0xff]  }
  0xdd   : > { %5190 = vmatpush3.bf16.msra.mxu1 %v5619_v37  ;;  %2202 = vmatprep.subr.bf16.mxu0 %v5622_v38  ;;  %v5694_v37 = vld [vmem:[%s7459_s1 + $0x830] ss:$12 sps:$4 sm:$0xff]   ;;  %v5698_v38 = vld [vmem:[%s7459_s1 + $0x8d8] ss:$12 sps:$4 sm:$0xff]  }
  0xde   : > { %5191 = vmatprep.subr.bf16.mxu1 %v5623_v39  ;;  %v5697_v39 = vld [vmem:[%s7459_s1 + $0x8d4] ss:$12 sps:$4 sm:$0xff]  }
  0xe0   : > { %2203 = vmatpush1.bf16.msra.mxu0 %v5620_v40 }
  0xe1   : > { %5192 = vmatpush3.bf16.msra.mxu1 %v5624_v41  ;;  %2204 = vmatprep.subr.bf16.mxu0 %v5627_v42  ;;  %v5695_v41 = vld [vmem:[%s7459_s1 + $0x8d0] ss:$12 sps:$4 sm:$0xff]   ;;  %v5699_v42 = vld [vmem:[%s7459_s1 + $0x818] ss:$12 sps:$4 sm:$0xff]  }
  0xe2   : > { %5193 = vmatprep.subr.bf16.mxu1 %v5628_v43 }
  0xe4   : > { %2205 = vmatpush1.bf16.msra.mxu0 %v5625_v44  ;;  %v5703_v44 = vld [vmem:[%s7459_s1 + $0x8c0] ss:$12 sps:$4 sm:$0xff]  }
  0xe5   : > { %5194 = vmatpush3.bf16.msra.mxu1 %v5629_v45  ;;  %2206 = vmatprep.subr.bf16.mxu0 %v5632_v46  ;;  %v5702_v45 = vld [vmem:[%s7459_s1 + $0x8bc] ss:$12 sps:$4 sm:$0xff]  }
  0xe6   : > { %5195 = vmatprep.subr.bf16.mxu1 %v5633_v47  ;;  %v5700_v47 = vld [vmem:[%s7459_s1 + $0x8b8] ss:$12 sps:$4 sm:$0xff]  }
  0xe8   : > { %2207 = vmatpush1.bf16.msra.mxu0 %v5630_v48  ;;  %v5704_v48 = vld [vmem:[%s7459_s1 + $0x800] ss:$12 sps:$4 sm:$0xff]  }
  0xe9   : > { %5196 = vmatpush3.bf16.msra.mxu1 %v5634_v49  ;;  %2208 = vmatprep.subr.bf16.mxu0 %v5637_v50  ;;  %v5708_v50 = vld [vmem:[%s7459_s1 + $0x8a8] ss:$12 sps:$4 sm:$0xff]  }
  0xea   : > { %5197 = vmatprep.subr.bf16.mxu1 %v5638_v51  ;;  %v5707_v51 = vld [vmem:[%s7459_s1 + $0x8a4] ss:$12 sps:$4 sm:$0xff]  }
  0xec   : > { %2209 = vmatpush1.bf16.msra.mxu0 %v5635_v52  ;;  %v5705_v52 = vld [vmem:[%s7459_s1 + $0x8a0] ss:$12 sps:$4 sm:$0xff]  }
  0xed   : > { %5198 = vmatpush3.bf16.msra.mxu1 %v5639_v53  ;;  %2210 = vmatprep.subr.bf16.mxu0 %v5644_v54  ;;  %v5709_v53 = vld [vmem:[%s7459_s1 + $0x7e8] ss:$12 sps:$4 sm:$0xff]   ;;  %v5713_v54 = vld [vmem:[%s7459_s1 + $0x890] ss:$12 sps:$4 sm:$0xff]  }
  0xee   : > { %2621 = vmatprep.subr.bf16.mxu1 %v5647_v55  ;;  %v5712_v55 = vld [vmem:[%s7459_s1 + $0x88c] ss:$12 sps:$4 sm:$0xff]  }
  0xef   : > { %v5111_v1 = vpop.f32.mrf.mxu1 }
  0xf0   : > { %2268 = vmatmul.mubr.bf16.vlgmr.msra.gmra.mxu1 %v6746_v58  ;;  %2211 = vmatpush2.bf16.msra.mxu0 %v5642_v56  ;;  %v5710_v56 = vld [vmem:[%s7459_s1 + $0x888] ss:$12 sps:$4 sm:$0xff]  }
  0xf1   : > { %2622 = vmatpush1.bf16.msra.mxu1 %v5645_v57  ;;  %2212 = vmatprep.subr.bf16.mxu0 %v5650_v59  ;;  %v5112_v6 = vpop.f32.mrf.mxu1  ;;  %v5714_v57 = vld [vmem:[%s7459_s1 + $0x7d0] ss:$12 sps:$4 sm:$0xff]   ;;  %v5717_v59 = vld [vmem:[%s7459_s1 + $0x874] ss:$12 sps:$4 sm:$0xff]  }
  0xf2   : > { %2623 = vmatprep.subr.bf16.mxu1 %v5653_v60  ;;  %v6775_v8 = vadd.f32 %v5112_v6, %v5111_v1  ;;  %2653 = vmatprep.mubr.bf16.mxu1 %v2362_v13  ;;  %v4690_v60 = vcombine.low %v6755_v61, %v6755_v61  ;;  %v5722_v61 = vld [vmem:[%s7459_s1 + $0x85c] ss:$12 sps:$4 sm:$0xff]   ;;  %v5720_v1 = vld [vmem:[%s7459_s1 + $0x858] ss:$12 sps:$4 sm:$0xff]   ;;  %v5725_v6 = vld [vmem:[%s7459_s1 + $0x840] ss:$12 sps:$4 sm:$0xff]  }
  0xf3   : > { %v5114_v11 = vpop.f32.mrf.mxu1 }
  0xf4   : > { %2213 = vmatpush2.bf16.msra.mxu0 %v5648_v62  ;;  %v5715_v62 = vld [vmem:[%s7459_s1 + $0x870] ss:$12 sps:$4 sm:$0xff]   ;;  %v5734_v11 = vld [vmem:[%s7459_s1 + $0x9ac] ss:$12 sps:$4 sm:$0xff]  }
  0xf5   : > { %2624 = vmatpush1.bf16.msra.mxu1 %v5651_v0  ;;  %2214 = vmatprep.subr.bf16.mxu0 %v5656_v2  ;;  %v5115_v15 = vpop.f32.mrf.mxu1  ;;  %v5723_v0 = vld [vmem:[%s7459_s1 + $0x860] ss:$12 sps:$4 sm:$0xff]   ;;  %v2352_v2 = vshll.u32 %v4690_v60, 16 }
  0xf6   : > { %2625 = vmatprep.subr.bf16.mxu1 %v5659_v5  ;;  %v5727_v5 = vld [vmem:[%s7459_s1 + $0x844] ss:$12 sps:$4 sm:$0xff]   ;;  %v6953_v15 = vld [vmem:[%s6116_s11 + $0x8] sm:$0x33] }
  0xf7   : > { %v2354_v9 = vrot.slane %v2352_v2, 1  ;;  %v5780_v2 = vld [vmem:[%s7459_s1 + $0xa50] ss:$12 sps:$4 sm:$0xff]  }
  0xf8   : > { %2215 = vmatpush2.bf16.msra.mxu0 %v5654_v7  ;;  %v2350_v7 = vshrl.u32 %v4690_v60, 16  ;;  %v7064_v60 = vcombine.low %v6953_v15, %v6953_v15 }
  0xf9   : > { %2626 = vmatpush1.bf16.msra.mxu1 %v5657_v10  ;;  %2216 = vmatprep.subr.bf16.mxu0 %v5662_v12  ;;  %v5729_v10 = vld [vmem:[%s7459_s1 + $0x788] ss:$12 sps:$4 sm:$0xff]  }
  0xfa   : > { %2627 = vmatprep.subr.bf16.mxu1 %v5665_v14  ;;  %v5732_v12 = vld [vmem:[%s7459_s1 + $0x9a8] ss:$12 sps:$4 sm:$0xff]   ;;  %v2355_v14 = vor.u32 %v2354_v9, %v2350_v7 }
  0xfb   : > { %v5791_v7 = vld [vmem:[%s7459_s1 + $0xafc] ss:$12 sps:$4 sm:$0xff]  }
  0xfc   : > { %2217 = vmatpush2.bf16.msra.mxu0 %v5660_v16  ;;  %v5736_v16 = vld [vmem:[%s7459_s1 + $0x9b0] ss:$12 sps:$4 sm:$0xff]  }
  0xfd   : > { %2628 = vmatpush1.bf16.msra.mxu1 %v5663_v17  ;;  %2218 = vmatprep.subr.bf16.mxu0 %v5668_v18  ;;  %v5739_v17 = vld [vmem:[%s7459_s1 + $0x994] ss:$12 sps:$4 sm:$0xff]   ;;  %v5740_v18 = vld [vmem:[%s7459_s1 + $0xa58] ss:$12 sps:$4 sm:$0xff]  }
  0xfe   : > { %2629 = vmatprep.subr.bf16.mxu1 %v5671_v19  ;;  %v4807_v19 = vcombine.high %v6953_v15, %v6953_v15  ;;  %v5797_v15 = vld [vmem:[%s7459_s1 + $0xae4] ss:$12 sps:$4 sm:$0xff]  }
 0x100   : > { %2219 = vmatpush2.bf16.msra.mxu0 %v5666_v20 }
 0x101   : > { %2630 = vmatpush1.bf16.msra.mxu1 %v5669_v21  ;;  %2220 = vmatprep.subr.bf16.mxu0 %v5674_v22  ;;  %v5737_v22 = vld [vmem:[%s7459_s1 + $0x990] ss:$12 sps:$4 sm:$0xff]  }
 0x102   : > { %2631 = vmatprep.subr.bf16.mxu1 %v5677_v23 }
 0x104   : > { %2221 = vmatpush2.bf16.msra.mxu0 %v5672_v24 }
 0x105   : > { %2632 = vmatpush1.bf16.msra.mxu1 %v5675_v25  ;;  %2222 = vmatprep.subr.bf16.mxu0 %v5680_v26  ;;  %v5741_v25 = vld [vmem:[%s7459_s1 + $0x998] ss:$12 sps:$4 sm:$0xff]   ;;  %v5744_v26 = vld [vmem:[%s7459_s1 + $0x97c] ss:$12 sps:$4 sm:$0xff]  }
 0x106   : > { %2633 = vmatprep.subr.bf16.mxu1 %v5683_v27 }
 0x108   : > { %2223 = vmatpush2.bf16.msra.mxu0 %v5678_v28 }
 0x109   : > { %2634 = vmatpush1.bf16.msra.mxu1 %v5681_v29  ;;  %2224 = vmatprep.subr.bf16.mxu0 %v5686_v30  ;;  %v5745_v29 = vld [vmem:[%s7459_s1 + $0xa40] ss:$12 sps:$4 sm:$0xff]  }
 0x10a   : > { %2635 = vmatprep.subr.bf16.mxu1 %v5689_v31 }
 0x10c   : > { %2225 = vmatpush2.bf16.msra.mxu0 %v5684_v32 }
 0x10d   : > { %2636 = vmatpush1.bf16.msra.mxu1 %v5687_v33  ;;  %5205 = vmatprep.subr.bf16.mxu0 %v5693_v34  ;;  %v5742_v33 = vld [vmem:[%s7459_s1 + $0x978] ss:$12 sps:$4 sm:$0xff]   ;;  %v5746_v34 = vld [vmem:[%s7459_s1 + $0x980] ss:$12 sps:$4 sm:$0xff]  }
 0x10e   : > { %2637 = vmatprep.subr.bf16.mxu1 %v5692_v35 }
 0x10f   : > { %v6858_v40 = vpop.f32.mrf.mxu0  ;;  %2227 = vmatmul.mubr.bf16.vlgmr.msra.gmra.mxu0 %v6746_v58  ;;  %v5718_v58 = vld [vmem:[%s7459_s1 + $0x878] ss:$12 sps:$4 sm:$0xff]  }
 0x110   : > { %5206 = vmatpush3.bf16.msra.mxu0 %v5694_v37  ;;  %2694 = vmatprep.mubr.bf16.mxu0 %v2362_v13  ;;  %v5735_v13 = vld [vmem:[%s7459_s1 + $0xa70] ss:$12 sps:$4 sm:$0xff]  }
 0x111   : > { %2638 = vmatpush2.bf16.msra.mxu1 %v5690_v36  ;;  %v6867_v43 = vpop.f32.mrf.mxu0  ;;  %5207 = vmatprep.subr.bf16.mxu0 %v5698_v38  ;;  %v5749_v37 = vld [vmem:[%s7459_s1 + $0x964] ss:$12 sps:$4 sm:$0xff]  }
 0x112   : > { %2639 = vmatprep.subr.bf16.mxu1 %v5697_v39  ;;  %v5747_v39 = vld [vmem:[%s7459_s1 + $0x960] ss:$12 sps:$4 sm:$0xff]  }
 0x113   : > { %v632_v46 = vpop.f32.mrf.mxu0 }
 0x114   : > { %5208 = vmatpush3.bf16.msra.mxu0 %v5699_v42  ;;  %v5755_v42 = vld [vmem:[%s7459_s1 + $0xa10] ss:$12 sps:$4 sm:$0xff]   ;;  %v5760_v46 = vld [vmem:[%s7459_s1 + $0x9f8] ss:$12 sps:$4 sm:$0xff]  }
 0x115   : > { %2640 = vmatpush2.bf16.msra.mxu1 %v5695_v41  ;;  %v633_v49 = vpop.f32.mrf.mxu0  ;;  %5209 = vmatprep.subr.bf16.mxu0 %v5703_v44  ;;  %v5754_v41 = vld [vmem:[%s7459_s1 + $0x94c] ss:$12 sps:$4 sm:$0xff]   ;;  %v5756_v44 = vld [vmem:[%s7459_s1 + $0x950] ss:$12 sps:$4 sm:$0xff]  }
 0x116   : > { %2641 = vmatprep.subr.bf16.mxu1 %v5702_v45  ;;  %v5759_v45 = vld [vmem:[%s7459_s1 + $0x934] ss:$12 sps:$4 sm:$0xff]   ;;  %v5764_v49 = vld [vmem:[%s7459_s1 + $0x91c] ss:$12 sps:$4 sm:$0xff]  }
 0x118   : > { %5210 = vmatpush3.bf16.msra.mxu0 %v5704_v48  ;;  %v5761_v48 = vld [vmem:[%s7459_s1 + $0x938] ss:$12 sps:$4 sm:$0xff]  }
 0x119   : > { %2642 = vmatpush2.bf16.msra.mxu1 %v5700_v47  ;;  %5211 = vmatprep.subr.bf16.mxu0 %v5708_v50  ;;  %v5757_v47 = vld [vmem:[%s7459_s1 + $0x930] ss:$12 sps:$4 sm:$0xff]   ;;  %v5765_v50 = vld [vmem:[%s7459_s1 + $0x9e0] ss:$12 sps:$4 sm:$0xff]  }
 0x11a   : > { %2643 = vmatprep.subr.bf16.mxu1 %v5707_v51  ;;  %v5762_v51 = vld [vmem:[%s7459_s1 + $0x918] ss:$12 sps:$4 sm:$0xff]  }
 0x11c   : > { %5212 = vmatpush3.bf16.msra.mxu0 %v5709_v53  ;;  %v5769_v53 = vld [vmem:[%s7459_s1 + $0x904] ss:$12 sps:$4 sm:$0xff]  }
 0x11d   : > { %2644 = vmatpush2.bf16.msra.mxu1 %v5705_v52  ;;  %5213 = vmatprep.subr.bf16.mxu0 %v5713_v54  ;;  %v5766_v52 = vld [vmem:[%s7459_s1 + $0x920] ss:$12 sps:$4 sm:$0xff]   ;;  %v5770_v54 = vld [vmem:[%s7459_s1 + $0x9c8] ss:$12 sps:$4 sm:$0xff]  }
 0x11e   : > { %2645 = vmatprep.subr.bf16.mxu1 %v5712_v55  ;;  %v5767_v55 = vld [vmem:[%s7459_s1 + $0x900] ss:$12 sps:$4 sm:$0xff]  }
 0x120   : > { %5214 = vmatpush3.bf16.msra.mxu0 %v5714_v57  ;;  %v5776_v57 = vld [vmem:[%s7459_s1 + $0xa6c] ss:$12 sps:$4 sm:$0xff]  }
 0x121   : > { %2646 = vmatpush2.bf16.msra.mxu1 %v5710_v56  ;;  %5215 = vmatprep.subr.bf16.mxu0 %v5718_v58  ;;  %v5771_v56 = vld [vmem:[%s7459_s1 + $0x908] ss:$12 sps:$4 sm:$0xff]   ;;  %v5779_v58 = vld [vmem:[%s7459_s1 + $0xb2c] ss:$12 sps:$4 sm:$0xff]  }
 0x122   : > { %2647 = vmatprep.subr.bf16.mxu1 %v5717_v59  ;;  %v7060_v59 = vld [vmem:[%s6116_s11 + $0x30] sm:$0x33] }
 0x124   : > { %5216 = vmatpush3.bf16.msra.mxu0 %v5719_v63  ;;  %v5777_v63 = vld [vmem:[%s7459_s1 + $0xb28] ss:$12 sps:$4 sm:$0xff]  }
 0x125   : > { %2648 = vmatpush2.bf16.msra.mxu1 %v5715_v62  ;;  %5217 = vmatprep.subr.bf16.mxu0 %v5723_v0  ;;  %v5774_v62 = vld [vmem:[%s7459_s1 + $0xa68] ss:$12 sps:$4 sm:$0xff]  }
 0x126   : > { %2649 = vmatprep.subr.bf16.mxu1 %v5722_v61  ;;  %v5782_v0 = vld [vmem:[%s7459_s1 + $0xa54] ss:$12 sps:$4 sm:$0xff]  }
 0x127   : > { %v5785_v61 = vld [vmem:[%s7459_s1 + $0xb14] ss:$12 sps:$4 sm:$0xff]  }
 0x128   : > { %5218 = vmatpush3.bf16.msra.mxu0 %v5724_v3 }
 0x129   : > { %2650 = vmatpush2.bf16.msra.mxu1 %v5720_v1  ;;  %5219 = vmatprep.subr.bf16.mxu0 %v5728_v4  ;;  %v7080_v1 = vcombine.high %v7060_v59, %v7060_v59  ;;  %v5783_v4 = vld [vmem:[%s7459_s1 + $0xb10] ss:$12 sps:$4 sm:$0xff]  }
 0x12a   : > { %2651 = vmatprep.subr.bf16.mxu1 %v5727_v5  ;;  %v5788_v5 = vld [vmem:[%s7459_s1 + $0xa3c] ss:$12 sps:$4 sm:$0xff]  }
 0x12c   : > { %5220 = vmatpush3.bf16.msra.mxu0 %v5729_v10  ;;  %v5786_v10 = vld [vmem:[%s7459_s1 + $0xa38] ss:$12 sps:$4 sm:$0xff]  }
 0x12d   : > { %2652 = vmatpush2.bf16.msra.mxu1 %v5725_v6  ;;  %3038 = vmatprep.subr.bf16.mxu0 %v5734_v11 }
 0x12e   : > { %5227 = vmatprep.subr.bf16.mxu1 %v5735_v13  ;;  %v5789_v13 = vld [vmem:[%s7459_s1 + $0xaf8] ss:$12 sps:$4 sm:$0xff]  }
 0x12f   : > { %v5133_v20 = vpop.f32.mrf.mxu0  ;;  %2695 = vmatmul.mubr.bf16.vlgmr.msra.gmra.mxu0 %v2355_v14  ;;  %v972_v21 = vpop.f32.mrf.mxu1 }
 0x130   : > { %2654 = vmatmul.mubr.bf16.vlgmr.msra.gmra.mxu1 %v2355_v14  ;;  %3039 = vmatpush1.bf16.msra.mxu0 %v5732_v12  ;;  %v6970_v23 = vadd.f32 %v972_v21, %v6858_v40  ;;  %v5751_v40 = vld [vmem:[%s7459_s1 + $0x968] ss:$12 sps:$4 sm:$0xff]   ;;  %v5794_v14 = vld [vmem:[%s7459_s1 + $0xa24] ss:$12 sps:$4 sm:$0xff]  }
 0x131   : > { %5228 = vmatpush3.bf16.msra.mxu1 %v5736_v16  ;;  %v5134_v24 = vpop.f32.mrf.mxu0  ;;  %3040 = vmatprep.subr.bf16.mxu0 %v5739_v17  ;;  %v974_v27 = vpop.f32.mrf.mxu1  ;;  %v5792_v17 = vld [vmem:[%s7459_s1 + $0xa20] ss:$12 sps:$4 sm:$0xff]   ;;  %v5798_v21 = vld [vmem:[%s7459_s1 + $0xa08] ss:$12 sps:$4 sm:$0xff]  }
 0x132   : > { %v5135_v28 = vadd.f32 %v5134_v24, %v5133_v20  ;;  %5229 = vmatprep.subr.bf16.mxu1 %v5740_v18  ;;  %3111 = vmatprep.mubr.bf16.mxu1 %v4807_v19  ;;  %v6982_v30 = vadd.f32 %v974_v27, %v6867_v43  ;;  %v5752_v43 = vld [vmem:[%s7459_s1 + $0x948] ss:$12 sps:$4 sm:$0xff]   ;;  %v5795_v18 = vld [vmem:[%s7459_s1 + $0xae0] ss:$12 sps:$4 sm:$0xff]   ;;  %v5807_v27 = vld [vmem:[%s7459_s1 + $0xab0] ss:$12 sps:$4 sm:$0xff]  }
 0x133   : > { %v5136_v31 = vpop.f32.mrf.mxu0  ;;  %3070 = vmatprep.mubr.bf16.mxu0 %v4807_v19  ;;  %v976_v35 = vpop.f32.mrf.mxu1  ;;  %v5800_v19 = vld [vmem:[%s7459_s1 + $0xa0c] ss:$12 sps:$4 sm:$0xff]   ;;  %v5806_v24 = vld [vmem:[%s7459_s1 + $0x9f4] ss:$12 sps:$4 sm:$0xff]  }
 0x134   : > { %v6985_v32 = vadd.f32 %v5135_v28, %v6775_v8  ;;  %3041 = vmatpush1.bf16.msra.mxu0 %v5737_v22  ;;  %v5750_v8 = vld [vmem:[%s7459_s1 + $0xa28] ss:$12 sps:$4 sm:$0xff]   ;;  %v5803_v20 = vld [vmem:[%s7459_s1 + $0xacc] ss:$12 sps:$4 sm:$0xff]  }
 0x135   : > { %5230 = vmatpush3.bf16.msra.mxu1 %v5741_v25  ;;  %v5137_v36 = vpop.f32.mrf.mxu0  ;;  %3042 = vmatprep.subr.bf16.mxu0 %v5744_v26  ;;  %v977_v38 = vpop.f32.mrf.mxu1  ;;  %v5801_v22 = vld [vmem:[%s7459_s1 + $0xac8] ss:$12 sps:$4 sm:$0xff]   ;;  %v5804_v26 = vld [vmem:[%s7459_s1 + $0x9f0] ss:$12 sps:$4 sm:$0xff]   ;;  %v5810_v31 = vld [vmem:[%s7459_s1 + $0x9d8] ss:$12 sps:$4 sm:$0xff]  }
 0x136   : > { %5231 = vmatprep.subr.bf16.mxu1 %v5745_v29  ;;  %v5809_v25 = vld [vmem:[%s7459_s1 + $0xab4] ss:$12 sps:$4 sm:$0xff]   ;;  %v5812_v28 = vld [vmem:[%s7459_s1 + $0x9dc] ss:$12 sps:$4 sm:$0xff]  }
 0x137   : > { %v5815_v29 = vld [vmem:[%s7459_s1 + $0xa9c] ss:$12 sps:$4 sm:$0xff]   ;;  %v5816_v35 = vld [vmem:[%s7459_s1 + $0x9c0] ss:$12 sps:$4 sm:$0xff]  }
 0x138   : > { %3043 = vmatpush1.bf16.msra.mxu0 %v5742_v33  ;;  %v5818_v33 = vld [vmem:[%s7459_s1 + $0x9c4] ss:$12 sps:$4 sm:$0xff]   ;;  %v5819_v36 = vld [vmem:[%s7459_s1 + $0xa80] ss:$12 sps:$4 sm:$0xff]  }
 0x139   : > { %5232 = vmatpush3.bf16.msra.mxu1 %v5746_v34  ;;  %3044 = vmatprep.subr.bf16.mxu0 %v5749_v37  ;;  %v5821_v34 = vld [vmem:[%s7459_s1 + $0xa84] ss:$12 sps:$4 sm:$0xff]  }
 0x13a   : > { %5233 = vmatprep.subr.bf16.mxu1 %v5750_v8  ;;  %v5825_v37 = vld [vmem:[%s7459_s1 + $0xbf0] ss:$12 sps:$4 sm:$0xff]   ;;  %v5824_v8 = vld [vmem:[%s7459_s1 + $0xbec] ss:$12 sps:$4 sm:$0xff]  }
 0x13b   : > { %v5826_v38 = vld [vmem:[%s7459_s1 + $0xb30] ss:$12 sps:$4 sm:$0xff]  }
 0x13c   : > { %3045 = vmatpush1.bf16.msra.mxu0 %v5747_v39  ;;  %v5822_v39 = vld [vmem:[%s7459_s1 + $0xbe8] ss:$12 sps:$4 sm:$0xff]  }
 0x13d   : > { %5234 = vmatpush3.bf16.msra.mxu1 %v5751_v40  ;;  %3046 = vmatprep.subr.bf16.mxu0 %v5754_v41  ;;  %v5830_v40 = vld [vmem:[%s7459_s1 + $0xbd8] ss:$12 sps:$4 sm:$0xff]   ;;  %v5829_v41 = vld [vmem:[%s7459_s1 + $0xbd4] ss:$12 sps:$4 sm:$0xff]  }
 0x13e   : > { %5235 = vmatprep.subr.bf16.mxu1 %v5755_v42 }
 0x140   : > { %3047 = vmatpush1.bf16.msra.mxu0 %v5752_v43 }
 0x141   : > { %5236 = vmatpush3.bf16.msra.mxu1 %v5756_v44  ;;  %3048 = vmatprep.subr.bf16.mxu0 %v5759_v45  ;;  %v5831_v44 = vld [vmem:[%s7459_s1 + $0xb18] ss:$12 sps:$4 sm:$0xff]  }
 0x142   : > { %5237 = vmatprep.subr.bf16.mxu1 %v5760_v46  ;;  %v5827_v46 = vld [vmem:[%s7459_s1 + $0xbd0] ss:$12 sps:$4 sm:$0xff]  }
 0x144   : > { %3049 = vmatpush1.bf16.msra.mxu0 %v5757_v47  ;;  %v5835_v47 = vld [vmem:[%s7459_s1 + $0xbc0] ss:$12 sps:$4 sm:$0xff]  }
 0x145   : > { %5238 = vmatpush3.bf16.msra.mxu1 %v5761_v48  ;;  %3050 = vmatprep.subr.bf16.mxu0 %v5764_v49  ;;  %v5834_v48 = vld [vmem:[%s7459_s1 + $0xbbc] ss:$12 sps:$4 sm:$0xff]  }
 0x146   : > { %5239 = vmatprep.subr.bf16.mxu1 %v5765_v50  ;;  %v5836_v50 = vld [vmem:[%s7459_s1 + $0xb00] ss:$12 sps:$4 sm:$0xff]  }
 0x148   : > { %3051 = vmatpush1.bf16.msra.mxu0 %v5762_v51 }
 0x149   : > { %5240 = vmatpush3.bf16.msra.mxu1 %v5766_v52  ;;  %3052 = vmatprep.subr.bf16.mxu0 %v5769_v53  ;;  %v5832_v52 = vld [vmem:[%s7459_s1 + $0xbb8] ss:$12 sps:$4 sm:$0xff]  }
 0x14a   : > { %5241 = vmatprep.subr.bf16.mxu1 %v5770_v54  ;;  %v5839_v53 = vld [vmem:[%s7459_s1 + $0xba4] ss:$12 sps:$4 sm:$0xff]   ;;  %v5841_v54 = vld [vmem:[%s7459_s1 + $0xae8] ss:$12 sps:$4 sm:$0xff]  }
 0x14c   : > { %3053 = vmatpush1.bf16.msra.mxu0 %v5767_v55  ;;  %v5837_v55 = vld [vmem:[%s7459_s1 + $0xba0] ss:$12 sps:$4 sm:$0xff]  }
 0x14d   : > { %5242 = vmatpush3.bf16.msra.mxu1 %v5771_v56  ;;  %3054 = vmatprep.subr.bf16.mxu0 %v5776_v57  ;;  %v5845_v56 = vld [vmem:[%s7459_s1 + $0xb90] ss:$12 sps:$4 sm:$0xff]   ;;  %v5844_v57 = vld [vmem:[%s7459_s1 + $0xb8c] ss:$12 sps:$4 sm:$0xff]  }
 0x14e   : > { %3454 = vmatprep.subr.bf16.mxu1 %v5779_v58  ;;  %v5846_v58 = vld [vmem:[%s7459_s1 + $0xad0] ss:$12 sps:$4 sm:$0xff]  }
 0x14f   : > { %v5155_v3 = vpop.f32.mrf.mxu1 }
 0x150   : > { %3112 = vmatmul.mubr.bf16.vlgmr.msra.gmra.mxu1 %v7064_v60  ;;  %3055 = vmatpush2.bf16.msra.mxu0 %v5774_v62  ;;  %v5850_v62 = vld [vmem:[%s7459_s1 + $0xb78] ss:$12 sps:$4 sm:$0xff]  }
 0x151   : > { %3455 = vmatpush1.bf16.msra.mxu1 %v5777_v63  ;;  %3056 = vmatprep.subr.bf16.mxu0 %v5782_v0  ;;  %v5156_v6 = vpop.f32.mrf.mxu1  ;;  %v5849_v63 = vld [vmem:[%s7459_s1 + $0xb74] ss:$12 sps:$4 sm:$0xff]   ;;  %v7240_v0 = vld [vmem:[%s6116_s11 + $0x8] sm:$0x77] }
 0x152   : > { %3456 = vmatprep.subr.bf16.mxu1 %v5785_v61  ;;  %3486 = vmatprep.mubr.bf16.mxu1 %v7080_v1  ;;  %v5157_v9 = vadd.f32 %v5156_v6, %v5155_v3  ;;  %v5851_v61 = vld [vmem:[%s7459_s1 + $0xab8] ss:$12 sps:$4 sm:$0xff]   ;;  %v5854_v3 = vld [vmem:[%s7459_s1 + $0xb5c] ss:$12 sps:$4 sm:$0xff]  }
 0x153   : > { %v5158_v11 = vpop.f32.mrf.mxu1  ;;  %v5852_v6 = vld [vmem:[%s7459_s1 + $0xb58] ss:$12 sps:$4 sm:$0xff]  }
 0x154   : > { %3057 = vmatpush2.bf16.msra.mxu0 %v5780_v2  ;;  %v7100_v12 = vadd.f32 %v5157_v9, %v6985_v32  ;;  %v5813_v32 = vld [vmem:[%s7459_s1 + $0xa98] ss:$12 sps:$4 sm:$0xff]   ;;  %v5855_v2 = vld [vmem:[%s7459_s1 + $0xb60] ss:$12 sps:$4 sm:$0xff]   ;;  %v5861_v11 = vld [vmem:[%s7459_s1 + $0xa88] ss:$12 sps:$4 sm:$0xff]  }
 0x155   : > { %3457 = vmatpush1.bf16.msra.mxu1 %v5783_v4  ;;  %3058 = vmatprep.subr.bf16.mxu0 %v5788_v5  ;;  %v5159_v16 = vpop.f32.mrf.mxu1  ;;  %v5039_v4 = vcombine.high %v7240_v0, %v7240_v0  ;;  %v5856_v5 = vld [vmem:[%s7459_s1 + $0xaa0] ss:$12 sps:$4 sm:$0xff]   ;;  %v5859_v9 = vld [vmem:[%s7459_s1 + $0xb44] ss:$12 sps:$4 sm:$0xff]  }
 0x156   : > { %3458 = vmatprep.subr.bf16.mxu1 %v5791_v7  ;;  %v5860_v7 = vld [vmem:[%s7459_s1 + $0xb48] ss:$12 sps:$4 sm:$0xff]  }
 0x157   : > { %v3617_v16 = vshrl.u32 %v5039_v4, 16 }
 0x158   : > { %3059 = vmatpush2.bf16.msra.mxu0 %v5786_v10  ;;  %v3619_v10 = vshll.u32 %v5039_v4, 16 }
 0x159   : > { %3459 = vmatpush1.bf16.msra.mxu1 %v5789_v13  ;;  %3060 = vmatprep.subr.bf16.mxu0 %v5794_v14  ;;  %v5857_v13 = vld [vmem:[%s7459_s1 + $0xb40] ss:$12 sps:$4 sm:$0xff]  }
 0x15a   : > { %3460 = vmatprep.subr.bf16.mxu1 %v5797_v15  ;;  %v5866_v14 = vld [vmem:[%s7459_s1 + $0xcac] ss:$12 sps:$4 sm:$0xff]   ;;  %v5867_v15 = vld [vmem:[%s7459_s1 + $0xd70] ss:$12 sps:$4 sm:$0xff]  }
 0x15c   : > { %3061 = vmatpush2.bf16.msra.mxu0 %v5792_v17  ;;  %v3621_v17 = vrot.slane %v3619_v10, 1  ;;  %v5912_v10 = vld [vmem:[%s7459_s1 + $0xd38] ss:$12 sps:$4 sm:$0xff]  }
 0x15d   : > { %3461 = vmatpush1.bf16.msra.mxu1 %v5795_v18  ;;  %3062 = vmatprep.subr.bf16.mxu0 %v5800_v19  ;;  %v4923_v18 = vcombine.low %v7060_v59, %v7060_v59  ;;  %v5864_v19 = vld [vmem:[%s7459_s1 + $0xca8] ss:$12 sps:$4 sm:$0xff]   ;;  %v5872_v59 = vld [vmem:[%s7459_s1 + $0xd58] ss:$12 sps:$4 sm:$0xff]  }
 0x15e   : > { %3462 = vmatprep.subr.bf16.mxu1 %v5803_v20  ;;  %v5868_v20 = vld [vmem:[%s7459_s1 + $0xcb0] ss:$12 sps:$4 sm:$0xff]  }
 0x160   : > { %3063 = vmatpush2.bf16.msra.mxu0 %v5798_v21  ;;  %v5871_v21 = vld [vmem:[%s7459_s1 + $0xc94] ss:$12 sps:$4 sm:$0xff]  }
 0x161   : > { %3463 = vmatpush1.bf16.msra.mxu1 %v5801_v22  ;;  %3064 = vmatprep.subr.bf16.mxu0 %v5806_v24  ;;  %v3622_v22 = vor.u32 %v3621_v17, %v3617_v16  ;;  %v5915_v16 = vld [vmem:[%s7459_s1 + $0xd20] ss:$12 sps:$4 sm:$0xff]  }
 0x162   : > { %3464 = vmatprep.subr.bf16.mxu1 %v5809_v25  ;;  %v5920_v17 = vld [vmem:[%s7459_s1 + $0xd0c] ss:$12 sps:$4 sm:$0xff]  }
 0x164   : > { %3065 = vmatpush2.bf16.msra.mxu0 %v5804_v26  ;;  %v5869_v26 = vld [vmem:[%s7459_s1 + $0xc90] ss:$12 sps:$4 sm:$0xff]  }
 0x165   : > { %3465 = vmatpush1.bf16.msra.mxu1 %v5807_v27  ;;  %3066 = vmatprep.subr.bf16.mxu0 %v5812_v28 }
 0x166   : > { %3466 = vmatprep.subr.bf16.mxu1 %v5815_v29  ;;  %v5873_v29 = vld [vmem:[%s7459_s1 + $0xc98] ss:$12 sps:$4 sm:$0xff]  }
 0x168   : > { %3067 = vmatpush2.bf16.msra.mxu0 %v5810_v31  ;;  %v5876_v31 = vld [vmem:[%s7459_s1 + $0xc7c] ss:$12 sps:$4 sm:$0xff]  }
 0x169   : > { %3467 = vmatpush1.bf16.msra.mxu1 %v5813_v32  ;;  %3068 = vmatprep.subr.bf16.mxu0 %v5818_v33 }
 0x16a   : > { %3468 = vmatprep.subr.bf16.mxu1 %v5821_v34  ;;  %v5877_v34 = vld [vmem:[%s7459_s1 + $0xd40] ss:$12 sps:$4 sm:$0xff]  }
 0x16c   : > { %3069 = vmatpush2.bf16.msra.mxu0 %v5816_v35 }
 0x16d   : > { %3469 = vmatpush1.bf16.msra.mxu1 %v5819_v36  ;;  %5249 = vmatprep.subr.bf16.mxu0 %v5825_v37 }
 0x16e   : > { %3470 = vmatprep.subr.bf16.mxu1 %v5824_v8  ;;  %v5874_v8 = vld [vmem:[%s7459_s1 + $0xc78] ss:$12 sps:$4 sm:$0xff]  }
 0x16f   : > { %v1396_v42 = vpop.f32.mrf.mxu0  ;;  %3071 = vmatmul.mubr.bf16.vlgmr.msra.gmra.mxu0 %v7064_v60  ;;  %v5842_v60 = vld [vmem:[%s7459_s1 + $0xb88] ss:$12 sps:$4 sm:$0xff]  }
 0x170   : > { %v7185_v43 = vadd.f32 %v1396_v42, %v6970_v23  ;;  %5250 = vmatpush3.bf16.msra.mxu0 %v5826_v38  ;;  %3527 = vmatprep.mubr.bf16.mxu0 %v7080_v1  ;;  %v5847_v1 = vld [vmem:[%s7459_s1 + $0xb70] ss:$12 sps:$4 sm:$0xff]  }
 0x171   : > { %3471 = vmatpush2.bf16.msra.mxu1 %v5822_v39  ;;  %v1398_v45 = vpop.f32.mrf.mxu0  ;;  %5251 = vmatprep.subr.bf16.mxu0 %v5830_v40  ;;  %v5878_v40 = vld [vmem:[%s7459_s1 + $0xc80] ss:$12 sps:$4 sm:$0xff]  }
 0x172   : > { %v7198_v23 = vadd.f32 %v1398_v45, %v6982_v30  ;;  %3472 = vmatprep.subr.bf16.mxu1 %v5829_v41  ;;  %v5840_v30 = vld [vmem:[%s7459_s1 + $0xba8] ss:$12 sps:$4 sm:$0xff]   ;;  %v5881_v41 = vld [vmem:[%s7459_s1 + $0xc64] ss:$12 sps:$4 sm:$0xff]   ;;  %v5886_v45 = vld [vmem:[%s7459_s1 + $0xc4c] ss:$12 sps:$4 sm:$0xff]  }
 0x173   : > { %v1400_v49 = vpop.f32.mrf.mxu0 }
 0x174   : > { %5252 = vmatpush3.bf16.msra.mxu0 %v5831_v44  ;;  %v5883_v44 = vld [vmem:[%s7459_s1 + $0xc68] ss:$12 sps:$4 sm:$0xff]   ;;  %v5892_v49 = vld [vmem:[%s7459_s1 + $0xcf8] ss:$12 sps:$4 sm:$0xff]  }
 0x175   : > { %3473 = vmatpush2.bf16.msra.mxu1 %v5827_v46  ;;  %v1401_v51 = vpop.f32.mrf.mxu0  ;;  %5253 = vmatprep.subr.bf16.mxu0 %v5835_v47  ;;  %v5887_v46 = vld [vmem:[%s7459_s1 + $0xd10] ss:$12 sps:$4 sm:$0xff]   ;;  %v5884_v47 = vld [vmem:[%s7459_s1 + $0xc48] ss:$12 sps:$4 sm:$0xff]  }
 0x176   : > { %3474 = vmatprep.subr.bf16.mxu1 %v5834_v48  ;;  %v5891_v48 = vld [vmem:[%s7459_s1 + $0xc34] ss:$12 sps:$4 sm:$0xff]   ;;  %v5038_v51 = vcombine.low %v7240_v0, %v7240_v0 }
 0x177   : > { %v5903_v0 = vld [vmem:[%s7459_s1 + $0xc08] ss:$12 sps:$4 sm:$0xff]  }
 0x178   : > { %5254 = vmatpush3.bf16.msra.mxu0 %v5836_v50  ;;  %v5889_v50 = vld [vmem:[%s7459_s1 + $0xc30] ss:$12 sps:$4 sm:$0xff]  }
 0x179   : > { %3475 = vmatpush2.bf16.msra.mxu1 %v5832_v52  ;;  %5255 = vmatprep.subr.bf16.mxu0 %v5840_v30  ;;  %v5893_v52 = vld [vmem:[%s7459_s1 + $0xc38] ss:$12 sps:$4 sm:$0xff]   ;;  %v5896_v30 = vld [vmem:[%s7459_s1 + $0xc1c] ss:$12 sps:$4 sm:$0xff]  }
 0x17a   : > { %3476 = vmatprep.subr.bf16.mxu1 %v5839_v53  ;;  %v5897_v53 = vld [vmem:[%s7459_s1 + $0xce0] ss:$12 sps:$4 sm:$0xff]  }
 0x17c   : > { %5256 = vmatpush3.bf16.msra.mxu0 %v5841_v54  ;;  %v5894_v54 = vld [vmem:[%s7459_s1 + $0xc18] ss:$12 sps:$4 sm:$0xff]  }
 0x17d   : > { %3477 = vmatpush2.bf16.msra.mxu1 %v5837_v55  ;;  %5257 = vmatprep.subr.bf16.mxu0 %v5845_v56  ;;  %v3612_v55 = vshll.u32 %v5038_v51, 16  ;;  %v5898_v56 = vld [vmem:[%s7459_s1 + $0xc20] ss:$12 sps:$4 sm:$0xff]  }
 0x17e   : > { %3478 = vmatprep.subr.bf16.mxu1 %v5844_v57  ;;  %v5901_v57 = vld [vmem:[%s7459_s1 + $0xc04] ss:$12 sps:$4 sm:$0xff]  }
 0x180   : > { %5258 = vmatpush3.bf16.msra.mxu0 %v5846_v58  ;;  %v5902_v58 = vld [vmem:[%s7459_s1 + $0xcc8] ss:$12 sps:$4 sm:$0xff]  }
 0x181   : > { %3479 = vmatpush2.bf16.msra.mxu1 %v5842_v60  ;;  %5259 = vmatprep.subr.bf16.mxu0 %v5850_v62  ;;  %v5899_v60 = vld [vmem:[%s7459_s1 + $0xc00] ss:$12 sps:$4 sm:$0xff]   ;;  %v3610_v62 = vshrl.u32 %v5038_v51, 16 }
 0x182   : > { %3480 = vmatprep.subr.bf16.mxu1 %v5849_v63  ;;  %v3614_v63 = vrot.slane %v3612_v55, 1 }
 0x184   : > { %5260 = vmatpush3.bf16.msra.mxu0 %v5851_v61  ;;  %v5908_v61 = vld [vmem:[%s7459_s1 + $0xd6c] ss:$12 sps:$4 sm:$0xff]  }
 0x185   : > { %3481 = vmatpush2.bf16.msra.mxu1 %v5847_v1  ;;  %5261 = vmatprep.subr.bf16.mxu0 %v5855_v2  ;;  %v5906_v1 = vld [vmem:[%s7459_s1 + $0xd68] ss:$12 sps:$4 sm:$0xff]   ;;  %v3615_v2 = vor.u32 %v3614_v63, %v3610_v62  ;;  %v3967_v62 = vlaneseq }
 0x186   : > { %3482 = vmatprep.subr.bf16.mxu1 %v5854_v3  ;;  %v5911_v3 = vld [vmem:[%s7459_s1 + $0xd54] ss:$12 sps:$4 sm:$0xff]  }
 0x187   : > { %v3968_v63 = vshrl.u32 %v3967_v62, 7 }
 0x188   : > { %5262 = vmatpush3.bf16.msra.mxu0 %v5856_v5  ;;  %v5909_v5 = vld [vmem:[%s7459_s1 + $0xd50] ss:$12 sps:$4 sm:$0xff]  }
 0x189   : > { %3483 = vmatpush2.bf16.msra.mxu1 %v5852_v6  ;;  %5263 = vmatprep.subr.bf16.mxu0 %v5860_v7  ;;  %v5914_v6 = vld [vmem:[%s7459_s1 + $0xd3c] ss:$12 sps:$4 sm:$0xff]  }
 0x18a   : > { %3484 = vmatprep.subr.bf16.mxu1 %v5859_v9 }
 0x18c   : > { %5264 = vmatpush3.bf16.msra.mxu0 %v5861_v11 }
 0x18d   : > { %3485 = vmatpush2.bf16.msra.mxu1 %v5857_v13  ;;  %3881 = vmatprep.subr.bf16.mxu0 %v5866_v14  ;;  %v5917_v14 = vld [vmem:[%s7459_s1 + $0xd24] ss:$12 sps:$4 sm:$0xff]  }
 0x18e   : > { %5271 = vmatprep.subr.bf16.mxu1 %v5867_v15 }
 0x18f   : > { %v5177_v24 = vpop.f32.mrf.mxu0  ;;  %3528 = vmatmul.mubr.bf16.vlgmr.msra.gmra.mxu0 %v4923_v18 }
 0x190   : > { %v1812_v25 = vpop.f32.mrf.mxu1  ;;  %3487 = vmatmul.mubr.bf16.vlgmr.msra.gmra.mxu1 %v4923_v18  ;;  %3882 = vmatpush1.bf16.msra.mxu0 %v5864_v19  ;;  %v5918_v18 = vld [vmem:[%s7459_s1 + $0xd08] ss:$12 sps:$4 sm:$0xff]  }
 0x191   : > { %v7298_v27 = vadd.f32 %v1812_v25, %v7185_v43  ;;  %5272 = vmatpush3.bf16.msra.mxu1 %v5868_v20  ;;  %v5178_v28 = vpop.f32.mrf.mxu0  ;;  %3883 = vmatprep.subr.bf16.mxu0 %v5871_v21  ;;  %v5879_v43 = vld [vmem:[%s7459_s1 + $0xc60] ss:$12 sps:$4 sm:$0xff]   ;;  %v5921_v20 = vld [vmem:[%s7459_s1 + $0xcf0] ss:$12 sps:$4 sm:$0xff]  }
 0x192   : > { %v1814_v32 = vpop.f32.mrf.mxu1  ;;  %v5179_v33 = vadd.f32 %v5178_v28, %v5177_v24  ;;  %5273 = vmatprep.subr.bf16.mxu1 %v5872_v59  ;;  %3954 = vmatprep.mubr.bf16.mxu1 %v3622_v22  ;;  %v5923_v19 = vld [vmem:[%s7459_s1 + $0xcf4] ss:$12 sps:$4 sm:$0xff]   ;;  %v5926_v21 = vld [vmem:[%s7459_s1 + $0xcdc] ss:$12 sps:$4 sm:$0xff]   ;;  %v5924_v59 = vld [vmem:[%s7459_s1 + $0xcd8] ss:$12 sps:$4 sm:$0xff]  }
 0x193   : > { %v7310_v35 = vadd.f32 %v1814_v32, %v7198_v23  ;;  %v5180_v36 = vpop.f32.mrf.mxu0  ;;  %3913 = vmatprep.mubr.bf16.mxu0 %v3622_v22  ;;  %v5888_v23 = vld [vmem:[%s7459_s1 + $0xc50] ss:$12 sps:$4 sm:$0xff]   ;;  %v5927_v24 = vld [vmem:[%s7459_s1 + $0xcc0] ss:$12 sps:$4 sm:$0xff]  }
 0x194   : > { %v7313_v37 = vadd.f32 %v5179_v33, %v7100_v12  ;;  %3884 = vmatpush1.bf16.msra.mxu0 %v5869_v26  ;;  %v1816_v38 = vpop.f32.mrf.mxu1  ;;  %v5882_v12 = vld [vmem:[%s7459_s1 + $0xd28] ss:$12 sps:$4 sm:$0xff]   ;;  %v5929_v22 = vld [vmem:[%s7459_s1 + $0xcc4] ss:$12 sps:$4 sm:$0xff]  }
 0x195   : > { %5274 = vmatpush3.bf16.msra.mxu1 %v5873_v29  ;;  %v5181_v39 = vpop.f32.mrf.mxu0  ;;  %3885 = vmatprep.subr.bf16.mxu0 %v5876_v31 }
 0x196   : > { %5275 = vmatprep.subr.bf16.mxu1 %v5877_v34  ;;  %v1817_v42 = vpop.f32.mrf.mxu1 }
 0x198   : > { %3886 = vmatpush1.bf16.msra.mxu0 %v5874_v8 }
 0x199   : > { %5276 = vmatpush3.bf16.msra.mxu1 %v5878_v40  ;;  %3887 = vmatprep.subr.bf16.mxu0 %v5881_v41 }
 0x19a   : > { %5277 = vmatprep.subr.bf16.mxu1 %v5882_v12 }
 0x19c   : > { %3888 = vmatpush1.bf16.msra.mxu0 %v5879_v43 }
 0x19d   : > { %5278 = vmatpush3.bf16.msra.mxu1 %v5883_v44  ;;  %3889 = vmatprep.subr.bf16.mxu0 %v5886_v45 }
 0x19e   : > { %5279 = vmatprep.subr.bf16.mxu1 %v5887_v46 }
 0x1a0   : > { %3890 = vmatpush1.bf16.msra.mxu0 %v5884_v47 }
 0x1a1   : > { %5280 = vmatpush3.bf16.msra.mxu1 %v5888_v23  ;;  %3891 = vmatprep.subr.bf16.mxu0 %v5891_v48 }
 0x1a2   : > { %5281 = vmatprep.subr.bf16.mxu1 %v5892_v49 }
 0x1a4   : > { %3892 = vmatpush1.bf16.msra.mxu0 %v5889_v50 }
 0x1a5   : > { %5282 = vmatpush3.bf16.msra.mxu1 %v5893_v52  ;;  %3893 = vmatprep.subr.bf16.mxu0 %v5896_v30 }
 0x1a6   : > { %5283 = vmatprep.subr.bf16.mxu1 %v5897_v53 }
 0x1a8   : > { %3894 = vmatpush1.bf16.msra.mxu0 %v5894_v54 }
 0x1a9   : > { %5284 = vmatpush3.bf16.msra.mxu1 %v5898_v56  ;;  %3895 = vmatprep.subr.bf16.mxu0 %v5901_v57 }
 0x1aa   : > { %5285 = vmatprep.subr.bf16.mxu1 %v5902_v58 }
 0x1ac   : > { %3896 = vmatpush1.bf16.msra.mxu0 %v5899_v60 }
 0x1ad   : > { %5286 = vmatpush3.bf16.msra.mxu1 %v5903_v0  ;;  %3897 = vmatprep.subr.bf16.mxu0 %v5908_v61  ;;  %v3977_v61 = vsub.s32 2, %v3968_v63 }
 0x1b0   : > { %v5199_v4 = vpop.f32.mrf.mxu1  ;;  %3955 = vmatmul.mubr.bf16.vlgmr.msra.gmra.mxu1 %v3615_v2  ;;  %3898 = vmatpush2.bf16.msra.mxu0 %v5906_v1 }
 0x1b1   : > { %3899 = vmatprep.subr.bf16.mxu0 %v5911_v3 }
 0x1b2   : > { %v5200_v7 = vpop.f32.mrf.mxu1 }
 0x1b3   : > { %v5201_v9 = vadd.f32 %v5200_v7, %v5199_v4 }
 0x1b4   : > { %3900 = vmatpush2.bf16.msra.mxu0 %v5909_v5  ;;  %v5202_v11 = vpop.f32.mrf.mxu1 }
 0x1b5   : > { %v2277_v13 = vadd.f32 %v5201_v9, %v7313_v37  ;;  %3901 = vmatprep.subr.bf16.mxu0 %v5914_v6 }
 0x1b6   : > { %v5203_v15 = vpop.f32.mrf.mxu1 }
 0x1b7   : > { %v3973_v15 = vsub.s32 1, %v3968_v63 }
 0x1b8   : > { %3902 = vmatpush2.bf16.msra.mxu0 %v5912_v10 }
 0x1b9   : > { %3903 = vmatprep.subr.bf16.mxu0 %v5917_v14  ;;  %v3969_v14 = vsub.s32 0, %v3968_v63 }
 0x1bc   : > { %3904 = vmatpush2.bf16.msra.mxu0 %v5915_v16 }
 0x1bd   : > { %3905 = vmatprep.subr.bf16.mxu0 %v5920_v17 }
 0x1c0   : > { %3906 = vmatpush2.bf16.msra.mxu0 %v5918_v18 }
 0x1c1   : > { %3907 = vmatprep.subr.bf16.mxu0 %v5923_v19 }
 0x1c4   : > { %3908 = vmatpush2.bf16.msra.mxu0 %v5921_v20 }
 0x1c5   : > { %3909 = vmatprep.subr.bf16.mxu0 %v5926_v21 }
 0x1c8   : > { %3910 = vmatpush2.bf16.msra.mxu0 %v5924_v59 }
 0x1c9   : > { %3911 = vmatprep.subr.bf16.mxu0 %v5929_v22 }
 0x1cc   : > { %3912 = vmatpush2.bf16.msra.mxu0 %v5927_v24 }
 0x1cf   : > { %v2228_v25 = vpop.f32.mrf.mxu0  ;;  %3914 = vmatmul.mubr.bf16.vlgmr.msra.gmra.mxu0 %v3615_v2  ;;  %v3965_v2 = vld [vmem:[%s7460_s2] sm:$0x7] }
 0x1d0   : > { %v2275_v26 = vadd.f32 %v2228_v25, %v7298_v27  ;;  %v3978_v6 = vrot.slane %v3965_v2, %v3977_v61  ;;  %v3970_v17 = vrot.slane %v3965_v2, %v3969_v14  ;;  %v3974_v21 = vrot.slane %v3965_v2, %v3973_v15 }
 0x1d1   : > { %v2230_v28 = vpop.f32.mrf.mxu0 }
 0x1d2   : > { %v2276_v29 = vadd.f32 %v2230_v28, %v7310_v35 }
 0x1d3   : > { %v2232_v31 = vpop.f32.mrf.mxu0 }
 0x1d5   : > { %v2233_v32 = vpop.f32.mrf.mxu0 }
 0x1ef   : > { %v5221_v33 = vpop.f32.mrf.mxu0 }
 0x1f0   : > { %v2655_v34 = vpop.f32.mrf.mxu1 }
 0x1f1   : > { %v2702_v36 = vadd.f32 %v2655_v34, %v2275_v26  ;;  %v5222_v37 = vpop.f32.mrf.mxu0 }
 0x1f2   : > { %v2657_v8 = vpop.f32.mrf.mxu1  ;;  %v5223_v38 = vadd.f32 %v5222_v37, %v5221_v33 }
 0x1f3   : > { %v2703_v39 = vadd.f32 %v2657_v8, %v2276_v29  ;;  %v5224_v40 = vpop.f32.mrf.mxu0 }
 0x1f4   : > { %v2704_v41 = vadd.f32 %v5223_v38, %v2277_v13  ;;  %v2659_v12 = vpop.f32.mrf.mxu1 }
 0x1f5   : > { %v5225_v42 = vpop.f32.mrf.mxu0 }
 0x1f6   : > { %v2660_v43 = vpop.f32.mrf.mxu1 }
 0x210   : > { %v5243_v44 = vpop.f32.mrf.mxu1 }
 0x212   : > { %v5244_v45 = vpop.f32.mrf.mxu1 }
 0x213   : > { %v5245_v27 = vadd.f32 %v5244_v45, %v5243_v44 }
 0x214   : > { %v5246_v46 = vpop.f32.mrf.mxu1 }
 0x215   : > { %v3121_v47 = vadd.f32 %v5245_v27, %v2704_v41 }
 0x216   : > { %v5247_v35 = vpop.f32.mrf.mxu1 }
 0x22f   : > { %v3072_v23 = vpop.f32.mrf.mxu0 }
 0x230   : > { %v3119_v48 = vadd.f32 %v3072_v23, %v2702_v36 }
 0x231   : > { %v3074_v49 = vpop.f32.mrf.mxu0 }
 0x232   : > { %v3120_v50 = vadd.f32 %v3074_v49, %v2703_v39 }
 0x233   : > { %v3076_v51 = vpop.f32.mrf.mxu0 }
 0x235   : > { %v3077_v52 = vpop.f32.mrf.mxu0 }
 0x24f   : > { %v5265_v30 = vpop.f32.mrf.mxu0 }
 0x250   : > { %v3488_v53 = vpop.f32.mrf.mxu1 }
 0x251   : > { %v5266_v54 = vpop.f32.mrf.mxu0  ;;  %v3535_v16 = vadd.f32 %v3488_v53, %v3119_v48 }
 0x252   : > { %v3490_v55 = vpop.f32.mrf.mxu1  ;;  %v5267_v0 = vadd.f32 %v5266_v54, %v5265_v30 }
 0x253   : > { %v5268_v56 = vpop.f32.mrf.mxu0  ;;  %v3536_v19 = vadd.f32 %v3490_v55, %v3120_v50 }
 0x254   : > { %v3492_v57 = vpop.f32.mrf.mxu1  ;;  %v3537_v4 = vadd.f32 %v5267_v0, %v3121_v47 }
 0x255   : > { %v5269_v58 = vpop.f32.mrf.mxu0 }
 0x256   : > { %v3493_v60 = vpop.f32.mrf.mxu1 }
 0x270   : > { %v5287_v1 = vpop.f32.mrf.mxu1 }
 0x272   : > { %v5288_v3 = vpop.f32.mrf.mxu1 }
 0x273   : > { %v5289_v5 = vadd.f32 %v5288_v3, %v5287_v1 }
 0x274   : > { %v5290_v7 = vpop.f32.mrf.mxu1 }
 0x275   : > { %v3964_v9 = vadd.f32 %v5289_v5, %v3537_v4 }
 0x276   : > { %v5291_v10 = vpop.f32.mrf.mxu1 }
 0x277   : > { %v3984_v11 = vadd.f32 %v3978_v6, %v3964_v9 }
 0x279   : > { %v3987_v13 = vmax.f32 %v3984_v11, 0.0 }
 0x27b   : > { %3993 = vst [vmem:[%s192_s12 + $0x8] sm:$0xf] %v3987_v13 }
 0x28f   : > { %v3915_v18 = vpop.f32.mrf.mxu0 }
 0x290   : > { %v3962_v20 = vadd.f32 %v3915_v18, %v3535_v16 }
 0x291   : > { %v3917_v59 = vpop.f32.mrf.mxu0 }
 0x292   : > { %v3982_v22 = vadd.f32 %v3970_v17, %v3962_v20  ;;  %v3963_v24 = vadd.f32 %v3917_v59, %v3536_v19 }
 0x293   : > { %v3919_v25 = vpop.f32.mrf.mxu0 }
 0x294   : > { %v3983_v26 = vadd.f32 %v3974_v21, %v3963_v24  ;;  %v3985_v29 = vmax.f32 %v3982_v22, 0.0 }
 0x295   : > { %v3920_v28 = vpop.f32.mrf.mxu0 }
 0x296   : > { %v3986_v31 = vmax.f32 %v3983_v26, 0.0 }
 0x298   : > { %v3990_v32 = vcombine.low %v3985_v29, %v3986_v31 }
 0x29a   : > { %3992 = vst [vmem:[%s192_s12] sm:$0xff] %v3990_v32 }
 0x29b PF: > { %s13_s16 = sadd.s32 1, %s5968_s16   ;;  %s7462_s12 = smov %s5960_s14 }
 0x29c   : > { %p10_p7 = scmp.ge.s32.totalorder %s13_s16, 10   ;;  %s7463_s13 = smov %s5964_s15 }
 0x29d   : > { %s7464_s14 = smov %s7467_s17  ;;  %s7465_s15 = smov %s7471_s18 }
 0x29e   :  { %12 = sbr.rel (!%p10_p7) target bundleno = 3 (0x3), region = 76 }

</bundles_post_ra>
